<compile_context>
chip_gen: v5e
topology: v5e:2x2
jax: 0.10.0
libtpu: 0.0.40
codegen_flags: <defaults>
</compile_context>

<pallas_src>
import functools
import math

import jax
import jax.numpy as jnp
from jax.experimental import pallas as pl
from jax.experimental.pallas import tpu as pltpu


# ----------------------------------------------------------------------------
# Fused Pallas kernel
# ----------------------------------------------------------------------------
def _sesp_fused_kernel(x_ref, w0_ref, b0_ref, w1_ref, b1_ref, w2_ref, b2_ref,
                       s0a_ref, s0b_ref, s1a_ref, s1b_ref, s2a_ref, s2b_ref,
                       out_ref,
                       pad1_ref, patch1_ref, pad2_ref, patch2_ref,
                       *, H, W):
    """One grid step == one image.

    x_ref    : (1, Cin, H*W)  input image, channel-major (free reshape of NCHW)
    w0_ref   : (C0, Cin)      1x1 conv weight, BN scale folded, transposed
    w1_ref   : (9*C0, C1)     3x3 conv weight, im2col layout, BN scale folded
    w2_ref   : (9*C1, C2)     3x3 conv weight, im2col layout, BN scale folded
    b*_ref   : (1, C*)        folded BN bias
    s*a/s*b  : SE FC weights  (C, C//r) / (C//r, C)
    out_ref  : (1, Ctot, H*W) concat result, channel-major (== NCHW flat)
    pad*_ref : (H+2, W+16, C) zero-filled halo scratch (interior at col 8)
    patch*_ref: (H*W, 9*C)    im2col patch buffer
    """
    HW = H * W
    C0 = w0_ref.shape[0]
    C1 = w1_ref.shape[1]
    C2 = w2_ref.shape[1]

    def se(feat, wa_ref, wb_ref):
        # SELayer: global avg pool -> FC -> ReLU -> FC -> sigmoid -> rescale.
        m = jnp.mean(feat, axis=0, keepdims=True)                        # (1,C)
        h = jnp.maximum(
            jnp.dot(m, wa_ref[...], preferred_element_type=jnp.float32), 0.0)
        z = jnp.dot(h, wb_ref[...], preferred_element_type=jnp.float32)
        return feat * (1.0 / (1.0 + jnp.exp(-z)))                        # (HW,C)

    def conv3x3(feat, c_in, pad_ref, patch_ref, wm_ref, b_ref):
        # feat: (HW, c_in). 3x3 / stride 1 / pad 1 conv as a single im2col dot.
        # Interior lives at columns [8, 8+W) so the store is sublane-aligned;
        # halo rows/cols stay zero from the memset.
        pad_ref[...] = jnp.zeros(pad_ref.shape, jnp.float32)
        pad_ref[1:H + 1, 8:8 + W, :] = feat.reshape(H, W, c_in)
        for kh in range(3):
            for kw in range(3):
                t = kh * 3 + kw
                patch_ref[:, t * c_in:(t + 1) * c_in] = (
                    pad_ref[kh:kh + H, 7 + kw:7 + kw + W, :].reshape(HW, c_in))
        y = jnp.dot(patch_ref[...], wm_ref[...],
                    preferred_element_type=jnp.float32)                  # (HW,Cout)
        return jnp.maximum(y + b_ref[...], 0.0)

    # --- conv0: 1x1 conv (+ folded BN) + ReLU --------------------------------
    out1 = jnp.maximum(
        jnp.dot(w0_ref[...], x_ref[0],
                preferred_element_type=jnp.float32).T + b0_ref[...], 0.0)
    se0 = se(out1, s0a_ref, s0b_ref)                                     # (HW,C0)

    # conv1 / conv2 consume the *un-gated* activations (matches PyTorch forward).
    out2 = conv3x3(out1, C0, pad1_ref, patch1_ref, w1_ref, b1_ref)       # (HW,C1)
    se1 = se(out2, s1a_ref, s1b_ref)

    out3 = conv3x3(out2, C1, pad2_ref, patch2_ref, w2_ref, b2_ref)       # (HW,C2)
    se2 = se(out3, s2a_ref, s2b_ref)

    # Channel concat, stored channel-major: lane-dense (HW lanes) and directly
    # NCHW after a free reshape in the wrapper.
    cat_t = jnp.concatenate([se0.T, se1.T, se2.T], axis=0)               # (Ctot,HW)
    out_ref[0] = cat_t.astype(out_ref.dtype)


# ----------------------------------------------------------------------------
# Wrapper: SESPCatBottleneck forward (stride=1, block_num=3). NCHW in / out.
# ----------------------------------------------------------------------------
def sesp_cat_bottleneck(x_nchw, params):
    N, Cin, H, W = x_nchw.shape
    HW = H * W

    def fold(w, scale):                 # fold eval-BN scale into conv weights
        return w * scale.reshape(1, 1, -1)          # w: (k*k, cin, cout)

    w0, sc0, b0 = params["conv0"]
    w1, sc1, b1 = params["conv1"]
    w2, sc2, b2 = params["conv2"]
    s0a, s0b = params["se0"]
    s1a, s1b = params["se1"]
    s2a, s2b = params["se2"]

    w0t = jnp.transpose(fold(w0, sc0)[0])             # (C0, Cin)
    w1m = fold(w1, sc1).reshape(-1, w1.shape[-1])     # (9*C0, C1)
    w2m = fold(w2, sc2).reshape(-1, w2.shape[-1])     # (9*C1, C2)

    C0, C1, C2 = w0t.shape[0], w1m.shape[1], w2m.shape[1]
    Ctot = C0 + C1 + C2

    x_flat = x_nchw.reshape(N, Cin, HW)               # free reshape of NCHW

    kern = functools.partial(_sesp_fused_kernel, H=H, W=W)
    full2d = lambda n: (0, 0)
    out = pl.pallas_call(
        kern,
        out_shape=jax.ShapeDtypeStruct((N, Ctot, HW), x_nchw.dtype),
        grid=(N,),
        in_specs=[
            pl.BlockSpec((1, Cin, HW), lambda n: (n, 0, 0)),
            pl.BlockSpec((C0, Cin), full2d),
            pl.BlockSpec((1, C0), full2d),
            pl.BlockSpec((9 * C0, C1), full2d),
            pl.BlockSpec((1, C1), full2d),
            pl.BlockSpec((9 * C1, C2), full2d),
            pl.BlockSpec((1, C2), full2d),
            pl.BlockSpec(s0a.shape, full2d),
            pl.BlockSpec(s0b.shape, full2d),
            pl.BlockSpec(s1a.shape, full2d),
            pl.BlockSpec(s1b.shape, full2d),
            pl.BlockSpec(s2a.shape, full2d),
            pl.BlockSpec(s2b.shape, full2d),
        ],
        out_specs=pl.BlockSpec((1, Ctot, HW), lambda n: (n, 0, 0)),
        scratch_shapes=[
            pltpu.VMEM((H + 2, W + 16, C0), jnp.float32),   # halo, conv1
            pltpu.VMEM((HW, 9 * C0), jnp.float32),          # im2col patches 1
            pltpu.VMEM((H + 2, W + 16, C1), jnp.float32),   # halo, conv2
            pltpu.VMEM((HW, 9 * C1), jnp.float32),          # im2col patches 2
        ],
        compiler_params=pltpu.CompilerParams(
            dimension_semantics=("parallel",)),
    )(x_flat, w0t, b0, w1m, b1, w2m, b2, s0a, s0b, s1a, s1b, s2a, s2b)

    # (N, Ctot, H*W) -> NCHW: contiguous reshape only, no transpose.
    return out.reshape(N, Ctot, H, W)


# ----------------------------------------------------------------------------
# Pure-JAX reference (for correctness check)
# ----------------------------------------------------------------------------
def _ref_conv_bn_relu(x, w_tap, scale, bias, k):
    cin, cout = w_tap.shape[1], w_tap.shape[2]
    w_hwio = w_tap.reshape(k, k, cin, cout)
    y = jax.lax.conv_general_dilated(
        x, w_hwio, window_strides=(1, 1),
        padding=[(k // 2, k // 2), (k // 2, k // 2)],
        dimension_numbers=("NHWC", "HWIO", "NHWC"))
    return jnp.maximum(y * scale.reshape(1, 1, 1, -1)
                       + bias.reshape(1, 1, 1, -1), 0.0)


def _ref_se(x, w1, w2):
    m = x.mean(axis=(1, 2))                    # (N, C)
    h = jnp.maximum(m @ w1, 0.0)
    g = jax.nn.sigmoid(h @ w2)
    return x * g[:, None, None, :]


def _ref_forward(x_nchw, params):
    x = jnp.transpose(x_nchw, (0, 2, 3, 1))
    out1 = _ref_conv_bn_relu(x, *params["conv0"], 1)
    se0 = _ref_se(out1, *params["se0"])
    out2 = _ref_conv_bn_relu(out1, *params["conv1"], 3)
    se1 = _ref_se(out2, *params["se1"])
    out3 = _ref_conv_bn_relu(out2, *params["conv2"], 3)
    se2 = _ref_se(out3, *params["se2"])
    out = jnp.concatenate([se0, se1, se2], axis=-1)
    return jnp.transpose(out, (0, 3, 1, 2))


# ----------------------------------------------------------------------------
# Deterministic parameter construction
# ----------------------------------------------------------------------------
def _make_conv_params(key, cin, cout, k):
    kw, kbn = jax.random.split(key)
    fan_in = cin * k * k
    w = jax.random.normal(kw, (k * k, cin, cout), jnp.float32) * math.sqrt(
        2.0 / fan_in)
    # eval-mode BatchNorm folded: scale = gamma/sqrt(var+eps), bias = beta - mean*scale
    k1, k2, k3, k4 = jax.random.split(kbn, 4)
    gamma = 1.0 + 0.1 * jax.random.normal(k1, (cout,), jnp.float32)
    beta = 0.05 * jax.random.normal(k2, (cout,), jnp.float32)
    mean = 0.1 * jax.random.normal(k3, (cout,), jnp.float32)
    var = 0.5 + jnp.abs(jax.random.normal(k4, (cout,), jnp.float32))
    scale = gamma / jnp.sqrt(var + 1e-5)
    bias = beta - mean * scale
    return (w, scale.reshape(1, cout), bias.reshape(1, cout))


def _make_se_params(key, c, reduction):
    cr = c // reduction
    k1, k2 = jax.random.split(key)
    w1 = jax.random.normal(k1, (c, cr), jnp.float32) * math.sqrt(1.0 / c)
    w2 = jax.random.normal(k2, (cr, c), jnp.float32) * math.sqrt(1.0 / cr)
    return (w1, w2)


def make_params(key, in_planes, out_planes, reduction):
    ks = jax.random.split(key, 6)
    return {
        # block_num=3, stride=1 channel plan (matches the PyTorch __init__):
        #   conv0: in -> out/2   (1x1)      se0: SE(out/2)
        #   conv1: out/2 -> out/4 (3x3)     se1: SE(out/4)
        #   conv2: out/4 -> out/4 (3x3)     se2: SE(out/4)
        "conv0": _make_conv_params(ks[0], in_planes, out_planes // 2, 1),
        "conv1": _make_conv_params(ks[1], out_planes // 2, out_planes // 4, 3),
        "conv2": _make_conv_params(ks[2], out_planes // 4, out_planes // 4, 3),
        "se0": _make_se_params(ks[3], out_planes // 2, reduction),
        "se1": _make_se_params(ks[4], out_planes // 4, reduction),
        "se2": _make_se_params(ks[5], out_planes // 4, reduction),
    }


# ----------------------------------------------------------------------------
if __name__ == "__main__":
    key = jax.random.PRNGKey(0)
    k_x, k_p = jax.random.split(key)

    in_planes, out_planes, reduction = 4, 32, 4
    N, H, W = 2, 16, 16

    x = jax.random.normal(k_x, (N, in_planes, H, W), jnp.float32)   # NCHW
    params = make_params(k_p, in_planes, out_planes, reduction)

    out = jax.jit(sesp_cat_bottleneck)(x, params)
    out = jax.block_until_ready(out)

    ref = _ref_forward(x, params)
    assert out.shape == (N, out_planes, H, W), out.shape
    assert jnp.allclose(out, ref, rtol=1e-4, atol=1e-4), float(
        jnp.max(jnp.abs(out - ref)))

    print("KERNEL_OK")
</pallas_src>

<mosaic_0001>
module attributes {stable_mosaic.version = 11 : i64} {
  func.func @_sesp_fused_kernel(%arg0: i32, %arg1: memref<1x4x256xf32, #tpu.memory_space<vmem>>, %arg2: memref<16x4xf32, #tpu.memory_space<vmem>>, %arg3: memref<1x16xf32, #tpu.memory_space<vmem>>, %arg4: memref<144x8xf32, #tpu.memory_space<vmem>>, %arg5: memref<1x8xf32, #tpu.memory_space<vmem>>, %arg6: memref<72x8xf32, #tpu.memory_space<vmem>>, %arg7: memref<1x8xf32, #tpu.memory_space<vmem>>, %arg8: memref<16x4xf32, #tpu.memory_space<vmem>>, %arg9: memref<4x16xf32, #tpu.memory_space<vmem>>, %arg10: memref<8x2xf32, #tpu.memory_space<vmem>>, %arg11: memref<2x8xf32, #tpu.memory_space<vmem>>, %arg12: memref<8x2xf32, #tpu.memory_space<vmem>>, %arg13: memref<2x8xf32, #tpu.memory_space<vmem>>, %arg14: memref<1x32x256xf32, #tpu.memory_space<vmem>>, %arg15: memref<18x32x16xf32, #tpu.memory_space<vmem>>, %arg16: memref<256x144xf32, #tpu.memory_space<vmem>>, %arg17: memref<18x32x8xf32, #tpu.memory_space<vmem>>, %arg18: memref<256x72xf32, #tpu.memory_space<vmem>>) attributes {dimension_semantics = [#tpu.dimension_semantics<parallel>], iteration_bounds = array<i64: 2>, scalar_prefetch = 0 : i64, scratch_operands = 4 : i64, tpu.core_type = #tpu.core_type<tc>, window_params = [{transform_indices = @transform_0, window_bounds = array<i64: 1, 4, 256>}, {pipeline_mode = #tpu.pipeline_mode<synchronous>, transform_indices = @transform_1, window_bounds = array<i64: 16, 4>}, {pipeline_mode = #tpu.pipeline_mode<synchronous>, transform_indices = @transform_2, window_bounds = array<i64: 1, 16>}, {pipeline_mode = #tpu.pipeline_mode<synchronous>, transform_indices = @transform_3, window_bounds = array<i64: 144, 8>}, {pipeline_mode = #tpu.pipeline_mode<synchronous>, transform_indices = @transform_4, window_bounds = array<i64: 1, 8>}, {pipeline_mode = #tpu.pipeline_mode<synchronous>, transform_indices = @transform_5, window_bounds = array<i64: 72, 8>}, {pipeline_mode = #tpu.pipeline_mode<synchronous>, transform_indices = @transform_6, window_bounds = array<i64: 1, 8>}, {pipeline_mode = #tpu.pipeline_mode<synchronous>, transform_indices = @transform_7, window_bounds = array<i64: 16, 4>}, {pipeline_mode = #tpu.pipeline_mode<synchronous>, transform_indices = @transform_8, window_bounds = array<i64: 4, 16>}, {pipeline_mode = #tpu.pipeline_mode<synchronous>, transform_indices = @transform_9, window_bounds = array<i64: 8, 2>}, {pipeline_mode = #tpu.pipeline_mode<synchronous>, transform_indices = @transform_10, window_bounds = array<i64: 2, 8>}, {pipeline_mode = #tpu.pipeline_mode<synchronous>, transform_indices = @transform_11, window_bounds = array<i64: 8, 2>}, {pipeline_mode = #tpu.pipeline_mode<synchronous>, transform_indices = @transform_12, window_bounds = array<i64: 2, 8>}, {transform_indices = @transform_13, window_bounds = array<i64: 1, 32, 256>}]} {
    %c0 = arith.constant 0 : index
    %c0_0 = arith.constant 0 : index
    %0 = vector.load %arg2[%c0, %c0_0] : memref<16x4xf32, #tpu.memory_space<vmem>>, vector<16x4xf32>
    %c0_1 = arith.constant 0 : index
    %c0_2 = arith.constant 0 : index
    %c0_3 = arith.constant 0 : index
    %1 = vector.load %arg1[%c0_1, %c0_2, %c0_3] : memref<1x4x256xf32, #tpu.memory_space<vmem>>, vector<1x4x256xf32>
    %2 = vector.shape_cast %1 : vector<1x4x256xf32> to vector<4x256xf32>
    %cst = arith.constant dense<0.000000e+00> : vector<16x256xf32>
    %3 = tpu.matmul %0, %2, %cst {dimension_numbers = #tpu.dot_dimension_numbers<[1], [0], [0], [1], [0, 0, 1, 1], [], []>} : vector<16x4xf32>, vector<4x256xf32>, vector<16x256xf32> -> vector<16x256xf32>
    %4 = tpu.transpose %3, [1, 0] : vector<16x256xf32> -> vector<256x16xf32>
    %c0_4 = arith.constant 0 : index
    %c0_5 = arith.constant 0 : index
    %5 = vector.load %arg3[%c0_4, %c0_5] : memref<1x16xf32, #tpu.memory_space<vmem>>, vector<1x16xf32>
    %6 = vector.broadcast %5 : vector<1x16xf32> to vector<256x16xf32>
    %7 = arith.addf %4, %6 : vector<256x16xf32>
    %cst_6 = arith.constant 0.000000e+00 : f32
    %8 = vector.broadcast %cst_6 : f32 to vector<256x16xf32>
    %9 = arith.maximumf %7, %8 : vector<256x16xf32>
    %cst_7 = arith.constant dense<0.000000e+00> : vector<16xf32>
    %10 = vector.multi_reduction <add>, %9, %cst_7 [0] : vector<256x16xf32> to vector<16xf32>
    %11 = vector.shape_cast %10 : vector<16xf32> to vector<1x16xf32>
    %cst_8 = arith.constant 2.560000e+02 : f32
    %12 = vector.broadcast %cst_8 : f32 to vector<1x16xf32>
    %13 = arith.divf %11, %12 : vector<1x16xf32>
    %c0_9 = arith.constant 0 : index
    %c0_10 = arith.constant 0 : index
    %14 = vector.load %arg8[%c0_9, %c0_10] : memref<16x4xf32, #tpu.memory_space<vmem>>, vector<16x4xf32>
    %cst_11 = arith.constant dense<0.000000e+00> : vector<1x4xf32>
    %15 = tpu.matmul %13, %14, %cst_11 {dimension_numbers = #tpu.dot_dimension_numbers<[1], [0], [0], [1], [0, 0, 1, 1], [], []>} : vector<1x16xf32>, vector<16x4xf32>, vector<1x4xf32> -> vector<1x4xf32>
    %cst_12 = arith.constant 0.000000e+00 : f32
    %16 = vector.broadcast %cst_12 : f32 to vector<1x4xf32>
    %17 = arith.maximumf %15, %16 : vector<1x4xf32>
    %c0_13 = arith.constant 0 : index
    %c0_14 = arith.constant 0 : index
    %18 = vector.load %arg9[%c0_13, %c0_14] : memref<4x16xf32, #tpu.memory_space<vmem>>, vector<4x16xf32>
    %cst_15 = arith.constant dense<0.000000e+00> : vector<1x16xf32>
    %19 = tpu.matmul %17, %18, %cst_15 {dimension_numbers = #tpu.dot_dimension_numbers<[1], [0], [0], [1], [0, 0, 1, 1], [], []>} : vector<1x4xf32>, vector<4x16xf32>, vector<1x16xf32> -> vector<1x16xf32>
    %cst_16 = arith.constant 0.000000e+00 : f32
    %20 = vector.broadcast %cst_16 : f32 to vector<1x16xf32>
    %21 = arith.subf %20, %19 : vector<1x16xf32>
    %22 = math.exp %21 : vector<1x16xf32>
    %cst_17 = arith.constant 1.000000e+00 : f32
    %23 = vector.broadcast %cst_17 : f32 to vector<1x16xf32>
    %24 = arith.addf %23, %22 : vector<1x16xf32>
    %cst_18 = arith.constant 1.000000e+00 : f32
    %25 = vector.broadcast %cst_18 : f32 to vector<1x16xf32>
    %26 = arith.divf %25, %24 : vector<1x16xf32>
    %27 = vector.broadcast %26 : vector<1x16xf32> to vector<256x16xf32>
    %28 = arith.mulf %9, %27 : vector<256x16xf32>
    %cst_19 = arith.constant 0.000000e+00 : f32
    %29 = vector.broadcast %cst_19 : f32 to vector<18x32x16xf32>
    %c0_20 = arith.constant 0 : index
    %c0_21 = arith.constant 0 : index
    %c0_22 = arith.constant 0 : index
    %30 = vector.load %arg15[%c0_20, %c0_21, %c0_22] : memref<18x32x16xf32, #tpu.memory_space<vmem>>, vector<18x32x16xf32>
    tpu.vector_store %arg15[%c0_20, %c0_21, %c0_22], %29 {strides = array<i32>} : memref<18x32x16xf32, #tpu.memory_space<vmem>>, vector<18x32x16xf32>,
    %31 = vector.shape_cast %9 : vector<256x16xf32> to vector<16x16x16xf32>
    %c1 = arith.constant 1 : index
    %c8 = arith.constant 8 : index
    %c0_23 = arith.constant 0 : index
    %32 = vector.load %arg15[%c1, %c8, %c0_23] : memref<18x32x16xf32, #tpu.memory_space<vmem>>, vector<16x16x16xf32>
    tpu.vector_store %arg15[%c1, %c8, %c0_23], %31 {strides = array<i32>} : memref<18x32x16xf32, #tpu.memory_space<vmem>>, vector<16x16x16xf32>,
    %c0_24 = arith.constant 0 : index
    %c7 = arith.constant 7 : index
    %c0_25 = arith.constant 0 : index
    %33 = vector.load %arg15[%c0_24, %c7, %c0_25] : memref<18x32x16xf32, #tpu.memory_space<vmem>>, vector<16x16x16xf32>
    %34 = vector.shape_cast %33 : vector<16x16x16xf32> to vector<256x16xf32>
    %c0_26 = arith.constant 0 : index
    %c0_27 = arith.constant 0 : index
    %35 = vector.load %arg16[%c0_26, %c0_27] : memref<256x144xf32, #tpu.memory_space<vmem>>, vector<256x16xf32>
    tpu.vector_store %arg16[%c0_26, %c0_27], %34 {strides = array<i32>} : memref<256x144xf32, #tpu.memory_space<vmem>>, vector<256x16xf32>,
    %c0_28 = arith.constant 0 : index
    %c8_29 = arith.constant 8 : index
    %c0_30 = arith.constant 0 : index
    %36 = vector.load %arg15[%c0_28, %c8_29, %c0_30] : memref<18x32x16xf32, #tpu.memory_space<vmem>>, vector<16x16x16xf32>
    %37 = vector.shape_cast %36 : vector<16x16x16xf32> to vector<256x16xf32>
    %c0_31 = arith.constant 0 : index
    %c16 = arith.constant 16 : index
    %38 = vector.load %arg16[%c0_31, %c16] : memref<256x144xf32, #tpu.memory_space<vmem>>, vector<256x16xf32>
    tpu.vector_store %arg16[%c0_31, %c16], %37 {strides = array<i32>} : memref<256x144xf32, #tpu.memory_space<vmem>>, vector<256x16xf32>,
    %c0_32 = arith.constant 0 : index
    %c9 = arith.constant 9 : index
    %c0_33 = arith.constant 0 : index
    %39 = vector.load %arg15[%c0_32, %c9, %c0_33] : memref<18x32x16xf32, #tpu.memory_space<vmem>>, vector<16x16x16xf32>
    %40 = vector.shape_cast %39 : vector<16x16x16xf32> to vector<256x16xf32>
    %c0_34 = arith.constant 0 : index
    %c32 = arith.constant 32 : index
    %41 = vector.load %arg16[%c0_34, %c32] : memref<256x144xf32, #tpu.memory_space<vmem>>, vector<256x16xf32>
    tpu.vector_store %arg16[%c0_34, %c32], %40 {strides = array<i32>} : memref<256x144xf32, #tpu.memory_space<vmem>>, vector<256x16xf32>,
    %c1_35 = arith.constant 1 : index
    %c7_36 = arith.constant 7 : index
    %c0_37 = arith.constant 0 : index
    %42 = vector.load %arg15[%c1_35, %c7_36, %c0_37] : memref<18x32x16xf32, #tpu.memory_space<vmem>>, vector<16x16x16xf32>
    %43 = vector.shape_cast %42 : vector<16x16x16xf32> to vector<256x16xf32>
    %c0_38 = arith.constant 0 : index
    %c48 = arith.constant 48 : index
    %44 = vector.load %arg16[%c0_38, %c48] : memref<256x144xf32, #tpu.memory_space<vmem>>, vector<256x16xf32>
    tpu.vector_store %arg16[%c0_38, %c48], %43 {strides = array<i32>} : memref<256x144xf32, #tpu.memory_space<vmem>>, vector<256x16xf32>,
    %c1_39 = arith.constant 1 : index
    %c8_40 = arith.constant 8 : index
    %c0_41 = arith.constant 0 : index
    %45 = vector.load %arg15[%c1_39, %c8_40, %c0_41] : memref<18x32x16xf32, #tpu.memory_space<vmem>>, vector<16x16x16xf32>
    %46 = vector.shape_cast %45 : vector<16x16x16xf32> to vector<256x16xf32>
    %c0_42 = arith.constant 0 : index
    %c64 = arith.constant 64 : index
    %47 = vector.load %arg16[%c0_42, %c64] : memref<256x144xf32, #tpu.memory_space<vmem>>, vector<256x16xf32>
    tpu.vector_store %arg16[%c0_42, %c64], %46 {strides = array<i32>} : memref<256x144xf32, #tpu.memory_space<vmem>>, vector<256x16xf32>,
    %c1_43 = arith.constant 1 : index
    %c9_44 = arith.constant 9 : index
    %c0_45 = arith.constant 0 : index
    %48 = vector.load %arg15[%c1_43, %c9_44, %c0_45] : memref<18x32x16xf32, #tpu.memory_space<vmem>>, vector<16x16x16xf32>
    %49 = vector.shape_cast %48 : vector<16x16x16xf32> to vector<256x16xf32>
    %c0_46 = arith.constant 0 : index
    %c80 = arith.constant 80 : index
    %50 = vector.load %arg16[%c0_46, %c80] : memref<256x144xf32, #tpu.memory_space<vmem>>, vector<256x16xf32>
    tpu.vector_store %arg16[%c0_46, %c80], %49 {strides = array<i32>} : memref<256x144xf32, #tpu.memory_space<vmem>>, vector<256x16xf32>,
    %c2 = arith.constant 2 : index
    %c7_47 = arith.constant 7 : index
    %c0_48 = arith.constant 0 : index
    %51 = vector.load %arg15[%c2, %c7_47, %c0_48] : memref<18x32x16xf32, #tpu.memory_space<vmem>>, vector<16x16x16xf32>
    %52 = vector.shape_cast %51 : vector<16x16x16xf32> to vector<256x16xf32>
    %c0_49 = arith.constant 0 : index
    %c96 = arith.constant 96 : index
    %53 = vector.load %arg16[%c0_49, %c96] : memref<256x144xf32, #tpu.memory_space<vmem>>, vector<256x16xf32>
    tpu.vector_store %arg16[%c0_49, %c96], %52 {strides = array<i32>} : memref<256x144xf32, #tpu.memory_space<vmem>>, vector<256x16xf32>,
    %c2_50 = arith.constant 2 : index
    %c8_51 = arith.constant 8 : index
    %c0_52 = arith.constant 0 : index
    %54 = vector.load %arg15[%c2_50, %c8_51, %c0_52] : memref<18x32x16xf32, #tpu.memory_space<vmem>>, vector<16x16x16xf32>
    %55 = vector.shape_cast %54 : vector<16x16x16xf32> to vector<256x16xf32>
    %c0_53 = arith.constant 0 : index
    %c112 = arith.constant 112 : index
    %56 = vector.load %arg16[%c0_53, %c112] : memref<256x144xf32, #tpu.memory_space<vmem>>, vector<256x16xf32>
    tpu.vector_store %arg16[%c0_53, %c112], %55 {strides = array<i32>} : memref<256x144xf32, #tpu.memory_space<vmem>>, vector<256x16xf32>,
    %c2_54 = arith.constant 2 : index
    %c9_55 = arith.constant 9 : index
    %c0_56 = arith.constant 0 : index
    %57 = vector.load %arg15[%c2_54, %c9_55, %c0_56] : memref<18x32x16xf32, #tpu.memory_space<vmem>>, vector<16x16x16xf32>
    %58 = vector.shape_cast %57 : vector<16x16x16xf32> to vector<256x16xf32>
    %c0_57 = arith.constant 0 : index
    %c128 = arith.constant 128 : index
    %59 = vector.load %arg16[%c0_57, %c128] : memref<256x144xf32, #tpu.memory_space<vmem>>, vector<256x16xf32>
    tpu.vector_store %arg16[%c0_57, %c128], %58 {strides = array<i32>} : memref<256x144xf32, #tpu.memory_space<vmem>>, vector<256x16xf32>,
    %c0_58 = arith.constant 0 : index
    %c0_59 = arith.constant 0 : index
    %60 = vector.load %arg16[%c0_58, %c0_59] : memref<256x144xf32, #tpu.memory_space<vmem>>, vector<256x144xf32>
    %c0_60 = arith.constant 0 : index
    %c0_61 = arith.constant 0 : index
    %61 = vector.load %arg4[%c0_60, %c0_61] : memref<144x8xf32, #tpu.memory_space<vmem>>, vector<144x8xf32>
    %cst_62 = arith.constant dense<0.000000e+00> : vector<256x8xf32>
    %62 = tpu.matmul %60, %61, %cst_62 {dimension_numbers = #tpu.dot_dimension_numbers<[1], [0], [0], [1], [0, 0, 1, 1], [], []>} : vector<256x144xf32>, vector<144x8xf32>, vector<256x8xf32> -> vector<256x8xf32>
    %c0_63 = arith.constant 0 : index
    %c0_64 = arith.constant 0 : index
    %63 = vector.load %arg5[%c0_63, %c0_64] : memref<1x8xf32, #tpu.memory_space<vmem>>, vector<1x8xf32>
    %64 = vector.broadcast %63 : vector<1x8xf32> to vector<256x8xf32>
    %65 = arith.addf %62, %64 : vector<256x8xf32>
    %cst_65 = arith.constant 0.000000e+00 : f32
    %66 = vector.broadcast %cst_65 : f32 to vector<256x8xf32>
    %67 = arith.maximumf %65, %66 : vector<256x8xf32>
    %cst_66 = arith.constant dense<0.000000e+00> : vector<8xf32>
    %68 = vector.multi_reduction <add>, %67, %cst_66 [0] : vector<256x8xf32> to vector<8xf32>
    %69 = vector.shape_cast %68 : vector<8xf32> to vector<1x8xf32>
    %cst_67 = arith.constant 2.560000e+02 : f32
    %70 = vector.broadcast %cst_67 : f32 to vector<1x8xf32>
    %71 = arith.divf %69, %70 : vector<1x8xf32>
    %c0_68 = arith.constant 0 : index
    %c0_69 = arith.constant 0 : index
    %72 = vector.load %arg10[%c0_68, %c0_69] : memref<8x2xf32, #tpu.memory_space<vmem>>, vector<8x2xf32>
    %cst_70 = arith.constant dense<0.000000e+00> : vector<1x2xf32>
    %73 = tpu.matmul %71, %72, %cst_70 {dimension_numbers = #tpu.dot_dimension_numbers<[1], [0], [0], [1], [0, 0, 1, 1], [], []>} : vector<1x8xf32>, vector<8x2xf32>, vector<1x2xf32> -> vector<1x2xf32>
    %cst_71 = arith.constant 0.000000e+00 : f32
    %74 = vector.broadcast %cst_71 : f32 to vector<1x2xf32>
    %75 = arith.maximumf %73, %74 : vector<1x2xf32>
    %c0_72 = arith.constant 0 : index
    %c0_73 = arith.constant 0 : index
    %76 = vector.load %arg11[%c0_72, %c0_73] : memref<2x8xf32, #tpu.memory_space<vmem>>, vector<2x8xf32>
    %cst_74 = arith.constant dense<0.000000e+00> : vector<1x8xf32>
    %77 = tpu.matmul %75, %76, %cst_74 {dimension_numbers = #tpu.dot_dimension_numbers<[1], [0], [0], [1], [0, 0, 1, 1], [], []>} : vector<1x2xf32>, vector<2x8xf32>, vector<1x8xf32> -> vector<1x8xf32>
    %cst_75 = arith.constant 0.000000e+00 : f32
    %78 = vector.broadcast %cst_75 : f32 to vector<1x8xf32>
    %79 = arith.subf %78, %77 : vector<1x8xf32>
    %80 = math.exp %79 : vector<1x8xf32>
    %cst_76 = arith.constant 1.000000e+00 : f32
    %81 = vector.broadcast %cst_76 : f32 to vector<1x8xf32>
    %82 = arith.addf %81, %80 : vector<1x8xf32>
    %cst_77 = arith.constant 1.000000e+00 : f32
    %83 = vector.broadcast %cst_77 : f32 to vector<1x8xf32>
    %84 = arith.divf %83, %82 : vector<1x8xf32>
    %85 = vector.broadcast %84 : vector<1x8xf32> to vector<256x8xf32>
    %86 = arith.mulf %67, %85 : vector<256x8xf32>
    %cst_78 = arith.constant 0.000000e+00 : f32
    %87 = vector.broadcast %cst_78 : f32 to vector<18x32x8xf32>
    %c0_79 = arith.constant 0 : index
    %c0_80 = arith.constant 0 : index
    %c0_81 = arith.constant 0 : index
    %88 = vector.load %arg17[%c0_79, %c0_80, %c0_81] : memref<18x32x8xf32, #tpu.memory_space<vmem>>, vector<18x32x8xf32>
    tpu.vector_store %arg17[%c0_79, %c0_80, %c0_81], %87 {strides = array<i32>} : memref<18x32x8xf32, #tpu.memory_space<vmem>>, vector<18x32x8xf32>,
    %89 = vector.shape_cast %67 : vector<256x8xf32> to vector<16x16x8xf32>
    %c1_82 = arith.constant 1 : index
    %c8_83 = arith.constant 8 : index
    %c0_84 = arith.constant 0 : index
    %90 = vector.load %arg17[%c1_82, %c8_83, %c0_84] : memref<18x32x8xf32, #tpu.memory_space<vmem>>, vector<16x16x8xf32>
    tpu.vector_store %arg17[%c1_82, %c8_83, %c0_84], %89 {strides = array<i32>} : memref<18x32x8xf32, #tpu.memory_space<vmem>>, vector<16x16x8xf32>,
    %c0_85 = arith.constant 0 : index
    %c7_86 = arith.constant 7 : index
    %c0_87 = arith.constant 0 : index
    %91 = vector.load %arg17[%c0_85, %c7_86, %c0_87] : memref<18x32x8xf32, #tpu.memory_space<vmem>>, vector<16x16x8xf32>
    %92 = vector.shape_cast %91 : vector<16x16x8xf32> to vector<256x8xf32>
    %c0_88 = arith.constant 0 : index
    %c0_89 = arith.constant 0 : index
    %93 = vector.load %arg18[%c0_88, %c0_89] : memref<256x72xf32, #tpu.memory_space<vmem>>, vector<256x8xf32>
    tpu.vector_store %arg18[%c0_88, %c0_89], %92 {strides = array<i32>} : memref<256x72xf32, #tpu.memory_space<vmem>>, vector<256x8xf32>,
    %c0_90 = arith.constant 0 : index
    %c8_91 = arith.constant 8 : index
    %c0_92 = arith.constant 0 : index
    %94 = vector.load %arg17[%c0_90, %c8_91, %c0_92] : memref<18x32x8xf32, #tpu.memory_space<vmem>>, vector<16x16x8xf32>
    %95 = vector.shape_cast %94 : vector<16x16x8xf32> to vector<256x8xf32>
    %c0_93 = arith.constant 0 : index
    %c8_94 = arith.constant 8 : index
    %96 = vector.load %arg18[%c0_93, %c8_94] : memref<256x72xf32, #tpu.memory_space<vmem>>, vector<256x8xf32>
    tpu.vector_store %arg18[%c0_93, %c8_94], %95 {strides = array<i32>} : memref<256x72xf32, #tpu.memory_space<vmem>>, vector<256x8xf32>,
    %c0_95 = arith.constant 0 : index
    %c9_96 = arith.constant 9 : index
    %c0_97 = arith.constant 0 : index
    %97 = vector.load %arg17[%c0_95, %c9_96, %c0_97] : memref<18x32x8xf32, #tpu.memory_space<vmem>>, vector<16x16x8xf32>
    %98 = vector.shape_cast %97 : vector<16x16x8xf32> to vector<256x8xf32>
    %c0_98 = arith.constant 0 : index
    %c16_99 = arith.constant 16 : index
    %99 = vector.load %arg18[%c0_98, %c16_99] : memref<256x72xf32, #tpu.memory_space<vmem>>, vector<256x8xf32>
    tpu.vector_store %arg18[%c0_98, %c16_99], %98 {strides = array<i32>} : memref<256x72xf32, #tpu.memory_space<vmem>>, vector<256x8xf32>,
    %c1_100 = arith.constant 1 : index
    %c7_101 = arith.constant 7 : index
    %c0_102 = arith.constant 0 : index
    %100 = vector.load %arg17[%c1_100, %c7_101, %c0_102] : memref<18x32x8xf32, #tpu.memory_space<vmem>>, vector<16x16x8xf32>
    %101 = vector.shape_cast %100 : vector<16x16x8xf32> to vector<256x8xf32>
    %c0_103 = arith.constant 0 : index
    %c24 = arith.constant 24 : index
    %102 = vector.load %arg18[%c0_103, %c24] : memref<256x72xf32, #tpu.memory_space<vmem>>, vector<256x8xf32>
    tpu.vector_store %arg18[%c0_103, %c24], %101 {strides = array<i32>} : memref<256x72xf32, #tpu.memory_space<vmem>>, vector<256x8xf32>,
    %c1_104 = arith.constant 1 : index
    %c8_105 = arith.constant 8 : index
    %c0_106 = arith.constant 0 : index
    %103 = vector.load %arg17[%c1_104, %c8_105, %c0_106] : memref<18x32x8xf32, #tpu.memory_space<vmem>>, vector<16x16x8xf32>
    %104 = vector.shape_cast %103 : vector<16x16x8xf32> to vector<256x8xf32>
    %c0_107 = arith.constant 0 : index
    %c32_108 = arith.constant 32 : index
    %105 = vector.load %arg18[%c0_107, %c32_108] : memref<256x72xf32, #tpu.memory_space<vmem>>, vector<256x8xf32>
    tpu.vector_store %arg18[%c0_107, %c32_108], %104 {strides = array<i32>} : memref<256x72xf32, #tpu.memory_space<vmem>>, vector<256x8xf32>,
    %c1_109 = arith.constant 1 : index
    %c9_110 = arith.constant 9 : index
    %c0_111 = arith.constant 0 : index
    %106 = vector.load %arg17[%c1_109, %c9_110, %c0_111] : memref<18x32x8xf32, #tpu.memory_space<vmem>>, vector<16x16x8xf32>
    %107 = vector.shape_cast %106 : vector<16x16x8xf32> to vector<256x8xf32>
    %c0_112 = arith.constant 0 : index
    %c40 = arith.constant 40 : index
    %108 = vector.load %arg18[%c0_112, %c40] : memref<256x72xf32, #tpu.memory_space<vmem>>, vector<256x8xf32>
    tpu.vector_store %arg18[%c0_112, %c40], %107 {strides = array<i32>} : memref<256x72xf32, #tpu.memory_space<vmem>>, vector<256x8xf32>,
    %c2_113 = arith.constant 2 : index
    %c7_114 = arith.constant 7 : index
    %c0_115 = arith.constant 0 : index
    %109 = vector.load %arg17[%c2_113, %c7_114, %c0_115] : memref<18x32x8xf32, #tpu.memory_space<vmem>>, vector<16x16x8xf32>
    %110 = vector.shape_cast %109 : vector<16x16x8xf32> to vector<256x8xf32>
    %c0_116 = arith.constant 0 : index
    %c48_117 = arith.constant 48 : index
    %111 = vector.load %arg18[%c0_116, %c48_117] : memref<256x72xf32, #tpu.memory_space<vmem>>, vector<256x8xf32>
    tpu.vector_store %arg18[%c0_116, %c48_117], %110 {strides = array<i32>} : memref<256x72xf32, #tpu.memory_space<vmem>>, vector<256x8xf32>,
    %c2_118 = arith.constant 2 : index
    %c8_119 = arith.constant 8 : index
    %c0_120 = arith.constant 0 : index
    %112 = vector.load %arg17[%c2_118, %c8_119, %c0_120] : memref<18x32x8xf32, #tpu.memory_space<vmem>>, vector<16x16x8xf32>
    %113 = vector.shape_cast %112 : vector<16x16x8xf32> to vector<256x8xf32>
    %c0_121 = arith.constant 0 : index
    %c56 = arith.constant 56 : index
    %114 = vector.load %arg18[%c0_121, %c56] : memref<256x72xf32, #tpu.memory_space<vmem>>, vector<256x8xf32>
    tpu.vector_store %arg18[%c0_121, %c56], %113 {strides = array<i32>} : memref<256x72xf32, #tpu.memory_space<vmem>>, vector<256x8xf32>,
    %c2_122 = arith.constant 2 : index
    %c9_123 = arith.constant 9 : index
    %c0_124 = arith.constant 0 : index
    %115 = vector.load %arg17[%c2_122, %c9_123, %c0_124] : memref<18x32x8xf32, #tpu.memory_space<vmem>>, vector<16x16x8xf32>
    %116 = vector.shape_cast %115 : vector<16x16x8xf32> to vector<256x8xf32>
    %c0_125 = arith.constant 0 : index
    %c64_126 = arith.constant 64 : index
    %117 = vector.load %arg18[%c0_125, %c64_126] : memref<256x72xf32, #tpu.memory_space<vmem>>, vector<256x8xf32>
    tpu.vector_store %arg18[%c0_125, %c64_126], %116 {strides = array<i32>} : memref<256x72xf32, #tpu.memory_space<vmem>>, vector<256x8xf32>,
    %c0_127 = arith.constant 0 : index
    %c0_128 = arith.constant 0 : index
    %118 = vector.load %arg18[%c0_127, %c0_128] : memref<256x72xf32, #tpu.memory_space<vmem>>, vector<256x72xf32>
    %c0_129 = arith.constant 0 : index
    %c0_130 = arith.constant 0 : index
    %119 = vector.load %arg6[%c0_129, %c0_130] : memref<72x8xf32, #tpu.memory_space<vmem>>, vector<72x8xf32>
    %cst_131 = arith.constant dense<0.000000e+00> : vector<256x8xf32>
    %120 = tpu.matmul %118, %119, %cst_131 {dimension_numbers = #tpu.dot_dimension_numbers<[1], [0], [0], [1], [0, 0, 1, 1], [], []>} : vector<256x72xf32>, vector<72x8xf32>, vector<256x8xf32> -> vector<256x8xf32>
    %c0_132 = arith.constant 0 : index
    %c0_133 = arith.constant 0 : index
    %121 = vector.load %arg7[%c0_132, %c0_133] : memref<1x8xf32, #tpu.memory_space<vmem>>, vector<1x8xf32>
    %122 = vector.broadcast %121 : vector<1x8xf32> to vector<256x8xf32>
    %123 = arith.addf %120, %122 : vector<256x8xf32>
    %cst_134 = arith.constant 0.000000e+00 : f32
    %124 = vector.broadcast %cst_134 : f32 to vector<256x8xf32>
    %125 = arith.maximumf %123, %124 : vector<256x8xf32>
    %cst_135 = arith.constant dense<0.000000e+00> : vector<8xf32>
    %126 = vector.multi_reduction <add>, %125, %cst_135 [0] : vector<256x8xf32> to vector<8xf32>
    %127 = vector.shape_cast %126 : vector<8xf32> to vector<1x8xf32>
    %cst_136 = arith.constant 2.560000e+02 : f32
    %128 = vector.broadcast %cst_136 : f32 to vector<1x8xf32>
    %129 = arith.divf %127, %128 : vector<1x8xf32>
    %c0_137 = arith.constant 0 : index
    %c0_138 = arith.constant 0 : index
    %130 = vector.load %arg12[%c0_137, %c0_138] : memref<8x2xf32, #tpu.memory_space<vmem>>, vector<8x2xf32>
    %cst_139 = arith.constant dense<0.000000e+00> : vector<1x2xf32>
    %131 = tpu.matmul %129, %130, %cst_139 {dimension_numbers = #tpu.dot_dimension_numbers<[1], [0], [0], [1], [0, 0, 1, 1], [], []>} : vector<1x8xf32>, vector<8x2xf32>, vector<1x2xf32> -> vector<1x2xf32>
    %cst_140 = arith.constant 0.000000e+00 : f32
    %132 = vector.broadcast %cst_140 : f32 to vector<1x2xf32>
    %133 = arith.maximumf %131, %132 : vector<1x2xf32>
    %c0_141 = arith.constant 0 : index
    %c0_142 = arith.constant 0 : index
    %134 = vector.load %arg13[%c0_141, %c0_142] : memref<2x8xf32, #tpu.memory_space<vmem>>, vector<2x8xf32>
    %cst_143 = arith.constant dense<0.000000e+00> : vector<1x8xf32>
    %135 = tpu.matmul %133, %134, %cst_143 {dimension_numbers = #tpu.dot_dimension_numbers<[1], [0], [0], [1], [0, 0, 1, 1], [], []>} : vector<1x2xf32>, vector<2x8xf32>, vector<1x8xf32> -> vector<1x8xf32>
    %cst_144 = arith.constant 0.000000e+00 : f32
    %136 = vector.broadcast %cst_144 : f32 to vector<1x8xf32>
    %137 = arith.subf %136, %135 : vector<1x8xf32>
    %138 = math.exp %137 : vector<1x8xf32>
    %cst_145 = arith.constant 1.000000e+00 : f32
    %139 = vector.broadcast %cst_145 : f32 to vector<1x8xf32>
    %140 = arith.addf %139, %138 : vector<1x8xf32>
    %cst_146 = arith.constant 1.000000e+00 : f32
    %141 = vector.broadcast %cst_146 : f32 to vector<1x8xf32>
    %142 = arith.divf %141, %140 : vector<1x8xf32>
    %143 = vector.broadcast %142 : vector<1x8xf32> to vector<256x8xf32>
    %144 = arith.mulf %125, %143 : vector<256x8xf32>
    %145 = tpu.transpose %28, [1, 0] : vector<256x16xf32> -> vector<16x256xf32>
    %146 = tpu.transpose %86, [1, 0] : vector<256x8xf32> -> vector<8x256xf32>
    %147 = tpu.transpose %144, [1, 0] : vector<256x8xf32> -> vector<8x256xf32>
    %148 = tpu.concatenate %145, %146, %147 in 0 : vector<16x256xf32>, vector<8x256xf32>, vector<8x256xf32> -> vector<32x256xf32>
    %c0_147 = arith.constant 0 : index
    %c0_148 = arith.constant 0 : index
    %c0_149 = arith.constant 0 : index
    %149 = vector.load %arg14[%c0_147, %c0_148, %c0_149] : memref<1x32x256xf32, #tpu.memory_space<vmem>>, vector<1x32x256xf32>
    %150 = vector.shape_cast %149 : vector<1x32x256xf32> to vector<32x256xf32>
    %151 = vector.shape_cast %148 : vector<32x256xf32> to vector<1x32x256xf32>
    tpu.vector_store %arg14[%c0_147, %c0_148, %c0_149], %151 {strides = array<i32>} : memref<1x32x256xf32, #tpu.memory_space<vmem>>, vector<1x32x256xf32>,
    return
  }
  func.func @transform_0(%arg0: i32) -> (i32, i32, i32) {
    %c0_i32 = arith.constant 0 : i32
    %c0_i32_0 = arith.constant 0 : i32
    %c0_i32_1 = arith.constant 0 : i32
    return %arg0, %c0_i32, %c0_i32_0 : i32, i32, i32
  }
  func.func @transform_1(%arg0: i32) -> (i32, i32) {
    %c0_i32 = arith.constant 0 : i32
    %c0_i32_0 = arith.constant 0 : i32
    %c0_i32_1 = arith.constant 0 : i32
    return %c0_i32, %c0_i32_0 : i32, i32
  }
  func.func @transform_2(%arg0: i32) -> (i32, i32) {
    %c0_i32 = arith.constant 0 : i32
    %c0_i32_0 = arith.constant 0 : i32
    %c0_i32_1 = arith.constant 0 : i32
    return %c0_i32, %c0_i32_0 : i32, i32
  }
  func.func @transform_3(%arg0: i32) -> (i32, i32) {
    %c0_i32 = arith.constant 0 : i32
    %c0_i32_0 = arith.constant 0 : i32
    %c0_i32_1 = arith.constant 0 : i32
    return %c0_i32, %c0_i32_0 : i32, i32
  }
  func.func @transform_4(%arg0: i32) -> (i32, i32) {
    %c0_i32 = arith.constant 0 : i32
    %c0_i32_0 = arith.constant 0 : i32
    %c0_i32_1 = arith.constant 0 : i32
    return %c0_i32, %c0_i32_0 : i32, i32
  }
  func.func @transform_5(%arg0: i32) -> (i32, i32) {
    %c0_i32 = arith.constant 0 : i32
    %c0_i32_0 = arith.constant 0 : i32
    %c0_i32_1 = arith.constant 0 : i32
    return %c0_i32, %c0_i32_0 : i32, i32
  }
  func.func @transform_6(%arg0: i32) -> (i32, i32) {
    %c0_i32 = arith.constant 0 : i32
    %c0_i32_0 = arith.constant 0 : i32
    %c0_i32_1 = arith.constant 0 : i32
    return %c0_i32, %c0_i32_0 : i32, i32
  }
  func.func @transform_7(%arg0: i32) -> (i32, i32) {
    %c0_i32 = arith.constant 0 : i32
    %c0_i32_0 = arith.constant 0 : i32
    %c0_i32_1 = arith.constant 0 : i32
    return %c0_i32, %c0_i32_0 : i32, i32
  }
  func.func @transform_8(%arg0: i32) -> (i32, i32) {
    %c0_i32 = arith.constant 0 : i32
    %c0_i32_0 = arith.constant 0 : i32
    %c0_i32_1 = arith.constant 0 : i32
    return %c0_i32, %c0_i32_0 : i32, i32
  }
  func.func @transform_9(%arg0: i32) -> (i32, i32) {
    %c0_i32 = arith.constant 0 : i32
    %c0_i32_0 = arith.constant 0 : i32
    %c0_i32_1 = arith.constant 0 : i32
    return %c0_i32, %c0_i32_0 : i32, i32
  }
  func.func @transform_10(%arg0: i32) -> (i32, i32) {
    %c0_i32 = arith.constant 0 : i32
    %c0_i32_0 = arith.constant 0 : i32
    %c0_i32_1 = arith.constant 0 : i32
    return %c0_i32, %c0_i32_0 : i32, i32
  }
  func.func @transform_11(%arg0: i32) -> (i32, i32) {
    %c0_i32 = arith.constant 0 : i32
    %c0_i32_0 = arith.constant 0 : i32
    %c0_i32_1 = arith.constant 0 : i32
    return %c0_i32, %c0_i32_0 : i32, i32
  }
  func.func @transform_12(%arg0: i32) -> (i32, i32) {
    %c0_i32 = arith.constant 0 : i32
    %c0_i32_0 = arith.constant 0 : i32
    %c0_i32_1 = arith.constant 0 : i32
    return %c0_i32, %c0_i32_0 : i32, i32
  }
  func.func @transform_13(%arg0: i32) -> (i32, i32, i32) {
    %c0_i32 = arith.constant 0 : i32
    %c0_i32_0 = arith.constant 0 : i32
    %c0_i32_1 = arith.constant 0 : i32
    return %arg0, %c0_i32, %c0_i32_0 : i32, i32, i32
  }
}

</mosaic_0001>

<bundles_post_ra>
// kernel: sesp_cat_bottleneck.1
= control target key start
LH: loop header
LB: loop body
LE: loop exit
PB: predicated region body
PF: predicated region fallthrough
CT: control target
= control target key end

     0   :  { %s5704_s25 = smov 0   ;;  %s9012_s0 = inlined_call_operand.vmem [shape: f32[2,4,256], index: 0, kind: input, shape index: {}]   ;;  %s9013_s1 = inlined_call_operand.vmem [shape: f32[16,4], index: 1, kind: input, shape index: {}]   ;;  %s9014_s2 = inlined_call_operand.vmem [shape: f32[1,16], index: 2, kind: input, shape index: {}]   ;;  %s9015_s3 = inlined_call_operand.vmem [shape: f32[144,8], index: 3, kind: input, shape index: {}]   ;;  %s9016_s4 = inlined_call_operand.vmem [shape: f32[1,8], index: 4, kind: input, shape index: {}]   ;;  %s9017_s5 = inlined_call_operand.vmem [shape: f32[72,8], index: 5, kind: input, shape index: {}]   ;;  %s9018_s6 = inlined_call_operand.vmem [shape: f32[1,8], index: 6, kind: input, shape index: {}]   ;;  %s9019_s7 = inlined_call_operand.vmem [shape: f32[16,4], index: 7, kind: input, shape index: {}]   ;;  %s9020_s8 = inlined_call_operand.vmem [shape: f32[4,16], index: 8, kind: input, shape index: {}]   ;;  %s9021_s9 = inlined_call_operand.vmem [shape: f32[8,2], index: 9, kind: input, shape index: {}]   ;;  %s9022_s10 = inlined_call_operand.vmem [shape: f32[2,8], index: 10, kind: input, shape index: {}]   ;;  %s9023_s11 = inlined_call_operand.vmem [shape: f32[8,2], index: 11, kind: input, shape index: {}]   ;;  %s9024_s12 = inlined_call_operand.vmem [shape: f32[2,8], index: 12, kind: input, shape index: {}]   ;;  %s9025_s13 = inlined_call_operand.vmem [shape: f32[2,32,256], index: 13, kind: output, shape index: {}]  }
   0x1 LB: > { %s5453_s26 = sadd.s32 4294967295, %s5619_s25   ;;  %p5457_p0 = scmp.ge.s32.totalorder %s5619_s25, 1  ;;  %s5619_s25 = sphi %s5704_s25, %s23_s25  }
   0x2   : > { %p387_p1 = scmp.lt.s32.totalorder %s5619_s25, 3 }
   0x4   : > { %p388_p2 = pnand %p5457_p0, %p387_p1 }
   0x6   : > { %391 = sbr.rel (%p388_p2) target bundleno = 2757 (0xac5), region = 72 }
   0xb   : > { %p431_p3 = scmp.lt.s32.totalorder %s5453_s26, 1  ;;  %vm455_vm0 = vcmask 1043456   ;;  %v441_v1 = vld [vmem:[%s9013_s1] sm:$0xff]  ;;  %vm448_vm1 = vcmask 31744   ;;  %v442_v4 = vld [vmem:[%s9013_s1 + $0x8] sm:$0xff]  ;;  %vm638_vm2 = vcmask 130048  }
   0xc   : > { %v9026_v5 = vmov 0.0   ;;  %s5622_s18 = smov 16   ;;  %v5879_v12 = vld [vmem:[%s9014_s2] ss:$0 sm:$0xff]  ;;  %s5623_s21 = smov 32   ;;  %vm1150_vm3 = vcmask 261248  }
   0xd   : > { %s9275_s26 = smov (!%p431_p3, %s5453_s26), 1  ;;  %822 = vst.msk [vmem:[#allocation2 + $0x8] sm:$0xff] %vm638_vm2, %v9026_v5  ;;  %vm1343_vm4 = vcmask 392448   ;;  %s5624_s22 = smov 48   ;;  %vm1536_vm6 = vcmask 523648   ;;  %vm1729_vm7 = vcmask 654848  }
   0xe   : > { %s5543_s27 = sshll.u32 %s9275_s26, 3  ;;  %821 = vst.msk [vmem:[#allocation2] sm:$0xff] %vm638_vm2, %v9026_v5  ;;  %s5626_s29 = smov 64   ;;  %vm1922_vm8 = vcmask 786048   ;;  %vm2116_vm9 = vcmask 917248   ;;  %vm2309_vm10 = vcmask 1048448  }
   0xf   : > { %s435_s30 = scalar_lea.vmem %s9012_s0, %s5543_s27  ;;  %823 = vst.msk [vmem:[#allocation2 + $0x10] sm:$0xff] %vm638_vm2, %v9026_v5  ;;  %s5627_s20 = smov 80   ;;  %vm2846_vm11 = vcmask 64512   ;;  %vm3352_vm12 = vcmask 130112   ;;  %vm3545_vm13 = vcmask 195712   ;;  %vm2947_vm14 = vcmask 1041408  }
  0x10   : > { %v443_v0 = vld [vmem:[%s435_s30] sm:$0xff]  ;;  %824 = vst.msk [vmem:[#allocation2 + $0x18] sm:$0xff] %vm638_vm2, %v9026_v5  ;;  %s5628_s23 = smov 96   ;;  %s5629_s24 = smov 112   ;;  %vm2943_vm15 = vcmask 15360  }
  0x11   : > { %445 = vst [vmem:[#allocation1] ss:$2 sm:$0xff] %v443_v0  ;;  %s5630_s19 = smov 8   ;;  %s5631_s27 = smov 24  }
  0x12   : > { %825 = vst.msk [vmem:[#allocation2 + $0x20] sm:$0xff] %vm638_vm2, %v9026_v5  ;;  %s5632_s30 = smov 40   ;;  %s5633_s14 = smov 56  }
  0x13   : > { %826 = vst.msk [vmem:[#allocation2 + $0x28] sm:$0xff] %vm638_vm2, %v9026_v5  ;;  %s5544_s28 = sshll.u32 %s9275_s26, 6 }
  0x14   : > { %827 = vst.msk [vmem:[#allocation2 + $0x30] sm:$0xff] %vm638_vm2, %v9026_v5  ;;  %v990_v6 = vld [vmem:[#allocation2 + $0x8] sm:$0xff] }
  0x15   : > { %828 = vst.msk [vmem:[#allocation2 + $0x38] sm:$0xff] %vm638_vm2, %v9026_v5  ;;  %1054 = vrot.lane.b32.xlu2 %v990_v6, %s5622_s18 }
  0x16   : > { %829 = vst.msk [vmem:[#allocation2 + $0x40] sm:$0xff] %vm638_vm2, %v9026_v5  ;;  %v991_v11 = vld [vmem:[#allocation2 + $0x10] sm:$0xff] }
  0x17   : > { %830 = vst.msk [vmem:[#allocation2 + $0x48] sm:$0xff] %vm638_vm2, %v9026_v5  ;;  %v1184_v32 = vld [vmem:[#allocation2 + $0x11] sm:$0xff] }
  0x18   : > { %v446_v2 = vld.sshfl [vmem:[#allocation1] sm:$0xff pattern:$0x75316420]  ;;  %v447_v3 = vld.sshfl [vmem:[#allocation1 + $0x8] sm:$0xff pattern:$0x75316420] }
  0x19   : > { %5462 = vmatpush.msk.msra.mxu0 %vm455_vm0, %v446_v2  ;;  %5465 = vmatpush.msk.msra.mxu1 %vm455_vm0, %v447_v3  ;;  %831 = vst.msk [vmem:[#allocation2 + $0x50] sm:$0xff] %vm638_vm2, %v9026_v5 }
  0x1a   : > { %5463 = vmatmul.msk.f32.vlgmr.msra.gmra.mxu0 %vm448_vm1, %v441_v1  ;;  %5466 = vmatmul.msk.f32.vlgmr.msra.gmra.mxu1 %vm448_vm1, %v441_v1  ;;  %832 = vst.msk [vmem:[#allocation2 + $0x58] sm:$0xff] %vm638_vm2, %v9026_v5 }
  0x1b   : > { %833 = vst.msk [vmem:[#allocation2 + $0x60] sm:$0xff] %vm638_vm2, %v9026_v5 }
  0x1c   : > { %834 = vst.msk [vmem:[#allocation2 + $0x68] sm:$0xff] %vm638_vm2, %v9026_v5 }
  0x1d   : > { %835 = vst.msk [vmem:[#allocation2 + $0x70] sm:$0xff] %vm638_vm2, %v9026_v5  ;;  %1056 = vrot.lane.b32.xlu2 %v991_v11, %s5622_s18 }
  0x1e   : > { %836 = vst.msk [vmem:[#allocation2 + $0x78] sm:$0xff] %vm638_vm2, %v9026_v5 }
  0x1f   : > { %837 = vst.msk [vmem:[#allocation2 + $0x80] sm:$0xff] %vm638_vm2, %v9026_v5 }
  0x20   : > { %838 = vst.msk [vmem:[#allocation2 + $0x88] sm:$0xff] %vm638_vm2, %v9026_v5 }
  0x21   : > { %839 = vst.msk [vmem:[#allocation2 + $0x90] sm:$0xff] %vm638_vm2, %v9026_v5 }
  0x22   : > { %5464 = vmatmul.msk.f32.gmra.mxu0 %vm448_vm1, %v442_v4  ;;  %5467 = vmatmul.msk.f32.gmra.mxu1 %vm448_vm1, %v442_v4  ;;  %840 = vst.msk [vmem:[#allocation2 + $0x98] sm:$0xff] %vm638_vm2, %v9026_v5 }
  0x23   : > { %841 = vst.msk [vmem:[#allocation2 + $0xa0] sm:$0xff] %vm638_vm2, %v9026_v5 }
  0x24   : > { %842 = vst.msk [vmem:[#allocation2 + $0xa8] sm:$0xff] %vm638_vm2, %v9026_v5 }
  0x25   : > { %843 = vst.msk [vmem:[#allocation2 + $0xb0] sm:$0xff] %vm638_vm2, %v9026_v5 }
  0x26   : > { %844 = vst.msk [vmem:[#allocation2 + $0xb8] sm:$0xff] %vm638_vm2, %v9026_v5 }
  0x27   : > { %845 = vst.msk [vmem:[#allocation2 + $0xc0] sm:$0xff] %vm638_vm2, %v9026_v5 }
  0x28   : > { %846 = vst.msk [vmem:[#allocation2 + $0xc8] sm:$0xff] %vm638_vm2, %v9026_v5 }
  0x29   : > { %847 = vst.msk [vmem:[#allocation2 + $0xd0] sm:$0xff] %vm638_vm2, %v9026_v5 }
  0x2a   : > { %848 = vst.msk [vmem:[#allocation2 + $0xd8] sm:$0xff] %vm638_vm2, %v9026_v5 }
  0x2b   : > { %849 = vst.msk [vmem:[#allocation2 + $0xe0] sm:$0xff] %vm638_vm2, %v9026_v5 }
  0x2c   : > { %850 = vst.msk [vmem:[#allocation2 + $0xe8] sm:$0xff] %vm638_vm2, %v9026_v5 }
  0x2d   : > { %851 = vst.msk [vmem:[#allocation2 + $0xf0] sm:$0xff] %vm638_vm2, %v9026_v5 }
  0x2e   : > { %852 = vst.msk [vmem:[#allocation2 + $0xf8] sm:$0xff] %vm638_vm2, %v9026_v5 }
  0x2f   : > { %853 = vst.msk [vmem:[#allocation2 + $0x100] sm:$0xff] %vm638_vm2, %v9026_v5 }
  0x30   : > { %854 = vst.msk [vmem:[#allocation2 + $0x108] sm:$0xff] %vm638_vm2, %v9026_v5 }
  0x31   : > { %855 = vst.msk [vmem:[#allocation2 + $0x110] sm:$0xff] %vm638_vm2, %v9026_v5 }
  0x32   : > { %856 = vst.msk [vmem:[#allocation2 + $0x118] sm:$0xff] %vm638_vm2, %v9026_v5 }
  0x33   : > { %857 = vst.msk [vmem:[#allocation2 + $0x120] sm:$0xff] %vm638_vm2, %v9026_v5 }
  0x34   : > { %858 = vst.msk [vmem:[#allocation2 + $0x128] sm:$0xff] %vm638_vm2, %v9026_v5 }
  0x35   : > { %859 = vst.msk [vmem:[#allocation2 + $0x130] sm:$0xff] %vm638_vm2, %v9026_v5 }
  0x36   : > { %860 = vst.msk [vmem:[#allocation2 + $0x138] sm:$0xff] %vm638_vm2, %v9026_v5 }
  0x37   : > { %861 = vst.msk [vmem:[#allocation2 + $0x140] sm:$0xff] %vm638_vm2, %v9026_v5 }
  0x38   : > { %862 = vst.msk [vmem:[#allocation2 + $0x148] sm:$0xff] %vm638_vm2, %v9026_v5 }
  0x39   : > { %863 = vst.msk [vmem:[#allocation2 + $0x150] sm:$0xff] %vm638_vm2, %v9026_v5 }
  0x3a   : > { %864 = vst.msk [vmem:[#allocation2 + $0x158] sm:$0xff] %vm638_vm2, %v9026_v5 }
  0x3b   : > { %865 = vst.msk [vmem:[#allocation2 + $0x160] sm:$0xff] %vm638_vm2, %v9026_v5 }
  0x3c   : > { %866 = vst.msk [vmem:[#allocation2 + $0x168] sm:$0xff] %vm638_vm2, %v9026_v5 }
  0x3d   : > { %867 = vst.msk [vmem:[#allocation2 + $0x170] sm:$0xff] %vm638_vm2, %v9026_v5 }
  0x3e   : > { %868 = vst.msk [vmem:[#allocation2 + $0x178] sm:$0xff] %vm638_vm2, %v9026_v5 }
  0x3f   : > { %869 = vst.msk [vmem:[#allocation2 + $0x180] sm:$0xff] %vm638_vm2, %v9026_v5 }
  0x40   : > { %870 = vst.msk [vmem:[#allocation2 + $0x188] sm:$0xff] %vm638_vm2, %v9026_v5 }
  0x41   : > { %871 = vst.msk [vmem:[#allocation2 + $0x190] sm:$0xff] %vm638_vm2, %v9026_v5 }
  0x42   : > { %872 = vst.msk [vmem:[#allocation2 + $0x198] sm:$0xff] %vm638_vm2, %v9026_v5 }
  0x43   : > { %873 = vst.msk [vmem:[#allocation2 + $0x1a0] sm:$0xff] %vm638_vm2, %v9026_v5 }
  0x44   : > { %874 = vst.msk [vmem:[#allocation2 + $0x1a8] sm:$0xff] %vm638_vm2, %v9026_v5 }
  0x45   : > { %875 = vst.msk [vmem:[#allocation2 + $0x1b0] sm:$0xff] %vm638_vm2, %v9026_v5 }
  0x46   : > { %876 = vst.msk [vmem:[#allocation2 + $0x1b8] sm:$0xff] %vm638_vm2, %v9026_v5 }
  0x47   : > { %877 = vst.msk [vmem:[#allocation2 + $0x1c0] sm:$0xff] %vm638_vm2, %v9026_v5 }
  0x48   : > { %878 = vst.msk [vmem:[#allocation2 + $0x1c8] sm:$0xff] %vm638_vm2, %v9026_v5 }
  0x49   : > { %879 = vst.msk [vmem:[#allocation2 + $0x1d0] sm:$0xff] %vm638_vm2, %v9026_v5 }
  0x4a   : > { %880 = vst.msk [vmem:[#allocation2 + $0x1d8] sm:$0xff] %vm638_vm2, %v9026_v5 }
  0x4b   : > { %881 = vst.msk [vmem:[#allocation2 + $0x1e0] sm:$0xff] %vm638_vm2, %v9026_v5 }
  0x4c   : > { %882 = vst.msk [vmem:[#allocation2 + $0x1e8] sm:$0xff] %vm638_vm2, %v9026_v5 }
  0x4d   : > { %883 = vst.msk [vmem:[#allocation2 + $0x1f0] sm:$0xff] %vm638_vm2, %v9026_v5 }
  0x4e   : > { %884 = vst.msk [vmem:[#allocation2 + $0x1f8] sm:$0xff] %vm638_vm2, %v9026_v5 }
  0x4f   : > { %885 = vst.msk [vmem:[#allocation2 + $0x200] sm:$0xff] %vm638_vm2, %v9026_v5 }
  0x50   : > { %886 = vst.msk [vmem:[#allocation2 + $0x208] sm:$0xff] %vm638_vm2, %v9026_v5 }
  0x51   : > { %887 = vst.msk [vmem:[#allocation2 + $0x210] sm:$0xff] %vm638_vm2, %v9026_v5 }
  0x52   : > { %888 = vst.msk [vmem:[#allocation2 + $0x218] sm:$0xff] %vm638_vm2, %v9026_v5 }
  0x53   : > { %889 = vst.msk [vmem:[#allocation2 + $0x220] sm:$0xff] %vm638_vm2, %v9026_v5 }
  0x54   : > { %890 = vst.msk [vmem:[#allocation2 + $0x228] sm:$0xff] %vm638_vm2, %v9026_v5 }
  0x55   : > { %891 = vst.msk [vmem:[#allocation2 + $0x230] sm:$0xff] %vm638_vm2, %v9026_v5 }
  0x56   : > { %892 = vst.msk [vmem:[#allocation2 + $0x238] sm:$0xff] %vm638_vm2, %v9026_v5 }
  0x97   : > { %v477_v7 = vpop.f32.mrf.mxu0  ;;  %v500_v8 = vpop.f32.mrf.mxu1 }
  0x98   : > { %538 = vxpose.xlu1.b32.start [1/2] (short) %v500_v8, 128  ;;  %506 = vxpose.xlu0.b32.start [1/2] (short) %v477_v7, 128 }
  0x9f   : > { %v480_v9 = vpop.f32.mrf.mxu0  ;;  %v503_v10 = vpop.f32.mrf.mxu1 }
  0xa0   : > { %539 = vxpose.xlu1.b32.end [2/2] (short) %v503_v10, 128  ;;  %507 = vxpose.xlu0.b32.end [2/2] (short) %v480_v9, 128 }
 0x13c   : > { %v554_v13 = vpop.trf.xlu1  ;;  %v522_v14 = vpop.trf.xlu0 }
 0x13d   : > { %v590_v15 = vadd.f32 %v5879_v12, %v554_v13  ;;  %v574_v16 = vadd.f32 %v5879_v12, %v522_v14  ;;  %v1183_v14 = vld [vmem:[#allocation2 + $0x9] sm:$0xff] }
 0x13f   : > { %v5883_v17 = vmax.f32 %v590_v15, 0.0  ;;  %v5885_v18 = vmax.f32 %v574_v16, 0.0  ;;  %v1055_v16 = vpop.permute.xlu2 %1054 }
 0x141   : > { %9115 = vst [vmem:[#allocation6_spill] sm:$0xff] %v5883_v17 }
 0x142   : > { %9116 = vst [vmem:[#allocation7_spill] sm:$0xff] %v5885_v18 }
 0x143   : > { %910 = vst.msk [vmem:[#allocation2 + $0x128] sm:$0xff] %vm638_vm2, %v5883_v17 }
 0x144   : > { %894 = vst.msk [vmem:[#allocation2 + $0x28] sm:$0xff] %vm638_vm2, %v5885_v18  ;;  %v555_v19 = vpop.trf.xlu1  ;;  %v523_v20 = vpop.trf.xlu0 }
 0x145   : > { %v591_v21 = vadd.f32 %v5879_v12, %v555_v19  ;;  %v575_v22 = vadd.f32 %v5879_v12, %v523_v20  ;;  %v926_v19 = vld [vmem:[#allocation2 + $0x7] sm:$0xff] }
 0x146   : > { %958 = vst.msk [vmem:[#allocation3] sm:$0xff] %vm638_vm2, %v926_v19 }
 0x147   : > { %v5893_v23 = vmax.f32 %v591_v21, 0.0  ;;  %v5895_v24 = vmax.f32 %v575_v22, 0.0  ;;  %1151 = vst.msk [vmem:[#allocation3] sm:$0xff] %vm1150_vm3, %v1055_v16 }
 0x149   : > { %9117 = vst [vmem:[#allocation8_spill] sm:$0xff] %v5893_v23 }
 0x14a   : > { %9118 = vst [vmem:[#allocation9_spill] sm:$0xff] %v5895_v24  ;;  %v1008_v25 = vld [vmem:[#allocation2 + $0x128] sm:$0xff] }
 0x14b   : > { %v5897_v26 = vld [vmem:[#allocation2 + $0x127] sm:$0xff]  ;;  %911 = vst.msk [vmem:[#allocation2 + $0x130] sm:$0xff] %vm638_vm2, %v5893_v23  ;;  %1090 = vrot.lane.b32.xlu2 %v1008_v25, %s5622_s18 }
 0x14c   : > { %v5902_v27 = vld [vmem:[#allocation2 + $0x27] sm:$0xff]  ;;  %895 = vst.msk [vmem:[#allocation2 + $0x30] sm:$0xff] %vm638_vm2, %v5895_v24  ;;  %v524_v28 = vpop.trf.xlu0  ;;  %v556_v29 = vpop.trf.xlu1 }
 0x14d   : > { %976 = vst.msk [vmem:[#allocation3 + $0x120] sm:$0xff] %vm638_vm2, %v5897_v26  ;;  %v576_v30 = vadd.f32 %v5879_v12, %v524_v28  ;;  %v592_v31 = vadd.f32 %v5879_v12, %v556_v29 }
 0x14e   : > { %960 = vst.msk [vmem:[#allocation3 + $0x20] sm:$0xff] %vm638_vm2, %v5902_v27 }
 0x14f   : > { %v5912_v33 = vmax.f32 %v576_v30, 0.0  ;;  %v5914_v34 = vmax.f32 %v592_v31, 0.0 }
 0x151   : > { %9119 = vst [vmem:[#allocation10_spill] sm:$0xff] %v5912_v33 }
 0x152   : > { %9120 = vst [vmem:[#allocation11_spill] sm:$0xff] %v5914_v34  ;;  %v5921_v35 = vld [vmem:[#allocation2 + $0x12f] sm:$0xff] }
 0x153   : > { %896 = vst.msk [vmem:[#allocation2 + $0x48] sm:$0xff] %vm638_vm2, %v5912_v33  ;;  %1249 = vrot.lane.b32.xlu2 %v1184_v32, %s5623_s21  ;;  %v5923_v36 = vld [vmem:[#allocation2 + $0x2f] sm:$0xff] }
 0x154   : > { %912 = vst.msk [vmem:[#allocation2 + $0x148] sm:$0xff] %vm638_vm2, %v5914_v34  ;;  %v5927_v37 = vld [vmem:[#allocation2 + $0x131] sm:$0xff]  ;;  %v5929_v38 = vld [vmem:[#allocation2 + $0x129] sm:$0xff]  ;;  %v525_v39 = vpop.trf.xlu0  ;;  %v557_v40 = vpop.trf.xlu1 }
 0x155   : > { %977 = vst.msk [vmem:[#allocation3 + $0x130] sm:$0xff] %vm638_vm2, %v5921_v35  ;;  %v577_v41 = vadd.f32 %v5879_v12, %v525_v39  ;;  %v593_v42 = vadd.f32 %v5879_v12, %v557_v40  ;;  %v1009_v43 = vld [vmem:[#allocation2 + $0x130] sm:$0xff] }
 0x156   : > { %961 = vst.msk [vmem:[#allocation3 + $0x30] sm:$0xff] %vm638_vm2, %v5923_v36  ;;  %v5997_v4 = vld [vmem:[#allocation2 + $0x30] sm:$0xff] }
 0x157   : > { %2388 = vst.msk [vmem:[#allocation3 + $0xe8] sm:$0xff] %vm638_vm2, %v5929_v38  ;;  %v5939_v44 = vmax.f32 %v577_v41, 0.0  ;;  %v5941_v45 = vmax.f32 %v593_v42, 0.0  ;;  %v1185_v41 = vld [vmem:[#allocation2 + $0x29] sm:$0xff]  ;;  %v1186_v16 = vld [vmem:[#allocation2 + $0x31] sm:$0xff] }
 0x158   : > { %2389 = vst.msk [vmem:[#allocation3 + $0xf8] sm:$0xff] %vm638_vm2, %v5927_v37  ;;  %v927_v42 = vld [vmem:[#allocation2 + $0xf] sm:$0xff] }
 0x159   : > { %9121 = vst [vmem:[#allocation12_spill] sm:$0xff] %v5939_v44 }
 0x15a   : > { %9122 = vst [vmem:[#allocation13_spill] sm:$0xff] %v5941_v45  ;;  %v5943_v46 = vld [vmem:[#allocation2 + $0x47] sm:$0xff] }
 0x15b   : > { %897 = vst.msk [vmem:[#allocation2 + $0x50] sm:$0xff] %vm638_vm2, %v5939_v44  ;;  %1092 = vrot.lane.b32.xlu2 %v1009_v43, %s5622_s18  ;;  %v5948_v47 = vld [vmem:[#allocation2 + $0x147] sm:$0xff] }
 0x15c   : > { %913 = vst.msk [vmem:[#allocation2 + $0x150] sm:$0xff] %vm638_vm2, %v5941_v45  ;;  %v526_v48 = vpop.trf.xlu0  ;;  %v558_v49 = vpop.trf.xlu1  ;;  %v5958_v52 = vld [vmem:[#allocation2 + $0x48] sm:$0xff] }
 0x15d   : > { %962 = vst.msk [vmem:[#allocation3 + $0x40] sm:$0xff] %vm638_vm2, %v5943_v46  ;;  %v578_v50 = vadd.f32 %v5879_v12, %v526_v48  ;;  %v594_v51 = vadd.f32 %v5879_v12, %v558_v49  ;;  %v1010_v1 = vld [vmem:[#allocation2 + $0x148] sm:$0xff]  ;;  %v1057_v48 = vpop.permute.xlu2 %1056 }
 0x15e   : > { %978 = vst.msk [vmem:[#allocation3 + $0x140] sm:$0xff] %vm638_vm2, %v5948_v47 }
 0x15f   : > { %v5960_v53 = vmax.f32 %v578_v50, 0.0  ;;  %v5962_v54 = vmax.f32 %v594_v51, 0.0  ;;  %959 = vst.msk [vmem:[#allocation3 + $0x10] sm:$0xff] %vm638_vm2, %v927_v42 }
 0x160   : > { %1152 = vst.msk [vmem:[#allocation3 + $0x10] sm:$0xff] %vm1150_vm3, %v1057_v48 }
 0x161   : > { %9123 = vst [vmem:[#allocation14_spill] sm:$0xff] %v5960_v53 }
 0x162   : > { %9124 = vst [vmem:[#allocation15_spill] sm:$0xff] %v5962_v54  ;;  %v5970_v55 = vld [vmem:[#allocation2 + $0x4f] sm:$0xff] }
 0x163   : > { %898 = vst.msk [vmem:[#allocation2 + $0x68] sm:$0xff] %vm638_vm2, %v5960_v53  ;;  %1062 = vrot.lane.b32.xlu2 %v5958_v52, %s5622_s18  ;;  %v5972_v56 = vld [vmem:[#allocation2 + $0x14f] sm:$0xff] }
 0x164   : > { %914 = vst.msk [vmem:[#allocation2 + $0x168] sm:$0xff] %vm638_vm2, %v5962_v54  ;;  %v5976_v57 = vld [vmem:[#allocation2 + $0x149] sm:$0xff]  ;;  %v527_v58 = vpop.trf.xlu0  ;;  %v559_v59 = vpop.trf.xlu1  ;;  %v5980_v60 = vld [vmem:[#allocation2 + $0x151] sm:$0xff] }
 0x165   : > { %963 = vst.msk [vmem:[#allocation3 + $0x50] sm:$0xff] %vm638_vm2, %v5970_v55  ;;  %v579_v61 = vadd.f32 %v5879_v12, %v527_v58  ;;  %v595_v62 = vadd.f32 %v5879_v12, %v559_v59  ;;  %v2342_v63 = vld [vmem:[#allocation2 + $0x49] sm:$0xff]  ;;  %v2343_v0 = vld [vmem:[#allocation2 + $0x51] sm:$0xff] }
 0x166   : > { %979 = vst.msk [vmem:[#allocation3 + $0x150] sm:$0xff] %vm638_vm2, %v5972_v56  ;;  %v995_v11 = vld [vmem:[#allocation2 + $0x50] sm:$0xff]  ;;  %v992_v58 = vld [vmem:[#allocation2 + $0x28] sm:$0xff] }
 0x167   : > { %9125 = vst [vmem:[#allocation16_spill] sm:$0xff] %v5980_v60  ;;  %v5988_v2 = vmax.f32 %v579_v61, 0.0  ;;  %v5990_v3 = vmax.f32 %v595_v62, 0.0  ;;  %v6031_v32 = vld [vmem:[#allocation2 + $0x150] sm:$0xff] }
 0x168   : > { %2390 = vst.msk [vmem:[#allocation3 + $0x108] sm:$0xff] %vm638_vm2, %v5976_v57 }
 0x169   : > { %2391 = vst.msk [vmem:[#allocation3 + $0x118] sm:$0xff] %vm638_vm2, %v5980_v60 }
 0x16a   : > { %9126 = vst [vmem:[#allocation17_spill] sm:$0xff] %v5988_v2  ;;  %1060 = vrot.lane.b32.xlu1 %v5997_v4, %s5622_s18  ;;  %v6003_v6 = vld [vmem:[#allocation2 + $0x67] sm:$0xff] }
 0x16b   : > { %9127 = vst [vmem:[#allocation18_spill] sm:$0xff] %v5990_v3  ;;  %1094 = vrot.lane.b32.xlu2 %v1010_v1, %s5622_s18  ;;  %v6020_v20 = vld [vmem:[#allocation2 + $0x167] sm:$0xff]  ;;  %v1188_v1 = vld [vmem:[#allocation2 + $0x51] sm:$0xff] }
 0x16c   : > { %2374 = vst.msk [vmem:[#allocation3 + $0x8] sm:$0xff] %vm638_vm2, %v2342_v63  ;;  %v528_v7 = vpop.trf.xlu0  ;;  %v560_v8 = vpop.trf.xlu1 }
 0x16d   : > { %2375 = vst.msk [vmem:[#allocation3 + $0x18] sm:$0xff] %vm638_vm2, %v2343_v0  ;;  %v580_v9 = vadd.f32 %v5879_v12, %v528_v7  ;;  %v596_v10 = vadd.f32 %v5879_v12, %v560_v8  ;;  %v1187_v0 = vld [vmem:[#allocation2 + $0x49] sm:$0xff] }
 0x16e   : > { %899 = vst.msk [vmem:[#allocation2 + $0x70] sm:$0xff] %vm638_vm2, %v5988_v2 }
 0x16f   : > { %915 = vst.msk [vmem:[#allocation2 + $0x170] sm:$0xff] %vm638_vm2, %v5990_v3  ;;  %v6009_v13 = vmax.f32 %v580_v9, 0.0  ;;  %v6011_v15 = vmax.f32 %v596_v10, 0.0 }
 0x170   : > { %964 = vst.msk [vmem:[#allocation3 + $0x60] sm:$0xff] %vm638_vm2, %v6003_v6 }
 0x171   : > { %9128 = vst [vmem:[#allocation19_spill] sm:$0xff] %v6009_v13 }
 0x172   : > { %9129 = vst [vmem:[#allocation20_spill] sm:$0xff] %v6011_v15  ;;  %1247 = vrot.lane.b32.xlu1 %v1183_v14, %s5623_s21 }
 0x173   : > { %900 = vst.msk [vmem:[#allocation2 + $0x88] sm:$0xff] %vm638_vm2, %v6009_v13  ;;  %1064 = vrot.lane.b32.xlu2 %v995_v11, %s5622_s18 }
 0x174   : > { %916 = vst.msk [vmem:[#allocation2 + $0x188] sm:$0xff] %vm638_vm2, %v6011_v15  ;;  %v529_v22 = vpop.trf.xlu0  ;;  %v561_v25 = vpop.trf.xlu1 }
 0x175   : > { %v6022_v21 = vld [vmem:[#allocation2 + $0x6f] sm:$0xff]  ;;  %v581_v29 = vadd.f32 %v5879_v12, %v529_v22  ;;  %v597_v30 = vadd.f32 %v5879_v12, %v561_v25  ;;  %980 = vst.msk [vmem:[#allocation3 + $0x160] sm:$0xff] %vm638_vm2, %v6020_v20 }
 0x176   : > { %v6025_v28 = vld [vmem:[#allocation2 + $0x16f] sm:$0xff]  ;;  %965 = vst.msk [vmem:[#allocation3 + $0x70] sm:$0xff] %vm638_vm2, %v6022_v21 }
 0x177   : > { %v2360_v31 = vld [vmem:[#allocation2 + $0x169] sm:$0xff]  ;;  %v6035_v39 = vmax.f32 %v581_v29, 0.0  ;;  %v6037_v40 = vmax.f32 %v597_v30, 0.0  ;;  %981 = vst.msk [vmem:[#allocation3 + $0x170] sm:$0xff] %vm638_vm2, %v6025_v28  ;;  %v2345_v61 = vld [vmem:[#allocation2 + $0x71] sm:$0xff] }
 0x178   : > { %2392 = vst.msk [vmem:[#allocation3 + $0x128] sm:$0xff] %vm638_vm2, %v2360_v31  ;;  %v6049_v43 = vld [vmem:[#allocation2 + $0x69] sm:$0xff]  ;;  %v6070_v9 = vld [vmem:[#allocation2 + $0x171] sm:$0xff] }
 0x179   : > { %9130 = vst [vmem:[#allocation21_spill] sm:$0xff] %v6035_v39  ;;  %v6078_v22 = vld [vmem:[#allocation2 + $0x68] sm:$0xff] }
 0x17a   : > { %9131 = vst [vmem:[#allocation22_spill] sm:$0xff] %v6037_v40  ;;  %1251 = vrot.lane.b32.xlu1 %v1185_v41, %s5623_s21  ;;  %v1203_v30 = vld [vmem:[#allocation2 + $0x149] sm:$0xff] }
 0x17b   : > { %901 = vst.msk [vmem:[#allocation2 + $0x90] sm:$0xff] %vm638_vm2, %v6035_v39  ;;  %1096 = vrot.lane.b32.xlu2 %v6031_v32, %s5622_s18  ;;  %v1189_v48 = vld [vmem:[#allocation2 + $0x69] sm:$0xff] }
 0x17c   : > { %917 = vst.msk [vmem:[#allocation2 + $0x190] sm:$0xff] %vm638_vm2, %v6037_v40  ;;  %v530_v49 = vpop.trf.xlu0  ;;  %v562_v50 = vpop.trf.xlu1 }
 0x17d   : > { %v582_v51 = vadd.f32 %v5879_v12, %v530_v49  ;;  %v598_v59 = vadd.f32 %v5879_v12, %v562_v50  ;;  %2376 = vst.msk [vmem:[#allocation3 + $0x28] sm:$0xff] %vm638_vm2, %v6049_v43  ;;  %v6094_v50 = vld [vmem:[#allocation2 + $0x168] sm:$0xff] }
 0x17e   : > { %1058 = vrot.lane.b32.xlu0 %v992_v58, %s5622_s18  ;;  %2377 = vst.msk [vmem:[#allocation3 + $0x38] sm:$0xff] %vm638_vm2, %v2345_v61 }
 0x17f   : > { %v6058_v62 = vmax.f32 %v582_v51, 0.0  ;;  %v6060_v63 = vmax.f32 %v598_v59, 0.0  ;;  %2393 = vst.msk [vmem:[#allocation3 + $0x138] sm:$0xff] %vm638_vm2, %v6070_v9 }
 0x181   : > { %9132 = vst [vmem:[#allocation23_spill] sm:$0xff] %v6058_v62 }
 0x182   : > { %9133 = vst [vmem:[#allocation24_spill] sm:$0xff] %v6060_v63  ;;  %1257 = vrot.lane.b32.xlu1 %v1188_v1, %s5623_s21  ;;  %v1191_v7 = vld [vmem:[#allocation2 + $0x89] sm:$0xff]  ;;  %v1192_v8 = vld [vmem:[#allocation2 + $0x91] sm:$0xff] }
 0x183   : > { %902 = vst.msk [vmem:[#allocation2 + $0xa8] sm:$0xff] %vm638_vm2, %v6058_v62  ;;  %1255 = vrot.lane.b32.xlu2 %v1187_v0, %s5623_s21 }
 0x184   : > { %918 = vst.msk [vmem:[#allocation2 + $0x1a8] sm:$0xff] %vm638_vm2, %v6060_v63  ;;  %v531_v10 = vpop.trf.xlu0  ;;  %v563_v11 = vpop.trf.xlu1 }
 0x185   : > { %2378 = vst.msk [vmem:[#allocation3 + $0x48] sm:$0xff] %vm638_vm2, %v1191_v7  ;;  %v583_v14 = vadd.f32 %v5879_v12, %v531_v10  ;;  %v599_v19 = vadd.f32 %v5879_v12, %v563_v11  ;;  %v1201_v10 = vld [vmem:[#allocation2 + $0x129] sm:$0xff] }
 0x186   : > { %2379 = vst.msk [vmem:[#allocation3 + $0x58] sm:$0xff] %vm638_vm2, %v1192_v8  ;;  %1253 = vrot.lane.b32.xlu0 %v1186_v16, %s5623_s21  ;;  %v1206_v16 = vld [vmem:[#allocation2 + $0x171] sm:$0xff] }
 0x187   : > { %v6080_v25 = vmax.f32 %v583_v14, 0.0  ;;  %v6082_v29 = vmax.f32 %v599_v19, 0.0  ;;  %v6114_v14 = vld [vmem:[#allocation2 + $0x70] sm:$0xff] }
 0x189   : > { %9134 = vst [vmem:[#allocation25_spill] sm:$0xff] %v6080_v25 }
 0x18a   : > { %9135 = vst [vmem:[#allocation26_spill] sm:$0xff] %v6082_v29  ;;  %1287 = vrot.lane.b32.xlu1 %v1203_v30, %s5623_s21  ;;  %v639_v30 = vsel %vm638_vm2, %v5885_v18, 0.0 }
 0x18b   : > { %903 = vst.msk [vmem:[#allocation2 + $0xb0] sm:$0xff] %vm638_vm2, %v6080_v25  ;;  %1066 = vrot.lane.b32.xlu2 %v6078_v22, %s5622_s18 }
 0x18c   : > { %919 = vst.msk [vmem:[#allocation2 + $0x1b0] sm:$0xff] %vm638_vm2, %v6082_v29  ;;  %v532_v31 = vpop.trf.xlu0  ;;  %v564_v41 = vpop.trf.xlu1 }
 0x18d   : > { %v584_v42 = vadd.f32 %v5879_v12, %v532_v31  ;;  %v600_v49 = vadd.f32 %v5879_v12, %v564_v41  ;;  %v640_v31 = vsel %vm638_vm2, %v5895_v24, 0.0  ;;  %v6131_v41 = vld [vmem:[#allocation2 + $0x87] sm:$0xff] }
 0x18e   : > { %1259 = vrot.lane.b32.xlu0 %v1189_v48, %s5623_s21  ;;  %966 = vst.msk [vmem:[#allocation3 + $0x80] sm:$0xff] %vm638_vm2, %v6131_v41 }
 0x18f   : > { %v6096_v51 = vmax.f32 %v584_v42, 0.0  ;;  %v6098_v58 = vmax.f32 %v600_v49, 0.0  ;;  %v6133_v42 = vld [vmem:[#allocation2 + $0x8f] sm:$0xff] }
 0x190   : > { %967 = vst.msk [vmem:[#allocation3 + $0x90] sm:$0xff] %vm638_vm2, %v6133_v42 }
 0x191   : > { %9136 = vst [vmem:[#allocation27_spill] sm:$0xff] %v6096_v51 }
 0x192   : > { %9137 = vst [vmem:[#allocation28_spill] sm:$0xff] %v6098_v58  ;;  %1263 = vrot.lane.b32.xlu1 %v1191_v7, %s5623_s21  ;;  %v6105_v59 = vld [vmem:[#allocation2 + $0xb1] sm:$0xff] }
 0x193   : > { %904 = vst.msk [vmem:[#allocation2 + $0xc8] sm:$0xff] %vm638_vm2, %v6096_v51  ;;  %1098 = vrot.lane.b32.xlu2 %v6094_v50, %s5622_s18 }
 0x194   : > { %920 = vst.msk [vmem:[#allocation2 + $0x1c8] sm:$0xff] %vm638_vm2, %v6098_v58  ;;  %v533_v61 = vpop.trf.xlu0  ;;  %v565_v0 = vpop.trf.xlu1 }
 0x195   : > { %2381 = vst.msk [vmem:[#allocation3 + $0x78] sm:$0xff] %vm638_vm2, %v6105_v59  ;;  %v585_v1 = vadd.f32 %v5879_v12, %v533_v61  ;;  %v601_v11 = vadd.f32 %v5879_v12, %v565_v0  ;;  %v642_v61 = vsel %vm638_vm2, %v5912_v33, 0.0 }
 0x196   : > { %1283 = vrot.lane.b32.xlu0 %v1201_v10, %s5623_s21  ;;  %v641_v10 = vadd.f32 %v640_v31, %v639_v30  ;;  %v648_v31 = vsel %vm638_vm2, %v5988_v2, 0.0 }
 0x197   : > { %v6116_v7 = vmax.f32 %v585_v1, 0.0  ;;  %v6118_v19 = vmax.f32 %v601_v11, 0.0  ;;  %v1013_v11 = vld [vmem:[#allocation2 + $0x170] sm:$0xff] }
 0x198   : > { %v643_v18 = vadd.f32 %v642_v61, %v641_v10  ;;  %v6163_v61 = vld [vmem:[#allocation2 + $0x187] sm:$0xff] }
 0x199   : > { %9138 = vst [vmem:[#allocation29_spill] sm:$0xff] %v6116_v7 }
 0x19a   : > { %9139 = vst [vmem:[#allocation30_spill] sm:$0xff] %v6118_v19  ;;  %1293 = vrot.lane.b32.xlu1 %v1206_v16, %s5623_s21  ;;  %v644_v16 = vsel %vm638_vm2, %v5939_v44, 0.0 }
 0x19b   : > { %905 = vst.msk [vmem:[#allocation2 + $0xd0] sm:$0xff] %vm638_vm2, %v6116_v7  ;;  %1068 = vrot.lane.b32.xlu2 %v6114_v14, %s5622_s18  ;;  %v645_v30 = vadd.f32 %v644_v16, %v643_v18  ;;  %v650_v16 = vsel %vm638_vm2, %v6009_v13, 0.0 }
 0x19c   : > { %921 = vst.msk [vmem:[#allocation2 + $0x1d0] sm:$0xff] %vm638_vm2, %v6118_v19  ;;  %v534_v48 = vpop.trf.xlu0  ;;  %v566_v49 = vpop.trf.xlu1 }
 0x19d   : > { %v586_v0 = vadd.f32 %v5879_v12, %v534_v48  ;;  %v602_v1 = vadd.f32 %v5879_v12, %v566_v49  ;;  %v646_v48 = vsel %vm638_vm2, %v5960_v53, 0.0  ;;  %v1204_v53 = vld [vmem:[#allocation2 + $0x151] sm:$0xff]  ;;  %982 = vst.msk [vmem:[#allocation3 + $0x180] sm:$0xff] %vm638_vm2, %v6163_v61 }
 0x19e   : > { %1265 = vrot.lane.b32.xlu0 %v1192_v8, %s5623_s21  ;;  %v647_v18 = vadd.f32 %v646_v48, %v645_v30  ;;  %v652_v48 = vsel %vm638_vm2, %v6035_v39, 0.0 }
 0x19f   : > { %v6146_v5 = vmax.f32 %v586_v0, 0.0  ;;  %v6148_v24 = vmax.f32 %v602_v1, 0.0  ;;  %v6165_v0 = vld [vmem:[#allocation2 + $0x18f] sm:$0xff] }
 0x1a0   : > { %v649_v33 = vadd.f32 %v648_v31, %v647_v18  ;;  %983 = vst.msk [vmem:[#allocation3 + $0x190] sm:$0xff] %vm638_vm2, %v6165_v0  ;;  %v654_v31 = vsel %vm638_vm2, %v6058_v62, 0.0  ;;  %v658_v62 = vsel %vm638_vm2, %v6096_v51, 0.0 }
 0x1a1   : > { %9140 = vst [vmem:[#allocation31_spill] sm:$0xff] %v6146_v5 }
 0x1a2   : > { %9141 = vst [vmem:[#allocation32_spill] sm:$0xff] %v6148_v24  ;;  %1269 = vrot.lane.b32.xlu1 %v6105_v59, %s5623_s21  ;;  %v6159_v8 = vld [vmem:[#allocation2 + $0xc9] sm:$0xff] }
 0x1a3   : > { %906 = vst.msk [vmem:[#allocation2 + $0xe8] sm:$0xff] %vm638_vm2, %v6146_v5  ;;  %1100 = vrot.lane.b32.xlu2 %v1013_v11, %s5622_s18  ;;  %v6170_v11 = vld [vmem:[#allocation2 + $0x189] sm:$0xff] }
 0x1a4   : > { %922 = vst.msk [vmem:[#allocation2 + $0x1e8] sm:$0xff] %vm638_vm2, %v6148_v24  ;;  %v535_v1 = vpop.trf.xlu0  ;;  %v567_v10 = vpop.trf.xlu1 }
 0x1a5   : > { %v1091_v49 = vpop.permute.xlu2 %1090  ;;  %2382 = vst.msk [vmem:[#allocation3 + $0x88] sm:$0xff] %vm638_vm2, %v6159_v8  ;;  %v587_v2 = vadd.f32 %v5879_v12, %v535_v1  ;;  %v603_v44 = vadd.f32 %v5879_v12, %v567_v10  ;;  %v651_v1 = vadd.f32 %v650_v16, %v649_v33  ;;  %v1202_v10 = vld [vmem:[#allocation2 + $0x131] sm:$0xff] }
 0x1a6   : > { %1169 = vst.msk [vmem:[#allocation3 + $0x120] sm:$0xff] %vm1150_vm3, %v1091_v49  ;;  %1289 = vrot.lane.b32.xlu0 %v1204_v53, %s5623_s21  ;;  %v1209_v49 = vld [vmem:[#allocation2 + $0x1a9] sm:$0xff] }
 0x1a7   : > { %9142 = vst [vmem:[#allocation33_spill] sm:$0xff] %v6170_v11  ;;  %v6183_v30 = vmax.f32 %v587_v2, 0.0  ;;  %v6185_v13 = vmax.f32 %v603_v44, 0.0  ;;  %v653_v53 = vadd.f32 %v652_v48, %v651_v1  ;;  %v656_v44 = vsel %vm638_vm2, %v6080_v25, 0.0  ;;  %v1207_v2 = vld [vmem:[#allocation2 + $0x189] sm:$0xff] }
 0x1a8   : > { %2394 = vst.msk [vmem:[#allocation3 + $0x148] sm:$0xff] %vm638_vm2, %v6170_v11  ;;  %v660_v1 = vsel %vm638_vm2, %v6116_v7, 0.0  ;;  %v6208_v11 = vld [vmem:[#allocation2 + $0x71] sm:$0xff] }
 0x1a9   : > { %9143 = vst [vmem:[#allocation34_spill] sm:$0xff] %v6183_v30  ;;  %v655_v18 = vadd.f32 %v654_v31, %v653_v53  ;;  %v662_v31 = vsel %vm638_vm2, %v6146_v5, 0.0 }
 0x1aa   : > { %9144 = vst [vmem:[#allocation35_spill] sm:$0xff] %v6185_v13  ;;  %1299 = vrot.lane.b32.xlu1 %v1209_v49, %s5623_s21 }
 0x1ab   : > { %907 = vst.msk [vmem:[#allocation2 + $0xf0] sm:$0xff] %vm638_vm2, %v6183_v30  ;;  %1285 = vrot.lane.b32.xlu2 %v1202_v10, %s5623_s21  ;;  %v657_v48 = vadd.f32 %v656_v44, %v655_v18  ;;  %v1210_v18 = vld [vmem:[#allocation2 + $0x1b1] sm:$0xff] }
 0x1ac   : > { %923 = vst.msk [vmem:[#allocation2 + $0x1f0] sm:$0xff] %vm638_vm2, %v6185_v13  ;;  %v536_v16 = vpop.trf.xlu0  ;;  %v568_v49 = vpop.trf.xlu1 }
 0x1ad   : > { %v1250_v33 = vpop.permute.xlu2 %1249  ;;  %v588_v10 = vadd.f32 %v5879_v12, %v536_v16  ;;  %v659_v25 = vadd.f32 %v658_v62, %v657_v48  ;;  %v664_v62 = vsel %vm638_vm2, %v6183_v30, 0.0  ;;  %v998_v30 = vld [vmem:[#allocation2 + $0x88] sm:$0xff] }
 0x1ae   : > { %1345 = vst.msk [vmem:[#allocation3 + $0x10] sm:$0xff] %vm1343_vm4, %v1250_v33  ;;  %1295 = vrot.lane.b32.xlu0 %v1207_v2, %s5623_s21 }
 0x1af   : > { %v6206_v39 = vmax.f32 %v588_v10, 0.0  ;;  %v661_v44 = vadd.f32 %v660_v1, %v659_v25  ;;  %v2363_v25 = vld [vmem:[#allocation2 + $0x191] sm:$0xff]  ;;  %v604_v1 = vadd.f32 %v5879_v12, %v568_v49 }
 0x1b0   : > { %2395 = vst.msk [vmem:[#allocation3 + $0x158] sm:$0xff] %vm638_vm2, %v2363_v25  ;;  %v674_v25 = vsel %vm638_vm2, %v5914_v34, 0.0 }
 0x1b1   : > { %9145 = vst [vmem:[#allocation36_spill] sm:$0xff] %v6206_v39  ;;  %v663_v16 = vadd.f32 %v662_v31, %v661_v44  ;;  %v666_v48 = vsel %vm638_vm2, %v6206_v39, 0.0  ;;  %v1212_v31 = vld [vmem:[#allocation2 + $0x1d1] sm:$0xff]  ;;  %v6235_v60 = vmax.f32 %v604_v1, 0.0 }
 0x1b2   : > { %908 = vst.msk [vmem:[#allocation2 + $0x108] sm:$0xff] %vm638_vm2, %v6206_v39  ;;  %v6216_v53 = vld [vmem:[#allocation2 + $0xe9] sm:$0xff]  ;;  %1440 = vrot.lane.b32.xlu1 %v5902_v27, %s5624_s22  ;;  %v1198_v33 = vld [vmem:[#allocation2 + $0xf1] sm:$0xff] }
 0x1b3   : > { %1261 = vrot.lane.b32.xlu2 %v6208_v11, %s5623_s21  ;;  %2384 = vst.msk [vmem:[#allocation3 + $0xa8] sm:$0xff] %vm638_vm2, %v6216_v53  ;;  %v665_v5 = vadd.f32 %v664_v62, %v663_v16  ;;  %v6256_v16 = vld [vmem:[#allocation2 + $0x188] sm:$0xff] }
 0x1b4   : > { %2385 = vst.msk [vmem:[#allocation3 + $0xb8] sm:$0xff] %vm638_vm2, %v1198_v33  ;;  %v537_v10 = vpop.trf.xlu0  ;;  %v569_v7 = vpop.trf.xlu1 }
 0x1b5   : > { %v1093_v2 = vpop.permute.xlu2 %1092  ;;  %v589_v27 = vadd.f32 %v5879_v12, %v537_v10  ;;  %v605_v44 = vadd.f32 %v5879_v12, %v569_v7  ;;  %9147 = vst [vmem:[#allocation38_spill] sm:$0xff] %v6235_v60 }
 0x1b6   : > { %1170 = vst.msk [vmem:[#allocation3 + $0x130] sm:$0xff] %vm1150_vm3, %v1093_v2  ;;  %1301 = vrot.lane.b32.xlu0 %v1210_v18, %s5623_s21  ;;  %v667_v2 = vadd.f32 %v666_v48, %v665_v5  ;;  %v670_v5 = vsel %vm638_vm2, %v5883_v17, 0.0  ;;  %v6260_v48 = vld [vmem:[#allocation2 + $0x1e8] sm:$0xff] }
 0x1b7   : > { %v6232_v51 = vmax.f32 %v589_v27, 0.0  ;;  %v6242_v49 = vmax.f32 %v605_v44, 0.0  ;;  %924 = vst.msk [vmem:[#allocation2 + $0x208] sm:$0xff] %vm638_vm2, %v6235_v60  ;;  %v678_v44 = vsel %vm638_vm2, %v5962_v54, 0.0 }
 0x1b9   : > { %9146 = vst [vmem:[#allocation37_spill] sm:$0xff] %v6232_v51  ;;  %v668_v10 = vsel %vm638_vm2, %v6232_v51, 0.0 }
 0x1ba   : > { %909 = vst.msk [vmem:[#allocation2 + $0x110] sm:$0xff] %vm638_vm2, %v6232_v51  ;;  %v669_v62 = vadd.f32 %v668_v10, %v667_v2  ;;  %1305 = vrot.lane.b32.xlu1 %v1212_v31, %s5623_s21  ;;  %v676_v31 = vsel %vm638_vm2, %v5941_v45, 0.0  ;;  %v6314_v51 = vld [vmem:[#allocation2 + $0x190] sm:$0xff] }
 0x1bb   : > { %1070 = vrot.lane.b32.xlu2 %v998_v30, %s5622_s18  ;;  %9148 = vst [vmem:[#allocation39_spill] sm:$0xff] %v6242_v49  ;;  %v672_v30 = vsel %vm638_vm2, %v5893_v23, 0.0 }
 0x1bc   : > { %925 = vst.msk [vmem:[#allocation2 + $0x210] sm:$0xff] %vm638_vm2, %v6242_v49  ;;  %v671_v7 = vadd.f32 %v670_v5, %v669_v62  ;;  %v680_v62 = vsel %vm638_vm2, %v5990_v3, 0.0 }
 0x1bd   : > { %v1063_v12 = vpop.permute.xlu2 %1062 }
 0x1be   : > { %1155 = vst.msk [vmem:[#allocation3 + $0x40] sm:$0xff] %vm1150_vm3, %v1063_v12  ;;  %v673_v18 = vadd.f32 %v672_v30, %v671_v7  ;;  %1271 = vrot.lane.b32.xlu0 %v6159_v8, %s5623_s21  ;;  %v6278_v12 = vld [vmem:[#allocation2 + $0x90] sm:$0xff]  ;;  %v717_v7 = vld [vmem:[%s9019_s7 + $0x8] sm:$0xff]  ;;  %v716_v30 = vld [vmem:[%s9019_s7] sm:$0xff] }
 0x1bf   : > { %735 = vmatpush.msra.mxu2 %v717_v7  ;;  %v5625_v7 = vmov 256.0  }
 0x1c0   : > { %v675_v27 = vadd.f32 %v674_v25, %v673_v18  ;;  %v682_v18 = vsel %vm638_vm2, %v6011_v15, 0.0  ;;  %v684_v25 = vsel %vm638_vm2, %v6037_v40, 0.0  ;;  %5596 = vrcp.f32 %v5625_v7  ;;  %v6536_v40 = vld [vmem:[#allocation2 + $0x107] sm:$0xff] }
 0x1c1   : > { %v6262_v1 = vld [vmem:[#allocation2 + $0x111] sm:$0xff]  ;;  %736 = vmatpush.msra.mxu2 %v716_v30  ;;  %v6305_v30 = vld [vmem:[#allocation2 + $0xa9] sm:$0xff]  ;;  %v696_v7 = vsel %vm638_vm2, %v6185_v13, 0.0  ;;  %974 = vst.msk [vmem:[#allocation3 + $0x100] sm:$0xff] %vm638_vm2, %v6536_v40 }
 0x1c2   : > { %2387 = vst.msk [vmem:[#allocation3 + $0xd8] sm:$0xff] %vm638_vm2, %v6262_v1  ;;  %v677_v8 = vadd.f32 %v676_v31, %v675_v27  ;;  %1114 = vrot.lane.b32.xlu1 %v6260_v48, %s5622_s18  ;;  %v6294_v31 = vld [vmem:[#allocation2 + $0xaf] sm:$0xff] }
 0x1c3   : > { %1102 = vrot.lane.b32.xlu2 %v6256_v16, %s5622_s18  ;;  %969 = vst.msk [vmem:[#allocation3 + $0xb0] sm:$0xff] %vm638_vm2, %v6294_v31  ;;  %v6547_v15 = vld [vmem:[#allocation2 + $0x209] sm:$0xff]  ;;  %v6565_v54 = vld [vmem:[#allocation2 + $0x211] sm:$0xff] }
 0x1c4   : > { %v679_v10 = vadd.f32 %v678_v44, %v677_v8  ;;  %v688_v44 = vsel %vm638_vm2, %v6082_v29, 0.0  ;;  %2380 = vst.msk [vmem:[#allocation3 + $0x68] sm:$0xff] %vm638_vm2, %v6305_v30 }
 0x1c5   : > { %v1095_v2 = vpop.permute.xlu2 %1094  ;;  %2402 = vst.msk [vmem:[#allocation3 + $0x1c8] sm:$0xff] %vm638_vm2, %v6547_v15 }
 0x1c6   : > { %1171 = vst.msk [vmem:[#allocation3 + $0x140] sm:$0xff] %vm1150_vm3, %v1095_v2  ;;  %v681_v5 = vadd.f32 %v680_v62, %v679_v10  ;;  %1277 = vrot.lane.b32.xlu0 %v1198_v33, %s5623_s21  ;;  %v686_v33 = vsel %vm638_vm2, %v6060_v63, 0.0  ;;  %v1213_v10 = vld [vmem:[#allocation2 + $0x1e9] sm:$0xff] }
 0x1c7   : > { %v6302_v62 = vld [vmem:[#allocation2 + $0xa7] sm:$0xff]  ;;  %2403 = vst.msk [vmem:[#allocation3 + $0x1d8] sm:$0xff] %vm638_vm2, %v6565_v54 }
 0x1c8   : > { %v683_v27 = vadd.f32 %v682_v18, %v681_v5  ;;  %v690_v18 = vsel %vm638_vm2, %v6098_v58, 0.0  ;;  %968 = vst.msk [vmem:[#allocation3 + $0xa0] sm:$0xff] %vm638_vm2, %v6302_v62  ;;  %v6533_v63 = vld [vmem:[#allocation2 + $0x109] sm:$0xff] }
 0x1c9   : > { %2386 = vst.msk [vmem:[#allocation3 + $0xc8] sm:$0xff] %vm638_vm2, %v6533_v63 }
 0x1ca   : > { %v685_v8 = vadd.f32 %v684_v25, %v683_v27  ;;  %1275 = vrot.lane.b32.xlu1 %v6216_v53, %s5623_s21  ;;  %v6309_v25 = vld [vmem:[#allocation2 + $0xc7] sm:$0xff] }
 0x1cb   : > { %1072 = vrot.lane.b32.xlu2 %v6278_v12, %s5622_s18  ;;  %970 = vst.msk [vmem:[#allocation3 + $0xc0] sm:$0xff] %vm638_vm2, %v6309_v25 }
 0x1cc   : > { %v687_v5 = vadd.f32 %v686_v33, %v685_v8  ;;  %v692_v33 = vsel %vm638_vm2, %v6118_v19, 0.0  ;;  %v6332_v19 = vld [vmem:[#allocation2 + $0x1a7] sm:$0xff] }
 0x1cd   : > { %v1065_v2 = vpop.permute.xlu2 %1064  ;;  %984 = vst.msk [vmem:[#allocation3 + $0x1a0] sm:$0xff] %vm638_vm2, %v6332_v19 }
 0x1ce   : > { %1156 = vst.msk [vmem:[#allocation3 + $0x50] sm:$0xff] %vm1150_vm3, %v1065_v2  ;;  %v689_v27 = vadd.f32 %v688_v44, %v687_v5  ;;  %1307 = vrot.lane.b32.xlu0 %v1213_v10, %s5623_s21  ;;  %v694_v2 = vsel %vm638_vm2, %v6148_v24, 0.0  ;;  %v5597_v44 = vpop.eup %5596  ;;  %v6328_v5 = vld [vmem:[#allocation2 + $0xe7] sm:$0xff]  ;;  %v1389_v24 = vld [vmem:[#allocation2 + $0xef] sm:$0xff] }
 0x1cf   : > { %972 = vst.msk [vmem:[#allocation3 + $0xe0] sm:$0xff] %vm638_vm2, %v6328_v5  ;;  %vm713_vm5 = vweird.f32 %v5597_v44 }
 0x1d0   : > { %v691_v8 = vadd.f32 %v690_v18, %v689_v27  ;;  %v6334_v18 = vld [vmem:[#allocation2 + $0x1af] sm:$0xff]  ;;  %973 = vst.msk [vmem:[#allocation3 + $0xf0] sm:$0xff] %vm638_vm2, %v1389_v24 }
 0x1d1   : > { %985 = vst.msk [vmem:[#allocation3 + $0x1b0] sm:$0xff] %vm638_vm2, %v6334_v18 }
 0x1d2   : > { %v693_v10 = vadd.f32 %v692_v33, %v691_v8  ;;  %1446 = vrot.lane.b32.xlu1 %v5970_v55, %s5624_s22  ;;  %v698_v33 = vsel %vm638_vm2, %v6235_v60, 0.0  ;;  %v709_v55 = vmul.f32 256.0, %v5597_v44  ;;  %v6343_v8 = vld [vmem:[#allocation2 + $0x1a9] sm:$0xff] }
 0x1d3   : > { %1104 = vrot.lane.b32.xlu2 %v6314_v51, %s5622_s18  ;;  %2396 = vst.msk [vmem:[#allocation3 + $0x168] sm:$0xff] %vm638_vm2, %v6343_v8 }
 0x1d4   : > { %v695_v27 = vadd.f32 %v694_v2, %v693_v10  ;;  %v6352_v10 = vld [vmem:[#allocation2 + $0x169] sm:$0xff] }
 0x1d5   : > { %v1097_v39 = vpop.permute.xlu2 %1096 }
 0x1d6   : > { %1172 = vst.msk [vmem:[#allocation3 + $0x150] sm:$0xff] %vm1150_vm3, %v1097_v39  ;;  %v697_v13 = vadd.f32 %v696_v7, %v695_v27  ;;  %1442 = vrot.lane.b32.xlu0 %v5923_v36, %s5624_s22  ;;  %v700_v39 = vsel %vm638_vm2, %v6242_v49, 0.0  ;;  %v710_v7 = vsub.f32 1.0, %v709_v55  ;;  %v1391_v36 = vld [vmem:[#allocation2 + $0x10f] sm:$0xff] }
 0x1d7   : > { %975 = vst.msk [vmem:[#allocation3 + $0x110] sm:$0xff] %vm638_vm2, %v1391_v36  ;;  %v6365_v55 = vld [vmem:[#allocation2 + $0x191] sm:$0xff] }
 0x1d8   : > { %v699_v2 = vadd.f32 %v698_v33, %v697_v13  ;;  %v711_v33 = vmul.f32 %v5597_v44, %v710_v7 }
 0x1da   : > { %v701_v27 = vadd.f32 %v700_v39, %v699_v2  ;;  %1281 = vrot.lane.b32.xlu1 %v6262_v1, %s5623_s21  ;;  %v712_v2 = vadd.f32 %v5597_v44, %v711_v33 }
 0x1db   : > { %1291 = vrot.lane.b32.xlu2 %v6352_v10, %s5623_s21 }
 0x1dc   : > { %v702_v60 = vrot.slane %v701_v27, 4  ;;  %v1061_v13 = vpop.permute.xlu1 %1060 }
 0x1dd   : > { %v1256_v49 = vpop.permute.xlu2 %1255  ;;  %1154 = vst.msk [vmem:[#allocation3 + $0x30] sm:$0xff] %vm1150_vm3, %v1061_v13  ;;  %v6379_v13 = vld [vmem:[#allocation2 + $0xa8] sm:$0xff] }
 0x1de   : > { %1348 = vst.msk [vmem:[#allocation3 + $0x40] sm:$0xff] %vm1343_vm4, %v1256_v49  ;;  %v703_v58 = vadd.f32 %v702_v60, %v701_v27  ;;  %1448 = vrot.lane.b32.xlu0 %v6003_v6, %s5624_s22  ;;  %v6372_v27 = vld [vmem:[#allocation2 + $0x1b1] sm:$0xff]  ;;  %v6375_v6 = vsel %vm713_vm5, %v5597_v44, %v712_v2  ;;  %vm4704_vm5 = vcmask 589312  }
 0x1df   : > { %9149 = vst [vmem:[#allocation40_spill] sm:$0xff] %v6375_v6 }
 0x1e0   : > { %v704_v39 = vrot.slane %v703_v58, 2  ;;  %2397 = vst.msk [vmem:[#allocation3 + $0x178] sm:$0xff] %vm638_vm2, %v6372_v27 }
 0x1e2   : > { %1452 = vrot.lane.b32.xlu1 %v6131_v41, %s5624_s22  ;;  %v705_v29 = vadd.f32 %v704_v39, %v703_v58 }
 0x1e3   : > { %1297 = vrot.lane.b32.xlu2 %v6365_v55, %s5623_s21 }
 0x1e4   : > { %v1248_v7 = vpop.permute.xlu1 %1247  ;;  %v706_v60 = vrot.slane %v705_v29, 1 }
 0x1e5   : > { %v1067_v49 = vpop.permute.xlu2 %1066  ;;  %1344 = vst.msk [vmem:[#allocation3] sm:$0xff] %vm1343_vm4, %v1248_v7 }
 0x1e6   : > { %1157 = vst.msk [vmem:[#allocation3 + $0x60] sm:$0xff] %vm1150_vm3, %v1067_v49  ;;  %1454 = vrot.lane.b32.xlu0 %v6133_v42, %s5624_s22  ;;  %v707_v33 = vadd.f32 %v706_v60, %v705_v29  ;;  %v1016_v29 = vld [vmem:[#allocation2 + $0x1a8] sm:$0xff] }
 0x1e7   : > { %v6397_v49 = vld [vmem:[#allocation2 + $0xcf] sm:$0xff] }
 0x1e8   : > { %v715_v58 = vmul.f32 %v6375_v6, %v707_v33  ;;  %971 = vst.msk [vmem:[#allocation3 + $0xd0] sm:$0xff] %vm638_vm2, %v6397_v49  ;;  %v1403_v33 = vld [vmem:[#allocation2 + $0x1cf] sm:$0xff] }
 0x1e9   : > { %987 = vst.msk [vmem:[#allocation3 + $0x1d0] sm:$0xff] %vm638_vm2, %v1403_v33 }
 0x1ea   : > { %1458 = vrot.lane.b32.xlu1 %v6294_v31, %s5624_s22  ;;  %5468 = vmatmul.msk.f32.vlgmr.msra.gmra.mxu2 %vm638_vm2, %v715_v58 }
 0x1eb   : > { %1074 = vrot.lane.b32.xlu2 %v6379_v13, %s5622_s18 }
 0x1ec   : > { %v1252_v42 = vpop.permute.xlu1 %1251 }
 0x1ed   : > { %v1099_v44 = vpop.permute.xlu2 %1098 }
 0x1ee   : > { %1173 = vst.msk [vmem:[#allocation3 + $0x160] sm:$0xff] %vm1150_vm3, %v1099_v44  ;;  %1460 = vrot.lane.b32.xlu0 %v6309_v25, %s5624_s22  ;;  %v6402_v25 = vld [vmem:[#allocation2 + $0xb0] sm:$0xff]  ;;  %v6412_v44 = vld [vmem:[#allocation2 + $0x1c7] sm:$0xff] }
 0x1ef   : > { %986 = vst.msk [vmem:[#allocation3 + $0x1c0] sm:$0xff] %vm638_vm2, %v6412_v44 }
 0x1f0   : > { %v1059_v39 = vpop.permute.xlu0 %1058 }
 0x1f1   : > { %1153 = vst.msk [vmem:[#allocation3 + $0x20] sm:$0xff] %vm1150_vm3, %v1059_v39  ;;  %v6419_v39 = vld [vmem:[#allocation2 + $0x1b0] sm:$0xff] }
 0x1f2   : > { %1346 = vst.msk [vmem:[#allocation3 + $0x20] sm:$0xff] %vm1343_vm4, %v1252_v42  ;;  %1464 = vrot.lane.b32.xlu1 %v6328_v5, %s5624_s22  ;;  %v1404_v42 = vld [vmem:[#allocation2 + $0x1e7] sm:$0xff] }
 0x1f3   : > { %1106 = vrot.lane.b32.xlu2 %v1016_v29, %s5622_s18  ;;  %v6415_v29 = vld [vmem:[#allocation2 + $0x1c9] sm:$0xff]  ;;  %988 = vst.msk [vmem:[#allocation3 + $0x1e0] sm:$0xff] %vm638_vm2, %v1404_v42 }
 0x1f4   : > { %v1258_v7 = vpop.permute.xlu1 %1257  ;;  %2398 = vst.msk [vmem:[#allocation3 + $0x188] sm:$0xff] %vm638_vm2, %v6415_v29 }
 0x1f5   : > { %v1069_v2 = vpop.permute.xlu2 %1068  ;;  %1349 = vst.msk [vmem:[#allocation3 + $0x50] sm:$0xff] %vm1343_vm4, %v1258_v7 }
 0x1f6   : > { %1158 = vst.msk [vmem:[#allocation3 + $0x70] sm:$0xff] %vm1150_vm3, %v1069_v2  ;;  %1466 = vrot.lane.b32.xlu0 %v1389_v24, %s5624_s22  ;;  %v6431_v2 = vld [vmem:[#allocation2 + $0xd1] sm:$0xff] }
 0x1f7   : > { %2383 = vst.msk [vmem:[#allocation3 + $0x98] sm:$0xff] %vm638_vm2, %v6431_v2 }
 0x1f8   : > { %v1254_v60 = vpop.permute.xlu0 %1253 }
 0x1f9   : > { %1347 = vst.msk [vmem:[#allocation3 + $0x30] sm:$0xff] %vm1343_vm4, %v1254_v60 }
 0x1fa   : > { %1470 = vrot.lane.b32.xlu1 %v1391_v36, %s5624_s22 }
 0x1fb   : > { %1076 = vrot.lane.b32.xlu2 %v6402_v25, %s5622_s18 }
 0x1fc   : > { %v1288_v24 = vpop.permute.xlu1 %1287 }
 0x1fd   : > { %v1101_v58 = vpop.permute.xlu2 %1100  ;;  %1364 = vst.msk [vmem:[#allocation3 + $0x140] sm:$0xff] %vm1343_vm4, %v1288_v24 }
 0x1fe   : > { %1174 = vst.msk [vmem:[#allocation3 + $0x170] sm:$0xff] %vm1150_vm3, %v1101_v58  ;;  %1472 = vrot.lane.b32.xlu0 %v5897_v26, %s5624_s22  ;;  %v6443_v58 = vld [vmem:[#allocation2 + $0x1d1] sm:$0xff] }
 0x1ff   : > { %2399 = vst.msk [vmem:[#allocation3 + $0x198] sm:$0xff] %vm638_vm2, %v6443_v58 }
 0x200   : > { %v1260_v36 = vpop.permute.xlu0 %1259 }
 0x201   : > { %1350 = vst.msk [vmem:[#allocation3 + $0x60] sm:$0xff] %vm1343_vm4, %v1260_v36 }
 0x202   : > { %1476 = vrot.lane.b32.xlu1 %v5948_v47, %s5624_s22 }
 0x203   : > { %1108 = vrot.lane.b32.xlu2 %v6419_v39, %s5622_s18 }
 0x204   : > { %v1264_v7 = vpop.permute.xlu1 %1263 }
 0x205   : > { %v1286_v26 = vpop.permute.xlu2 %1285 }
 0x206   : > { %1363 = vst.msk [vmem:[#allocation3 + $0x130] sm:$0xff] %vm1343_vm4, %v1286_v26  ;;  %1478 = vrot.lane.b32.xlu0 %v5972_v56, %s5624_s22  ;;  %v6449_v56 = vld [vmem:[#allocation2 + $0xc8] sm:$0xff] }
 0x208   : > { %v1284_v60 = vpop.permute.xlu0 %1283 }
 0x209   : > { %1362 = vst.msk [vmem:[#allocation3 + $0x120] sm:$0xff] %vm1343_vm4, %v1284_v60 }
 0x20a   : > { %1482 = vrot.lane.b32.xlu1 %v6025_v28, %s5624_s22 }
 0x20b   : > { %1267 = vrot.lane.b32.xlu2 %v6305_v30, %s5623_s21 }
 0x20c   : > { %v1294_v24 = vpop.permute.xlu1 %1293 }
 0x20d   : > { %v1262_v47 = vpop.permute.xlu2 %1261  ;;  %1367 = vst.msk [vmem:[#allocation3 + $0x170] sm:$0xff] %vm1343_vm4, %v1294_v24  ;;  %v1406_v24 = vld [vmem:[#allocation2 + $0x207] sm:$0xff] }
 0x20e   : > { %1351 = vst.msk [vmem:[#allocation3 + $0x70] sm:$0xff] %vm1343_vm4, %v1262_v47  ;;  %1484 = vrot.lane.b32.xlu0 %v6163_v61, %s5624_s22  ;;  %v6463_v61 = vld [vmem:[#allocation2 + $0x1c8] sm:$0xff] }
 0x210   : > { %v1266_v36 = vpop.permute.xlu0 %1265 }
 0x212   : > { %1488 = vrot.lane.b32.xlu1 %v6332_v19, %s5624_s22 }
 0x213   : > { %1078 = vrot.lane.b32.xlu2 %v6449_v56, %s5622_s18 }
 0x214   : > { %v6458_v26 = vpop.permute.xlu1 %1269 }
 0x215   : > { %v1071_v28 = vpop.permute.xlu2 %1070 }
 0x216   : > { %1159 = vst.msk [vmem:[#allocation3 + $0x80] sm:$0xff] %vm1150_vm3, %v1071_v28  ;;  %1490 = vrot.lane.b32.xlu0 %v6334_v18, %s5624_s22 }
 0x217   : > { %1352 = vst.msk [vmem:[#allocation3 + $0x80] sm:$0xff] %vm1343_vm4, %v1264_v7  ;;  %v1003_v7 = vld [vmem:[#allocation2 + $0xd0] sm:$0xff] }
 0x218   : > { %v1290_v60 = vpop.permute.xlu0 %1289 }
 0x219   : > { %1365 = vst.msk [vmem:[#allocation3 + $0x150] sm:$0xff] %vm1343_vm4, %v1290_v60  ;;  %v1407_v60 = vld [vmem:[#allocation2 + $0x20f] sm:$0xff] }
 0x21a   : > { %1494 = vrot.lane.b32.xlu1 %v1403_v33, %s5624_s22 }
 0x21b   : > { %1110 = vrot.lane.b32.xlu2 %v6463_v61, %s5622_s18 }
 0x21c   : > { %v6470_v47 = vpop.permute.xlu1 %1299 }
 0x21d   : > { %v1103_v19 = vpop.permute.xlu2 %1102 }
 0x21e   : > { %1175 = vst.msk [vmem:[#allocation3 + $0x180] sm:$0xff] %vm1150_vm3, %v1103_v19  ;;  %1496 = vrot.lane.b32.xlu0 %v1404_v42, %s5624_s22  ;;  %v6480_v42 = vld [vmem:[#allocation2 + $0x1d0] sm:$0xff] }
 0x220   : > { %v1296_v18 = vpop.permute.xlu0 %1295 }
 0x221   : > { %1368 = vst.msk [vmem:[#allocation3 + $0x180] sm:$0xff] %vm1343_vm4, %v1296_v18  ;;  %v6488_v18 = vld [vmem:[#allocation2 + $0x1ef] sm:$0xff] }
 0x222   : > { %1500 = vrot.lane.b32.xlu1 %v1406_v24, %s5624_s22  ;;  %989 = vst.msk [vmem:[#allocation3 + $0x1f0] sm:$0xff] %vm638_vm2, %v6488_v18 }
 0x223   : > { %1080 = vrot.lane.b32.xlu2 %v1003_v7, %s5622_s18 }
 0x224   : > { %v1441_v33 = vpop.permute.xlu1 %1440 }
 0x225   : > { %v1073_v28 = vpop.permute.xlu2 %1072  ;;  %1537 = vst.msk [vmem:[#allocation3] sm:$0xff] %vm1536_vm6, %v1441_v33  ;;  %v6507_v33 = vld [vmem:[#allocation2 + $0x1f1] sm:$0xff] }
 0x226   : > { %1160 = vst.msk [vmem:[#allocation3 + $0x90] sm:$0xff] %vm1150_vm3, %v1073_v28  ;;  %1502 = vrot.lane.b32.xlu0 %v1407_v60, %s5624_s22  ;;  %v6493_v28 = vld [vmem:[#allocation2 + $0x1e9] sm:$0xff] }
 0x227   : > { %1353 = vst.msk [vmem:[#allocation3 + $0x90] sm:$0xff] %vm1343_vm4, %v1266_v36 }
 0x228   : > { %v6482_v19 = vpop.permute.xlu0 %1301  ;;  %2400 = vst.msk [vmem:[#allocation3 + $0x1a8] sm:$0xff] %vm638_vm2, %v6493_v28 }
 0x229   : > { %2401 = vst.msk [vmem:[#allocation3 + $0x1b8] sm:$0xff] %vm638_vm2, %v6507_v33 }
 0x22a   : > { %1635 = vrot.lane.b32.xlu1 %v5997_v4, %s5626_s29 }
 0x22b   : > { %1112 = vrot.lane.b32.xlu2 %v6480_v42, %s5622_s18 }
 0x22c   : > { %v6491_v36 = vpop.permute.xlu1 %1305 }
 0x22d   : > { %v1105_v24 = vpop.permute.xlu2 %1104 }
 0x22e   : > { %1176 = vst.msk [vmem:[#allocation3 + $0x190] sm:$0xff] %vm1150_vm3, %v1105_v24  ;;  %1637 = vrot.lane.b32.xlu0 %v5958_v52, %s5626_s29 }
 0x230   : > { %v6501_v60 = vpop.permute.xlu0 %1271 }
 0x232   : > { %1641 = vrot.lane.b32.xlu1 %v6078_v22, %s5626_s29 }
 0x233   : > { %1273 = vrot.lane.b32.xlu2 %v6431_v2, %s5623_s21 }
 0x234   : > { %v1115_v24 = vpop.permute.xlu1 %1114 }
 0x235   : > { %v1292_v4 = vpop.permute.xlu2 %1291  ;;  %1181 = vst.msk [vmem:[#allocation3 + $0x1e0] sm:$0xff] %vm1150_vm3, %v1115_v24 }
 0x236   : > { %1366 = vst.msk [vmem:[#allocation3 + $0x160] sm:$0xff] %vm1343_vm4, %v1292_v4  ;;  %1643 = vrot.lane.b32.xlu0 %v6114_v14, %s5626_s29  ;;  %v6526_v14 = vld [vmem:[#allocation2 + $0xe8] sm:$0xff] }
 0x238   : > { %v6515_v52 = vpop.permute.xlu0 %1277 }
 0x23a   : > { %1647 = vrot.lane.b32.xlu1 %v6278_v12, %s5626_s29 }
 0x23b   : > { %1303 = vrot.lane.b32.xlu2 %v6415_v29, %s5623_s21 }
 0x23c   : > { %v6522_v4 = vpop.permute.xlu1 %1275 }
 0x23d   : > { %v1298_v22 = vpop.permute.xlu2 %1297 }
 0x23e   : > { %1369 = vst.msk [vmem:[#allocation3 + $0x190] sm:$0xff] %vm1343_vm4, %v1298_v22  ;;  %1649 = vrot.lane.b32.xlu0 %v6379_v13, %s5626_s29  ;;  %v1005_v13 = vld [vmem:[#allocation2 + $0xf0] sm:$0xff] }
 0x240   : > { %v1308_v24 = vpop.permute.xlu0 %1307 }
 0x241   : > { %1374 = vst.msk [vmem:[#allocation3 + $0x1e0] sm:$0xff] %vm1343_vm4, %v1308_v24 }
 0x242   : > { %1653 = vrot.lane.b32.xlu1 %v6449_v56, %s5626_s29 }
 0x243   : > { %1082 = vrot.lane.b32.xlu2 %v6526_v14, %s5622_s18 }
 0x244   : > { %v1447_v22 = vpop.permute.xlu1 %1446 }
 0x245   : > { %v1075_v12 = vpop.permute.xlu2 %1074  ;;  %1540 = vst.msk [vmem:[#allocation3 + $0x30] sm:$0xff] %vm1536_vm6, %v1447_v22  ;;  %v1021_v22 = vld [vmem:[#allocation2 + $0x1f0] sm:$0xff] }
 0x246   : > { %1161 = vst.msk [vmem:[#allocation3 + $0xa0] sm:$0xff] %vm1150_vm3, %v1075_v12  ;;  %1655 = vrot.lane.b32.xlu0 %v1003_v7, %s5626_s29  ;;  %v1583_v12 = vld [vmem:[#allocation2 + $0x108] sm:$0xff] }
 0x248   : > { %v1443_v56 = vpop.permute.xlu0 %1442 }
 0x249   : > { %1538 = vst.msk [vmem:[#allocation3 + $0x10] sm:$0xff] %vm1536_vm6, %v1443_v56  ;;  %v742_v56 = vld [vmem:[%s9020_s8] sm:$0xf] }
 0x24a   : > { %1659 = vrot.lane.b32.xlu1 %v1005_v13, %s5626_s29  ;;  %5469 = vmatpush.msk.msra.mxu3 %vm455_vm0, %v742_v56  ;;  %v2487_v56 = vld [vmem:[%s9015_s3 + $0x88] sm:$0xff]  ;;  %vm3738_vm0 = vcmask 261312  }
 0x24b   : > { %1084 = vrot.lane.b32.xlu2 %v1005_v13, %s5622_s18 }
 0x24c   : > { %v6550_v7 = vpop.permute.xlu1 %1281  ;;  %5561 = vmatpush.msrb.mxu3 %v2487_v56 }
 0x24d   : > { %v1107_v24 = vpop.permute.xlu2 %1106 }
 0x24e   : > { %1177 = vst.msk [vmem:[#allocation3 + $0x1a0] sm:$0xff] %vm1150_vm3, %v1107_v24  ;;  %1661 = vrot.lane.b32.xlu0 %v1583_v12, %s5626_s29  ;;  %v1585_v24 = vld [vmem:[#allocation2 + $0x128] sm:$0xff] }
 0x24f   : > { %1370 = vst.msk [vmem:[#allocation3 + $0x1a0] sm:$0xff] %vm1343_vm4, %v6470_v47 }
 0x250   : > { %v1449_v13 = vpop.permute.xlu0 %1448 }
 0x251   : > { %1541 = vst.msk [vmem:[#allocation3 + $0x40] sm:$0xff] %vm1536_vm6, %v1449_v13  ;;  %v5610_v13 = vld [vmem:[#allocation2 + $0x130] sm:$0xff] }
 0x252   : > { %1665 = vrot.lane.b32.xlu1 %v1585_v24, %s5626_s29  ;;  %v2486_v24 = vld [vmem:[%s9015_s3 + $0x80] sm:$0xff] }
 0x253   : > { %1116 = vrot.lane.b32.xlu2 %v1021_v22, %s5622_s18  ;;  %5562 = vmatpush.msrb.mxu3 %v2486_v24 }
 0x254   : > { %v1453_v3 = vpop.permute.xlu1 %1452 }
 0x255   : > { %v1077_v47 = vpop.permute.xlu2 %1076  ;;  %1543 = vst.msk [vmem:[#allocation3 + $0x60] sm:$0xff] %vm1536_vm6, %v1453_v3 }
 0x256   : > { %1162 = vst.msk [vmem:[#allocation3 + $0xb0] sm:$0xff] %vm1150_vm3, %v1077_v47  ;;  %1667 = vrot.lane.b32.xlu0 %v5610_v13, %s5626_s29 }
 0x257   : > { %1355 = vst.msk [vmem:[#allocation3 + $0xb0] sm:$0xff] %vm1343_vm4, %v6458_v26 }
 0x258   : > { %v1455_v47 = vpop.permute.xlu0 %1454 }
 0x259   : > { %1544 = vst.msk [vmem:[#allocation3 + $0x70] sm:$0xff] %vm1536_vm6, %v1455_v47 }
 0x25a   : > { %1671 = vrot.lane.b32.xlu1 %v6031_v32, %s5626_s29 }
 0x25b   : > { %1444 = vrot.lane.b32.xlu2 %v5943_v46, %s5624_s22 }
 0x25c   : > { %v1459_v26 = vpop.permute.xlu1 %1458 }
 0x25d   : > { %v1109_v3 = vpop.permute.xlu2 %1108  ;;  %1546 = vst.msk [vmem:[#allocation3 + $0x90] sm:$0xff] %vm1536_vm6, %v1459_v26 }
 0x25e   : > { %1178 = vst.msk [vmem:[#allocation3 + $0x1b0] sm:$0xff] %vm1150_vm3, %v1109_v3  ;;  %1673 = vrot.lane.b32.xlu0 %v6094_v50, %s5626_s29  ;;  %v1600_v3 = vld [vmem:[#allocation2 + $0x210] sm:$0xff] }
 0x25f   : > { %1371 = vst.msk [vmem:[#allocation3 + $0x1b0] sm:$0xff] %vm1343_vm4, %v6482_v19 }
 0x260   : > { %v1461_v56 = vpop.permute.xlu0 %1460 }
 0x262   : > { %1677 = vrot.lane.b32.xlu1 %v6256_v16, %s5626_s29 }
 0x263   : > { %1309 = vrot.lane.b32.xlu2 %v6507_v33, %s5623_s21 }
 0x264   : > { %v1465_v32 = vpop.permute.xlu1 %1464 }
 0x265   : > { %v1268_v46 = vpop.permute.xlu2 %1267 }
 0x266   : > { %1354 = vst.msk [vmem:[#allocation3 + $0xa0] sm:$0xff] %vm1343_vm4, %v1268_v46  ;;  %1679 = vrot.lane.b32.xlu0 %v6314_v51, %s5626_s29 }
 0x267   : > { %1547 = vst.msk [vmem:[#allocation3 + $0xa0] sm:$0xff] %vm1536_vm6, %v1461_v56  ;;  %v1762_v56 = vld [vmem:[#allocation2 + $0x29] sm:$0xff] }
 0x268   : > { %v1467_v19 = vpop.permute.xlu0 %1466 }
 0x26a   : > { %1683 = vrot.lane.b32.xlu1 %v6419_v39, %s5626_s29  ;;  %v6612_v39 = vld [vmem:[#allocation2 + $0x110] sm:$0xff] }
 0x26b   : > { %1086 = vrot.lane.b32.xlu2 %v1583_v12, %s5622_s18 }
 0x26c   : > { %v6602_v13 = vpop.permute.xlu1 %1470 }
 0x26d   : > { %v1079_v50 = vpop.permute.xlu2 %1078  ;;  %v738_v16 = vpop.f32.mrf.mxu2 }
 0x26e   : > { %1163 = vst.msk [vmem:[#allocation3 + $0xc0] sm:$0xff] %vm1150_vm3, %v1079_v50  ;;  %v741_v24 = vmax.f32 %v738_v16, 0.0  ;;  %1685 = vrot.lane.b32.xlu0 %v6463_v61, %s5626_s29  ;;  %v2415_v61 = vld [vmem:[#allocation3 + $0x48] sm:$0xff] }
 0x26f   : > { %1356 = vst.msk [vmem:[#allocation3 + $0xc0] sm:$0xff] %vm1343_vm4, %v6501_v60 }
 0x270   : > { %1549 = vst.msk [vmem:[#allocation3 + $0xc0] sm:$0xff] %vm1536_vm6, %v1465_v32  ;;  %5470 = vmatmul.msk.f32.vlgmr.msra.gmra.mxu3 %vm448_vm1, %v741_v24  ;;  %v6610_v51 = vpop.permute.xlu0 %1472  ;;  %v1764_v32 = vld [vmem:[#allocation2 + $0x49] sm:$0xff]  ;;  %v1765_v24 = vld [vmem:[#allocation2 + $0x51] sm:$0xff]  ;;  %vm3931_vm1 = vcmask 326912  }
 0x272   : > { %1689 = vrot.lane.b32.xlu1 %v6260_v48, %s5626_s29 }
 0x273   : > { %1088 = vrot.lane.b32.xlu2 %v6612_v39, %s5622_s18 }
 0x274   : > { %v1477_v12 = vpop.permute.xlu1 %1476 }
 0x275   : > { %v1111_v60 = vpop.permute.xlu2 %1110  ;;  %1555 = vst.msk [vmem:[#allocation3 + $0x120] sm:$0xff] %vm1536_vm6, %v1477_v12 }
 0x276   : > { %1179 = vst.msk [vmem:[#allocation3 + $0x1c0] sm:$0xff] %vm1150_vm3, %v1111_v60  ;;  %1691 = vrot.lane.b32.xlu0 %v1021_v22, %s5626_s29  ;;  %v2417_v22 = vld [vmem:[#allocation3 + $0x58] sm:$0xff]  ;;  %v2419_v60 = vld [vmem:[#allocation3 + $0x68] sm:$0xff] }
 0x278   : > { %5475 = vmatmul.msk.f32.vlgmr.msrb.gmra.mxu3 %vm638_vm2, %v2415_v61  ;;  %v1479_v47 = vpop.permute.xlu0 %1478 }
 0x279   : > { %1556 = vst.msk [vmem:[#allocation3 + $0x130] sm:$0xff] %vm1536_vm6, %v1479_v47  ;;  %v1768_v47 = vld [vmem:[#allocation2 + $0x89] sm:$0xff] }
 0x27a   : > { %1695 = vrot.lane.b32.xlu1 %v1600_v3, %s5626_s29  ;;  %v2421_v3 = vld [vmem:[#allocation3 + $0x78] sm:$0xff] }
 0x27b   : > { %1279 = vrot.lane.b32.xlu2 %v6533_v63, %s5623_s21 }
 0x27c   : > { %v1483_v26 = vpop.permute.xlu1 %1482 }
 0x27d   : > { %v1081_v48 = vpop.permute.xlu2 %1080  ;;  %1558 = vst.msk [vmem:[#allocation3 + $0x150] sm:$0xff] %vm1536_vm6, %v1483_v26 }
 0x27e   : > { %1164 = vst.msk [vmem:[#allocation3 + $0xd0] sm:$0xff] %vm1150_vm3, %v1081_v48  ;;  %1826 = vrot.lane.b32.xlu0 %v1762_v56, %s5627_s20 }
 0x280   : > { %5476 = vmatmul.msk.f32.gmra.mxu3 %vm638_vm2, %v2417_v22  ;;  %v1485_v46 = vpop.permute.xlu0 %1484 }
 0x281   : > { %1559 = vst.msk [vmem:[#allocation3 + $0x160] sm:$0xff] %vm1536_vm6, %v1485_v46 }
 0x282   : > { %1830 = vrot.lane.b32.xlu1 %v1764_v32, %s5627_s20 }
 0x283   : > { %1450 = vrot.lane.b32.xlu2 %v6022_v21, %s5624_s22 }
 0x284   : > { %v1489_v16 = vpop.permute.xlu1 %1488 }
 0x285   : > { %v1113_v50 = vpop.permute.xlu2 %1112  ;;  %1561 = vst.msk [vmem:[#allocation3 + $0x180] sm:$0xff] %vm1536_vm6, %v1489_v16 }
 0x286   : > { %1180 = vst.msk [vmem:[#allocation3 + $0x1d0] sm:$0xff] %vm1150_vm3, %v1113_v50  ;;  %1832 = vrot.lane.b32.xlu0 %v1765_v24, %s5627_s20 }
 0x287   : > { %1373 = vst.msk [vmem:[#allocation3 + $0x1d0] sm:$0xff] %vm1343_vm4, %v6491_v36 }
 0x288   : > { %5477 = vmatmul.msk.f32.gmra.mxu3 %vm638_vm2, %v2419_v60  ;;  %v1491_v12 = vpop.permute.xlu0 %1490  ;;  %v2435_v60 = vld [vmem:[#allocation3 + $0xe8] sm:$0xff] }
 0x289   : > { %1562 = vst.msk [vmem:[#allocation3 + $0x190] sm:$0xff] %vm1536_vm6, %v1491_v12  ;;  %v1569_v12 = vld [vmem:[#allocation2 + $0x28] sm:$0xff] }
 0x28a   : > { %1836 = vrot.lane.b32.xlu1 %v6208_v11, %s5627_s20 }
 0x28b   : > { %1456 = vrot.lane.b32.xlu2 %v6302_v62, %s5624_s22 }
 0x28c   : > { %v1495_v36 = vpop.permute.xlu1 %1494 }
 0x28d   : > { %v1274_v61 = vpop.permute.xlu2 %1273  ;;  %1564 = vst.msk [vmem:[#allocation3 + $0x1b0] sm:$0xff] %vm1536_vm6, %v1495_v36 }
 0x28e   : > { %1357 = vst.msk [vmem:[#allocation3 + $0xd0] sm:$0xff] %vm1343_vm4, %v1274_v61  ;;  %1838 = vrot.lane.b32.xlu0 %v1768_v47, %s5627_s20  ;;  %v6743_v47 = vld [vmem:[#allocation2 + $0x50] sm:$0xff] }
 0x28f   : > { %1550 = vst.msk [vmem:[#allocation3 + $0xd0] sm:$0xff] %vm1536_vm6, %v1467_v19  ;;  %v2423_v19 = vld [vmem:[#allocation3 + $0x88] sm:$0xff] }
 0x290   : > { %5478 = vmatmul.msk.f32.gmra.mxu3 %vm638_vm2, %v2421_v3  ;;  %v1497_v48 = vpop.permute.xlu0 %1496 }
 0x292   : > { %1842 = vrot.lane.b32.xlu1 %v6305_v30, %s5627_s20 }
 0x293   : > { %1462 = vrot.lane.b32.xlu2 %v6397_v49, %s5624_s22 }
 0x294   : > { %v1501_v26 = vpop.permute.xlu1 %1500 }
 0x295   : > { %v1304_v11 = vpop.permute.xlu2 %1303  ;;  %1567 = vst.msk [vmem:[#allocation3 + $0x1e0] sm:$0xff] %vm1536_vm6, %v1501_v26  ;;  %v6757_v26 = vld [vmem:[#allocation2 + $0x88] sm:$0xff] }
 0x296   : > { %1372 = vst.msk [vmem:[#allocation3 + $0x1c0] sm:$0xff] %vm1343_vm4, %v1304_v11  ;;  %1844 = vrot.lane.b32.xlu0 %v6105_v59, %s5627_s20  ;;  %v2425_v59 = vld [vmem:[#allocation3 + $0x98] sm:$0xff] }
 0x297   : > { %1565 = vst.msk [vmem:[#allocation3 + $0x1c0] sm:$0xff] %vm1536_vm6, %v1497_v48  ;;  %v2439_v48 = vld [vmem:[#allocation3 + $0x108] sm:$0xff] }
 0x298   : > { %5479 = vmatmul.msk.f32.gmra.mxu3 %vm638_vm2, %v2423_v19  ;;  %v1503_v56 = vpop.permute.xlu0 %1502 }
 0x29a   : > { %1848 = vrot.lane.b32.xlu1 %v6431_v2, %s5627_s20 }
 0x29b   : > { %1468 = vrot.lane.b32.xlu2 %v6536_v40, %s5624_s22 }
 0x29c   : > { %v1636_v22 = vpop.permute.xlu1 %1635 }
 0x29d   : > { %v1083_v30 = vpop.permute.xlu2 %1082  ;;  %1731 = vst.msk [vmem:[#allocation3 + $0x10] sm:$0xff] %vm1729_vm7, %v1636_v22 }
 0x29e   : > { %1165 = vst.msk [vmem:[#allocation3 + $0xe0] sm:$0xff] %vm1150_vm3, %v1083_v30  ;;  %1850 = vrot.lane.b32.xlu0 %v6216_v53, %s5627_s20  ;;  %v2427_v53 = vld [vmem:[#allocation3 + $0xa8] sm:$0xff] }
 0x29f   : > { %1358 = vst.msk [vmem:[#allocation3 + $0xe0] sm:$0xff] %vm1343_vm4, %v6522_v4 }
 0x2a0   : > { %5480 = vmatmul.msk.f32.gmra.mxu3 %vm638_vm2, %v2425_v59  ;;  %v1638_v46 = vpop.permute.xlu0 %1637 }
 0x2a2   : > { %1854 = vrot.lane.b32.xlu1 %v6533_v63, %s5627_s20 }
 0x2a3   : > { %1474 = vrot.lane.b32.xlu2 %v5921_v35, %s5624_s22 }
 0x2a4   : > { %v1642_v32 = vpop.permute.xlu1 %1641 }
 0x2a5   : > { %v1085_v2 = vpop.permute.xlu2 %1084  ;;  %1734 = vst.msk [vmem:[#allocation3 + $0x40] sm:$0xff] %vm1729_vm7, %v1642_v32 }
 0x2a6   : > { %1166 = vst.msk [vmem:[#allocation3 + $0xf0] sm:$0xff] %vm1150_vm3, %v1085_v2  ;;  %1856 = vrot.lane.b32.xlu0 %v6262_v1, %s5627_s20  ;;  %v2429_v1 = vld [vmem:[#allocation3 + $0xb8] sm:$0xff]  ;;  %v2447_v2 = vld [vmem:[#allocation3 + $0x148] sm:$0xff] }
 0x2a7   : > { %1359 = vst.msk [vmem:[#allocation3 + $0xf0] sm:$0xff] %vm1343_vm4, %v6515_v52 }
 0x2a8   : > { %1552 = vst.msk [vmem:[#allocation3 + $0xf0] sm:$0xff] %vm1536_vm6, %v6602_v13  ;;  %5481 = vmatmul.msk.f32.gmra.mxu3 %vm638_vm2, %v2427_v53  ;;  %v6684_v35 = vpop.permute.xlu0 %1643  ;;  %v6810_v53 = vld [vmem:[#allocation2 + $0x148] sm:$0xff] }
 0x2aa   : > { %1860 = vrot.lane.b32.xlu1 %v5927_v37, %s5627_s20 }
 0x2ab   : > { %1480 = vrot.lane.b32.xlu2 %v6020_v20, %s5624_s22 }
 0x2ac   : > { %v1648_v52 = vpop.permute.xlu1 %1647 }
 0x2ad   : > { %v1117_v63 = vpop.permute.xlu2 %1116  ;;  %1737 = vst.msk [vmem:[#allocation3 + $0x70] sm:$0xff] %vm1729_vm7, %v1648_v52  ;;  %v1972_v52 = vld [vmem:[#allocation2 + $0x147] sm:$0xff] }
 0x2ae   : > { %1182 = vst.msk [vmem:[#allocation3 + $0x1f0] sm:$0xff] %vm1150_vm3, %v1117_v63  ;;  %1862 = vrot.lane.b32.xlu0 %v5976_v57, %s5627_s20  ;;  %v2431_v57 = vld [vmem:[#allocation3 + $0xc8] sm:$0xff] }
 0x2b0   : > { %5482 = vmatmul.msk.f32.gmra.mxu3 %vm638_vm2, %v2429_v1  ;;  %v6695_v4 = vpop.permute.xlu0 %1649  ;;  %v2449_v1 = vld [vmem:[#allocation3 + $0x158] sm:$0xff] }
 0x2b2   : > { %1866 = vrot.lane.b32.xlu1 %v6352_v10, %s5627_s20 }
 0x2b3   : > { %1486 = vrot.lane.b32.xlu2 %v6165_v0, %s5624_s22 }
 0x2b4   : > { %v1654_v20 = vpop.permute.xlu1 %1653 }
 0x2b5   : > { %v1445_v37 = vpop.permute.xlu2 %1444  ;;  %1740 = vst.msk [vmem:[#allocation3 + $0xa0] sm:$0xff] %vm1729_vm7, %v1654_v20  ;;  %v1974_v20 = vld [vmem:[#allocation2 + $0x167] sm:$0xff] }
 0x2b6   : > { %1539 = vst.msk [vmem:[#allocation3 + $0x20] sm:$0xff] %vm1536_vm6, %v1445_v37  ;;  %1868 = vrot.lane.b32.xlu0 %v6070_v9, %s5627_s20  ;;  %v2433_v9 = vld [vmem:[#allocation3 + $0xd8] sm:$0xff]  ;;  %v6823_v37 = vld [vmem:[#allocation2 + $0x170] sm:$0xff] }
 0x2b7   : > { %1732 = vst.msk [vmem:[#allocation3 + $0x20] sm:$0xff] %vm1729_vm7, %v1638_v46 }
 0x2b8   : > { %5483 = vmatmul.msk.f32.gmra.mxu3 %vm638_vm2, %v2431_v57  ;;  %v6707_v13 = vpop.permute.xlu0 %1655 }
 0x2ba   : > { %1872 = vrot.lane.b32.xlu1 %v6365_v55, %s5627_s20 }
 0x2bb   : > { %1492 = vrot.lane.b32.xlu2 %v6412_v44, %s5624_s22 }
 0x2bc   : > { %v1660_v50 = vpop.permute.xlu1 %1659 }
 0x2bd   : > { %v1310_v10 = vpop.permute.xlu2 %1309  ;;  %1743 = vst.msk [vmem:[#allocation3 + $0xd0] sm:$0xff] %vm1729_vm7, %v1660_v50  ;;  %v2451_v50 = vld [vmem:[#allocation3 + $0x168] sm:$0xff] }
 0x2be   : > { %1375 = vst.msk [vmem:[#allocation3 + $0x1f0] sm:$0xff] %vm1343_vm4, %v1310_v10  ;;  %1874 = vrot.lane.b32.xlu0 %v6343_v8, %s5627_s20  ;;  %v1975_v10 = vld [vmem:[#allocation2 + $0x16f] sm:$0xff] }
 0x2bf   : > { %1568 = vst.msk [vmem:[#allocation3 + $0x1f0] sm:$0xff] %vm1536_vm6, %v1503_v56  ;;  %v2441_v56 = vld [vmem:[#allocation3 + $0x118] sm:$0xff] }
 0x2c0   : > { %5484 = vmatmul.msk.f32.gmra.mxu3 %vm638_vm2, %v2433_v9  ;;  %v6719_v16 = vpop.permute.xlu0 %1661 }
 0x2c2   : > { %1878 = vrot.lane.b32.xlu1 %v6415_v29, %s5627_s20 }
 0x2c3   : > { %1498 = vrot.lane.b32.xlu2 %v6488_v18, %s5624_s22 }
 0x2c4   : > { %v1666_v24 = vpop.permute.xlu1 %1665 }
 0x2c5   : > { %v1087_v55 = vpop.permute.xlu2 %1086 }
 0x2c6   : > { %1167 = vst.msk [vmem:[#allocation3 + $0x100] sm:$0xff] %vm1150_vm3, %v1087_v55  ;;  %1880 = vrot.lane.b32.xlu0 %v6443_v58, %s5627_s20  ;;  %v2437_v58 = vld [vmem:[#allocation3 + $0xf8] sm:$0xff] }
 0x2c8   : > { %5485 = vmatmul.msk.f32.gmra.mxu3 %vm638_vm2, %v2435_v60  ;;  %v6729_v8 = vpop.permute.xlu0 %1667  ;;  %v1978_v60 = vld [vmem:[#allocation2 + $0x1a7] sm:$0xff] }
 0x2ca   : > { %1884 = vrot.lane.b32.xlu1 %v6507_v33, %s5627_s20  ;;  %v1956_v33 = vld [vmem:[#allocation2 + $0x47] sm:$0xff] }
 0x2cb   : > { %1633 = vrot.lane.b32.xlu2 %v1569_v12, %s5626_s29 }
 0x2cc   : > { %v1672_v29 = vpop.permute.xlu1 %1671 }
 0x2cd   : > { %v1089_v61 = vpop.permute.xlu2 %1088  ;;  %1749 = vst.msk [vmem:[#allocation3 + $0x130] sm:$0xff] %vm1729_vm7, %v1672_v29  ;;  %v1981_v29 = vld [vmem:[#allocation2 + $0x1cf] sm:$0xff] }
 0x2ce   : > { %1168 = vst.msk [vmem:[#allocation3 + $0x110] sm:$0xff] %vm1150_vm3, %v1089_v61  ;;  %1886 = vrot.lane.b32.xlu0 %v6547_v15, %s5627_s20  ;;  %v1957_v15 = vld [vmem:[#allocation2 + $0x4f] sm:$0xff]  ;;  %vm4318_vm3 = vcmask 458112  }
 0x2cf   : > { %1361 = vst.msk [vmem:[#allocation3 + $0x110] sm:$0xff] %vm1343_vm4, %v6550_v7 }
 0x2d0   : > { %5486 = vmatmul.msk.f32.gmra.mxu3 %vm638_vm2, %v2437_v58  ;;  %v6741_v36 = vpop.permute.xlu0 %1673  ;;  %v2455_v58 = vld [vmem:[#allocation3 + $0x188] sm:$0xff] }
 0x2d2   : > { %2020 = vrot.lane.b32.xlu1 %v1956_v33, %s5628_s23 }
 0x2d3   : > { %1639 = vrot.lane.b32.xlu2 %v6743_v47, %s5626_s29 }
 0x2d4   : > { %v1678_v3 = vpop.permute.xlu1 %1677 }
 0x2d5   : > { %v1280_v7 = vpop.permute.xlu2 %1279  ;;  %1752 = vst.msk [vmem:[#allocation3 + $0x160] sm:$0xff] %vm1729_vm7, %v1678_v3  ;;  %v2457_v3 = vld [vmem:[#allocation3 + $0x198] sm:$0xff] }
 0x2d6   : > { %1360 = vst.msk [vmem:[#allocation3 + $0x100] sm:$0xff] %vm1343_vm4, %v1280_v7  ;;  %2022 = vrot.lane.b32.xlu0 %v1957_v15, %s5628_s23  ;;  %v1984_v7 = vld [vmem:[#allocation2 + $0x207] sm:$0xff]  ;;  %vm4511_vm4 = vcmask 523712  }
 0x2d7   : > { %1553 = vst.msk [vmem:[#allocation3 + $0x100] sm:$0xff] %vm1536_vm6, %v6610_v51  ;;  %v1986_v15 = vld [vmem:[#allocation2 + $0x227] sm:$0xff] }
 0x2d8   : > { %1746 = vst.msk [vmem:[#allocation3 + $0x100] sm:$0xff] %vm1729_vm7, %v1666_v24  ;;  %5487 = vmatmul.msk.f32.gmra.mxu3 %vm638_vm2, %v2439_v48  ;;  %v6755_v11 = vpop.permute.xlu0 %1679  ;;  %v1763_v48 = vld [vmem:[#allocation2 + $0x31] sm:$0xff] }
 0x2da   : > { %2026 = vrot.lane.b32.xlu1 %v6022_v21, %s5628_s23 }
 0x2db   : > { %1645 = vrot.lane.b32.xlu2 %v6757_v26, %s5626_s29 }
 0x2dc   : > { %v1684_v19 = vpop.permute.xlu1 %1683 }
 0x2dd   : > { %v1451_v51 = vpop.permute.xlu2 %1450  ;;  %1755 = vst.msk [vmem:[#allocation3 + $0x190] sm:$0xff] %vm1729_vm7, %v1684_v19  ;;  %v1987_v19 = vld [vmem:[#allocation2 + $0x22f] sm:$0xff] }
 0x2de   : > { %1542 = vst.msk [vmem:[#allocation3 + $0x50] sm:$0xff] %vm1536_vm6, %v1451_v51  ;;  %2028 = vrot.lane.b32.xlu0 %v6131_v41, %s5628_s23  ;;  %v2443_v41 = vld [vmem:[#allocation3 + $0x128] sm:$0xff] }
 0x2df   : > { %1735 = vst.msk [vmem:[#allocation3 + $0x50] sm:$0xff] %vm1729_vm7, %v6684_v35 }
 0x2e0   : > { %5488 = vmatmul.msk.f32.gmra.mxu3 %vm638_vm2, %v2441_v56  ;;  %v6770_v30 = vpop.permute.xlu0 %1685  ;;  %v2459_v56 = vld [vmem:[#allocation3 + $0x1a8] sm:$0xff] }
 0x2e2   : > { %2032 = vrot.lane.b32.xlu1 %v6302_v62, %s5628_s23 }
 0x2e3   : > { %1651 = vrot.lane.b32.xlu2 %v6402_v25, %s5626_s29 }
 0x2e4   : > { %v1690_v22 = vpop.permute.xlu1 %1689 }
 0x2e5   : > { %v1457_v21 = vpop.permute.xlu2 %1456  ;;  %1758 = vst.msk [vmem:[#allocation3 + $0x1c0] sm:$0xff] %vm1729_vm7, %v1690_v22 }
 0x2e6   : > { %1545 = vst.msk [vmem:[#allocation3 + $0x80] sm:$0xff] %vm1536_vm6, %v1457_v21  ;;  %2034 = vrot.lane.b32.xlu0 %v6294_v31, %s5628_s23  ;;  %v2445_v31 = vld [vmem:[#allocation3 + $0x138] sm:$0xff] }
 0x2e7   : > { %1738 = vst.msk [vmem:[#allocation3 + $0x80] sm:$0xff] %vm1729_vm7, %v6695_v4 }
 0x2e8   : > { %5489 = vmatmul.msk.f32.gmra.mxu3 %vm638_vm2, %v2443_v41  ;;  %v6783_v59 = vpop.permute.xlu0 %1691 }
 0x2ea   : > { %2038 = vrot.lane.b32.xlu1 %v6397_v49, %s5628_s23 }
 0x2eb   : > { %1657 = vrot.lane.b32.xlu2 %v6526_v14, %s5626_s29 }
 0x2ec   : > { %v1696_v25 = vpop.permute.xlu1 %1695 }
 0x2ed   : > { %v1463_v62 = vpop.permute.xlu2 %1462  ;;  %1761 = vst.msk [vmem:[#allocation3 + $0x1f0] sm:$0xff] %vm1729_vm7, %v1696_v25 }
 0x2ee   : > { %1548 = vst.msk [vmem:[#allocation3 + $0xb0] sm:$0xff] %vm1536_vm6, %v1463_v62  ;;  %2040 = vrot.lane.b32.xlu0 %v6328_v5, %s5628_s23  ;;  %v1969_v5 = vld [vmem:[#allocation2 + $0x10f] sm:$0xff] }
 0x2ef   : > { %1741 = vst.msk [vmem:[#allocation3 + $0xb0] sm:$0xff] %vm1729_vm7, %v6707_v13 }
 0x2f0   : > { %5490 = vmatmul.msk.f32.gmra.mxu3 %vm638_vm2, %v2445_v31  ;;  %v6796_v46 = vpop.permute.xlu0 %1826 }
 0x2f2   : > { %2044 = vrot.lane.b32.xlu1 %v6536_v40, %s5628_s23  ;;  %v1971_v40 = vld [vmem:[#allocation2 + $0x12f] sm:$0xff] }
 0x2f3   : > { %1663 = vrot.lane.b32.xlu2 %v6612_v39, %s5626_s29 }
 0x2f4   : > { %v1831_v14 = vpop.permute.xlu1 %1830 }
 0x2f5   : > { %v1469_v49 = vpop.permute.xlu2 %1468  ;;  %1925 = vst.msk [vmem:[#allocation3 + $0x20] sm:$0xff] %vm1922_vm8, %v1831_v14  ;;  %v2463_v14 = vld [vmem:[#allocation3 + $0x1c8] sm:$0xff] }
 0x2f6   : > { %1551 = vst.msk [vmem:[#allocation3 + $0xe0] sm:$0xff] %vm1536_vm6, %v1469_v49  ;;  %2046 = vrot.lane.b32.xlu0 %v1969_v5, %s5628_s23  ;;  %v2154_v49 = vld [vmem:[#allocation2 + $0x90] sm:$0xff] }
 0x2f7   : > { %1744 = vst.msk [vmem:[#allocation3 + $0xe0] sm:$0xff] %vm1729_vm7, %v6719_v16  ;;  %v6836_v16 = vld [vmem:[#allocation2 + $0x1a8] sm:$0xff]  ;;  %v2156_v5 = vld [vmem:[#allocation2 + $0xb0] sm:$0xff] }
 0x2f8   : > { %5491 = vmatmul.msk.f32.gmra.mxu3 %vm638_vm2, %v2447_v2  ;;  %v6808_v32 = vpop.permute.xlu0 %1832 }
 0x2fa   : > { %2050 = vrot.lane.b32.xlu1 %v1971_v40, %s5628_s23  ;;  %v2157_v40 = vld [vmem:[#allocation2 + $0xc8] sm:$0xff] }
 0x2fb   : > { %1669 = vrot.lane.b32.xlu2 %v6810_v53, %s5626_s29 }
 0x2fc   : > { %v1837_v63 = vpop.permute.xlu1 %1836 }
 0x2fd   : > { %v1475_v35 = vpop.permute.xlu2 %1474  ;;  %1928 = vst.msk [vmem:[#allocation3 + $0x50] sm:$0xff] %vm1922_vm8, %v1837_v63 }
 0x2fe   : > { %1554 = vst.msk [vmem:[#allocation3 + $0x110] sm:$0xff] %vm1536_vm6, %v1475_v35  ;;  %2052 = vrot.lane.b32.xlu0 %v1972_v52, %s5628_s23  ;;  %v2465_v35 = vld [vmem:[#allocation3 + $0x1d8] sm:$0xff] }
 0x2ff   : > { %1747 = vst.msk [vmem:[#allocation3 + $0x110] sm:$0xff] %vm1729_vm7, %v6729_v8  ;;  %v2453_v8 = vld [vmem:[#allocation3 + $0x178] sm:$0xff] }
 0x300   : > { %5492 = vmatmul.msk.f32.gmra.mxu3 %vm638_vm2, %v2449_v1  ;;  %v6821_v4 = vpop.permute.xlu0 %1838  ;;  %v1775_v1 = vld [vmem:[#allocation2 + $0xf1] sm:$0xff] }
 0x302   : > { %2056 = vrot.lane.b32.xlu1 %v1974_v20, %s5628_s23 }
 0x303   : > { %1675 = vrot.lane.b32.xlu2 %v6823_v37, %s5626_s29 }
 0x304   : > { %v1843_v13 = vpop.permute.xlu1 %1842 }
 0x305   : > { %v1481_v57 = vpop.permute.xlu2 %1480  ;;  %1931 = vst.msk [vmem:[#allocation3 + $0x80] sm:$0xff] %vm1922_vm8, %v1843_v13  ;;  %v2160_v13 = vld [vmem:[#allocation2 + $0xf0] sm:$0xff] }
 0x306   : > { %1557 = vst.msk [vmem:[#allocation3 + $0x140] sm:$0xff] %vm1536_vm6, %v1481_v57  ;;  %2058 = vrot.lane.b32.xlu0 %v1975_v10, %s5628_s23 }
 0x307   : > { %1750 = vst.msk [vmem:[#allocation3 + $0x140] sm:$0xff] %vm1729_vm7, %v6741_v36 }
 0x308   : > { %5493 = vmatmul.msk.f32.gmra.mxu3 %vm638_vm2, %v2451_v50  ;;  %v6834_v9 = vpop.permute.xlu0 %1844 }
 0x30a   : > { %2062 = vrot.lane.b32.xlu1 %v6165_v0, %s5628_s23 }
 0x30b   : > { %1681 = vrot.lane.b32.xlu2 %v6836_v16, %s5626_s29 }
 0x30c   : > { %v1849_v24 = vpop.permute.xlu1 %1848 }
 0x30d   : > { %v1487_v55 = vpop.permute.xlu2 %1486  ;;  %1934 = vst.msk [vmem:[#allocation3 + $0xb0] sm:$0xff] %vm1922_vm8, %v1849_v24  ;;  %v9151_v24 = vld [vmem:[#allocation16_spill] sm:$0xff] }
 0x30e   : > { %1560 = vst.msk [vmem:[#allocation3 + $0x170] sm:$0xff] %vm1536_vm6, %v1487_v55  ;;  %2064 = vrot.lane.b32.xlu0 %v1978_v60, %s5628_s23  ;;  %v2163_v55 = vld [vmem:[#allocation2 + $0x128] sm:$0xff] }
 0x30f   : > { %1753 = vst.msk [vmem:[#allocation3 + $0x170] sm:$0xff] %vm1729_vm7, %v6755_v11 }
 0x310   : > { %5494 = vmatmul.msk.f32.gmra.mxu3 %vm638_vm2, %v2453_v8  ;;  %v6848_v12 = vpop.permute.xlu0 %1850  ;;  %v2166_v8 = vld [vmem:[#allocation2 + $0x150] sm:$0xff] }
 0x312   : > { %2068 = vrot.lane.b32.xlu1 %v6412_v44, %s5628_s23 }
 0x313   : > { %1687 = vrot.lane.b32.xlu2 %v6480_v42, %s5626_s29  ;;  %v6862_v42 = vld [vmem:[#allocation2 + $0x208] sm:$0xff] }
 0x314   : > { %v1855_v61 = vpop.permute.xlu1 %1854 }
 0x315   : > { %v1493_v0 = vpop.permute.xlu2 %1492  ;;  %1937 = vst.msk [vmem:[#allocation3 + $0xe0] sm:$0xff] %vm1922_vm8, %v1855_v61 }
 0x316   : > { %1563 = vst.msk [vmem:[#allocation3 + $0x1a0] sm:$0xff] %vm1536_vm6, %v1493_v0  ;;  %2070 = vrot.lane.b32.xlu0 %v1981_v29, %s5628_s23  ;;  %v2169_v29 = vld [vmem:[#allocation2 + $0x188] sm:$0xff] }
 0x317   : > { %1756 = vst.msk [vmem:[#allocation3 + $0x1a0] sm:$0xff] %vm1729_vm7, %v6770_v30  ;;  %v6888_v30 = vpop.f32.mrf.mxu3 }
 0x318   : > { %5495 = vmatmul.msk.f32.gmra.mxu3 %vm638_vm2, %v2455_v58  ;;  %v6860_v36 = vpop.permute.xlu0 %1856  ;;  %9150 = vst [vmem:[#allocation41_spill] sm:$0xff] %v6888_v30 }
 0x31a   : > { %2074 = vrot.lane.b32.xlu1 %v6488_v18, %s5628_s23 }
 0x31b   : > { %1693 = vrot.lane.b32.xlu2 %v6862_v42, %s5626_s29 }
 0x31c   : > { %v1861_v33 = vpop.permute.xlu1 %1860 }
 0x31d   : > { %v1499_v44 = vpop.permute.xlu2 %1498  ;;  %1940 = vst.msk [vmem:[#allocation3 + $0x110] sm:$0xff] %vm1922_vm8, %v1861_v33 }
 0x31e   : > { %1566 = vst.msk [vmem:[#allocation3 + $0x1d0] sm:$0xff] %vm1536_vm6, %v1499_v44  ;;  %2076 = vrot.lane.b32.xlu0 %v1984_v7, %s5628_s23  ;;  %v2175_v7 = vld [vmem:[#allocation2 + $0x1e8] sm:$0xff]  ;;  %vm4782_vm6 = vcmask 588800  }
 0x31f   : > { %1759 = vst.msk [vmem:[#allocation3 + $0x1d0] sm:$0xff] %vm1729_vm7, %v6783_v59  ;;  %v2151_v59 = vld [vmem:[#allocation2 + $0x68] sm:$0xff]  ;;  %v6904_v31 = vpop.f32.mrf.mxu3 }
 0x320   : > { %5496 = vmatmul.msk.f32.gmra.mxu3 %vm638_vm2, %v2457_v3  ;;  %v6875_v18 = vpop.permute.xlu0 %1862 }
 0x322   : > { %2080 = vrot.lane.b32.xlu1 %v1986_v15, %s5628_s23 }
 0x323   : > { %1828 = vrot.lane.b32.xlu2 %v1763_v48, %s5627_s20  ;;  %v2178_v48 = vld [vmem:[#allocation2 + $0x210] sm:$0xff] }
 0x324   : > { %v1867_v51 = vpop.permute.xlu1 %1866 }
 0x325   : > { %v1634_v11 = vpop.permute.xlu2 %1633  ;;  %1943 = vst.msk [vmem:[#allocation3 + $0x140] sm:$0xff] %vm1922_vm8, %v1867_v51 }
 0x326   : > { %1730 = vst.msk [vmem:[#allocation3] sm:$0xff] %vm1729_vm7, %v1634_v11  ;;  %2082 = vrot.lane.b32.xlu0 %v1987_v19, %s5628_s23 }
 0x327   : > { %1923 = vst.msk [vmem:[#allocation3] sm:$0xff] %vm1922_vm8, %v6796_v46  ;;  %v6918_v63 = vpop.f32.mrf.mxu3 }
 0x328   : > { %5497 = vmatmul.msk.f32.gmra.mxu3 %vm638_vm2, %v2459_v56  ;;  %v6890_v22 = vpop.permute.xlu0 %1868 }
 0x32a   : > { %2215 = vrot.lane.b32.xlu1 %v6743_v47, %s5629_s24  ;;  %v1769_v47 = vld [vmem:[#allocation2 + $0x91] sm:$0xff] }
 0x32b   : > { %1834 = vrot.lane.b32.xlu2 %v6049_v43, %s5627_s20  ;;  %v2461_v43 = vld [vmem:[#allocation3 + $0x1b8] sm:$0xff] }
 0x32c   : > { %v1873_v41 = vpop.permute.xlu1 %1872 }
 0x32d   : > { %v1640_v21 = vpop.permute.xlu2 %1639  ;;  %1946 = vst.msk [vmem:[#allocation3 + $0x170] sm:$0xff] %vm1922_vm8, %v1873_v41 }
 0x32e   : > { %1733 = vst.msk [vmem:[#allocation3 + $0x30] sm:$0xff] %vm1729_vm7, %v1640_v21  ;;  %2217 = vrot.lane.b32.xlu0 %v2151_v59, %s5629_s24 }
 0x32f   : > { %1926 = vst.msk [vmem:[#allocation3 + $0x30] sm:$0xff] %vm1922_vm8, %v6808_v32 }
 0x330   : > { %5498 = vmatmul.msk.f32.gmra.mxu3 %vm638_vm2, %v2461_v43  ;;  %v6906_v46 = vpop.permute.xlu0 %1874 }
 0x332   : > { %2221 = vrot.lane.b32.xlu1 %v6757_v26, %s5629_s24  ;;  %v1772_v26 = vld [vmem:[#allocation2 + $0xc9] sm:$0xff] }
 0x333   : > { %1840 = vrot.lane.b32.xlu2 %v1769_v47, %s5627_s20  ;;  %v1967_v47 = vld [vmem:[#allocation2 + $0xef] sm:$0xff] }
 0x334   : > { %v1879_v25 = vpop.permute.xlu1 %1878 }
 0x335   : > { %v1646_v62 = vpop.permute.xlu2 %1645  ;;  %1949 = vst.msk [vmem:[#allocation3 + $0x1a0] sm:$0xff] %vm1922_vm8, %v1879_v25 }
 0x336   : > { %1736 = vst.msk [vmem:[#allocation3 + $0x60] sm:$0xff] %vm1729_vm7, %v1646_v62  ;;  %2223 = vrot.lane.b32.xlu0 %v2154_v49, %s5629_s24 }
 0x337   : > { %1929 = vst.msk [vmem:[#allocation3 + $0x60] sm:$0xff] %vm1922_vm8, %v6821_v4  ;;  %v2159_v4 = vld [vmem:[#allocation2 + $0xe8] sm:$0xff] }
 0x338   : > { %5499 = vmatmul.msk.f32.gmra.mxu3 %vm638_vm2, %v2463_v14  ;;  %v1881_v52 = vpop.permute.xlu0 %1880 }
 0x33a   : > { %2227 = vrot.lane.b32.xlu1 %v2156_v5, %s5629_s24  ;;  %v1973_v5 = vld [vmem:[#allocation2 + $0x14f] sm:$0xff] }
 0x33b   : > { %1846 = vrot.lane.b32.xlu2 %v1772_v26, %s5627_s20 }
 0x33c   : > { %v1885_v32 = vpop.permute.xlu1 %1884 }
 0x33d   : > { %v1652_v2 = vpop.permute.xlu2 %1651  ;;  %1952 = vst.msk [vmem:[#allocation3 + $0x1d0] sm:$0xff] %vm1922_vm8, %v1885_v32 }
 0x33e   : > { %1739 = vst.msk [vmem:[#allocation3 + $0x90] sm:$0xff] %vm1729_vm7, %v1652_v2  ;;  %2229 = vrot.lane.b32.xlu0 %v2157_v40, %s5629_s24 }
 0x33f   : > { %1932 = vst.msk [vmem:[#allocation3 + $0x90] sm:$0xff] %vm1922_vm8, %v6834_v9 }
 0x340   : > { %5500 = vmatmul.msk.f32.gmra.mxu3 %vm638_vm2, %v2465_v35  ;;  %v1887_v10 = vpop.permute.xlu0 %1886  ;;  %v1976_v35 = vld [vmem:[#allocation2 + $0x187] sm:$0xff] }
 0x342   : > { %2233 = vrot.lane.b32.xlu1 %v2159_v4, %s5629_s24 }
 0x343   : > { %1852 = vrot.lane.b32.xlu2 %v1775_v1, %s5627_s20 }
 0x344   : > { %v2021_v57 = vpop.permute.xlu1 %2020 }
 0x345   : > { %v1658_v20 = vpop.permute.xlu2 %1657  ;;  %2117 = vst.msk [vmem:[#allocation3] sm:$0xff] %vm2116_vm9, %v2021_v57 }
 0x346   : > { %1742 = vst.msk [vmem:[#allocation3 + $0xc0] sm:$0xff] %vm1729_vm7, %v1658_v20  ;;  %2235 = vrot.lane.b32.xlu0 %v2160_v13, %s5629_s24  ;;  %v1979_v20 = vld [vmem:[#allocation2 + $0x1af] sm:$0xff] }
 0x347   : > { %1935 = vst.msk [vmem:[#allocation3 + $0xc0] sm:$0xff] %vm1922_vm8, %v6848_v12  ;;  %v9152_v12 = vld [vmem:[#allocation33_spill] sm:$0xff] }
 0x34a   : > { %2239 = vrot.lane.b32.xlu1 %v6612_v39, %s5629_s24  ;;  %v2023_v39 = vpop.permute.xlu0 %2022 }
 0x34b   : > { %1858 = vrot.lane.b32.xlu2 %v5929_v38, %s5627_s20 }
 0x34c   : > { %v2027_v9 = vpop.permute.xlu1 %2026 }
 0x34d   : > { %v1664_v50 = vpop.permute.xlu2 %1663  ;;  %2120 = vst.msk [vmem:[#allocation3 + $0x30] sm:$0xff] %vm2116_vm9, %v2027_v9 }
 0x34e   : > { %1745 = vst.msk [vmem:[#allocation3 + $0xf0] sm:$0xff] %vm1729_vm7, %v1664_v50  ;;  %2241 = vrot.lane.b32.xlu0 %v2163_v55, %s5629_s24  ;;  %v1982_v50 = vld [vmem:[#allocation2 + $0x1e7] sm:$0xff] }
 0x34f   : > { %1938 = vst.msk [vmem:[#allocation3 + $0xf0] sm:$0xff] %vm1922_vm8, %v6860_v36  ;;  %v2172_v36 = vld [vmem:[#allocation2 + $0x1b0] sm:$0xff] }
 0x352   : > { %2245 = vrot.lane.b32.xlu1 %v6810_v53, %s5629_s24  ;;  %v2029_v61 = vpop.permute.xlu0 %2028 }
 0x353   : > { %1864 = vrot.lane.b32.xlu2 %v9151_v24, %s5627_s20  ;;  %v1985_v24 = vld [vmem:[#allocation2 + $0x20f] sm:$0xff] }
 0x354   : > { %v2033_v60 = vpop.permute.xlu1 %2032 }
 0x355   : > { %v1670_v38 = vpop.permute.xlu2 %1669  ;;  %2123 = vst.msk [vmem:[#allocation3 + $0x60] sm:$0xff] %vm2116_vm9, %v2033_v60 }
 0x356   : > { %1748 = vst.msk [vmem:[#allocation3 + $0x120] sm:$0xff] %vm1729_vm7, %v1670_v38  ;;  %2247 = vrot.lane.b32.xlu0 %v2166_v8, %s5629_s24  ;;  %v2149_v8 = vld [vmem:[#allocation2 + $0x48] sm:$0xff] }
 0x357   : > { %1941 = vst.msk [vmem:[#allocation3 + $0x120] sm:$0xff] %vm1922_vm8, %v6875_v18  ;;  %v1958_v18 = vld [vmem:[#allocation2 + $0x67] sm:$0xff] }
 0x35a   : > { %2251 = vrot.lane.b32.xlu1 %v6823_v37, %s5629_s24  ;;  %v2035_v44 = vpop.permute.xlu0 %2034 }
 0x35b   : > { %1870 = vrot.lane.b32.xlu2 %v9152_v12, %s5627_s20 }
 0x35c   : > { %v2039_v0 = vpop.permute.xlu1 %2038 }
 0x35d   : > { %v1676_v53 = vpop.permute.xlu2 %1675  ;;  %2126 = vst.msk [vmem:[#allocation3 + $0x90] sm:$0xff] %vm2116_vm9, %v2039_v0 }
 0x35e   : > { %1751 = vst.msk [vmem:[#allocation3 + $0x150] sm:$0xff] %vm1729_vm7, %v1676_v53  ;;  %2253 = vrot.lane.b32.xlu0 %v2169_v29, %s5629_s24 }
 0x35f   : > { %1944 = vst.msk [vmem:[#allocation3 + $0x150] sm:$0xff] %vm1922_vm8, %v6890_v22  ;;  %v1964_v22 = vld [vmem:[#allocation2 + $0xc7] sm:$0xff] }
 0x362   : > { %2257 = vrot.lane.b32.xlu1 %v6836_v16, %s5629_s24  ;;  %v2041_v3 = vpop.permute.xlu0 %2040 }
 0x363   : > { %1876 = vrot.lane.b32.xlu2 %v6372_v27, %s5627_s20  ;;  %v2174_v27 = vld [vmem:[#allocation2 + $0x1d0] sm:$0xff] }
 0x364   : > { %v2045_v58 = vpop.permute.xlu1 %2044 }
 0x365   : > { %v1682_v37 = vpop.permute.xlu2 %1681  ;;  %2129 = vst.msk [vmem:[#allocation3 + $0xc0] sm:$0xff] %vm2116_vm9, %v2045_v58 }
 0x366   : > { %1754 = vst.msk [vmem:[#allocation3 + $0x180] sm:$0xff] %vm1729_vm7, %v1682_v37  ;;  %2259 = vrot.lane.b32.xlu0 %v2172_v36, %s5629_s24  ;;  %v2155_v36 = vld [vmem:[#allocation2 + $0xa8] sm:$0xff] }
 0x367   : > { %1947 = vst.msk [vmem:[#allocation3 + $0x180] sm:$0xff] %vm1922_vm8, %v6906_v46  ;;  %v1970_v46 = vld [vmem:[#allocation2 + $0x127] sm:$0xff] }
 0x36a   : > { %2263 = vrot.lane.b32.xlu1 %v2174_v27, %s5629_s24 }
 0x36b   : > { %1882 = vrot.lane.b32.xlu2 %v6493_v28, %s5627_s20 }
 0x36c   : > { %v2051_v33 = vpop.permute.xlu1 %2050 }
 0x36d   : > { %v1688_v16 = vpop.permute.xlu2 %1687  ;;  %2132 = vst.msk [vmem:[#allocation3 + $0xf0] sm:$0xff] %vm2116_vm9, %v2051_v33  ;;  %v2158_v33 = vld [vmem:[#allocation2 + $0xd0] sm:$0xff] }
 0x36e   : > { %1757 = vst.msk [vmem:[#allocation3 + $0x1b0] sm:$0xff] %vm1729_vm7, %v1688_v16  ;;  %2265 = vrot.lane.b32.xlu0 %v2175_v7, %s5629_s24 }
 0x36f   : > { %1950 = vst.msk [vmem:[#allocation3 + $0x1b0] sm:$0xff] %vm1922_vm8, %v1881_v52 }
 0x372   : > { %2269 = vrot.lane.b32.xlu1 %v6862_v42, %s5629_s24  ;;  %v1961_v42 = vld [vmem:[#allocation2 + $0x8f] sm:$0xff] }
 0x373   : > { %1888 = vrot.lane.b32.xlu2 %v6565_v54, %s5627_s20  ;;  %v2047_v54 = vpop.permute.xlu0 %2046 }
 0x374   : > { %v2057_v15 = vpop.permute.xlu1 %2056 }
 0x375   : > { %v1694_v28 = vpop.permute.xlu2 %1693  ;;  %2135 = vst.msk [vmem:[#allocation3 + $0x120] sm:$0xff] %vm2116_vm9, %v2057_v15 }
 0x376   : > { %1760 = vst.msk [vmem:[#allocation3 + $0x1e0] sm:$0xff] %vm1729_vm7, %v1694_v28  ;;  %2271 = vrot.lane.b32.xlu0 %v2178_v48, %s5629_s24  ;;  %v2161_v28 = vld [vmem:[#allocation2 + $0x108] sm:$0xff] }
 0x377   : > { %1953 = vst.msk [vmem:[#allocation3 + $0x1e0] sm:$0xff] %vm1922_vm8, %v1887_v10 }
 0x37b   : > { %2024 = vrot.lane.b32.xlu2 %v1958_v18, %s5628_s23  ;;  %v2053_v21 = vpop.permute.xlu0 %2052  ;;  %v2485_v18 = vld [vmem:[%s9015_s3 + $0x78] sm:$0xff] }
 0x37c   : > { %v2063_v51 = vpop.permute.xlu1 %2062  ;;  %2588 = vmatpush.msrb.mxu0 %v2485_v18  ;;  %5545 = vmatpush.msrb.mxu1 %v2485_v18 }
 0x37d   : > { %v1829_v11 = vpop.permute.xlu2 %1828  ;;  %2138 = vst.msk [vmem:[#allocation3 + $0x150] sm:$0xff] %vm2116_vm9, %v2063_v51  ;;  %v2164_v51 = vld [vmem:[#allocation2 + $0x130] sm:$0xff] }
 0x37e   : > { %1924 = vst.msk [vmem:[#allocation3 + $0x10] sm:$0xff] %vm1922_vm8, %v1829_v11  ;;  %v2484_v11 = vld [vmem:[%s9015_s3 + $0x70] sm:$0xff] }
 0x37f   : > { %2118 = vst.msk [vmem:[#allocation3 + $0x10] sm:$0xff] %vm2116_vm9, %v2023_v39  ;;  %2589 = vmatpush.msrb.mxu0 %v2484_v11  ;;  %5546 = vmatpush.msrb.mxu1 %v2484_v11 }
 0x383   : > { %2030 = vrot.lane.b32.xlu2 %v1961_v42, %s5628_s23  ;;  %v2059_v43 = vpop.permute.xlu0 %2058  ;;  %v2482_v42 = vld [vmem:[%s9015_s3 + $0x60] sm:$0xff] }
 0x384   : > { %v2069_v56 = vpop.permute.xlu1 %2068 }
 0x385   : > { %v1835_v19 = vpop.permute.xlu2 %1834  ;;  %2141 = vst.msk [vmem:[#allocation3 + $0x180] sm:$0xff] %vm2116_vm9, %v2069_v56 }
 0x386   : > { %1927 = vst.msk [vmem:[#allocation3 + $0x40] sm:$0xff] %vm1922_vm8, %v1835_v19 }
 0x387   : > { %2121 = vst.msk [vmem:[#allocation3 + $0x40] sm:$0xff] %vm2116_vm9, %v2029_v61  ;;  %v2152_v61 = vld [vmem:[#allocation2 + $0x70] sm:$0xff] }
 0x38b   : > { %2036 = vrot.lane.b32.xlu2 %v1964_v22, %s5628_s23  ;;  %v2065_v49 = vpop.permute.xlu0 %2064  ;;  %v2480_v22 = vld [vmem:[%s9015_s3 + $0x50] sm:$0xff] }
 0x38c   : > { %v2075_v59 = vpop.permute.xlu1 %2074 }
 0x38d   : > { %v1841_v41 = vpop.permute.xlu2 %1840  ;;  %2144 = vst.msk [vmem:[#allocation3 + $0x1b0] sm:$0xff] %vm2116_vm9, %v2075_v59  ;;  %v2167_v59 = vld [vmem:[#allocation2 + $0x168] sm:$0xff] }
 0x38e   : > { %1930 = vst.msk [vmem:[#allocation3 + $0x70] sm:$0xff] %vm1922_vm8, %v1841_v41  ;;  %v2479_v41 = vld [vmem:[%s9015_s3 + $0x48] sm:$0xff] }
 0x38f   : > { %2124 = vst.msk [vmem:[#allocation3 + $0x70] sm:$0xff] %vm2116_vm9, %v2035_v44 }
 0x393   : > { %2042 = vrot.lane.b32.xlu2 %v1967_v47, %s5628_s23  ;;  %v2071_v32 = vpop.permute.xlu0 %2070 }
 0x394   : > { %v2081_v25 = vpop.permute.xlu1 %2080 }
 0x395   : > { %v1847_v62 = vpop.permute.xlu2 %1846  ;;  %2147 = vst.msk [vmem:[#allocation3 + $0x1e0] sm:$0xff] %vm2116_vm9, %v2081_v25  ;;  %v2476_v25 = vld [vmem:[%s9015_s3 + $0x30] sm:$0xff] }
 0x396   : > { %1933 = vst.msk [vmem:[#allocation3 + $0xa0] sm:$0xff] %vm1922_vm8, %v1847_v62  ;;  %v2477_v62 = vld [vmem:[%s9015_s3 + $0x38] sm:$0xff] }
 0x397   : > { %2127 = vst.msk [vmem:[#allocation3 + $0xa0] sm:$0xff] %vm2116_vm9, %v2041_v3 }
 0x39b   : > { %2048 = vrot.lane.b32.xlu2 %v1970_v46, %s5628_s23  ;;  %v2077_v4 = vpop.permute.xlu0 %2076 }
 0x39c   : > { %v2216_v26 = vpop.permute.xlu1 %2215 }
 0x39d   : > { %v1853_v14 = vpop.permute.xlu2 %1852  ;;  %2311 = vst.msk [vmem:[#allocation3 + $0x10] sm:$0xff] %vm2309_vm10, %v2216_v26  ;;  %v2474_v26 = vld [vmem:[%s9015_s3 + $0x20] sm:$0xff] }
 0x39e   : > { %1936 = vst.msk [vmem:[#allocation3 + $0xd0] sm:$0xff] %vm1922_vm8, %v1853_v14  ;;  %v2170_v14 = vld [vmem:[#allocation2 + $0x190] sm:$0xff] }
 0x39f   : > { %2130 = vst.msk [vmem:[#allocation3 + $0xd0] sm:$0xff] %vm2116_vm9, %v2047_v54  ;;  %v2483_v54 = vld [vmem:[%s9015_s3 + $0x68] sm:$0xff] }
 0x3a0   : > { %2590 = vmatpush.msrb.mxu0 %v2483_v54  ;;  %5547 = vmatpush.msrb.mxu1 %v2483_v54 }
 0x3a2   : > { %2591 = vmatpush.msrb.mxu0 %v2482_v42  ;;  %5548 = vmatpush.msrb.mxu1 %v2482_v42 }
 0x3a3   : > { %2054 = vrot.lane.b32.xlu2 %v1973_v5, %s5628_s23  ;;  %v2083_v10 = vpop.permute.xlu0 %2082 }
 0x3a4   : > { %v2222_v40 = vpop.permute.xlu1 %2221 }
 0x3a5   : > { %v1859_v2 = vpop.permute.xlu2 %1858  ;;  %2314 = vst.msk [vmem:[#allocation3 + $0x40] sm:$0xff] %vm2309_vm10, %v2222_v40  ;;  %v2180_v40 = vld [vmem:[#allocation2 + $0x230] sm:$0xff] }
 0x3a6   : > { %1939 = vst.msk [vmem:[#allocation3 + $0x100] sm:$0xff] %vm1922_vm8, %v1859_v2  ;;  %v2473_v2 = vld [vmem:[%s9015_s3 + $0x18] sm:$0xff]  ;;  %2275 = vrot.lane.b32.xlu1 %v2180_v40, %s5629_s24 }
 0x3a7   : > { %2133 = vst.msk [vmem:[#allocation3 + $0x100] sm:$0xff] %vm2116_vm9, %v2053_v21  ;;  %v2481_v21 = vld [vmem:[%s9015_s3 + $0x58] sm:$0xff] }
 0x3a8   : > { %2592 = vmatpush.msrb.mxu0 %v2481_v21  ;;  %5549 = vmatpush.msrb.mxu1 %v2481_v21 }
 0x3aa   : > { %2593 = vmatpush.msrb.mxu0 %v2480_v22  ;;  %5550 = vmatpush.msrb.mxu1 %v2480_v22 }
 0x3ab   : > { %2060 = vrot.lane.b32.xlu2 %v1976_v35, %s5628_s23  ;;  %v2218_v38 = vpop.permute.xlu0 %2217  ;;  %v2471_v35 = vld [vmem:[%s9015_s3 + $0x8] sm:$0xff] }
 0x3ac   : > { %v2228_v1 = vpop.permute.xlu1 %2227  ;;  %2594 = vmatpush.msrb.mxu0 %v2479_v41  ;;  %5551 = vmatpush.msrb.mxu1 %v2479_v41 }
 0x3ad   : > { %v1865_v52 = vpop.permute.xlu2 %1864  ;;  %2317 = vst.msk [vmem:[#allocation3 + $0x70] sm:$0xff] %vm2309_vm10, %v2228_v1  ;;  %v2173_v1 = vld [vmem:[#allocation2 + $0x1c8] sm:$0xff] }
 0x3ae   : > { %1942 = vst.msk [vmem:[#allocation3 + $0x130] sm:$0xff] %vm1922_vm8, %v1865_v52 }
 0x3af   : > { %2136 = vst.msk [vmem:[#allocation3 + $0x130] sm:$0xff] %vm2116_vm9, %v2059_v43  ;;  %v2478_v43 = vld [vmem:[%s9015_s3 + $0x40] sm:$0xff] }
 0x3b0   : > { %2595 = vmatpush.msrb.mxu0 %v2478_v43  ;;  %5552 = vmatpush.msrb.mxu1 %v2478_v43  ;;  %v2372_v43 = vld [vmem:[#allocation2 + $0x229] sm:$0xff] }
 0x3b1   : > { %2404 = vst.msk [vmem:[#allocation3 + $0x1e8] sm:$0xff] %vm638_vm2, %v2372_v43 }
 0x3b2   : > { %2596 = vmatpush.msrb.mxu0 %v2477_v62  ;;  %5553 = vmatpush.msrb.mxu1 %v2477_v62 }
 0x3b3   : > { %2066 = vrot.lane.b32.xlu2 %v1979_v20, %s5628_s23  ;;  %v2224_v53 = vpop.permute.xlu0 %2223 }
 0x3b4   : > { %v2234_v13 = vpop.permute.xlu1 %2233  ;;  %2597 = vmatpush.msrb.mxu0 %v2476_v25  ;;  %5554 = vmatpush.msrb.mxu1 %v2476_v25  ;;  %v2420_v54 = vld [vmem:[#allocation3 + $0x70] sm:$0xff] }
 0x3b5   : > { %v1871_v57 = vpop.permute.xlu2 %1870  ;;  %2320 = vst.msk [vmem:[#allocation3 + $0xa0] sm:$0xff] %vm2309_vm10, %v2234_v13  ;;  %v2176_v13 = vld [vmem:[#allocation2 + $0x1f0] sm:$0xff] }
 0x3b6   : > { %1945 = vst.msk [vmem:[#allocation3 + $0x160] sm:$0xff] %vm1922_vm8, %v1871_v57  ;;  %v5611_v57 = vld [vmem:[%s9015_s3 + $0x88] sm:$0xff] }
 0x3b7   : > { %2139 = vst.msk [vmem:[#allocation3 + $0x160] sm:$0xff] %vm2116_vm9, %v2065_v49  ;;  %v2475_v49 = vld [vmem:[%s9015_s3 + $0x28] sm:$0xff] }
 0x3b8   : > { %2598 = vmatpush.msrb.mxu0 %v2475_v49  ;;  %5555 = vmatpush.msrb.mxu1 %v2475_v49  ;;  %v2373_v49 = vld [vmem:[#allocation2 + $0x231] sm:$0xff] }
 0x3b9   : > { %2405 = vst.msk [vmem:[#allocation3 + $0x1f8] sm:$0xff] %vm638_vm2, %v2373_v49 }
 0x3ba   : > { %2599 = vmatpush.msrb.mxu0 %v2474_v26  ;;  %5556 = vmatpush.msrb.mxu1 %v2474_v26 }
 0x3bb   : > { %2072 = vrot.lane.b32.xlu2 %v1982_v50, %s5628_s23  ;;  %v2230_v58 = vpop.permute.xlu0 %2229 }
 0x3bc   : > { %v2240_v55 = vpop.permute.xlu1 %2239  ;;  %2600 = vmatpush.msrb.mxu0 %v2473_v2  ;;  %5557 = vmatpush.msrb.mxu1 %v2473_v2  ;;  %v2426_v25 = vld [vmem:[#allocation3 + $0xa0] sm:$0xff] }
 0x3bd   : > { %v1877_v9 = vpop.permute.xlu2 %1876  ;;  %2323 = vst.msk [vmem:[#allocation3 + $0xd0] sm:$0xff] %vm2309_vm10, %v2240_v55  ;;  %v2179_v55 = vld [vmem:[#allocation2 + $0x228] sm:$0xff] }
 0x3be   : > { %1948 = vst.msk [vmem:[#allocation3 + $0x190] sm:$0xff] %vm1922_vm8, %v1877_v9 }
 0x3bf   : > { %2142 = vst.msk [vmem:[#allocation3 + $0x190] sm:$0xff] %vm2116_vm9, %v2071_v32  ;;  %v2472_v32 = vld [vmem:[%s9015_s3 + $0x10] sm:$0xff] }
 0x3c0   : > { %2601 = vmatpush.msrb.mxu0 %v2472_v32  ;;  %5558 = vmatpush.msrb.mxu1 %v2472_v32  ;;  %v2469_v32 = vld [vmem:[#allocation3 + $0x1f8] sm:$0xff] }
 0x3c2   : > { %2602 = vmatpush.msrb.mxu0 %v2471_v35  ;;  %5559 = vmatpush.msrb.mxu1 %v2471_v35 }
 0x3c3   : > { %2078 = vrot.lane.b32.xlu2 %v1985_v24, %s5628_s23  ;;  %v2236_v16 = vpop.permute.xlu0 %2235 }
 0x3c4   : > { %v2246_v60 = vpop.permute.xlu1 %2245 }
 0x3c5   : > { %v1883_v39 = vpop.permute.xlu2 %1882  ;;  %2326 = vst.msk [vmem:[#allocation3 + $0x100] sm:$0xff] %vm2309_vm10, %v2246_v60  ;;  %v7112_v60 = vpop.f32.mrf.mxu3 }
 0x3c6   : > { %1951 = vst.msk [vmem:[#allocation3 + $0x1c0] sm:$0xff] %vm1922_vm8, %v1883_v39 }
 0x3c7   : > { %2145 = vst.msk [vmem:[#allocation3 + $0x1c0] sm:$0xff] %vm2116_vm9, %v2077_v4  ;;  %v2470_v4 = vld [vmem:[%s9015_s3] sm:$0xff] }
 0x3c8   : > { %2603 = vmatpush.msrb.mxu0 %v2470_v4  ;;  %5560 = vmatpush.msrb.mxu1 %v2470_v4 }
 0x3ca   : > { %2715 = vmatpush.msra.mxu1 %v5611_v57 }
 0x3cb   : > { %2213 = vrot.lane.b32.xlu2 %v2149_v8, %s5629_s24  ;;  %v2242_v15 = vpop.permute.xlu0 %2241 }
 0x3cc   : > { %v2252_v0 = vpop.permute.xlu1 %2251 }
 0x3cd   : > { %v1889_v12 = vpop.permute.xlu2 %1888  ;;  %2329 = vst.msk [vmem:[#allocation3 + $0x130] sm:$0xff] %vm2309_vm10, %v2252_v0 }
 0x3ce   : > { %1954 = vst.msk [vmem:[#allocation3 + $0x1f0] sm:$0xff] %vm1922_vm8, %v1889_v12 }
 0x3cf   : > { %2148 = vst.msk [vmem:[#allocation3 + $0x1f0] sm:$0xff] %vm2116_vm9, %v2083_v10  ;;  %v5612_v10 = vld [vmem:[%s9015_s3 + $0x80] sm:$0xff] }
 0x3d0   : > { %2716 = vmatpush.msra.mxu1 %v5612_v10 }
 0x3d3   : > { %2219 = vrot.lane.b32.xlu2 %v2152_v61, %s5629_s24  ;;  %v2248_v56 = vpop.permute.xlu0 %2247  ;;  %v2408_v61 = vld [vmem:[#allocation3 + $0x10] sm:$0xff] }
 0x3d4   : > { %v2258_v37 = vpop.permute.xlu1 %2257 }
 0x3d5   : > { %v2025_v29 = vpop.permute.xlu2 %2024  ;;  %2332 = vst.msk [vmem:[#allocation3 + $0x160] sm:$0xff] %vm2309_vm10, %v2258_v37 }
 0x3d6   : > { %2119 = vst.msk [vmem:[#allocation3 + $0x20] sm:$0xff] %vm2116_vm9, %v2025_v29 }
 0x3d7   : > { %2312 = vst.msk [vmem:[#allocation3 + $0x20] sm:$0xff] %vm2309_vm10, %v2218_v38 }
 0x3db   : > { %2225 = vrot.lane.b32.xlu2 %v2155_v36, %s5629_s24  ;;  %v2254_v46 = vpop.permute.xlu0 %2253 }
 0x3dc   : > { %v2264_v27 = vpop.permute.xlu1 %2263  ;;  %v2450_v43 = vld [vmem:[#allocation3 + $0x160] sm:$0xff] }
 0x3dd   : > { %v2031_v44 = vpop.permute.xlu2 %2030  ;;  %2335 = vst.msk [vmem:[#allocation3 + $0x190] sm:$0xff] %vm2309_vm10, %v2264_v27 }
 0x3de   : > { %2122 = vst.msk [vmem:[#allocation3 + $0x50] sm:$0xff] %vm2116_vm9, %v2031_v44  ;;  %v2410_v37 = vld [vmem:[#allocation3 + $0x20] sm:$0xff] }
 0x3df   : > { %2315 = vst.msk [vmem:[#allocation3 + $0x50] sm:$0xff] %vm2309_vm10, %v2224_v53  ;;  %v7115_v53 = vpop.f32.mrf.mxu3 }
 0x3e3   : > { %2231 = vrot.lane.b32.xlu2 %v2158_v33, %s5629_s24  ;;  %v2260_v52 = vpop.permute.xlu0 %2259  ;;  %v2414_v33 = vld [vmem:[#allocation3 + $0x40] sm:$0xff] }
 0x3e4   : > { %v2270_v3 = vpop.permute.xlu1 %2269  ;;  %v2456_v41 = vld [vmem:[#allocation3 + $0x190] sm:$0xff] }
 0x3e5   : > { %v2037_v7 = vpop.permute.xlu2 %2036  ;;  %2338 = vst.msk [vmem:[#allocation3 + $0x1c0] sm:$0xff] %vm2309_vm10, %v2270_v3 }
 0x3e6   : > { %2125 = vst.msk [vmem:[#allocation3 + $0x80] sm:$0xff] %vm2116_vm9, %v2037_v7 }
 0x3e7   : > { %2318 = vst.msk [vmem:[#allocation3 + $0x80] sm:$0xff] %vm2309_vm10, %v2230_v58  ;;  %v7118_v58 = vpop.f32.mrf.mxu3 }
 0x3eb   : > { %2237 = vrot.lane.b32.xlu2 %v2161_v28, %s5629_s24  ;;  %v2266_v50 = vpop.permute.xlu0 %2265  ;;  %v2416_v28 = vld [vmem:[#allocation3 + $0x50] sm:$0xff] }
 0x3ec   : > { %v2462_v35 = vld [vmem:[#allocation3 + $0x1c0] sm:$0xff] }
 0x3ed   : > { %v2043_v48 = vpop.permute.xlu2 %2042 }
 0x3ee   : > { %2128 = vst.msk [vmem:[#allocation3 + $0xb0] sm:$0xff] %vm2116_vm9, %v2043_v48 }
 0x3ef   : > { %2321 = vst.msk [vmem:[#allocation3 + $0xb0] sm:$0xff] %vm2309_vm10, %v2236_v16  ;;  %v7122_v27 = vpop.f32.mrf.mxu3 }
 0x3f3   : > { %2243 = vrot.lane.b32.xlu2 %v2164_v51, %s5629_s24  ;;  %v2272_v38 = vpop.permute.xlu0 %2271 }
 0x3f5   : > { %v2049_v19 = vpop.permute.xlu2 %2048 }
 0x3f6   : > { %2131 = vst.msk [vmem:[#allocation3 + $0xe0] sm:$0xff] %vm2116_vm9, %v2049_v19  ;;  %v2422_v19 = vld [vmem:[#allocation3 + $0x80] sm:$0xff] }
 0x3f7   : > { %2324 = vst.msk [vmem:[#allocation3 + $0xe0] sm:$0xff] %vm2309_vm10, %v2242_v15  ;;  %v7125_v7 = vpop.f32.mrf.mxu3 }
 0x3fb   : > { %2249 = vrot.lane.b32.xlu2 %v2167_v59, %s5629_s24 }
 0x3fd   : > { %v2055_v47 = vpop.permute.xlu2 %2054 }
 0x3fe   : > { %2134 = vst.msk [vmem:[#allocation3 + $0x110] sm:$0xff] %vm2116_vm9, %v2055_v47 }
 0x3ff   : > { %2327 = vst.msk [vmem:[#allocation3 + $0x110] sm:$0xff] %vm2309_vm10, %v2248_v56  ;;  %v7128_v15 = vpop.f32.mrf.mxu3 }
 0x403   : > { %2255 = vrot.lane.b32.xlu2 %v2170_v14, %s5629_s24  ;;  %v2467_v14 = vld [vmem:[#allocation3 + $0x1e8] sm:$0xff] }
 0x404   : > { %5501 = vmatmul.msk.f32.gmra.mxu3 %vm638_vm2, %v2467_v14 }
 0x405   : > { %v2061_v5 = vpop.permute.xlu2 %2060 }
 0x406   : > { %2137 = vst.msk [vmem:[#allocation3 + $0x140] sm:$0xff] %vm2116_vm9, %v2061_v5  ;;  %v2428_v5 = vld [vmem:[#allocation3 + $0xb0] sm:$0xff] }
 0x407   : > { %2330 = vst.msk [vmem:[#allocation3 + $0x140] sm:$0xff] %vm2309_vm10, %v2254_v46  ;;  %v7131_v51 = vpop.f32.mrf.mxu3 }
 0x40b   : > { %2261 = vrot.lane.b32.xlu2 %v2173_v1, %s5629_s24  ;;  %v2432_v1 = vld [vmem:[#allocation3 + $0xd0] sm:$0xff] }
 0x40c   : > { %5502 = vmatmul.msk.f32.gmra.mxu3 %vm638_vm2, %v2469_v32 }
 0x40d   : > { %v2067_v20 = vpop.permute.xlu2 %2066 }
 0x40e   : > { %2140 = vst.msk [vmem:[#allocation3 + $0x170] sm:$0xff] %vm2116_vm9, %v2067_v20 }
 0x40f   : > { %2333 = vst.msk [vmem:[#allocation3 + $0x170] sm:$0xff] %vm2309_vm10, %v2260_v52  ;;  %v7135_v21 = vpop.f32.mrf.mxu3 }
 0x413   : > { %2267 = vrot.lane.b32.xlu2 %v2176_v13, %s5629_s24  ;;  %v2434_v13 = vld [vmem:[#allocation3 + $0xe0] sm:$0xff] }
 0x415   : > { %v2073_v9 = vpop.permute.xlu2 %2072 }
 0x416   : > { %2143 = vst.msk [vmem:[#allocation3 + $0x1a0] sm:$0xff] %vm2116_vm9, %v2073_v9 }
 0x417   : > { %2336 = vst.msk [vmem:[#allocation3 + $0x1a0] sm:$0xff] %vm2309_vm10, %v2266_v50  ;;  %v7139_v47 = vpop.f32.mrf.mxu3 }
 0x418   : > { %v2276_v62 = vpop.permute.xlu1 %2275 }
 0x419   : > { %2341 = vst.msk [vmem:[#allocation3 + $0x1f0] sm:$0xff] %vm2309_vm10, %v2276_v62 }
 0x41b   : > { %2273 = vrot.lane.b32.xlu2 %v2179_v55, %s5629_s24  ;;  %s8975_s24 = scalar_lea.vmem %s9025_s13, %s5544_s28 }
 0x41d   : > { %v2079_v24 = vpop.permute.xlu2 %2078 }
 0x41e   : > { %2146 = vst.msk [vmem:[#allocation3 + $0x1d0] sm:$0xff] %vm2116_vm9, %v2079_v24  ;;  %v2458_v46 = vld [vmem:[#allocation3 + $0x1a0] sm:$0xff] }
 0x41f   : > { %2339 = vst.msk [vmem:[#allocation3 + $0x1d0] sm:$0xff] %vm2309_vm10, %v2272_v38  ;;  %v7144_v26 = vpop.f32.mrf.mxu3  ;;  %v2438_v38 = vld [vmem:[#allocation3 + $0x100] sm:$0xff] }
 0x420   : > { %v2468_v50 = vld [vmem:[#allocation3 + $0x1f0] sm:$0xff] }
 0x425   : > { %v2214_v39 = vpop.permute.xlu2 %2213 }
 0x426   : > { %2310 = vst.msk [vmem:[#allocation3] sm:$0xff] %vm2309_vm10, %v2214_v39  ;;  %v2464_v4 = vld [vmem:[#allocation3 + $0x1d0] sm:$0xff]  ;;  %v2407_v39 = vld [vmem:[#allocation3 + $0x8] sm:$0xff] }
 0x427   : > { %v7147_v52 = vpop.f32.mrf.mxu3 }
 0x42d   : > { %v2220_v8 = vpop.permute.xlu2 %2219  ;;  %v2406_v12 = vld [vmem:[#allocation3] sm:$0xff] }
 0x42e   : > { %2313 = vst.msk [vmem:[#allocation3 + $0x30] sm:$0xff] %vm2309_vm10, %v2220_v8  ;;  %2604 = vmatmul.f32.vlgmr.msrb.gmra.mxu0 %v2406_v12  ;;  %v9153_v8 = vmov 0.0  }
 0x42f   : > { %v7149_v20 = vpop.f32.mrf.mxu3  ;;  %3036 = vst.msk [vmem:[#allocation4 + $0x68] sm:$0xff] %vm2846_vm11, %v9153_v8 }
 0x430   : > { %3023 = vst.msk [vmem:[#allocation4] sm:$0xff] %vm2846_vm11, %v9153_v8 }
 0x431   : > { %3024 = vst.msk [vmem:[#allocation4 + $0x8] sm:$0xff] %vm2846_vm11, %v9153_v8 }
 0x432   : > { %3025 = vst.msk [vmem:[#allocation4 + $0x10] sm:$0xff] %vm2846_vm11, %v9153_v8 }
 0x433   : > { %3026 = vst.msk [vmem:[#allocation4 + $0x18] sm:$0xff] %vm2846_vm11, %v9153_v8 }
 0x434   : > { %3027 = vst.msk [vmem:[#allocation4 + $0x20] sm:$0xff] %vm2846_vm11, %v9153_v8 }
 0x435   : > { %v2226_v0 = vpop.permute.xlu2 %2225  ;;  %v2412_v44 = vld [vmem:[#allocation3 + $0x30] sm:$0xff]  ;;  %3028 = vst.msk [vmem:[#allocation4 + $0x28] sm:$0xff] %vm2846_vm11, %v9153_v8 }
 0x436   : > { %2316 = vst.msk [vmem:[#allocation3 + $0x60] sm:$0xff] %vm2309_vm10, %v2226_v0  ;;  %2607 = vmatmul.f32.gmra.mxu0 %v2408_v61  ;;  %v2440_v0 = vld [vmem:[#allocation3 + $0x110] sm:$0xff]  ;;  %v2409_v61 = vld [vmem:[#allocation3 + $0x18] sm:$0xff] }
 0x437   : > { %v7151_v10 = vpop.f32.mrf.mxu3  ;;  %3029 = vst.msk [vmem:[#allocation4 + $0x30] sm:$0xff] %vm2846_vm11, %v9153_v8 }
 0x438   : > { %3030 = vst.msk [vmem:[#allocation4 + $0x38] sm:$0xff] %vm2846_vm11, %v9153_v8 }
 0x439   : > { %3031 = vst.msk [vmem:[#allocation4 + $0x40] sm:$0xff] %vm2846_vm11, %v9153_v8 }
 0x43a   : > { %3032 = vst.msk [vmem:[#allocation4 + $0x48] sm:$0xff] %vm2846_vm11, %v9153_v8 }
 0x43b   : > { %3033 = vst.msk [vmem:[#allocation4 + $0x50] sm:$0xff] %vm2846_vm11, %v9153_v8 }
 0x43c   : > { %3034 = vst.msk [vmem:[#allocation4 + $0x58] sm:$0xff] %vm2846_vm11, %v9153_v8 }
 0x43d   : > { %v2232_v29 = vpop.permute.xlu2 %2231  ;;  %v2418_v18 = vld [vmem:[#allocation3 + $0x60] sm:$0xff]  ;;  %3035 = vst.msk [vmem:[#allocation4 + $0x60] sm:$0xff] %vm2846_vm11, %v9153_v8 }
 0x43e   : > { %2319 = vst.msk [vmem:[#allocation3 + $0x90] sm:$0xff] %vm2309_vm10, %v2232_v29  ;;  %2610 = vmatmul.f32.gmra.mxu0 %v2410_v37 }
 0x43f   : > { %v7155_v24 = vpop.f32.mrf.mxu3  ;;  %3037 = vst.msk [vmem:[#allocation4 + $0x70] sm:$0xff] %vm2846_vm11, %v9153_v8 }
 0x440   : > { %3038 = vst.msk [vmem:[#allocation4 + $0x78] sm:$0xff] %vm2846_vm11, %v9153_v8 }
 0x441   : > { %3039 = vst.msk [vmem:[#allocation4 + $0x80] sm:$0xff] %vm2846_vm11, %v9153_v8 }
 0x442   : > { %3040 = vst.msk [vmem:[#allocation4 + $0x88] sm:$0xff] %vm2846_vm11, %v9153_v8 }
 0x443   : > { %3041 = vst.msk [vmem:[#allocation4 + $0x90] sm:$0xff] %vm2846_vm11, %v9153_v8 }
 0x444   : > { %3042 = vst.msk [vmem:[#allocation4 + $0x98] sm:$0xff] %vm2846_vm11, %v9153_v8 }
 0x445   : > { %v2238_v36 = vpop.permute.xlu2 %2237  ;;  %v2424_v22 = vld [vmem:[#allocation3 + $0x90] sm:$0xff]  ;;  %3043 = vst.msk [vmem:[#allocation4 + $0xa0] sm:$0xff] %vm2846_vm11, %v9153_v8 }
 0x446   : > { %2322 = vst.msk [vmem:[#allocation3 + $0xc0] sm:$0xff] %vm2309_vm10, %v2238_v36  ;;  %2613 = vmatmul.f32.gmra.mxu0 %v2412_v44  ;;  %v2411_v44 = vld [vmem:[#allocation3 + $0x28] sm:$0xff] }
 0x447   : > { %v7170_v29 = vpop.f32.mrf.mxu3  ;;  %3044 = vst.msk [vmem:[#allocation4 + $0xa8] sm:$0xff] %vm2846_vm11, %v9153_v8 }
 0x448   : > { %3045 = vst.msk [vmem:[#allocation4 + $0xb0] sm:$0xff] %vm2846_vm11, %v9153_v8 }
 0x449   : > { %3046 = vst.msk [vmem:[#allocation4 + $0xb8] sm:$0xff] %vm2846_vm11, %v9153_v8 }
 0x44a   : > { %3047 = vst.msk [vmem:[#allocation4 + $0xc0] sm:$0xff] %vm2846_vm11, %v9153_v8 }
 0x44b   : > { %3048 = vst.msk [vmem:[#allocation4 + $0xc8] sm:$0xff] %vm2846_vm11, %v9153_v8 }
 0x44c   : > { %3049 = vst.msk [vmem:[#allocation4 + $0xd0] sm:$0xff] %vm2846_vm11, %v9153_v8 }
 0x44d   : > { %v2244_v16 = vpop.permute.xlu2 %2243  ;;  %v2430_v40 = vld [vmem:[#allocation3 + $0xc0] sm:$0xff]  ;;  %3050 = vst.msk [vmem:[#allocation4 + $0xd8] sm:$0xff] %vm2846_vm11, %v9153_v8 }
 0x44e   : > { %2325 = vst.msk [vmem:[#allocation3 + $0xf0] sm:$0xff] %vm2309_vm10, %v2244_v16  ;;  %2616 = vmatmul.f32.gmra.mxu0 %v2414_v33 }
 0x44f   : > { %v7196_v16 = vpop.f32.mrf.mxu3  ;;  %3051 = vst.msk [vmem:[#allocation4 + $0xe0] sm:$0xff] %vm2846_vm11, %v9153_v8 }
 0x450   : > { %3052 = vst.msk [vmem:[#allocation4 + $0xe8] sm:$0xff] %vm2846_vm11, %v9153_v8 }
 0x451   : > { %3053 = vst.msk [vmem:[#allocation4 + $0xf0] sm:$0xff] %vm2846_vm11, %v9153_v8 }
 0x452   : > { %3054 = vst.msk [vmem:[#allocation4 + $0xf8] sm:$0xff] %vm2846_vm11, %v9153_v8 }
 0x453   : > { %3055 = vst.msk [vmem:[#allocation4 + $0x100] sm:$0xff] %vm2846_vm11, %v9153_v8 }
 0x454   : > { %3056 = vst.msk [vmem:[#allocation4 + $0x108] sm:$0xff] %vm2846_vm11, %v9153_v8 }
 0x455   : > { %v2250_v3 = vpop.permute.xlu2 %2249  ;;  %v2436_v9 = vld [vmem:[#allocation3 + $0xf0] sm:$0xff]  ;;  %3057 = vst.msk [vmem:[#allocation4 + $0x110] sm:$0xff] %vm2846_vm11, %v9153_v8 }
 0x456   : > { %2328 = vst.msk [vmem:[#allocation3 + $0x120] sm:$0xff] %vm2309_vm10, %v2250_v3  ;;  %2619 = vmatmul.f32.gmra.mxu0 %v2416_v28  ;;  %v2444_v3 = vld [vmem:[#allocation3 + $0x130] sm:$0xff]  ;;  %v2413_v28 = vld [vmem:[#allocation3 + $0x38] sm:$0xff] }
 0x457   : > { %3058 = vst.msk [vmem:[#allocation4 + $0x118] sm:$0xff] %vm2846_vm11, %v9153_v8 }
 0x458   : > { %3059 = vst.msk [vmem:[#allocation4 + $0x120] sm:$0xff] %vm2846_vm11, %v9153_v8 }
 0x459   : > { %3060 = vst.msk [vmem:[#allocation4 + $0x128] sm:$0xff] %vm2846_vm11, %v9153_v8 }
 0x45a   : > { %3061 = vst.msk [vmem:[#allocation4 + $0x130] sm:$0xff] %vm2846_vm11, %v9153_v8 }
 0x45b   : > { %3062 = vst.msk [vmem:[#allocation4 + $0x138] sm:$0xff] %vm2846_vm11, %v9153_v8 }
 0x45c   : > { %3063 = vst.msk [vmem:[#allocation4 + $0x140] sm:$0xff] %vm2846_vm11, %v9153_v8 }
 0x45d   : > { %v2256_v48 = vpop.permute.xlu2 %2255  ;;  %v2442_v36 = vld [vmem:[#allocation3 + $0x120] sm:$0xff]  ;;  %3064 = vst.msk [vmem:[#allocation4 + $0x148] sm:$0xff] %vm2846_vm11, %v9153_v8 }
 0x45e   : > { %2331 = vst.msk [vmem:[#allocation3 + $0x150] sm:$0xff] %vm2309_vm10, %v2256_v48  ;;  %2622 = vmatmul.f32.gmra.mxu0 %v2418_v18  ;;  %v7221_v48 = vpop.f32.mrf.mxu3  ;;  %v7226_v18 = vld [vmem:[%s9016_s4] ss:$0 sm:$0xff] }
 0x45f   : > { %3065 = vst.msk [vmem:[#allocation4 + $0x150] sm:$0xff] %vm2846_vm11, %v9153_v8 }
 0x460   : > { %3066 = vst.msk [vmem:[#allocation4 + $0x158] sm:$0xff] %vm2846_vm11, %v9153_v8 }
 0x461   : > { %3067 = vst.msk [vmem:[#allocation4 + $0x160] sm:$0xff] %vm2846_vm11, %v9153_v8 }
 0x462   : > { %3068 = vst.msk [vmem:[#allocation4 + $0x168] sm:$0xff] %vm2846_vm11, %v9153_v8 }
 0x463   : > { %3069 = vst.msk [vmem:[#allocation4 + $0x170] sm:$0xff] %vm2846_vm11, %v9153_v8 }
 0x464   : > { %3070 = vst.msk [vmem:[#allocation4 + $0x178] sm:$0xff] %vm2846_vm11, %v9153_v8 }
 0x465   : > { %v2262_v11 = vpop.permute.xlu2 %2261  ;;  %3071 = vst.msk [vmem:[#allocation4 + $0x180] sm:$0xff] %vm2846_vm11, %v9153_v8 }
 0x466   : > { %2334 = vst.msk [vmem:[#allocation3 + $0x180] sm:$0xff] %vm2309_vm10, %v2262_v11  ;;  %2625 = vmatmul.f32.gmra.mxu0 %v2420_v54 }
 0x467   : > { %3072 = vst.msk [vmem:[#allocation4 + $0x188] sm:$0xff] %vm2846_vm11, %v9153_v8 }
 0x468   : > { %3073 = vst.msk [vmem:[#allocation4 + $0x190] sm:$0xff] %vm2846_vm11, %v9153_v8 }
 0x469   : > { %3074 = vst.msk [vmem:[#allocation4 + $0x198] sm:$0xff] %vm2846_vm11, %v9153_v8 }
 0x46a   : > { %3075 = vst.msk [vmem:[#allocation4 + $0x1a0] sm:$0xff] %vm2846_vm11, %v9153_v8 }
 0x46b   : > { %3076 = vst.msk [vmem:[#allocation4 + $0x1a8] sm:$0xff] %vm2846_vm11, %v9153_v8 }
 0x46c   : > { %3077 = vst.msk [vmem:[#allocation4 + $0x1b0] sm:$0xff] %vm2846_vm11, %v9153_v8 }
 0x46d   : > { %v2268_v42 = vpop.permute.xlu2 %2267  ;;  %v2454_v56 = vld [vmem:[#allocation3 + $0x180] sm:$0xff]  ;;  %3078 = vst.msk [vmem:[#allocation4 + $0x1b8] sm:$0xff] %vm2846_vm11, %v9153_v8 }
 0x46e   : > { %2337 = vst.msk [vmem:[#allocation3 + $0x1b0] sm:$0xff] %vm2309_vm10, %v2268_v42  ;;  %2628 = vmatmul.f32.gmra.mxu0 %v2422_v19  ;;  %2676 = vmatmul.f32.vlgmr.msrb.gmra.mxu1 %v2454_v56  ;;  %v2446_v42 = vld [vmem:[#allocation3 + $0x140] sm:$0xff] }
 0x46f   : > { %3079 = vst.msk [vmem:[#allocation4 + $0x1c0] sm:$0xff] %vm2846_vm11, %v9153_v8 }
 0x470   : > { %3080 = vst.msk [vmem:[#allocation4 + $0x1c8] sm:$0xff] %vm2846_vm11, %v9153_v8 }
 0x471   : > { %3081 = vst.msk [vmem:[#allocation4 + $0x1d0] sm:$0xff] %vm2846_vm11, %v9153_v8 }
 0x472   : > { %3082 = vst.msk [vmem:[#allocation4 + $0x1d8] sm:$0xff] %vm2846_vm11, %v9153_v8 }
 0x473   : > { %3083 = vst.msk [vmem:[#allocation4 + $0x1e0] sm:$0xff] %vm2846_vm11, %v9153_v8 }
 0x474   : > { %3084 = vst.msk [vmem:[#allocation4 + $0x1e8] sm:$0xff] %vm2846_vm11, %v9153_v8 }
 0x475   : > { %v2274_v59 = vpop.permute.xlu2 %2273  ;;  %v2460_v2 = vld [vmem:[#allocation3 + $0x1b0] sm:$0xff]  ;;  %3085 = vst.msk [vmem:[#allocation4 + $0x1f0] sm:$0xff] %vm2846_vm11, %v9153_v8 }
 0x476   : > { %2631 = vmatmul.f32.gmra.mxu0 %v2424_v22  ;;  %2679 = vmatmul.f32.gmra.mxu1 %v2456_v41  ;;  %2340 = vst.msk [vmem:[#allocation3 + $0x1e0] sm:$0xff] %vm2309_vm10, %v2274_v59  ;;  %v7252_v22 = vpop.f32.mrf.mxu3  ;;  %v2448_v41 = vld [vmem:[#allocation3 + $0x150] sm:$0xff] }
 0x477   : > { %3086 = vst.msk [vmem:[#allocation4 + $0x1f8] sm:$0xff] %vm2846_vm11, %v9153_v8 }
 0x478   : > { %3087 = vst.msk [vmem:[#allocation4 + $0x200] sm:$0xff] %vm2846_vm11, %v9153_v8 }
 0x479   : > { %3088 = vst.msk [vmem:[#allocation4 + $0x208] sm:$0xff] %vm2846_vm11, %v9153_v8 }
 0x47a   : > { %3089 = vst.msk [vmem:[#allocation4 + $0x210] sm:$0xff] %vm2846_vm11, %v9153_v8 }
 0x47b   : > { %3090 = vst.msk [vmem:[#allocation4 + $0x218] sm:$0xff] %vm2846_vm11, %v9153_v8 }
 0x47c   : > { %3091 = vst.msk [vmem:[#allocation4 + $0x220] sm:$0xff] %vm2846_vm11, %v9153_v8 }
 0x47d   : > { %v2466_v57 = vld [vmem:[#allocation3 + $0x1e0] sm:$0xff]  ;;  %3092 = vst.msk [vmem:[#allocation4 + $0x228] sm:$0xff] %vm2846_vm11, %v9153_v8 }
 0x47e   : > { %2634 = vmatmul.f32.gmra.mxu0 %v2426_v25  ;;  %2682 = vmatmul.f32.gmra.mxu1 %v2458_v46  ;;  %v2790_v62 = vpop.f32.mrf.mxu3  ;;  %v2452_v46 = vld [vmem:[#allocation3 + $0x170] sm:$0xff]  ;;  %3093 = vst.msk [vmem:[#allocation4 + $0x230] sm:$0xff] %vm2846_vm11, %v9153_v8 }
 0x47f   : > { %3094 = vst.msk [vmem:[#allocation4 + $0x238] sm:$0xff] %vm2846_vm11, %v9153_v8 }
 0x486   : > { %2637 = vmatmul.f32.gmra.mxu0 %v2428_v5  ;;  %2685 = vmatmul.f32.gmra.mxu1 %v2460_v2  ;;  %v2793_v49 = vpop.f32.mrf.mxu3 }
 0x48e   : > { %2640 = vmatmul.f32.gmra.mxu0 %v2430_v40  ;;  %2688 = vmatmul.f32.gmra.mxu1 %v2462_v35 }
 0x496   : > { %2643 = vmatmul.f32.gmra.mxu0 %v2432_v1  ;;  %2691 = vmatmul.f32.gmra.mxu1 %v2464_v4  ;;  %v2796_v1 = vpop.f32.mrf.mxu3 }
 0x49e   : > { %2646 = vmatmul.f32.gmra.mxu0 %v2434_v13  ;;  %2694 = vmatmul.f32.gmra.mxu1 %v2466_v57 }
 0x4a6   : > { %2649 = vmatmul.f32.gmra.mxu0 %v2436_v9  ;;  %2697 = vmatmul.f32.gmra.mxu1 %v2468_v50 }
 0x4ab   : > { %v7153_v55 = vpop.f32.mrf.mxu0 }
 0x4ae   : > { %2652 = vmatmul.f32.gmra.mxu0 %v2438_v38  ;;  %5471 = vmatmul.msk.f32.vlgmr.msra.gmra.mxu1 %vm638_vm2, %v2407_v39 }
 0x4b3   : > { %v7162_v12 = vpop.f32.mrf.mxu0 }
 0x4b6   : > { %2655 = vmatmul.f32.gmra.mxu0 %v2440_v0  ;;  %5472 = vmatmul.msk.f32.gmra.mxu1 %vm638_vm2, %v2409_v61 }
 0x4bb   : > { %v7183_v37 = vpop.f32.mrf.mxu0 }
 0x4be   : > { %2658 = vmatmul.f32.gmra.mxu0 %v2442_v36  ;;  %5473 = vmatmul.msk.f32.gmra.mxu1 %vm638_vm2, %v2411_v44 }
 0x4c3   : > { %v7204_v33 = vpop.f32.mrf.mxu0 }
 0x4c6   : > { %2661 = vmatmul.f32.gmra.mxu0 %v2444_v3  ;;  %5474 = vmatmul.msk.f32.gmra.mxu1 %vm638_vm2, %v2413_v28  ;;  %vm4124_vm2 = vcmask 392512  }
 0x4cb   : > { %v2617_v11 = vpop.f32.mrf.mxu0 }
 0x4cc   : > { %v2618_v54 = vadd.f32 %v7226_v18, %v2617_v11 }
 0x4ce   : > { %v2731_v19 = vadd.f32 %v6904_v31, %v2618_v54  ;;  %2664 = vmatmul.f32.gmra.mxu0 %v2446_v42  ;;  %v2799_v42 = vpop.f32.mrf.mxu3 }
 0x4d0   : > { %v7242_v56 = vmax.f32 %v2731_v19, 0.0 }
 0x4d2   : > { %9154 = vst [vmem:[#allocation16_spill] sm:$0xff] %v7242_v56 }
 0x4d3   : > { %3100 = vst.msk [vmem:[#allocation4 + $0x68] sm:$0xff] %vm2846_vm11, %v7242_v56  ;;  %v2620_v31 = vpop.f32.mrf.mxu0 }
 0x4d4   : > { %v2621_v2 = vadd.f32 %v7226_v18, %v2620_v31 }
 0x4d6   : > { %2667 = vmatmul.f32.gmra.mxu0 %v2448_v41  ;;  %v2734_v4 = vadd.f32 %v6918_v63, %v2621_v2 }
 0x4db   : > { %v2623_v59 = vpop.f32.mrf.mxu0 }
 0x4dc   : > { %v2624_v32 = vadd.f32 %v7226_v18, %v2623_v59 }
 0x4de   : > { %2670 = vmatmul.f32.gmra.mxu0 %v2450_v43  ;;  %v2737_v13 = vadd.f32 %v7112_v60, %v2624_v32  ;;  %v7335_v60 = vmax.f32 %v2734_v4, 0.0  ;;  %v7369_v43 = vld [vmem:[#allocation4 + $0x67] sm:$0xff] }
 0x4df   : > { %3166 = vst.msk [vmem:[#allocation5 + $0x30] sm:$0xff] %vm2846_vm11, %v7369_v43 }
 0x4e0   : > { %9155 = vst [vmem:[#allocation33_spill] sm:$0xff] %v7335_v60  ;;  %v7339_v36 = vmax.f32 %v2737_v13, 0.0 }
 0x4e1   : > { %3101 = vst.msk [vmem:[#allocation4 + $0x70] sm:$0xff] %vm2846_vm11, %v7335_v60 }
 0x4e2   : > { %9156 = vst [vmem:[#allocation42_spill] sm:$0xff] %v7339_v36 }
 0x4e3   : > { %v2626_v25 = vpop.f32.mrf.mxu0  ;;  %3102 = vst.msk [vmem:[#allocation4 + $0x88] sm:$0xff] %vm2846_vm11, %v7339_v36 }
 0x4e4   : > { %v2627_v40 = vadd.f32 %v7226_v18, %v2626_v25 }
 0x4e6   : > { %2673 = vmatmul.f32.gmra.mxu0 %v2452_v46  ;;  %v2740_v38 = vadd.f32 %v7115_v53, %v2627_v40 }
 0x4e8   : > { %v7344_v44 = vmax.f32 %v2740_v38, 0.0 }
 0x4ea   : > { %9157 = vst [vmem:[#allocation43_spill] sm:$0xff] %v7344_v44  ;;  %v7395_v40 = vld [vmem:[#allocation4 + $0x87] sm:$0xff] }
 0x4eb   : > { %v2629_v14 = vpop.f32.mrf.mxu0  ;;  %v2677_v5 = vpop.f32.mrf.mxu1  ;;  %3103 = vst.msk [vmem:[#allocation4 + $0x90] sm:$0xff] %vm2846_vm11, %v7344_v44 }
 0x4ec   : > { %v2630_v35 = vadd.f32 %v7226_v18, %v2629_v14  ;;  %v2678_v57 = vadd.f32 %v7226_v18, %v2677_v5  ;;  %3168 = vst.msk [vmem:[#allocation5 + $0x40] sm:$0xff] %vm2846_vm11, %v7395_v40 }
 0x4ee   : > { %v2743_v63 = vadd.f32 %v7118_v58, %v2630_v35  ;;  %v2791_v61 = vadd.f32 %v2790_v62, %v2678_v57 }
 0x4f0   : > { %v7348_v58 = vmax.f32 %v2743_v63, 0.0  ;;  %v7352_v28 = vmax.f32 %v2791_v61, 0.0 }
 0x4f2   : > { %9158 = vst [vmem:[#allocation44_spill] sm:$0xff] %v7348_v58  ;;  %v7393_v32 = vld [vmem:[#allocation4 + $0x8f] sm:$0xff] }
 0x4f3   : > { %v2632_v50 = vpop.f32.mrf.mxu0  ;;  %v2680_v9 = vpop.f32.mrf.mxu1  ;;  %9159 = vst [vmem:[#allocation45_spill] sm:$0xff] %v7352_v28 }
 0x4f4   : > { %v2633_v39 = vadd.f32 %v7226_v18, %v2632_v50  ;;  %v2681_v0 = vadd.f32 %v7226_v18, %v2680_v9  ;;  %3104 = vst.msk [vmem:[#allocation4 + $0xa8] sm:$0xff] %vm2846_vm11, %v7348_v58 }
 0x4f5   : > { %3120 = vst.msk [vmem:[#allocation4 + $0x1a8] sm:$0xff] %vm2846_vm11, %v7352_v28 }
 0x4f6   : > { %v2746_v53 = vadd.f32 %v7122_v27, %v2633_v39  ;;  %v2794_v3 = vadd.f32 %v2793_v49, %v2681_v0  ;;  %3169 = vst.msk [vmem:[#allocation5 + $0x48] sm:$0xff] %vm2846_vm11, %v7393_v32 }
 0x4f8   : > { %v7356_v27 = vmax.f32 %v2746_v53, 0.0  ;;  %v7360_v19 = vmax.f32 %v2794_v3, 0.0 }
 0x4fa   : > { %9160 = vst [vmem:[#allocation46_spill] sm:$0xff] %v7356_v27 }
 0x4fb   : > { %v2635_v11 = vpop.f32.mrf.mxu0  ;;  %v2683_v54 = vpop.f32.mrf.mxu1  ;;  %9161 = vst [vmem:[#allocation47_spill] sm:$0xff] %v7360_v19  ;;  %v7391_v2 = vld [vmem:[#allocation4 + $0xa7] sm:$0xff] }
 0x4fc   : > { %v2636_v8 = vadd.f32 %v7226_v18, %v2635_v11  ;;  %v2684_v31 = vadd.f32 %v7226_v18, %v2683_v54  ;;  %3105 = vst.msk [vmem:[#allocation4 + $0xb0] sm:$0xff] %vm2846_vm11, %v7356_v27  ;;  %v7399_v35 = vld [vmem:[#allocation4 + $0x1a7] sm:$0xff] }
 0x4fd   : > { %3121 = vst.msk [vmem:[#allocation4 + $0x1b0] sm:$0xff] %vm2846_vm11, %v7360_v19 }
 0x4fe   : > { %v2749_v41 = vadd.f32 %v7125_v7, %v2636_v8  ;;  %v2797_v59 = vadd.f32 %v2796_v1, %v2684_v31  ;;  %v7383_v7 = vld [vmem:[#allocation4 + $0x6f] sm:$0xff]  ;;  %3170 = vst.msk [vmem:[#allocation5 + $0x50] sm:$0xff] %vm2846_vm11, %v7391_v2  ;;  %v2802_v1 = vpop.f32.mrf.mxu3 }
 0x4ff   : > { %3167 = vst.msk [vmem:[#allocation5 + $0x38] sm:$0xff] %vm2846_vm11, %v7383_v7 }
 0x500   : > { %v7375_v62 = vmax.f32 %v2749_v41, 0.0  ;;  %v7377_v25 = vmax.f32 %v2797_v59, 0.0  ;;  %9164 = vst [vmem:[#allocation50_spill] sm:$0xff] %v7399_v35 }
 0x501   : > { %3186 = vst.msk [vmem:[#allocation5 + $0xd0] sm:$0xff] %vm2846_vm11, %v7399_v35 }
 0x502   : > { %9162 = vst [vmem:[#allocation48_spill] sm:$0xff] %v7375_v62 }
 0x503   : > { %9163 = vst [vmem:[#allocation49_spill] sm:$0xff] %v7377_v25  ;;  %v2638_v46 = vpop.f32.mrf.mxu0  ;;  %v2686_v49 = vpop.f32.mrf.mxu1  ;;  %v7410_v9 = vld [vmem:[#allocation4 + $0xaf] sm:$0xff] }
 0x504   : > { %3106 = vst.msk [vmem:[#allocation4 + $0xc8] sm:$0xff] %vm2846_vm11, %v7375_v62  ;;  %v2639_v14 = vadd.f32 %v7226_v18, %v2638_v46  ;;  %v2687_v5 = vadd.f32 %v7226_v18, %v2686_v49 }
 0x505   : > { %3122 = vst.msk [vmem:[#allocation4 + $0x1c8] sm:$0xff] %vm2846_vm11, %v7377_v25 }
 0x506   : > { %v2752_v4 = vadd.f32 %v7128_v15, %v2639_v14  ;;  %v2800_v57 = vadd.f32 %v2799_v42, %v2687_v5  ;;  %3171 = vst.msk [vmem:[#allocation5 + $0x58] sm:$0xff] %vm2846_vm11, %v7410_v9  ;;  %v7416_v15 = vld [vmem:[#allocation4 + $0x1af] sm:$0xff]  ;;  %v2805_v3 = vpop.f32.mrf.mxu3 }
 0x507   : > { %9167 = vst [vmem:[#allocation53_spill] sm:$0xff] %v7416_v15 }
 0x508   : > { %v7406_v13 = vmax.f32 %v2752_v4, 0.0  ;;  %v7408_v50 = vmax.f32 %v2800_v57, 0.0  ;;  %3187 = vst.msk [vmem:[#allocation5 + $0xd8] sm:$0xff] %vm2846_vm11, %v7416_v15 }
 0x50a   : > { %9165 = vst [vmem:[#allocation51_spill] sm:$0xff] %v7406_v13 }
 0x50b   : > { %9166 = vst [vmem:[#allocation52_spill] sm:$0xff] %v7408_v50  ;;  %v2641_v38 = vpop.f32.mrf.mxu0  ;;  %v2689_v39 = vpop.f32.mrf.mxu1  ;;  %v7431_v42 = vld [vmem:[#allocation4 + $0xc7] sm:$0xff] }
 0x50c   : > { %3107 = vst.msk [vmem:[#allocation4 + $0xd0] sm:$0xff] %vm2846_vm11, %v7406_v13  ;;  %v2642_v0 = vadd.f32 %v7226_v18, %v2641_v38  ;;  %v2690_v63 = vadd.f32 %v7226_v18, %v2689_v39  ;;  %v7437_v8 = vld [vmem:[#allocation4 + $0x1c7] sm:$0xff] }
 0x50d   : > { %3123 = vst.msk [vmem:[#allocation4 + $0x1d0] sm:$0xff] %vm2846_vm11, %v7408_v50  ;;  %v3192_v38 = vld [vmem:[#allocation4 + $0x8] sm:$0xff] }
 0x50e   : > { %v2755_v61 = vadd.f32 %v7131_v51, %v2642_v0  ;;  %v2803_v53 = vadd.f32 %v2802_v1, %v2690_v63  ;;  %3172 = vst.msk [vmem:[#allocation5 + $0x60] sm:$0xff] %vm2846_vm11, %v7431_v42  ;;  %v2808_v4 = vpop.f32.mrf.mxu3  ;;  %3256 = vrot.lane.b32.xlu0 %v3192_v38, %s5630_s19 }
 0x50f   : > { %3188 = vst.msk [vmem:[#allocation5 + $0xe0] sm:$0xff] %vm2846_vm11, %v7437_v8 }
 0x510   : > { %v7427_v11 = vmax.f32 %v2755_v61, 0.0  ;;  %v7429_v54 = vmax.f32 %v2803_v53, 0.0 }
 0x512   : > { %9168 = vst [vmem:[#allocation54_spill] sm:$0xff] %v7427_v11 }
 0x513   : > { %9169 = vst [vmem:[#allocation55_spill] sm:$0xff] %v7429_v54  ;;  %v2644_v51 = vpop.f32.mrf.mxu0  ;;  %v2692_v31 = vpop.f32.mrf.mxu1  ;;  %v7441_v41 = vld [vmem:[#allocation4 + $0xcf] sm:$0xff] }
 0x514   : > { %3108 = vst.msk [vmem:[#allocation4 + $0xe8] sm:$0xff] %vm2846_vm11, %v7427_v11  ;;  %v2645_v59 = vadd.f32 %v7226_v18, %v2644_v51  ;;  %v2693_v46 = vadd.f32 %v7226_v18, %v2692_v31  ;;  %v7454_v57 = vld [vmem:[#allocation4 + $0x1cf] sm:$0xff] }
 0x515   : > { %3124 = vst.msk [vmem:[#allocation4 + $0x1e8] sm:$0xff] %vm2846_vm11, %v7429_v54 }
 0x516   : > { %3173 = vst.msk [vmem:[#allocation5 + $0x68] sm:$0xff] %vm2846_vm11, %v7441_v41  ;;  %v2758_v49 = vadd.f32 %v7135_v21, %v2645_v59  ;;  %v2806_v14 = vadd.f32 %v2805_v3, %v2693_v46  ;;  %v2811_v46 = vpop.f32.mrf.mxu3 }
 0x517   : > { %9172 = vst [vmem:[#allocation58_spill] sm:$0xff] %v7454_v57 }
 0x518   : > { %v7450_v5 = vmax.f32 %v2758_v49, 0.0  ;;  %v7452_v1 = vmax.f32 %v2806_v14, 0.0  ;;  %3189 = vst.msk [vmem:[#allocation5 + $0xe8] sm:$0xff] %vm2846_vm11, %v7454_v57  ;;  %v3193_v49 = vld [vmem:[#allocation4 + $0x10] sm:$0xff]  ;;  %v7580_v57 = vld [vmem:[#allocation4 + $0x68] sm:$0xff] }
 0x519   : > { %3258 = vrot.lane.b32.xlu2 %v3193_v49, %s5630_s19  ;;  %v2606_v49 = vadd.f32 %v7226_v18, %v7153_v55 }
 0x51a   : > { %9170 = vst [vmem:[#allocation56_spill] sm:$0xff] %v7450_v5 }
 0x51b   : > { %9171 = vst [vmem:[#allocation57_spill] sm:$0xff] %v7452_v1  ;;  %v2647_v39 = vpop.f32.mrf.mxu0  ;;  %v2695_v21 = vpop.f32.mrf.mxu1  ;;  %v7470_v31 = vld [vmem:[#allocation4 + $0xe7] sm:$0xff] }
 0x51c   : > { %3109 = vst.msk [vmem:[#allocation4 + $0xf0] sm:$0xff] %vm2846_vm11, %v7450_v5  ;;  %v2648_v0 = vadd.f32 %v7226_v18, %v2647_v39  ;;  %v2696_v63 = vadd.f32 %v7226_v18, %v2695_v21  ;;  %v7474_v59 = vld [vmem:[#allocation4 + $0x1e7] sm:$0xff] }
 0x51d   : > { %3125 = vst.msk [vmem:[#allocation4 + $0x1f0] sm:$0xff] %vm2846_vm11, %v7452_v1 }
 0x51e   : > { %v2761_v61 = vadd.f32 %v7139_v47, %v2648_v0  ;;  %v2809_v53 = vadd.f32 %v2808_v4, %v2696_v63  ;;  %3174 = vst.msk [vmem:[#allocation5 + $0x70] sm:$0xff] %vm2846_vm11, %v7470_v31 }
 0x51f   : > { %9175 = vst [vmem:[#allocation61_spill] sm:$0xff] %v7474_v59 }
 0x520   : > { %v7466_v3 = vmax.f32 %v2761_v61, 0.0  ;;  %v7468_v51 = vmax.f32 %v2809_v53, 0.0  ;;  %3190 = vst.msk [vmem:[#allocation5 + $0xf0] sm:$0xff] %vm2846_vm11, %v7474_v59 }
 0x522   : > { %9173 = vst [vmem:[#allocation59_spill] sm:$0xff] %v7466_v3 }
 0x523   : > { %9174 = vst [vmem:[#allocation60_spill] sm:$0xff] %v7468_v51  ;;  %v2650_v47 = vpop.f32.mrf.mxu0  ;;  %v2698_v14 = vpop.f32.mrf.mxu1  ;;  %v7490_v61 = vld [vmem:[#allocation4 + $0xef] sm:$0xff] }
 0x524   : > { %3110 = vst.msk [vmem:[#allocation4 + $0x108] sm:$0xff] %vm2846_vm11, %v7466_v3  ;;  %v2651_v4 = vadd.f32 %v7226_v18, %v2650_v47  ;;  %v2699_v38 = vadd.f32 %v7226_v18, %v2698_v14  ;;  %v7494_v53 = vld [vmem:[#allocation4 + $0x1ef] sm:$0xff] }
 0x525   : > { %3126 = vst.msk [vmem:[#allocation4 + $0x208] sm:$0xff] %vm2846_vm11, %v7468_v51 }
 0x526   : > { %v2764_v39 = vadd.f32 %v7144_v26, %v2651_v4  ;;  %v2812_v21 = vadd.f32 %v2811_v46, %v2699_v38  ;;  %3175 = vst.msk [vmem:[#allocation5 + $0x78] sm:$0xff] %vm2846_vm11, %v7490_v61 }
 0x527   : > { %9178 = vst [vmem:[#allocation64_spill] sm:$0xff] %v7494_v53 }
 0x528   : > { %v7486_v0 = vmax.f32 %v2764_v39, 0.0  ;;  %v7488_v63 = vmax.f32 %v2812_v21, 0.0  ;;  %3191 = vst.msk [vmem:[#allocation5 + $0xf8] sm:$0xff] %vm2846_vm11, %v7494_v53  ;;  %v2609_v21 = vadd.f32 %v7226_v18, %v7162_v12 }
 0x52a   : > { %9176 = vst [vmem:[#allocation62_spill] sm:$0xff] %v7486_v0 }
 0x52b   : > { %9177 = vst [vmem:[#allocation63_spill] sm:$0xff] %v7488_v63  ;;  %v2653_v26 = vpop.f32.mrf.mxu0  ;;  %v2718_v46 = vpop.f32.mrf.mxu1  ;;  %v7512_v55 = vld [vmem:[#allocation4 + $0x107] sm:$0xff] }
 0x52c   : > { %3111 = vst.msk [vmem:[#allocation4 + $0x110] sm:$0xff] %vm2846_vm11, %v7486_v0  ;;  %v2654_v47 = vadd.f32 %v7226_v18, %v2653_v26  ;;  %v2719_v14 = vadd.f32 %v2718_v46, %v2606_v49 }
 0x52d   : > { %3127 = vst.msk [vmem:[#allocation4 + $0x210] sm:$0xff] %vm2846_vm11, %v7488_v63 }
 0x52e   : > { %v2767_v4 = vadd.f32 %v7147_v52, %v2654_v47  ;;  %v7506_v38 = vmax.f32 %v2719_v14, 0.0  ;;  %3176 = vst.msk [vmem:[#allocation5 + $0x80] sm:$0xff] %vm2846_vm11, %v7512_v55 }
 0x530   : > { %9179 = vst [vmem:[#allocation65_spill] sm:$0xff] %v7506_v38  ;;  %v7508_v39 = vmax.f32 %v2767_v4, 0.0 }
 0x531   : > { %3096 = vst.msk [vmem:[#allocation4 + $0x28] sm:$0xff] %vm2846_vm11, %v7506_v38 }
 0x532   : > { %9180 = vst [vmem:[#allocation66_spill] sm:$0xff] %v7508_v39 }
 0x533   : > { %3112 = vst.msk [vmem:[#allocation4 + $0x128] sm:$0xff] %vm2846_vm11, %v7508_v39  ;;  %v2656_v49 = vpop.f32.mrf.mxu0  ;;  %v2721_v52 = vpop.f32.mrf.mxu1  ;;  %v7532_v12 = vld [vmem:[#allocation4 + $0x10f] sm:$0xff] }
 0x534   : > { %v2657_v26 = vadd.f32 %v7226_v18, %v2656_v49  ;;  %v2722_v46 = vadd.f32 %v2721_v52, %v2609_v21  ;;  %3177 = vst.msk [vmem:[#allocation5 + $0x88] sm:$0xff] %vm2846_vm11, %v7532_v12 }
 0x536   : > { %v2770_v47 = vadd.f32 %v7149_v20, %v2657_v26  ;;  %v7522_v14 = vmax.f32 %v2722_v46, 0.0  ;;  %v2612_v20 = vadd.f32 %v7226_v18, %v7183_v37 }
 0x538   : > { %9181 = vst [vmem:[#allocation67_spill] sm:$0xff] %v7522_v14  ;;  %v7524_v4 = vld [vmem:[#allocation4 + $0x28] sm:$0xff]  ;;  %v7526_v45 = vmax.f32 %v2770_v47, 0.0 }
 0x539   : > { %9182 = vst [vmem:[#allocation68_spill] sm:$0xff] %v7524_v4  ;;  %3260 = vrot.lane.b32.xlu1 %v7524_v4, %s5630_s19  ;;  %v7534_v34 = vld [vmem:[#allocation4 + $0x27] sm:$0xff] }
 0x53a   : > { %3097 = vst.msk [vmem:[#allocation4 + $0x30] sm:$0xff] %vm2846_vm11, %v7522_v14  ;;  %v7556_v37 = vld [vmem:[#allocation4 + $0x127] sm:$0xff] }
 0x53b   : > { %3113 = vst.msk [vmem:[#allocation4 + $0x130] sm:$0xff] %vm2846_vm11, %v7526_v45  ;;  %v2659_v21 = vpop.f32.mrf.mxu0  ;;  %v2724_v49 = vpop.f32.mrf.mxu1 }
 0x53c   : > { %3162 = vst.msk [vmem:[#allocation5 + $0x10] sm:$0xff] %vm2846_vm11, %v7534_v34  ;;  %v2660_v52 = vadd.f32 %v7226_v18, %v2659_v21  ;;  %v2725_v26 = vadd.f32 %v2724_v49, %v2612_v20  ;;  %v2848_v20 = vsel %vm2846_vm11, %v7522_v14, 0.0 }
 0x53d   : > { %3178 = vst.msk [vmem:[#allocation5 + $0x90] sm:$0xff] %vm2846_vm11, %v7556_v37 }
 0x53e   : > { %v2773_v46 = vadd.f32 %v7151_v10, %v2660_v52  ;;  %v7546_v47 = vmax.f32 %v2725_v26, 0.0  ;;  %v2615_v10 = vadd.f32 %v7226_v18, %v7204_v33  ;;  %v2847_v52 = vsel %vm2846_vm11, %v7506_v38, 0.0 }
 0x540   : > { %9183 = vst [vmem:[#allocation69_spill] sm:$0xff] %v7546_v47  ;;  %v7550_v17 = vmax.f32 %v2773_v46, 0.0  ;;  %v2850_v26 = vsel %vm2846_vm11, %v7546_v47, 0.0 }
 0x541   : > { %v7548_v23 = vld [vmem:[#allocation4 + $0x30] sm:$0xff]  ;;  %3098 = vst.msk [vmem:[#allocation4 + $0x48] sm:$0xff] %vm2846_vm11, %v7546_v47 }
 0x542   : > { %9184 = vst [vmem:[#allocation70_spill] sm:$0xff] %v7548_v23  ;;  %3262 = vrot.lane.b32.xlu0 %v7548_v23, %s5630_s19  ;;  %v7558_v30 = vld [vmem:[#allocation4 + $0x2f] sm:$0xff]  ;;  %v2849_v23 = vadd.f32 %v2848_v20, %v2847_v52 }
 0x543   : > { %3114 = vst.msk [vmem:[#allocation4 + $0x148] sm:$0xff] %vm2846_vm11, %v7550_v17  ;;  %v2662_v21 = vpop.f32.mrf.mxu0  ;;  %v2727_v49 = vpop.f32.mrf.mxu1 }
 0x544   : > { %3163 = vst.msk [vmem:[#allocation5 + $0x18] sm:$0xff] %vm2846_vm11, %v7558_v30  ;;  %v2663_v46 = vadd.f32 %v7226_v18, %v2662_v21  ;;  %v2728_v33 = vadd.f32 %v2727_v49, %v2615_v10  ;;  %v2851_v4 = vadd.f32 %v2850_v26, %v2849_v23  ;;  %v7594_v23 = vld [vmem:[#allocation4 + $0x12f] sm:$0xff]  ;;  %v2856_v21 = vsel %vm2846_vm11, %v7335_v60, 0.0 }
 0x545   : > { %3179 = vst.msk [vmem:[#allocation5 + $0x98] sm:$0xff] %vm2846_vm11, %v7594_v23  ;;  %v7644_v60 = vld [vmem:[#allocation4 + $0xc8] sm:$0xff] }
 0x546   : > { %v2776_v14 = vadd.f32 %v7155_v24, %v2663_v46  ;;  %v7576_v59 = vmax.f32 %v2728_v33, 0.0  ;;  %v7610_v46 = vld [vmem:[#allocation4 + $0x70] sm:$0xff] }
 0x547   : > { %v7612_v33 = vld [vmem:[#allocation4 + $0x90] sm:$0xff] }
 0x548   : > { %9185 = vst [vmem:[#allocation71_spill] sm:$0xff] %v7576_v59  ;;  %v7578_v15 = vld [vmem:[#allocation4 + $0x48] sm:$0xff]  ;;  %v7584_v35 = vmax.f32 %v2776_v14, 0.0  ;;  %v2852_v47 = vsel %vm2846_vm11, %v7576_v59, 0.0  ;;  %v2854_v14 = vsel %vm2846_vm11, %v7242_v56, 0.0 }
 0x549   : > { %v7582_v53 = vld [vmem:[#allocation4 + $0x47] sm:$0xff]  ;;  %3099 = vst.msk [vmem:[#allocation4 + $0x50] sm:$0xff] %vm2846_vm11, %v7576_v59  ;;  %3264 = vrot.lane.b32.xlu2 %v7578_v15, %s5630_s19  ;;  %v2853_v24 = vadd.f32 %v2852_v47, %v2851_v4  ;;  %v2858_v47 = vsel %vm2846_vm11, %v7339_v36, 0.0 }
 0x54a   : > { %3268 = vrot.lane.b32.xlu0 %v7580_v57, %s5630_s19  ;;  %3164 = vst.msk [vmem:[#allocation5 + $0x20] sm:$0xff] %vm2846_vm11, %v7582_v53  ;;  %v3210_v59 = vld [vmem:[#allocation4 + $0x128] sm:$0xff] }
 0x54b   : > { %3115 = vst.msk [vmem:[#allocation4 + $0x150] sm:$0xff] %vm2846_vm11, %v7584_v35  ;;  %v2855_v10 = vadd.f32 %v2854_v14, %v2853_v24  ;;  %v2665_v20 = vpop.f32.mrf.mxu0  ;;  %v2860_v14 = vsel %vm2846_vm11, %v7344_v44, 0.0 }
 0x54c   : > { %v2666_v49 = vadd.f32 %v7226_v18, %v2665_v20  ;;  %v2862_v20 = vsel %vm2846_vm11, %v7348_v58, 0.0  ;;  %v7642_v58 = vld [vmem:[#allocation4 + $0xa8] sm:$0xff] }
 0x54d   : > { %v2857_v4 = vadd.f32 %v2856_v21, %v2855_v10  ;;  %v7624_v10 = vld [vmem:[#allocation4 + $0x147] sm:$0xff] }
 0x54e   : > { %v2779_v52 = vadd.f32 %v7170_v29, %v2666_v49  ;;  %3180 = vst.msk [vmem:[#allocation5 + $0xa0] sm:$0xff] %vm2846_vm11, %v7624_v10 }
 0x54f   : > { %v2859_v26 = vadd.f32 %v2858_v47, %v2857_v4  ;;  %v2864_v4 = vsel %vm2846_vm11, %v7356_v27, 0.0  ;;  %v7674_v27 = vld [vmem:[#allocation4 + $0xd0] sm:$0xff] }
 0x550   : > { %v7614_v24 = vld [vmem:[#allocation4 + $0x50] sm:$0xff]  ;;  %v7618_v56 = vmax.f32 %v2779_v52, 0.0 }
 0x551   : > { %3270 = vrot.lane.b32.xlu2 %v7610_v46, %s5630_s19  ;;  %v2861_v29 = vadd.f32 %v2860_v14, %v2859_v26  ;;  %3266 = vrot.lane.b32.xlu1 %v7614_v24, %s5630_s19  ;;  %v2866_v26 = vsel %vm2846_vm11, %v7375_v62, 0.0  ;;  %v7640_v44 = vld [vmem:[#allocation4 + $0x4f] sm:$0xff] }
 0x552   : > { %3274 = vrot.lane.b32.xlu0 %v7612_v33, %s5630_s19  ;;  %3116 = vst.msk [vmem:[#allocation4 + $0x168] sm:$0xff] %vm2846_vm11, %v7618_v56 }
 0x553   : > { %v2863_v21 = vadd.f32 %v2862_v20, %v2861_v29  ;;  %v2668_v49 = vpop.f32.mrf.mxu0  ;;  %3165 = vst.msk [vmem:[#allocation5 + $0x28] sm:$0xff] %vm2846_vm11, %v7640_v44  ;;  %v2868_v29 = vsel %vm2846_vm11, %v7406_v13, 0.0 }
 0x554   : > { %v2669_v47 = vadd.f32 %v7226_v18, %v2668_v49 }
 0x555   : > { %v2865_v52 = vadd.f32 %v2864_v4, %v2863_v21  ;;  %v7658_v21 = vld [vmem:[#allocation4 + $0x14f] sm:$0xff]  ;;  %v2870_v4 = vsel %vm2846_vm11, %v7427_v11, 0.0 }
 0x556   : > { %v2782_v14 = vadd.f32 %v7196_v16, %v2669_v47  ;;  %v7656_v16 = vld [vmem:[#allocation4 + $0x88] sm:$0xff]  ;;  %3181 = vst.msk [vmem:[#allocation5 + $0xa8] sm:$0xff] %vm2846_vm11, %v7658_v21  ;;  %v7676_v11 = vld [vmem:[#allocation4 + $0xf0] sm:$0xff] }
 0x557   : > { %v2867_v36 = vadd.f32 %v2866_v26, %v2865_v52  ;;  %v2872_v26 = vsel %vm2846_vm11, %v7450_v5, 0.0  ;;  %v3208_v5 = vld [vmem:[#allocation4 + $0x108] sm:$0xff] }
 0x558   : > { %v7650_v20 = vmax.f32 %v2782_v14, 0.0 }
 0x559   : > { %3276 = vrot.lane.b32.xlu2 %v7642_v58, %s5630_s19  ;;  %v2869_v49 = vadd.f32 %v2868_v29, %v2867_v36  ;;  %3272 = vrot.lane.b32.xlu1 %v7656_v16, %s5630_s19  ;;  %v2874_v29 = vsel %vm2846_vm11, %v7466_v3, 0.0 }
 0x55a   : > { %3280 = vrot.lane.b32.xlu0 %v7644_v60, %s5630_s19  ;;  %3117 = vst.msk [vmem:[#allocation4 + $0x170] sm:$0xff] %vm2846_vm11, %v7650_v20 }
 0x55b   : > { %v2871_v47 = vadd.f32 %v2870_v4, %v2869_v49  ;;  %v2671_v52 = vpop.f32.mrf.mxu0  ;;  %v2876_v49 = vsel %vm2846_vm11, %v7486_v0, 0.0 }
 0x55c   : > { %v2672_v14 = vadd.f32 %v7226_v18, %v2671_v52  ;;  %v7688_v52 = vld [vmem:[#allocation4 + $0x167] sm:$0xff] }
 0x55d   : > { %v2873_v36 = vadd.f32 %v2872_v26, %v2871_v47  ;;  %v7686_v47 = vld [vmem:[#allocation4 + $0xb0] sm:$0xff]  ;;  %3182 = vst.msk [vmem:[#allocation5 + $0xb0] sm:$0xff] %vm2846_vm11, %v7688_v52 }
 0x55e   : > { %v2785_v13 = vadd.f32 %v7221_v48, %v2672_v14 }
 0x55f   : > { %v2875_v62 = vadd.f32 %v2874_v29, %v2873_v36  ;;  %v2880_v36 = vsel %vm2846_vm11, %v7526_v45, 0.0 }
 0x560   : > { %v7680_v4 = vmax.f32 %v2785_v13, 0.0  ;;  %v2878_v13 = vsel %vm2846_vm11, %v7508_v39, 0.0  ;;  %v2884_v39 = vsel %vm2846_vm11, %v7584_v35, 0.0 }
 0x561   : > { %3282 = vrot.lane.b32.xlu2 %v7674_v27, %s5630_s19  ;;  %v2877_v48 = vadd.f32 %v2876_v49, %v2875_v62  ;;  %3278 = vrot.lane.b32.xlu1 %v7686_v47, %s5630_s19  ;;  %v2882_v49 = vsel %vm2846_vm11, %v7550_v17, 0.0 }
 0x562   : > { %9186 = vst [vmem:[#allocation72_spill] sm:$0xff] %v7680_v4  ;;  %3286 = vrot.lane.b32.xlu0 %v7676_v11, %s5630_s19 }
 0x563   : > { %3118 = vst.msk [vmem:[#allocation4 + $0x188] sm:$0xff] %vm2846_vm11, %v7680_v4  ;;  %v2879_v26 = vadd.f32 %v2878_v13, %v2877_v48  ;;  %v2674_v14 = vpop.f32.mrf.mxu0  ;;  %v7710_v48 = vld [vmem:[#allocation4 + $0xe8] sm:$0xff] }
 0x564   : > { %v2675_v29 = vadd.f32 %v7226_v18, %v2674_v14  ;;  %v7712_v18 = vld [vmem:[#allocation4 + $0x16f] sm:$0xff] }
 0x565   : > { %v2881_v62 = vadd.f32 %v2880_v36, %v2879_v26  ;;  %3183 = vst.msk [vmem:[#allocation5 + $0xb8] sm:$0xff] %vm2846_vm11, %v7712_v18  ;;  %v3211_v14 = vld [vmem:[#allocation4 + $0x130] sm:$0xff] }
 0x566   : > { %v2788_v0 = vadd.f32 %v7252_v22, %v2675_v29  ;;  %v2917_v22 = vld [vmem:[%s9021_s9] sm:$0xff]  ;;  %v3213_v36 = vld [vmem:[#allocation4 + $0x150] sm:$0xff] }
 0x567   : > { %v2883_v3 = vadd.f32 %v2882_v49, %v2881_v62  ;;  %2936 = vmatpush.msrb.mxu2 %v2917_v22  ;;  %v3209_v62 = vld [vmem:[#allocation4 + $0x110] sm:$0xff]  ;;  %v2894_v22 = vsel %vm2846_vm11, %v7352_v28, 0.0 }
 0x568   : > { %v7706_v38 = vmax.f32 %v2788_v0, 0.0 }
 0x569   : > { %3288 = vrot.lane.b32.xlu2 %v3208_v5, %s5630_s19  ;;  %v2885_v13 = vadd.f32 %v2884_v39, %v2883_v3  ;;  %3284 = vrot.lane.b32.xlu1 %v7710_v48, %s5630_s19  ;;  %v2886_v5 = vsel %vm2846_vm11, %v7618_v56, 0.0  ;;  %v2888_v3 = vsel %vm2846_vm11, %v7650_v20, 0.0  ;;  %v2890_v39 = vsel %vm2846_vm11, %v7680_v4, 0.0 }
 0x56a   : > { %9187 = vst [vmem:[#allocation73_spill] sm:$0xff] %v7706_v38  ;;  %3292 = vrot.lane.b32.xlu0 %v3210_v59, %s5630_s19  ;;  %v2892_v29 = vsel %vm2846_vm11, %v7706_v38, 0.0  ;;  %v7733_v49 = vld [vmem:[#allocation4 + $0x187] sm:$0xff] }
 0x56b   : > { %3119 = vst.msk [vmem:[#allocation4 + $0x190] sm:$0xff] %vm2846_vm11, %v7706_v38  ;;  %v2887_v59 = vadd.f32 %v2886_v5, %v2885_v13 }
 0x56c   : > { %3184 = vst.msk [vmem:[#allocation5 + $0xc0] sm:$0xff] %vm2846_vm11, %v7733_v49 }
 0x56d   : > { %v2889_v0 = vadd.f32 %v2888_v3, %v2887_v59  ;;  %v2896_v59 = vsel %vm2846_vm11, %v7360_v19, 0.0 }
 0x56f   : > { %v2891_v26 = vadd.f32 %v2890_v39, %v2889_v0  ;;  %v2898_v0 = vsel %vm2846_vm11, %v7377_v25, 0.0  ;;  %v3408_v25 = vld [vmem:[#allocation4 + $0x171] sm:$0xff] }
 0x571   : > { %3294 = vrot.lane.b32.xlu2 %v3211_v14, %s5630_s19  ;;  %v2893_v13 = vadd.f32 %v2892_v29, %v2891_v26  ;;  %3290 = vrot.lane.b32.xlu1 %v3209_v62, %s5630_s19  ;;  %v3214_v14 = vld [vmem:[#allocation4 + $0x168] sm:$0xff]  ;;  %v2900_v26 = vsel %vm2846_vm11, %v7408_v50, 0.0 }
 0x572   : > { %3298 = vrot.lane.b32.xlu0 %v3213_v36, %s5630_s19  ;;  %v3216_v36 = vld [vmem:[#allocation4 + $0x188] sm:$0xff] }
 0x573   : > { %v2895_v5 = vadd.f32 %v2894_v22, %v2893_v13  ;;  %v3212_v29 = vld [vmem:[#allocation4 + $0x148] sm:$0xff] }
 0x574   : > { %v7748_v62 = vld [vmem:[#allocation4 + $0x18f] sm:$0xff] }
 0x575   : > { %v2897_v3 = vadd.f32 %v2896_v59, %v2895_v5  ;;  %v3129_v22 = vld [vmem:[#allocation4 + $0xf] sm:$0xff]  ;;  %3185 = vst.msk [vmem:[#allocation5 + $0xc8] sm:$0xff] %vm2846_vm11, %v7748_v62  ;;  %v2902_v5 = vsel %vm2846_vm11, %v7429_v54, 0.0  ;;  %v2908_v54 = vsel %vm2846_vm11, %v7488_v63, 0.0 }
 0x576   : > { %3161 = vst.msk [vmem:[#allocation5 + $0x8] sm:$0xff] %vm2846_vm11, %v3129_v22  ;;  %v7834_v63 = vld [vmem:[#allocation4 + $0x149] sm:$0xff] }
 0x577   : > { %v2899_v39 = vadd.f32 %v2898_v0, %v2897_v3  ;;  %v2904_v3 = vsel %vm2846_vm11, %v7452_v1, 0.0  ;;  %v3386_v0 = vld [vmem:[#allocation4 + $0x11] sm:$0xff]  ;;  %v3387_v1 = vld [vmem:[#allocation4 + $0x29] sm:$0xff] }
 0x579   : > { %3300 = vrot.lane.b32.xlu2 %v3214_v14, %s5630_s19  ;;  %v2901_v13 = vadd.f32 %v2900_v26, %v2899_v39  ;;  %3296 = vrot.lane.b32.xlu1 %v3212_v29, %s5630_s19  ;;  %v2906_v39 = vsel %vm2846_vm11, %v7468_v51, 0.0  ;;  %v3217_v26 = vld [vmem:[#allocation4 + $0x190] sm:$0xff] }
 0x57a   : > { %3304 = vrot.lane.b32.xlu0 %v3216_v36, %s5630_s19  ;;  %v3259_v36 = vpop.permute.xlu2 %3258 }
 0x57b   : > { %v2903_v59 = vadd.f32 %v2902_v5, %v2901_v13  ;;  %3354 = vst.msk [vmem:[#allocation5 + $0x8] sm:$0xff] %vm3352_vm12, %v3259_v36  ;;  %v3215_v13 = vld [vmem:[#allocation4 + $0x170] sm:$0xff] }
 0x57d   : > { %v2905_v14 = vadd.f32 %v2904_v3, %v2903_v59  ;;  %v3219_v3 = vld [vmem:[#allocation4 + $0x1b0] sm:$0xff] }
 0x57f   : > { %v2907_v29 = vadd.f32 %v2906_v39, %v2905_v14  ;;  %v3218_v14 = vld [vmem:[#allocation4 + $0x1a8] sm:$0xff] }
 0x581   : > { %3306 = vrot.lane.b32.xlu2 %v3217_v26, %s5630_s19  ;;  %3302 = vrot.lane.b32.xlu1 %v3215_v13, %s5630_s19  ;;  %v2909_v22 = vadd.f32 %v2908_v54, %v2907_v29  ;;  %v3128_v26 = vld [vmem:[#allocation4 + $0x7] sm:$0xff]  ;;  %v3257_v13 = vpop.permute.xlu0 %3256 }
 0x582   : > { %3451 = vrot.lane.b32.xlu0 %v3386_v0, %s5622_s18  ;;  %3160 = vst.msk [vmem:[#allocation5] sm:$0xff] %vm2846_vm11, %v3128_v26  ;;  %v3385_v54 = vld [vmem:[#allocation4 + $0x9] sm:$0xff] }
 0x583   : > { %v2910_v5 = vrot.slane %v2909_v22, 4  ;;  %3353 = vst.msk [vmem:[#allocation5] sm:$0xff] %vm3352_vm12, %v3257_v13  ;;  %v3389_v29 = vld [vmem:[#allocation4 + $0x49] sm:$0xff] }
 0x584   : > { %v7783_v26 = vld [vmem:[#allocation4 + $0xa9] sm:$0xff] }
 0x585   : > { %v2911_v59 = vadd.f32 %v2910_v5, %v2909_v22  ;;  %v3220_v22 = vld [vmem:[#allocation4 + $0x1c8] sm:$0xff] }
 0x586   : > { %v3391_v13 = vld [vmem:[#allocation4 + $0x69] sm:$0xff] }
 0x587   : > { %v2912_v51 = vrot.slane %v2911_v59, 2 }
 0x589   : > { %3453 = vrot.lane.b32.xlu2 %v3387_v1, %s5622_s18  ;;  %3308 = vrot.lane.b32.xlu1 %v3218_v14, %s5630_s19  ;;  %v2913_v36 = vadd.f32 %v2912_v51, %v2911_v59  ;;  %v3392_v1 = vld [vmem:[#allocation4 + $0x71] sm:$0xff]  ;;  %v3393_v14 = vld [vmem:[#allocation4 + $0x89] sm:$0xff] }
 0x58a   : > { %3310 = vrot.lane.b32.xlu0 %v3219_v3, %s5630_s19  ;;  %v3390_v51 = vld [vmem:[#allocation4 + $0x51] sm:$0xff]  ;;  %v3222_v3 = vld [vmem:[#allocation4 + $0x1e8] sm:$0xff] }
 0x58b   : > { %v2914_v39 = vrot.slane %v2913_v36, 1  ;;  %v3388_v59 = vld [vmem:[#allocation4 + $0x31] sm:$0xff] }
 0x58d   : > { %v2915_v0 = vadd.f32 %v2914_v39, %v2913_v36  ;;  %v3221_v36 = vld [vmem:[#allocation4 + $0x1d0] sm:$0xff] }
 0x58f   : > { %v2916_v5 = vmul.f32 %v2915_v0, %v6375_v6  ;;  %v3223_v0 = vld [vmem:[#allocation4 + $0x1f0] sm:$0xff] }
 0x590   : > { %v7837_v6 = vld [vmem:[#allocation4 + $0x129] sm:$0xff] }
 0x591   : > { %3312 = vrot.lane.b32.xlu2 %v3220_v22, %s5630_s19  ;;  %3449 = vrot.lane.b32.xlu1 %v3385_v54, %s5622_s18  ;;  %v7791_v22 = vld [vmem:[#allocation4 + $0xd1] sm:$0xff] }
 0x592   : > { %3457 = vrot.lane.b32.xlu0 %v3389_v29, %s5622_s18  ;;  %5503 = vmatmul.msk.f32.vlgmr.msrb.gmra.mxu2 %vm2846_vm11, %v2916_v5  ;;  %v7793_v5 = vld [vmem:[#allocation4 + $0xb1] sm:$0xff] }
 0x599   : > { %3459 = vrot.lane.b32.xlu2 %v3390_v51, %s5622_s18  ;;  %3455 = vrot.lane.b32.xlu1 %v3388_v59, %s5622_s18 }
 0x59a   : > { %3463 = vrot.lane.b32.xlu0 %v3392_v1, %s5622_s18  ;;  %v7797_v1 = vld [vmem:[#allocation4 + $0x91] sm:$0xff] }
 0x5a1   : > { %3465 = vrot.lane.b32.xlu2 %v3393_v14, %s5622_s18  ;;  %3314 = vrot.lane.b32.xlu1 %v3221_v36, %s5630_s19  ;;  %v7807_v14 = vld [vmem:[#allocation4 + $0xe9] sm:$0xff] }
 0x5a2   : > { %3316 = vrot.lane.b32.xlu0 %v3222_v3, %s5630_s19  ;;  %v7805_v3 = vld [vmem:[#allocation4 + $0x109] sm:$0xff] }
 0x5a3   : > { %v3265_v39 = vpop.permute.xlu2 %3264  ;;  %v7811_v36 = vld [vmem:[#allocation4 + $0xc9] sm:$0xff] }
 0x5a4   : > { %3357 = vst.msk [vmem:[#allocation5 + $0x20] sm:$0xff] %vm3352_vm12, %v3265_v39 }
 0x5a9   : > { %3318 = vrot.lane.b32.xlu2 %v3223_v0, %s5630_s19  ;;  %3461 = vrot.lane.b32.xlu1 %v3391_v13, %s5622_s18  ;;  %v7819_v13 = vld [vmem:[#allocation4 + $0x131] sm:$0xff] }
 0x5aa   : > { %3469 = vrot.lane.b32.xlu0 %v7783_v26, %s5622_s18 }
 0x5ab   : > { %v3271_v54 = vpop.permute.xlu2 %3270  ;;  %v3261_v29 = vpop.permute.xlu1 %3260 }
 0x5ac   : > { %3360 = vst.msk [vmem:[#allocation5 + $0x38] sm:$0xff] %vm3352_vm12, %v3271_v54  ;;  %v7821_v54 = vld [vmem:[#allocation4 + $0x111] sm:$0xff] }
 0x5ad   : > { %3355 = vst.msk [vmem:[#allocation5 + $0x10] sm:$0xff] %vm3352_vm12, %v3261_v29  ;;  %v7825_v29 = vld [vmem:[#allocation4 + $0xf1] sm:$0xff] }
 0x5b1   : > { %3471 = vrot.lane.b32.xlu2 %v7793_v5, %s5622_s18  ;;  %3467 = vrot.lane.b32.xlu1 %v7797_v1, %s5622_s18 }
 0x5b2   : > { %3475 = vrot.lane.b32.xlu0 %v7791_v22, %s5622_s18 }
 0x5b3   : > { %v3277_v51 = vpop.permute.xlu2 %3276 }
 0x5b4   : > { %v3263_v59 = vpop.permute.xlu0 %3262  ;;  %3363 = vst.msk [vmem:[#allocation5 + $0x50] sm:$0xff] %vm3352_vm12, %v3277_v51 }
 0x5b5   : > { %3356 = vst.msk [vmem:[#allocation5 + $0x18] sm:$0xff] %vm3352_vm12, %v3263_v59 }
 0x5b9   : > { %3477 = vrot.lane.b32.xlu2 %v7807_v14, %s5622_s18  ;;  %3473 = vrot.lane.b32.xlu1 %v7811_v36, %s5622_s18 }
 0x5ba   : > { %3481 = vrot.lane.b32.xlu0 %v7805_v3, %s5622_s18 }
 0x5bb   : > { %v3283_v39 = vpop.permute.xlu2 %3282 }
 0x5bc   : > { %v3269_v0 = vpop.permute.xlu0 %3268  ;;  %3366 = vst.msk [vmem:[#allocation5 + $0x68] sm:$0xff] %vm3352_vm12, %v3283_v39 }
 0x5bd   : > { %3359 = vst.msk [vmem:[#allocation5 + $0x30] sm:$0xff] %vm3352_vm12, %v3269_v0  ;;  %v3407_v0 = vld [vmem:[#allocation4 + $0x169] sm:$0xff] }
 0x5c1   : > { %3483 = vrot.lane.b32.xlu2 %v7821_v54, %s5622_s18  ;;  %3479 = vrot.lane.b32.xlu1 %v7825_v29, %s5622_s18 }
 0x5c2   : > { %3487 = vrot.lane.b32.xlu0 %v7819_v13, %s5622_s18 }
 0x5c3   : > { %v3289_v51 = vpop.permute.xlu2 %3288  ;;  %v3267_v39 = vpop.permute.xlu1 %3266 }
 0x5c4   : > { %v3275_v59 = vpop.permute.xlu0 %3274  ;;  %3369 = vst.msk [vmem:[#allocation5 + $0x80] sm:$0xff] %vm3352_vm12, %v3289_v51 }
 0x5c5   : > { %3358 = vst.msk [vmem:[#allocation5 + $0x28] sm:$0xff] %vm3352_vm12, %v3267_v39 }
 0x5c6   : > { %3362 = vst.msk [vmem:[#allocation5 + $0x48] sm:$0xff] %vm3352_vm12, %v3275_v59  ;;  %v3410_v59 = vld [vmem:[#allocation4 + $0x191] sm:$0xff] }
 0x5c9   : > { %3489 = vrot.lane.b32.xlu2 %v7834_v63, %s5622_s18  ;;  %3485 = vrot.lane.b32.xlu1 %v7837_v6, %s5622_s18 }
 0x5ca   : > { %3493 = vrot.lane.b32.xlu0 %v3407_v0, %s5622_s18  ;;  %v7847_v0 = vld [vmem:[#allocation4 + $0x151] sm:$0xff] }
 0x5cb   : > { %v3295_v50 = vpop.permute.xlu2 %3294  ;;  %v3273_v39 = vpop.permute.xlu1 %3272 }
 0x5cc   : > { %v3281_v51 = vpop.permute.xlu0 %3280  ;;  %3372 = vst.msk [vmem:[#allocation5 + $0x98] sm:$0xff] %vm3352_vm12, %v3295_v50 }
 0x5cd   : > { %3361 = vst.msk [vmem:[#allocation5 + $0x40] sm:$0xff] %vm3352_vm12, %v3273_v39  ;;  %v3411_v39 = vld [vmem:[#allocation4 + $0x1a9] sm:$0xff] }
 0x5ce   : > { %3365 = vst.msk [vmem:[#allocation5 + $0x60] sm:$0xff] %vm3352_vm12, %v3281_v51  ;;  %v3413_v51 = vld [vmem:[#allocation4 + $0x1c9] sm:$0xff] }
 0x5d1   : > { %3495 = vrot.lane.b32.xlu2 %v3408_v25, %s5622_s18  ;;  %3491 = vrot.lane.b32.xlu1 %v7847_v0, %s5622_s18 }
 0x5d2   : > { %3499 = vrot.lane.b32.xlu0 %v3410_v59, %s5622_s18  ;;  %v3409_v59 = vld [vmem:[#allocation4 + $0x189] sm:$0xff] }
 0x5d3   : > { %v3301_v19 = vpop.permute.xlu2 %3300  ;;  %v3279_v50 = vpop.permute.xlu1 %3278 }
 0x5d4   : > { %v3287_v28 = vpop.permute.xlu0 %3286  ;;  %3375 = vst.msk [vmem:[#allocation5 + $0xb0] sm:$0xff] %vm3352_vm12, %v3301_v19  ;;  %v3416_v19 = vld [vmem:[#allocation4 + $0x1f1] sm:$0xff] }
 0x5d5   : > { %3364 = vst.msk [vmem:[#allocation5 + $0x58] sm:$0xff] %vm3352_vm12, %v3279_v50  ;;  %v3412_v50 = vld [vmem:[#allocation4 + $0x1b1] sm:$0xff] }
 0x5d6   : > { %3368 = vst.msk [vmem:[#allocation5 + $0x78] sm:$0xff] %vm3352_vm12, %v3287_v28  ;;  %v3414_v28 = vld [vmem:[#allocation4 + $0x1d1] sm:$0xff] }
 0x5d9   : > { %3501 = vrot.lane.b32.xlu2 %v3411_v39, %s5622_s18  ;;  %3497 = vrot.lane.b32.xlu1 %v3409_v59, %s5622_s18 }
 0x5da   : > { %3505 = vrot.lane.b32.xlu0 %v3413_v51, %s5622_s18 }
 0x5db   : > { %v3307_v25 = vpop.permute.xlu2 %3306  ;;  %v3285_v4 = vpop.permute.xlu1 %3284 }
 0x5dc   : > { %v3293_v38 = vpop.permute.xlu0 %3292  ;;  %3378 = vst.msk [vmem:[#allocation5 + $0xc8] sm:$0xff] %vm3352_vm12, %v3307_v25 }
 0x5dd   : > { %3367 = vst.msk [vmem:[#allocation5 + $0x70] sm:$0xff] %vm3352_vm12, %v3285_v4 }
 0x5de   : > { %3371 = vst.msk [vmem:[#allocation5 + $0x90] sm:$0xff] %vm3352_vm12, %v3293_v38  ;;  %v3415_v38 = vld [vmem:[#allocation4 + $0x1e9] sm:$0xff] }
 0x5e1   : > { %3507 = vrot.lane.b32.xlu2 %v3414_v28, %s5622_s18  ;;  %3503 = vrot.lane.b32.xlu1 %v3412_v50, %s5622_s18  ;;  %v2942_v50 = vld [vmem:[%s9022_s10] sm:$0x3] }
 0x5e2   : > { %3511 = vrot.lane.b32.xlu0 %v3416_v19, %s5622_s18  ;;  %5504 = vmatpush.msk.msrb.mxu1 %vm2947_vm14, %v2942_v50 }
 0x5e3   : > { %v3454_v51 = vpop.permute.xlu2 %3453  ;;  %v3291_v59 = vpop.permute.xlu1 %3290 }
 0x5e4   : > { %v3299_v39 = vpop.permute.xlu0 %3298  ;;  %3548 = vst.msk [vmem:[#allocation5 + $0x10] sm:$0xff] %vm3545_vm13, %v3454_v51 }
 0x5e5   : > { %3370 = vst.msk [vmem:[#allocation5 + $0x88] sm:$0xff] %vm3352_vm12, %v3291_v59 }
 0x5e6   : > { %3374 = vst.msk [vmem:[#allocation5 + $0xa8] sm:$0xff] %vm3352_vm12, %v3299_v39 }
 0x5e9   : > { %3642 = vrot.lane.b32.xlu2 %v7534_v34, %s5631_s27  ;;  %3509 = vrot.lane.b32.xlu1 %v3415_v38, %s5622_s18 }
 0x5ea   : > { %3646 = vrot.lane.b32.xlu0 %v7582_v53, %s5631_s27 }
 0x5eb   : > { %v3313_v4 = vpop.permute.xlu2 %3312  ;;  %v3297_v19 = vpop.permute.xlu1 %3296 }
 0x5ec   : > { %v3305_v25 = vpop.permute.xlu0 %3304  ;;  %3381 = vst.msk [vmem:[#allocation5 + $0xe0] sm:$0xff] %vm3352_vm12, %v3313_v4 }
 0x5ed   : > { %3373 = vst.msk [vmem:[#allocation5 + $0xa0] sm:$0xff] %vm3352_vm12, %v3297_v19 }
 0x5ee   : > { %3377 = vst.msk [vmem:[#allocation5 + $0xc0] sm:$0xff] %vm3352_vm12, %v3305_v25 }
 0x5f1   : > { %3648 = vrot.lane.b32.xlu2 %v7640_v44, %s5631_s27  ;;  %3644 = vrot.lane.b32.xlu1 %v7558_v30, %s5631_s27 }
 0x5f2   : > { %3652 = vrot.lane.b32.xlu0 %v7383_v7, %s5631_s27 }
 0x5f3   : > { %v3460_v34 = vpop.permute.xlu2 %3459  ;;  %v3303_v28 = vpop.permute.xlu1 %3302 }
 0x5f4   : > { %v3452_v53 = vpop.permute.xlu0 %3451  ;;  %3551 = vst.msk [vmem:[#allocation5 + $0x28] sm:$0xff] %vm3545_vm13, %v3460_v34 }
 0x5f5   : > { %3376 = vst.msk [vmem:[#allocation5 + $0xb8] sm:$0xff] %vm3352_vm12, %v3303_v28 }
 0x5f6   : > { %3547 = vst.msk [vmem:[#allocation5 + $0x8] sm:$0xff] %vm3545_vm13, %v3452_v53 }
 0x5f9   : > { %3654 = vrot.lane.b32.xlu2 %v7395_v40, %s5631_s27  ;;  %3650 = vrot.lane.b32.xlu1 %v7369_v43, %s5631_s27 }
 0x5fa   : > { %3658 = vrot.lane.b32.xlu0 %v7391_v2, %s5631_s27 }
 0x5fb   : > { %v3466_v30 = vpop.permute.xlu2 %3465  ;;  %v3309_v7 = vpop.permute.xlu1 %3308 }
 0x5fc   : > { %v3311_v44 = vpop.permute.xlu0 %3310  ;;  %3554 = vst.msk [vmem:[#allocation5 + $0x40] sm:$0xff] %vm3545_vm13, %v3466_v30 }
 0x5fd   : > { %3379 = vst.msk [vmem:[#allocation5 + $0xd0] sm:$0xff] %vm3352_vm12, %v3309_v7 }
 0x5fe   : > { %3380 = vst.msk [vmem:[#allocation5 + $0xd8] sm:$0xff] %vm3352_vm12, %v3311_v44 }
 0x601   : > { %3660 = vrot.lane.b32.xlu2 %v7410_v9, %s5631_s27  ;;  %3656 = vrot.lane.b32.xlu1 %v7393_v32, %s5631_s27 }
 0x602   : > { %3664 = vrot.lane.b32.xlu0 %v7441_v41, %s5631_s27 }
 0x603   : > { %v3319_v2 = vpop.permute.xlu2 %3318  ;;  %v3450_v40 = vpop.permute.xlu1 %3449 }
 0x604   : > { %v3458_v43 = vpop.permute.xlu0 %3457  ;;  %3384 = vst.msk [vmem:[#allocation5 + $0xf8] sm:$0xff] %vm3352_vm12, %v3319_v2 }
 0x605   : > { %3546 = vst.msk [vmem:[#allocation5] sm:$0xff] %vm3545_vm13, %v3450_v40  ;;  %v9189_v40 = vld [vmem:[#allocation64_spill] sm:$0xff] }
 0x606   : > { %3550 = vst.msk [vmem:[#allocation5 + $0x20] sm:$0xff] %vm3545_vm13, %v3458_v43 }
 0x609   : > { %3666 = vrot.lane.b32.xlu2 %v7470_v31, %s5631_s27  ;;  %3662 = vrot.lane.b32.xlu1 %v7431_v42, %s5631_s27 }
 0x60a   : > { %3670 = vrot.lane.b32.xlu0 %v7512_v55, %s5631_s27 }
 0x60b   : > { %v3472_v51 = vpop.permute.xlu2 %3471  ;;  %v3456_v39 = vpop.permute.xlu1 %3455 }
 0x60c   : > { %v3464_v32 = vpop.permute.xlu0 %3463  ;;  %3557 = vst.msk [vmem:[#allocation5 + $0x58] sm:$0xff] %vm3545_vm13, %v3472_v51  ;;  %v9191_v51 = vld [vmem:[#allocation53_spill] sm:$0xff] }
 0x60d   : > { %3549 = vst.msk [vmem:[#allocation5 + $0x18] sm:$0xff] %vm3545_vm13, %v3456_v39 }
 0x60e   : > { %3553 = vst.msk [vmem:[#allocation5 + $0x38] sm:$0xff] %vm3545_vm13, %v3464_v32 }
 0x611   : > { %3672 = vrot.lane.b32.xlu2 %v7532_v12, %s5631_s27  ;;  %3668 = vrot.lane.b32.xlu1 %v7490_v61, %s5631_s27 }
 0x612   : > { %3676 = vrot.lane.b32.xlu0 %v7594_v23, %s5631_s27 }
 0x613   : > { %v3478_v59 = vpop.permute.xlu2 %3477  ;;  %v3315_v4 = vpop.permute.xlu1 %3314 }
 0x614   : > { %v3317_v38 = vpop.permute.xlu0 %3316  ;;  %3560 = vst.msk [vmem:[#allocation5 + $0x70] sm:$0xff] %vm3545_vm13, %v3478_v59 }
 0x615   : > { %3382 = vst.msk [vmem:[#allocation5 + $0xe8] sm:$0xff] %vm3352_vm12, %v3315_v4  ;;  %v2938_v25 = vpop.f32.mrf.mxu2  ;;  %v9192_v4 = vld [vmem:[#allocation68_spill] sm:$0xff] }
 0x616   : > { %3383 = vst.msk [vmem:[#allocation5 + $0xf0] sm:$0xff] %vm3352_vm12, %v3317_v38  ;;  %v2941_v19 = vmax.f32 %v2938_v25, 0.0  ;;  %v3608_v38 = vld [vmem:[#allocation4 + $0x207] sm:$0xff]  ;;  %v9193_v25 = vld [vmem:[#allocation61_spill] sm:$0xff] }
 0x618   : > { %5505 = vmatmul.msk.f32.vlgmr.msrb.gmra.mxu1 %vm2943_vm15, %v2941_v19 }
 0x619   : > { %3678 = vrot.lane.b32.xlu2 %v7624_v10, %s5631_s27  ;;  %3674 = vrot.lane.b32.xlu1 %v7556_v37, %s5631_s27 }
 0x61a   : > { %3682 = vrot.lane.b32.xlu0 %v7688_v52, %s5631_s27 }
 0x61b   : > { %v3484_v34 = vpop.permute.xlu2 %3483  ;;  %v3462_v28 = vpop.permute.xlu1 %3461 }
 0x61c   : > { %v3470_v53 = vpop.permute.xlu0 %3469  ;;  %3563 = vst.msk [vmem:[#allocation5 + $0x88] sm:$0xff] %vm3545_vm13, %v3484_v34 }
 0x61d   : > { %3552 = vst.msk [vmem:[#allocation5 + $0x30] sm:$0xff] %vm3545_vm13, %v3462_v28  ;;  %v3609_v28 = vld [vmem:[#allocation4 + $0x20f] sm:$0xff] }
 0x61e   : > { %3556 = vst.msk [vmem:[#allocation5 + $0x50] sm:$0xff] %vm3545_vm13, %v3470_v53 }
 0x621   : > { %3684 = vrot.lane.b32.xlu2 %v7712_v18, %s5631_s27  ;;  %3680 = vrot.lane.b32.xlu1 %v7658_v21, %s5631_s27 }
 0x622   : > { %3688 = vrot.lane.b32.xlu0 %v7748_v62, %s5631_s27  ;;  %v9188_v62 = vld [vmem:[#allocation50_spill] sm:$0xff] }
 0x623   : > { %v3490_v50 = vpop.permute.xlu2 %3489  ;;  %v3468_v44 = vpop.permute.xlu1 %3467 }
 0x624   : > { %v3476_v30 = vpop.permute.xlu0 %3475  ;;  %3566 = vst.msk [vmem:[#allocation5 + $0xa0] sm:$0xff] %vm3545_vm13, %v3490_v50  ;;  %v9194_v50 = vld [vmem:[#allocation70_spill] sm:$0xff] }
 0x625   : > { %3555 = vst.msk [vmem:[#allocation5 + $0x48] sm:$0xff] %vm3545_vm13, %v3468_v44 }
 0x626   : > { %3559 = vst.msk [vmem:[#allocation5 + $0x68] sm:$0xff] %vm3545_vm13, %v3476_v30 }
 0x629   : > { %3690 = vrot.lane.b32.xlu2 %v9188_v62, %s5631_s27  ;;  %3686 = vrot.lane.b32.xlu1 %v7733_v49, %s5631_s27 }
 0x62a   : > { %3694 = vrot.lane.b32.xlu0 %v7437_v8, %s5631_s27  ;;  %v9190_v8 = vld [vmem:[#allocation58_spill] sm:$0xff] }
 0x62b   : > { %v3496_v7 = vpop.permute.xlu2 %3495  ;;  %v3474_v43 = vpop.permute.xlu1 %3473 }
 0x62c   : > { %v3482_v2 = vpop.permute.xlu0 %3481  ;;  %3569 = vst.msk [vmem:[#allocation5 + $0xb8] sm:$0xff] %vm3545_vm13, %v3496_v7 }
 0x62d   : > { %3558 = vst.msk [vmem:[#allocation5 + $0x60] sm:$0xff] %vm3545_vm13, %v3474_v43 }
 0x62e   : > { %3562 = vst.msk [vmem:[#allocation5 + $0x80] sm:$0xff] %vm3545_vm13, %v3482_v2 }
 0x631   : > { %3696 = vrot.lane.b32.xlu2 %v9190_v8, %s5631_s27  ;;  %3692 = vrot.lane.b32.xlu1 %v9191_v51, %s5631_s27 }
 0x632   : > { %3700 = vrot.lane.b32.xlu0 %v9189_v40, %s5631_s27 }
 0x633   : > { %v3502_v32 = vpop.permute.xlu2 %3501  ;;  %v3480_v59 = vpop.permute.xlu1 %3479 }
 0x634   : > { %v3488_v39 = vpop.permute.xlu0 %3487  ;;  %3572 = vst.msk [vmem:[#allocation5 + $0xd0] sm:$0xff] %vm3545_vm13, %v3502_v32 }
 0x635   : > { %3561 = vst.msk [vmem:[#allocation5 + $0x78] sm:$0xff] %vm3545_vm13, %v3480_v59 }
 0x636   : > { %3565 = vst.msk [vmem:[#allocation5 + $0x98] sm:$0xff] %vm3545_vm13, %v3488_v39 }
 0x639   : > { %3702 = vrot.lane.b32.xlu2 %v3608_v38, %s5631_s27  ;;  %3698 = vrot.lane.b32.xlu1 %v9193_v25, %s5631_s27  ;;  %v3783_v38 = vld [vmem:[#allocation4 + $0xe8] sm:$0xff]  ;;  %v3784_v25 = vld [vmem:[#allocation4 + $0xf0] sm:$0xff] }
 0x63a   : > { %3835 = vrot.lane.b32.xlu0 %v9192_v4, %s5623_s21 }
 0x63b   : > { %v3508_v19 = vpop.permute.xlu2 %3507  ;;  %v3486_v53 = vpop.permute.xlu1 %3485 }
 0x63c   : > { %v3494_v34 = vpop.permute.xlu0 %3493  ;;  %3575 = vst.msk [vmem:[#allocation5 + $0xe8] sm:$0xff] %vm3545_vm13, %v3508_v19  ;;  %v4363_v19 = vld [vmem:[#allocation4 + $0x108] sm:$0xff] }
 0x63d   : > { %3564 = vst.msk [vmem:[#allocation5 + $0x90] sm:$0xff] %vm3545_vm13, %v3486_v53 }
 0x63e   : > { %3568 = vst.msk [vmem:[#allocation5 + $0xb0] sm:$0xff] %vm3545_vm13, %v3494_v34 }
 0x641   : > { %3837 = vrot.lane.b32.xlu2 %v9194_v50, %s5623_s21  ;;  %3704 = vrot.lane.b32.xlu1 %v3609_v28, %s5631_s27  ;;  %v4364_v28 = vld [vmem:[#allocation4 + $0x110] sm:$0xff] }
 0x642   : > { %3841 = vrot.lane.b32.xlu0 %v7614_v24, %s5623_s21 }
 0x643   : > { %v3643_v30 = vpop.permute.xlu2 %3642  ;;  %v3492_v62 = vpop.permute.xlu1 %3491 }
 0x644   : > { %v3500_v44 = vpop.permute.xlu0 %3499  ;;  %3739 = vst.msk [vmem:[#allocation5] sm:$0xff] %vm3738_vm0, %v3643_v30 }
 0x645   : > { %3567 = vst.msk [vmem:[#allocation5 + $0xa8] sm:$0xff] %vm3545_vm13, %v3492_v62 }
 0x646   : > { %3571 = vst.msk [vmem:[#allocation5 + $0xc8] sm:$0xff] %vm3545_vm13, %v3500_v44  ;;  %v4365_v44 = vld [vmem:[#allocation4 + $0x128] sm:$0xff] }
 0x649   : > { %3843 = vrot.lane.b32.xlu2 %v7580_v57, %s5623_s21  ;;  %3839 = vrot.lane.b32.xlu1 %v7578_v15, %s5623_s21 }
 0x64a   : > { %3847 = vrot.lane.b32.xlu0 %v7656_v16, %s5623_s21 }
 0x64b   : > { %v3649_v24 = vpop.permute.xlu2 %3648  ;;  %v3498_v2 = vpop.permute.xlu1 %3497 }
 0x64c   : > { %v3506_v7 = vpop.permute.xlu0 %3505  ;;  %3742 = vst.msk [vmem:[#allocation5 + $0x18] sm:$0xff] %vm3738_vm0, %v3649_v24 }
 0x64d   : > { %3570 = vst.msk [vmem:[#allocation5 + $0xc0] sm:$0xff] %vm3545_vm13, %v3498_v2  ;;  %v4775_v2 = vld [vmem:[%s9017_s5 + $0x30] sm:$0xff] }
 0x64e   : > { %3574 = vst.msk [vmem:[#allocation5 + $0xe0] sm:$0xff] %vm3545_vm13, %v3506_v7 }
 0x651   : > { %3849 = vrot.lane.b32.xlu2 %v7612_v33, %s5623_s21  ;;  %3845 = vrot.lane.b32.xlu1 %v7610_v46, %s5623_s21 }
 0x652   : > { %3853 = vrot.lane.b32.xlu0 %v7686_v47, %s5623_s21 }
 0x653   : > { %v3655_v57 = vpop.permute.xlu2 %3654  ;;  %v3504_v16 = vpop.permute.xlu1 %3503 }
 0x654   : > { %v3512_v15 = vpop.permute.xlu0 %3511  ;;  %3745 = vst.msk [vmem:[#allocation5 + $0x30] sm:$0xff] %vm3738_vm0, %v3655_v57  ;;  %v4774_v57 = vld [vmem:[%s9017_s5 + $0x28] sm:$0xff] }
 0x655   : > { %3573 = vst.msk [vmem:[#allocation5 + $0xd8] sm:$0xff] %vm3545_vm13, %v3504_v16 }
 0x656   : > { %3577 = vst.msk [vmem:[#allocation5 + $0xf8] sm:$0xff] %vm3545_vm13, %v3512_v15 }
 0x659   : > { %3855 = vrot.lane.b32.xlu2 %v7644_v60, %s5623_s21  ;;  %3851 = vrot.lane.b32.xlu1 %v7642_v58, %s5623_s21 }
 0x65a   : > { %4236 = vrot.lane.b32.xlu0 %v7410_v9, %s5624_s22 }
 0x65b   : > { %v3661_v33 = vpop.permute.xlu2 %3660  ;;  %v3510_v43 = vpop.permute.xlu1 %3509 }
 0x65c   : > { %v3647_v46 = vpop.permute.xlu0 %3646  ;;  %3748 = vst.msk [vmem:[#allocation5 + $0x48] sm:$0xff] %vm3738_vm0, %v3661_v33  ;;  %v4773_v33 = vld [vmem:[%s9017_s5 + $0x20] sm:$0xff] }
 0x65d   : > { %3576 = vst.msk [vmem:[#allocation5 + $0xf0] sm:$0xff] %vm3545_vm13, %v3510_v43  ;;  %v4770_v43 = vld [vmem:[%s9017_s5 + $0x8] sm:$0xff] }
 0x65e   : > { %3741 = vst.msk [vmem:[#allocation5 + $0x10] sm:$0xff] %vm3738_vm0, %v3647_v46 }
 0x661   : > { %4429 = vrot.lane.b32.xlu2 %v7686_v47, %s5633_s14  ;;  %4042 = vrot.lane.b32.xlu1 %v7797_v1, %s5632_s30 }
 0x662   : > { %4044 = vrot.lane.b32.xlu0 %v7783_v26, %s5632_s30 }
 0x663   : > { %v3667_v58 = vpop.permute.xlu2 %3666  ;;  %v3645_v40 = vpop.permute.xlu1 %3644 }
 0x664   : > { %v3653_v9 = vpop.permute.xlu0 %3652  ;;  %3751 = vst.msk [vmem:[#allocation5 + $0x60] sm:$0xff] %vm3738_vm0, %v3667_v58 }
 0x665   : > { %3740 = vst.msk [vmem:[#allocation5 + $0x8] sm:$0xff] %vm3738_vm0, %v3645_v40  ;;  %v4769_v40 = vld [vmem:[%s9017_s5] sm:$0xff] }
 0x666   : > { %3744 = vst.msk [vmem:[#allocation5 + $0x28] sm:$0xff] %vm3738_vm0, %v3653_v9 }
 0x669   : > { %4238 = vrot.lane.b32.xlu2 %v7431_v42, %s5624_s22  ;;  %4622 = vrot.lane.b32.xlu1 %v7793_v5, %s5626_s29 }
 0x66a   : > { %4624 = vrot.lane.b32.xlu0 %v7811_v36, %s5626_s29 }
 0x66b   : > { %v3673_v47 = vpop.permute.xlu2 %3672  ;;  %v3651_v1 = vpop.permute.xlu1 %3650 }
 0x66c   : > { %v3659_v26 = vpop.permute.xlu0 %3658  ;;  %3754 = vst.msk [vmem:[#allocation5 + $0x78] sm:$0xff] %vm3738_vm0, %v3673_v47 }
 0x66d   : > { %3743 = vst.msk [vmem:[#allocation5 + $0x20] sm:$0xff] %vm3738_vm0, %v3651_v1 }
 0x66e   : > { %3747 = vst.msk [vmem:[#allocation5 + $0x40] sm:$0xff] %vm3738_vm0, %v3659_v26 }
 0x671   : > { %4046 = vrot.lane.b32.xlu2 %v7793_v5, %s5632_s30  ;;  %4431 = vrot.lane.b32.xlu1 %v7644_v60, %s5633_s14 }
 0x672   : > { %4433 = vrot.lane.b32.xlu0 %v7674_v27, %s5633_s14 }
 0x673   : > { %v3679_v42 = vpop.permute.xlu2 %3678  ;;  %v3657_v51 = vpop.permute.xlu1 %3656 }
 0x674   : > { %v3665_v8 = vpop.permute.xlu0 %3664  ;;  %3757 = vst.msk [vmem:[#allocation5 + $0x90] sm:$0xff] %vm3738_vm0, %v3679_v42  ;;  %v4367_v42 = vld [vmem:[#allocation4 + $0x148] sm:$0xff] }
 0x675   : > { %3746 = vst.msk [vmem:[#allocation5 + $0x38] sm:$0xff] %vm3738_vm0, %v3657_v51 }
 0x676   : > { %3750 = vst.msk [vmem:[#allocation5 + $0x58] sm:$0xff] %vm3738_vm0, %v3665_v8 }
 0x679   : > { %4626 = vrot.lane.b32.xlu2 %v7791_v22, %s5626_s29  ;;  %4240 = vrot.lane.b32.xlu1 %v7441_v41, %s5624_s22 }
 0x67a   : > { %4242 = vrot.lane.b32.xlu0 %v7470_v31, %s5624_s22 }
 0x67b   : > { %v3685_v5 = vpop.permute.xlu2 %3684  ;;  %v3663_v32 = vpop.permute.xlu1 %3662 }
 0x67c   : > { %v3671_v60 = vpop.permute.xlu0 %3670  ;;  %3760 = vst.msk [vmem:[#allocation5 + $0xa8] sm:$0xff] %vm3738_vm0, %v3685_v5  ;;  %v3981_v5 = vld [vmem:[#allocation4 + $0x131] sm:$0xff] }
 0x67d   : > { %3749 = vst.msk [vmem:[#allocation5 + $0x50] sm:$0xff] %vm3738_vm0, %v3663_v32 }
 0x67e   : > { %3753 = vst.msk [vmem:[#allocation5 + $0x70] sm:$0xff] %vm3738_vm0, %v3671_v60  ;;  %v4368_v60 = vld [vmem:[#allocation4 + $0x150] sm:$0xff] }
 0x681   : > { %4435 = vrot.lane.b32.xlu2 %v7710_v48, %s5633_s14  ;;  %4048 = vrot.lane.b32.xlu1 %v7811_v36, %s5632_s30 }
 0x682   : > { %3857 = vrot.lane.b32.xlu0 %v7674_v27, %s5623_s21 }
 0x683   : > { %v3691_v31 = vpop.permute.xlu2 %3690  ;;  %v3669_v39 = vpop.permute.xlu1 %3668 }
 0x684   : > { %v3677_v41 = vpop.permute.xlu0 %3676  ;;  %3763 = vst.msk [vmem:[#allocation5 + $0xc0] sm:$0xff] %vm3738_vm0, %v3691_v31 }
 0x685   : > { %3752 = vst.msk [vmem:[#allocation5 + $0x68] sm:$0xff] %vm3738_vm0, %v3669_v39 }
 0x686   : > { %3756 = vst.msk [vmem:[#allocation5 + $0x88] sm:$0xff] %vm3738_vm0, %v3677_v41  ;;  %v3982_v41 = vld [vmem:[#allocation4 + $0x149] sm:$0xff] }
 0x689   : > { %4050 = vrot.lane.b32.xlu2 %v7791_v22, %s5632_s30  ;;  %4628 = vrot.lane.b32.xlu1 %v7807_v14, %s5626_s29 }
 0x68a   : > { %4437 = vrot.lane.b32.xlu0 %v7676_v11, %s5633_s14 }
 0x68b   : > { %v3697_v27 = vpop.permute.xlu2 %3696  ;;  %v3675_v36 = vpop.permute.xlu1 %3674 }
 0x68c   : > { %v3683_v48 = vpop.permute.xlu0 %3682  ;;  %3766 = vst.msk [vmem:[#allocation5 + $0xd8] sm:$0xff] %vm3738_vm0, %v3697_v27 }
 0x68d   : > { %3755 = vst.msk [vmem:[#allocation5 + $0x80] sm:$0xff] %vm3738_vm0, %v3675_v36  ;;  %v8167_v36 = vld [vmem:[#allocation4 + $0x169] sm:$0xff] }
 0x68e   : > { %3759 = vst.msk [vmem:[#allocation5 + $0xa0] sm:$0xff] %vm3738_vm0, %v3683_v48 }
 0x691   : > { %4630 = vrot.lane.b32.xlu2 %v7825_v29, %s5626_s29  ;;  %4244 = vrot.lane.b32.xlu1 %v7490_v61, %s5624_s22 }
 0x692   : > { %4052 = vrot.lane.b32.xlu0 %v7807_v14, %s5632_s30 }
 0x693   : > { %v3703_v11 = vpop.permute.xlu2 %3702  ;;  %v3681_v59 = vpop.permute.xlu1 %3680 }
 0x694   : > { %v3689_v22 = vpop.permute.xlu0 %3688  ;;  %3769 = vst.msk [vmem:[#allocation5 + $0xf0] sm:$0xff] %vm3738_vm0, %v3703_v11 }
 0x695   : > { %3758 = vst.msk [vmem:[#allocation5 + $0x98] sm:$0xff] %vm3738_vm0, %v3681_v59  ;;  %v4369_v59 = vld [vmem:[#allocation4 + $0x168] sm:$0xff] }
 0x696   : > { %3762 = vst.msk [vmem:[#allocation5 + $0xb8] sm:$0xff] %vm3738_vm0, %v3689_v22 }
 0x699   : > { %4246 = vrot.lane.b32.xlu2 %v7512_v55, %s5624_s22  ;;  %3859 = vrot.lane.b32.xlu1 %v3783_v38, %s5623_s21 }
 0x69a   : > { %4632 = vrot.lane.b32.xlu0 %v7805_v3, %s5626_s29 }
 0x69b   : > { %v3838_v61 = vpop.permute.xlu2 %3837  ;;  %v3687_v4 = vpop.permute.xlu1 %3686 }
 0x69c   : > { %v3695_v14 = vpop.permute.xlu0 %3694  ;;  %3933 = vst.msk [vmem:[#allocation5 + $0x8] sm:$0xff] %vm3931_vm1, %v3838_v61 }
 0x69d   : > { %3761 = vst.msk [vmem:[#allocation5 + $0xb0] sm:$0xff] %vm3738_vm0, %v3687_v4  ;;  %v4370_v4 = vld [vmem:[#allocation4 + $0x170] sm:$0xff] }
 0x69e   : > { %3765 = vst.msk [vmem:[#allocation5 + $0xd0] sm:$0xff] %vm3738_vm0, %v3695_v14 }
 0x6a1   : > { %3861 = vrot.lane.b32.xlu2 %v3784_v25, %s5623_s21  ;;  %4439 = vrot.lane.b32.xlu1 %v4363_v19, %s5633_s14  ;;  %v3983_v25 = vld [vmem:[#allocation4 + $0x151] sm:$0xff] }
 0x6a2   : > { %4248 = vrot.lane.b32.xlu0 %v7532_v12, %s5624_s22 }
 0x6a3   : > { %v3844_v55 = vpop.permute.xlu2 %3843  ;;  %v3693_v53 = vpop.permute.xlu1 %3692 }
 0x6a4   : > { %v3701_v34 = vpop.permute.xlu0 %3700  ;;  %3936 = vst.msk [vmem:[#allocation5 + $0x20] sm:$0xff] %vm3931_vm1, %v3844_v55 }
 0x6a5   : > { %3764 = vst.msk [vmem:[#allocation5 + $0xc8] sm:$0xff] %vm3738_vm0, %v3693_v53  ;;  %v4158_v53 = vld [vmem:[#allocation4 + $0x47] sm:$0xff] }
 0x6a6   : > { %3768 = vst.msk [vmem:[#allocation5 + $0xe8] sm:$0xff] %vm3738_vm0, %v3701_v34 }
 0x6a9   : > { %4441 = vrot.lane.b32.xlu2 %v4364_v28, %s5633_s14  ;;  %4054 = vrot.lane.b32.xlu1 %v7825_v29, %s5632_s30  ;;  %v4777_v29 = vld [vmem:[%s9017_s5 + $0x40] sm:$0xff] }
 0x6aa   : > { %3863 = vrot.lane.b32.xlu0 %v4363_v19, %s5623_s21  ;;  %5563 = vmatpush.msra.mxu2 %v4777_v29 }
 0x6ab   : > { %v3850_v12 = vpop.permute.xlu2 %3849  ;;  %v3699_v30 = vpop.permute.xlu1 %3698  ;;  %4886 = vmatpush.msra.mxu1 %v4777_v29  ;;  %v4544_v29 = vld [vmem:[#allocation4 + $0x49] sm:$0xff] }
 0x6ac   : > { %v3836_v50 = vpop.permute.xlu0 %3835  ;;  %3939 = vst.msk [vmem:[#allocation5 + $0x38] sm:$0xff] %vm3931_vm1, %v3850_v12 }
 0x6ad   : > { %3767 = vst.msk [vmem:[#allocation5 + $0xe0] sm:$0xff] %vm3738_vm0, %v3699_v30 }
 0x6ae   : > { %3932 = vst.msk [vmem:[#allocation5] sm:$0xff] %vm3931_vm1, %v3836_v50 }
 0x6b1   : > { %4056 = vrot.lane.b32.xlu2 %v7805_v3, %s5632_s30  ;;  %4634 = vrot.lane.b32.xlu1 %v7821_v54, %s5626_s29  ;;  %v4776_v3 = vld [vmem:[%s9017_s5 + $0x38] sm:$0xff] }
 0x6b2   : > { %4443 = vrot.lane.b32.xlu0 %v4365_v44, %s5633_s14  ;;  %5564 = vmatpush.msra.mxu2 %v4776_v3 }
 0x6b3   : > { %v3856_v62 = vpop.permute.xlu2 %3855  ;;  %v3705_v7 = vpop.permute.xlu1 %3704  ;;  %4887 = vmatpush.msra.mxu1 %v4776_v3 }
 0x6b4   : > { %v3842_v24 = vpop.permute.xlu0 %3841  ;;  %3942 = vst.msk [vmem:[#allocation5 + $0x50] sm:$0xff] %vm3931_vm1, %v3856_v62  ;;  %5565 = vmatpush.msra.mxu2 %v4775_v2  ;;  %v4351_v62 = vld [vmem:[#allocation4 + $0x48] sm:$0xff] }
 0x6b5   : > { %3770 = vst.msk [vmem:[#allocation5 + $0xf8] sm:$0xff] %vm3738_vm0, %v3705_v7  ;;  %4888 = vmatpush.msra.mxu1 %v4775_v2 }
 0x6b6   : > { %3935 = vst.msk [vmem:[#allocation5 + $0x18] sm:$0xff] %vm3931_vm1, %v3842_v24  ;;  %5566 = vmatpush.msra.mxu2 %v4774_v57 }
 0x6b7   : > { %4889 = vmatpush.msra.mxu1 %v4774_v57  ;;  %v4371_v57 = vld [vmem:[#allocation4 + $0x188] sm:$0xff] }
 0x6b8   : > { %5567 = vmatpush.msra.mxu2 %v4773_v33 }
 0x6b9   : > { %4636 = vrot.lane.b32.xlu2 %v7837_v6, %s5626_s29  ;;  %4250 = vrot.lane.b32.xlu1 %v7556_v37, %s5624_s22  ;;  %v4771_v37 = vld [vmem:[%s9017_s5 + $0x10] sm:$0xff] }
 0x6ba   : > { %4058 = vrot.lane.b32.xlu0 %v7821_v54, %s5632_s30  ;;  %v4772_v54 = vld [vmem:[%s9017_s5 + $0x18] sm:$0xff]  ;;  %4890 = vmatpush.msra.mxu1 %v4773_v33 }
 0x6bb   : > { %v4430_v15 = vpop.permute.xlu2 %4429  ;;  %v3840_v46 = vpop.permute.xlu1 %3839  ;;  %5568 = vmatpush.msra.mxu2 %v4772_v54 }
 0x6bc   : > { %v3848_v16 = vpop.permute.xlu0 %3847  ;;  %3934 = vst.msk [vmem:[#allocation5 + $0x10] sm:$0xff] %vm3931_vm1, %v3840_v46  ;;  %4891 = vmatpush.msra.mxu1 %v4772_v54  ;;  %v4159_v46 = vld [vmem:[#allocation4 + $0x4f] sm:$0xff] }
 0x6bd   : > { %3938 = vst.msk [vmem:[#allocation5 + $0x30] sm:$0xff] %vm3931_vm1, %v3848_v16  ;;  %5569 = vmatpush.msra.mxu2 %v4771_v37  ;;  %v8217_v54 = vld [vmem:[#allocation4 + $0x189] sm:$0xff] }
 0x6be   : > { %4892 = vmatpush.msra.mxu1 %v4771_v37 }
 0x6bf   : > { %5570 = vmatpush.msra.mxu2 %v4770_v43 }
 0x6c0   : > { %4893 = vmatpush.msra.mxu1 %v4770_v43 }
 0x6c1   : > { %4252 = vrot.lane.b32.xlu2 %v7594_v23, %s5624_s22  ;;  %3865 = vrot.lane.b32.xlu1 %v4364_v28, %s5623_s21  ;;  %v4366_v23 = vld [vmem:[#allocation4 + $0x130] sm:$0xff] }
 0x6c2   : > { %4638 = vrot.lane.b32.xlu0 %v7819_v13, %s5626_s29  ;;  %5571 = vmatpush.msra.mxu2 %v4769_v40  ;;  %v8193_v28 = vld [vmem:[#allocation4 + $0x171] sm:$0xff] }
 0x6c3   : > { %v4239_v58 = vpop.permute.xlu2 %4238  ;;  %v3846_v47 = vpop.permute.xlu1 %3845  ;;  %4894 = vmatpush.msra.mxu1 %v4769_v40  ;;  %v4545_v40 = vld [vmem:[#allocation4 + $0x51] sm:$0xff] }
 0x6c4   : > { %v3854_v9 = vpop.permute.xlu0 %3853  ;;  %3937 = vst.msk [vmem:[#allocation5 + $0x28] sm:$0xff] %vm3931_vm1, %v3846_v47  ;;  %v4179_v47 = vld [vmem:[#allocation4 + $0x18f] sm:$0xff] }
 0x6c5   : > { %3941 = vst.msk [vmem:[#allocation5 + $0x48] sm:$0xff] %vm3931_vm1, %v3854_v9 }
 0x6c9   : > { %3867 = vrot.lane.b32.xlu2 %v4365_v44, %s5623_s21  ;;  %4445 = vrot.lane.b32.xlu1 %v4366_v23, %s5633_s14 }
 0x6ca   : > { %4254 = vrot.lane.b32.xlu0 %v7624_v10, %s5624_s22 }
 0x6cb   : > { %v4047_v13 = vpop.permute.xlu2 %4046  ;;  %v3852_v1 = vpop.permute.xlu1 %3851 }
 0x6cc   : > { %v4237_v26 = vpop.permute.xlu0 %4236  ;;  %4134 = vst.msk [vmem:[#allocation5 + $0x48] sm:$0xff] %vm4124_vm2, %v4047_v13 }
 0x6cd   : > { %3940 = vst.msk [vmem:[#allocation5 + $0x40] sm:$0xff] %vm3931_vm1, %v3852_v1 }
 0x6d1   : > { %4447 = vrot.lane.b32.xlu2 %v4367_v42, %s5633_s14  ;;  %4060 = vrot.lane.b32.xlu1 %v7837_v6, %s5632_s30 }
 0x6d2   : > { %3869 = vrot.lane.b32.xlu0 %v4366_v23, %s5623_s21  ;;  %v4352_v23 = vld [vmem:[#allocation4 + $0x50] sm:$0xff] }
 0x6d3   : > { %v4627_v10 = vpop.permute.xlu2 %4626  ;;  %v4043_v51 = vpop.permute.xlu1 %4042 }
 0x6d4   : > { %v4045_v8 = vpop.permute.xlu0 %4044  ;;  %4132 = vst.msk [vmem:[#allocation5 + $0x38] sm:$0xff] %vm4124_vm2, %v4043_v51 }
 0x6d5   : > { %4133 = vst.msk [vmem:[#allocation5 + $0x40] sm:$0xff] %vm4124_vm2, %v4045_v8 }
 0x6d6   : > { %4326 = vst.msk [vmem:[#allocation5 + $0x38] sm:$0xff] %vm4318_vm3, %v4237_v26 }
 0x6d7   : > { %4327 = vst.msk [vmem:[#allocation5 + $0x40] sm:$0xff] %vm4318_vm3, %v4239_v58 }
 0x6d8   : > { %4519 = vst.msk [vmem:[#allocation5 + $0x38] sm:$0xff] %vm4511_vm4, %v4430_v15  ;;  %v3965_v15 = vld [vmem:[#allocation4 + $0x31] sm:$0xff] }
 0x6d9   : > { %4062 = vrot.lane.b32.xlu2 %v3981_v5, %s5632_s30  ;;  %4640 = vrot.lane.b32.xlu1 %v7834_v63, %s5626_s29 }
 0x6da   : > { %4449 = vrot.lane.b32.xlu0 %v4368_v60, %s5633_s14 }
 0x6db   : > { %v4436_v6 = vpop.permute.xlu2 %4435  ;;  %v4623_v31 = vpop.permute.xlu1 %4622 }
 0x6dc   : > { %v4625_v32 = vpop.permute.xlu0 %4624  ;;  %4712 = vst.msk [vmem:[#allocation5 + $0x38] sm:$0xff] %vm4704_vm5, %v4623_v31 }
 0x6e1   : > { %4642 = vrot.lane.b32.xlu2 %v7847_v0, %s5626_s29  ;;  %4256 = vrot.lane.b32.xlu1 %v7658_v21, %s5624_s22 }
 0x6e2   : > { %4064 = vrot.lane.b32.xlu0 %v3982_v41, %s5632_s30 }
 0x6e3   : > { %v4051_v39 = vpop.permute.xlu2 %4050  ;;  %v4432_v48 = vpop.permute.xlu1 %4431  ;;  %v4744_v63 = vld [vmem:[#allocation5 + $0x38] sm:$0xff] }
 0x6e4   : > { %v4434_v27 = vpop.permute.xlu0 %4433  ;;  %4520 = vst.msk [vmem:[#allocation5 + $0x40] sm:$0xff] %vm4511_vm4, %v4432_v48  ;;  %5513 = vmatmul.msk.f32.vlgmr.msra.gmra.mxu2 %vm4782_vm6, %v4744_v63  ;;  %v4180_v48 = vld [vmem:[#allocation4 + $0x1a7] sm:$0xff] }
 0x6e5   : > { %4713 = vst.msk [vmem:[#allocation5 + $0x40] sm:$0xff] %vm4704_vm5, %v4625_v32  ;;  %v4353_v63 = vld [vmem:[#allocation4 + $0x68] sm:$0xff] }
 0x6e9   : > { %4258 = vrot.lane.b32.xlu2 %v7688_v52, %s5624_s22  ;;  %3871 = vrot.lane.b32.xlu1 %v4367_v42, %s5623_s21  ;;  %v4372_v42 = vld [vmem:[#allocation4 + $0x190] sm:$0xff] }
 0x6ea   : > { %4644 = vrot.lane.b32.xlu0 %v8167_v36, %s5626_s29 }
 0x6eb   : > { %v4631_v21 = vpop.permute.xlu2 %4630  ;;  %v4241_v11 = vpop.permute.xlu1 %4240 }
 0x6ec   : > { %v4243_v0 = vpop.permute.xlu0 %4242  ;;  %4328 = vst.msk [vmem:[#allocation5 + $0x48] sm:$0xff] %vm4318_vm3, %v4241_v11  ;;  %v4745_v22 = vld [vmem:[#allocation5 + $0x40] sm:$0xff]  ;;  %v4373_v11 = vld [vmem:[#allocation4 + $0x1a8] sm:$0xff] }
 0x6ed   : > { %4521 = vst.msk [vmem:[#allocation5 + $0x48] sm:$0xff] %vm4511_vm4, %v4434_v27  ;;  %5514 = vmatmul.msk.f32.gmra.mxu2 %vm4782_vm6, %v4745_v22  ;;  %v4546_v27 = vld [vmem:[#allocation4 + $0x69] sm:$0xff] }
 0x6ee   : > { %4714 = vst.msk [vmem:[#allocation5 + $0x48] sm:$0xff] %vm4704_vm5, %v4627_v10 }
 0x6f1   : > { %3873 = vrot.lane.b32.xlu2 %v4368_v60, %s5623_s21  ;;  %4451 = vrot.lane.b32.xlu1 %v4369_v59, %s5633_s14  ;;  %v4160_v60 = vld [vmem:[#allocation4 + $0x67] sm:$0xff] }
 0x6f2   : > { %4260 = vrot.lane.b32.xlu0 %v7712_v18, %s5624_s22  ;;  %v3964_v18 = vld [vmem:[#allocation4 + $0x29] sm:$0xff] }
 0x6f3   : > { %v4247_v52 = vpop.permute.xlu2 %4246  ;;  %v4049_v61 = vpop.permute.xlu1 %4048 }
 0x6f4   : > { %v3858_v38 = vpop.permute.xlu0 %3857  ;;  %4135 = vst.msk [vmem:[#allocation5 + $0x50] sm:$0xff] %vm4124_vm2, %v4049_v61  ;;  %v4161_v61 = vld [vmem:[#allocation4 + $0x6f] sm:$0xff] }
 0x6f5   : > { %3943 = vst.msk [vmem:[#allocation5 + $0x58] sm:$0xff] %vm3931_vm1, %v3858_v38  ;;  %v4746_v14 = vld [vmem:[#allocation5 + $0x48] sm:$0xff] }
 0x6f6   : > { %4329 = vst.msk [vmem:[#allocation5 + $0x50] sm:$0xff] %vm4318_vm3, %v4243_v0  ;;  %5515 = vmatmul.msk.f32.gmra.mxu2 %vm4782_vm6, %v4746_v14  ;;  %v8267_v14 = vld [vmem:[#allocation4 + $0x1a9] sm:$0xff] }
 0x6f7   : > { %4522 = vst.msk [vmem:[#allocation5 + $0x50] sm:$0xff] %vm4511_vm4, %v4436_v6  ;;  %v8242_v6 = vld [vmem:[#allocation4 + $0x191] sm:$0xff] }
 0x6f8   : > { %4136 = vst.msk [vmem:[#allocation5 + $0x58] sm:$0xff] %vm4124_vm2, %v4051_v39 }
 0x6f9   : > { %4453 = vrot.lane.b32.xlu2 %v4370_v4, %s5633_s14  ;;  %4066 = vrot.lane.b32.xlu1 %v3983_v25, %s5632_s30 }
 0x6fa   : > { %4028 = vrot.lane.b32.xlu0 %v3964_v18, %s5632_s30 }
 0x6fb   : > { %v3862_v19 = vpop.permute.xlu2 %3861  ;;  %v4629_v34 = vpop.permute.xlu1 %4628 }
 0x6fc   : > { %v4438_v55 = vpop.permute.xlu0 %4437  ;;  %3945 = vst.msk [vmem:[#allocation5 + $0x68] sm:$0xff] %vm3931_vm1, %v3862_v19  ;;  %v4547_v19 = vld [vmem:[#allocation4 + $0x71] sm:$0xff] }
 0x6fd   : > { %4715 = vst.msk [vmem:[#allocation5 + $0x50] sm:$0xff] %vm4704_vm5, %v4629_v34  ;;  %v4354_v34 = vld [vmem:[#allocation4 + $0x70] sm:$0xff] }
 0x701   : > { %4222 = vrot.lane.b32.xlu2 %v4158_v53, %s5624_s22  ;;  %4646 = vrot.lane.b32.xlu1 %v8193_v28, %s5626_s29 }
 0x702   : > { %3875 = vrot.lane.b32.xlu0 %v4369_v59, %s5623_s21 }
 0x703   : > { %v4442_v12 = vpop.permute.xlu2 %4441  ;;  %v4245_v30 = vpop.permute.xlu1 %4244 }
 0x704   : > { %v4053_v50 = vpop.permute.xlu0 %4052  ;;  %v4747_v44 = vld [vmem:[#allocation5 + $0x50] sm:$0xff]  ;;  %4330 = vst.msk [vmem:[#allocation5 + $0x58] sm:$0xff] %vm4318_vm3, %v4245_v30 }
 0x705   : > { %5516 = vmatmul.msk.f32.gmra.mxu2 %vm4782_vm6, %v4747_v44  ;;  %4523 = vst.msk [vmem:[#allocation5 + $0x58] sm:$0xff] %vm4511_vm4, %v4438_v55  ;;  %v4181_v55 = vld [vmem:[#allocation4 + $0x1af] sm:$0xff] }
 0x706   : > { %4716 = vst.msk [vmem:[#allocation5 + $0x58] sm:$0xff] %vm4704_vm5, %v4631_v21  ;;  %v4374_v30 = vld [vmem:[#allocation4 + $0x1b0] sm:$0xff] }
 0x709   : > { %4608 = vrot.lane.b32.xlu2 %v4544_v29, %s5626_s29  ;;  %4415 = vrot.lane.b32.xlu1 %v4351_v62, %s5633_s14 }
 0x70a   : > { %4262 = vrot.lane.b32.xlu0 %v7733_v49, %s5624_s22 }
 0x70b   : > { %v4057_v24 = vpop.permute.xlu2 %4056  ;;  %v3860_v3 = vpop.permute.xlu1 %3859 }
 0x70c   : > { %v4633_v7 = vpop.permute.xlu0 %4632  ;;  %3944 = vst.msk [vmem:[#allocation5 + $0x60] sm:$0xff] %vm3931_vm1, %v3860_v3  ;;  %v8290_v3 = vld [vmem:[#allocation4 + $0x1b1] sm:$0xff] }
 0x70d   : > { %4137 = vst.msk [vmem:[#allocation5 + $0x60] sm:$0xff] %vm4124_vm2, %v4053_v50  ;;  %v4748_v2 = vld [vmem:[#allocation5 + $0x58] sm:$0xff] }
 0x70e   : > { %4331 = vst.msk [vmem:[#allocation5 + $0x60] sm:$0xff] %vm4318_vm3, %v4247_v52  ;;  %5517 = vmatmul.msk.f32.gmra.mxu2 %vm4782_vm6, %v4748_v2 }
 0x711   : > { %4455 = vrot.lane.b32.xlu2 %v4371_v57, %s5633_s14  ;;  %4068 = vrot.lane.b32.xlu1 %v8167_v36, %s5632_s30 }
 0x712   : > { %4030 = vrot.lane.b32.xlu0 %v3965_v15, %s5632_s30 }
 0x713   : > { %v4637_v49 = vpop.permute.xlu2 %4636  ;;  %v4440_v33 = vpop.permute.xlu1 %4439 }
 0x714   : > { %v4249_v16 = vpop.permute.xlu0 %4248  ;;  %4524 = vst.msk [vmem:[#allocation5 + $0x60] sm:$0xff] %vm4511_vm4, %v4440_v33  ;;  %v4355_v33 = vld [vmem:[#allocation4 + $0x88] sm:$0xff] }
 0x715   : > { %4717 = vst.msk [vmem:[#allocation5 + $0x60] sm:$0xff] %vm4704_vm5, %v4633_v7  ;;  %v4162_v7 = vld [vmem:[#allocation4 + $0x87] sm:$0xff] }
 0x719   : > { %4224 = vrot.lane.b32.xlu2 %v4159_v46, %s5624_s22  ;;  %4648 = vrot.lane.b32.xlu1 %v8217_v54, %s5626_s29 }
 0x71a   : > { %3877 = vrot.lane.b32.xlu0 %v4370_v4, %s5623_s21 }
 0x71b   : > { %v4253_v37 = vpop.permute.xlu2 %4252  ;;  %v4055_v58 = vpop.permute.xlu1 %4054 }
 0x71c   : > { %v3864_v43 = vpop.permute.xlu0 %3863  ;;  %4138 = vst.msk [vmem:[#allocation5 + $0x68] sm:$0xff] %vm4124_vm2, %v4055_v58  ;;  %v4749_v9 = vld [vmem:[#allocation5 + $0x60] sm:$0xff]  ;;  %v4375_v58 = vld [vmem:[#allocation4 + $0x1c8] sm:$0xff] }
 0x71d   : > { %3946 = vst.msk [vmem:[#allocation5 + $0x70] sm:$0xff] %vm3931_vm1, %v3864_v43  ;;  %5518 = vmatmul.msk.f32.gmra.mxu2 %vm4782_vm6, %v4749_v9 }
 0x71e   : > { %4332 = vst.msk [vmem:[#allocation5 + $0x68] sm:$0xff] %vm4318_vm3, %v4249_v16  ;;  %v4182_v16 = vld [vmem:[#allocation4 + $0x1c7] sm:$0xff] }
 0x71f   : > { %4525 = vst.msk [vmem:[#allocation5 + $0x68] sm:$0xff] %vm4511_vm4, %v4442_v12 }
 0x720   : > { %4139 = vst.msk [vmem:[#allocation5 + $0x70] sm:$0xff] %vm4124_vm2, %v4057_v24 }
 0x721   : > { %4610 = vrot.lane.b32.xlu2 %v4545_v40, %s5626_s29  ;;  %4417 = vrot.lane.b32.xlu1 %v4352_v23, %s5633_s14  ;;  %v4163_v23 = vld [vmem:[#allocation4 + $0x8f] sm:$0xff] }
 0x722   : > { %4264 = vrot.lane.b32.xlu0 %v4179_v47, %s5624_s22 }
 0x723   : > { %v3868_v13 = vpop.permute.xlu2 %3867  ;;  %v4635_v1 = vpop.permute.xlu1 %4634 }
 0x724   : > { %v4444_v26 = vpop.permute.xlu0 %4443  ;;  %3948 = vst.msk [vmem:[#allocation5 + $0x80] sm:$0xff] %vm3931_vm1, %v3868_v13  ;;  %v8313_v13 = vld [vmem:[#allocation4 + $0x1c9] sm:$0xff] }
 0x725   : > { %4718 = vst.msk [vmem:[#allocation5 + $0x68] sm:$0xff] %vm4704_vm5, %v4635_v1 }
 0x729   : > { %4457 = vrot.lane.b32.xlu2 %v4372_v42, %s5633_s14  ;;  %4070 = vrot.lane.b32.xlu1 %v8193_v28, %s5632_s30 }
 0x72a   : > { %4032 = vrot.lane.b32.xlu0 %v4544_v29, %s5632_s30 }
 0x72b   : > { %v4448_v10 = vpop.permute.xlu2 %4447  ;;  %v4251_v51 = vpop.permute.xlu1 %4250 }
 0x72c   : > { %v4059_v8 = vpop.permute.xlu0 %4058  ;;  %v4750_v5 = vld [vmem:[#allocation5 + $0x68] sm:$0xff]  ;;  %4333 = vst.msk [vmem:[#allocation5 + $0x70] sm:$0xff] %vm4318_vm3, %v4251_v51 }
 0x72d   : > { %5519 = vmatmul.msk.f32.gmra.mxu2 %vm4782_vm6, %v4750_v5  ;;  %4526 = vst.msk [vmem:[#allocation5 + $0x70] sm:$0xff] %vm4511_vm4, %v4444_v26  ;;  %v4183_v51 = vld [vmem:[#allocation4 + $0x1cf] sm:$0xff] }
 0x72e   : > { %4719 = vst.msk [vmem:[#allocation5 + $0x70] sm:$0xff] %vm4704_vm5, %v4637_v49  ;;  %v4548_v49 = vld [vmem:[#allocation4 + $0x89] sm:$0xff] }
 0x72f   : > { %v4356_v5 = vld [vmem:[#allocation4 + $0x90] sm:$0xff] }
 0x731   : > { %4226 = vrot.lane.b32.xlu2 %v4160_v60, %s5624_s22  ;;  %4650 = vrot.lane.b32.xlu1 %v8242_v6, %s5626_s29 }
 0x732   : > { %3879 = vrot.lane.b32.xlu0 %v4371_v57, %s5623_s21 }
 0x733   : > { %v4063_v32 = vpop.permute.xlu2 %4062  ;;  %v3866_v41 = vpop.permute.xlu1 %3865 }
 0x734   : > { %v4639_v31 = vpop.permute.xlu0 %4638  ;;  %3947 = vst.msk [vmem:[#allocation5 + $0x78] sm:$0xff] %vm3931_vm1, %v3866_v41  ;;  %v4376_v41 = vld [vmem:[#allocation4 + $0x1d0] sm:$0xff] }
 0x735   : > { %4140 = vst.msk [vmem:[#allocation5 + $0x78] sm:$0xff] %vm4124_vm2, %v4059_v8  ;;  %v4751_v39 = vld [vmem:[#allocation5 + $0x70] sm:$0xff] }
 0x736   : > { %4334 = vst.msk [vmem:[#allocation5 + $0x78] sm:$0xff] %vm4318_vm3, %v4253_v37  ;;  %5520 = vmatmul.msk.f32.gmra.mxu2 %vm4782_vm6, %v4751_v39  ;;  %v4549_v8 = vld [vmem:[#allocation4 + $0x91] sm:$0xff] }
 0x739   : > { %4612 = vrot.lane.b32.xlu2 %v4546_v27, %s5626_s29  ;;  %4419 = vrot.lane.b32.xlu1 %v4353_v63, %s5633_s14  ;;  %v4164_v63 = vld [vmem:[#allocation4 + $0xa7] sm:$0xff] }
 0x73a   : > { %4266 = vrot.lane.b32.xlu0 %v4180_v48, %s5624_s22 }
 0x73b   : > { %v4643_v36 = vpop.permute.xlu2 %4642  ;;  %v4446_v0 = vpop.permute.xlu1 %4445 }
 0x73c   : > { %v4255_v21 = vpop.permute.xlu0 %4254  ;;  %4527 = vst.msk [vmem:[#allocation5 + $0x78] sm:$0xff] %vm4511_vm4, %v4446_v0 }
 0x73d   : > { %4720 = vst.msk [vmem:[#allocation5 + $0x78] sm:$0xff] %vm4704_vm5, %v4639_v31 }
 0x741   : > { %4459 = vrot.lane.b32.xlu2 %v4373_v11, %s5633_s14  ;;  %4072 = vrot.lane.b32.xlu1 %v8217_v54, %s5632_s30 }
 0x742   : > { %4034 = vrot.lane.b32.xlu0 %v4545_v40, %s5632_s30 }
 0x743   : > { %v4259_v22 = vpop.permute.xlu2 %4258  ;;  %v4061_v52 = vpop.permute.xlu1 %4060 }
 0x744   : > { %v3870_v59 = vpop.permute.xlu0 %3869  ;;  %4141 = vst.msk [vmem:[#allocation5 + $0x80] sm:$0xff] %vm4124_vm2, %v4061_v52  ;;  %v4752_v38 = vld [vmem:[#allocation5 + $0x78] sm:$0xff]  ;;  %v4184_v52 = vld [vmem:[#allocation4 + $0x1e7] sm:$0xff] }
 0x745   : > { %3949 = vst.msk [vmem:[#allocation5 + $0x88] sm:$0xff] %vm3931_vm1, %v3870_v59  ;;  %5521 = vmatmul.msk.f32.gmra.mxu2 %vm4782_vm6, %v4752_v38  ;;  %v4550_v59 = vld [vmem:[#allocation4 + $0xa9] sm:$0xff] }
 0x746   : > { %4335 = vst.msk [vmem:[#allocation5 + $0x80] sm:$0xff] %vm4318_vm3, %v4255_v21  ;;  %v4357_v38 = vld [vmem:[#allocation4 + $0xa8] sm:$0xff] }
 0x747   : > { %4528 = vst.msk [vmem:[#allocation5 + $0x80] sm:$0xff] %vm4511_vm4, %v4448_v10 }
 0x748   : > { %4142 = vst.msk [vmem:[#allocation5 + $0x88] sm:$0xff] %vm4124_vm2, %v4063_v32 }
 0x749   : > { %4228 = vrot.lane.b32.xlu2 %v4161_v61, %s5624_s22  ;;  %4652 = vrot.lane.b32.xlu1 %v8267_v14, %s5626_s29 }
 0x74a   : > { %3881 = vrot.lane.b32.xlu0 %v4372_v42, %s5623_s21 }
 0x74b   : > { %v3874_v4 = vpop.permute.xlu2 %3873  ;;  %v4641_v25 = vpop.permute.xlu1 %4640 }
 0x74c   : > { %v4450_v18 = vpop.permute.xlu0 %4449  ;;  %3951 = vst.msk [vmem:[#allocation5 + $0x98] sm:$0xff] %vm3931_vm1, %v3874_v4 }
 0x74d   : > { %4721 = vst.msk [vmem:[#allocation5 + $0x80] sm:$0xff] %vm4704_vm5, %v4641_v25  ;;  %v4377_v25 = vld [vmem:[#allocation4 + $0x1e8] sm:$0xff] }
 0x751   : > { %4614 = vrot.lane.b32.xlu2 %v4547_v19, %s5626_s29  ;;  %4421 = vrot.lane.b32.xlu1 %v4354_v34, %s5633_s14 }
 0x752   : > { %4268 = vrot.lane.b32.xlu0 %v4181_v55, %s5624_s22 }
 0x753   : > { %v4454_v53 = vpop.permute.xlu2 %4453  ;;  %v4257_v12 = vpop.permute.xlu1 %4256 }
 0x754   : > { %v4065_v28 = vpop.permute.xlu0 %4064  ;;  %v4753_v50 = vld [vmem:[#allocation5 + $0x80] sm:$0xff]  ;;  %4336 = vst.msk [vmem:[#allocation5 + $0x88] sm:$0xff] %vm4318_vm3, %v4257_v12 }
 0x755   : > { %5522 = vmatmul.msk.f32.gmra.mxu2 %vm4782_vm6, %v4753_v50  ;;  %4529 = vst.msk [vmem:[#allocation5 + $0x88] sm:$0xff] %vm4511_vm4, %v4450_v18 }
 0x756   : > { %4722 = vst.msk [vmem:[#allocation5 + $0x88] sm:$0xff] %vm4704_vm5, %v4643_v36  ;;  %v4569_v36 = vld [vmem:[#allocation4 + $0x1d1] sm:$0xff] }
 0x759   : > { %4461 = vrot.lane.b32.xlu2 %v4374_v30, %s5633_s14  ;;  %4074 = vrot.lane.b32.xlu1 %v8242_v6, %s5632_s30 }
 0x75a   : > { %4036 = vrot.lane.b32.xlu0 %v4546_v27, %s5632_s30 }
 0x75b   : > { %v4223_v44 = vpop.permute.xlu2 %4222  ;;  %v3872_v62 = vpop.permute.xlu1 %3871 }
 0x75c   : > { %v4645_v29 = vpop.permute.xlu0 %4644  ;;  %3950 = vst.msk [vmem:[#allocation5 + $0x90] sm:$0xff] %vm3931_vm1, %v3872_v62  ;;  %v4185_v62 = vld [vmem:[#allocation4 + $0x1ef] sm:$0xff] }
 0x75d   : > { %4143 = vst.msk [vmem:[#allocation5 + $0x90] sm:$0xff] %vm4124_vm2, %v4065_v28  ;;  %v4754_v24 = vld [vmem:[#allocation5 + $0x88] sm:$0xff] }
 0x75e   : > { %4337 = vst.msk [vmem:[#allocation5 + $0x90] sm:$0xff] %vm4318_vm3, %v4259_v22  ;;  %5523 = vmatmul.msk.f32.gmra.mxu2 %vm4782_vm6, %v4754_v24  ;;  %v4570_v28 = vld [vmem:[#allocation4 + $0x1e9] sm:$0xff] }
 0x761   : > { %4230 = vrot.lane.b32.xlu2 %v4162_v7, %s5624_s22  ;;  %4654 = vrot.lane.b32.xlu1 %v8290_v3, %s5626_s29 }
 0x762   : > { %3883 = vrot.lane.b32.xlu0 %v4373_v11, %s5623_s21 }
 0x763   : > { %v4609_v2 = vpop.permute.xlu2 %4608  ;;  %v4452_v15 = vpop.permute.xlu1 %4451 }
 0x764   : > { %v4261_v57 = vpop.permute.xlu0 %4260  ;;  %4530 = vst.msk [vmem:[#allocation5 + $0x90] sm:$0xff] %vm4511_vm4, %v4452_v15  ;;  %v4572_v15 = vld [vmem:[#allocation4 + $0x209] sm:$0xff] }
 0x765   : > { %4723 = vst.msk [vmem:[#allocation5 + $0x90] sm:$0xff] %vm4704_vm5, %v4645_v29  ;;  %v4571_v29 = vld [vmem:[#allocation4 + $0x1f1] sm:$0xff] }
 0x769   : > { %4616 = vrot.lane.b32.xlu2 %v4548_v49, %s5626_s29  ;;  %4423 = vrot.lane.b32.xlu1 %v4355_v33, %s5633_s14 }
 0x76a   : > { %4270 = vrot.lane.b32.xlu0 %v4182_v16, %s5624_s22 }
 0x76b   : > { %v4456_v46 = vpop.permute.xlu2 %4455  ;;  %v4067_v37 = vpop.permute.xlu1 %4066 }
 0x76c   : > { %v4029_v54 = vpop.permute.xlu0 %4028  ;;  %4144 = vst.msk [vmem:[#allocation5 + $0x98] sm:$0xff] %vm4124_vm2, %v4067_v37  ;;  %v4755_v43 = vld [vmem:[#allocation5 + $0x90] sm:$0xff] }
 0x76d   : > { %4125 = vst.msk [vmem:[#allocation5] sm:$0xff] %vm4124_vm2, %v4029_v54  ;;  %5524 = vmatmul.msk.f32.gmra.mxu2 %vm4782_vm6, %v4755_v43  ;;  %v4379_v54 = vld [vmem:[#allocation4 + $0x208] sm:$0xff] }
 0x76e   : > { %4338 = vst.msk [vmem:[#allocation5 + $0x98] sm:$0xff] %vm4318_vm3, %v4261_v57  ;;  %v4186_v57 = vld [vmem:[#allocation4 + $0x207] sm:$0xff] }
 0x76f   : > { %4531 = vst.msk [vmem:[#allocation5 + $0x98] sm:$0xff] %vm4511_vm4, %v4454_v53  ;;  %v4378_v53 = vld [vmem:[#allocation4 + $0x1f0] sm:$0xff] }
 0x770   : > { %4319 = vst.msk [vmem:[#allocation5] sm:$0xff] %vm4318_vm3, %v4223_v44 }
 0x771   : > { %4463 = vrot.lane.b32.xlu2 %v4375_v58, %s5633_s14  ;;  %4076 = vrot.lane.b32.xlu1 %v8267_v14, %s5632_s30 }
 0x772   : > { %4038 = vrot.lane.b32.xlu0 %v4547_v19, %s5632_s30 }
 0x773   : > { %v4225_v9 = vpop.permute.xlu2 %4224  ;;  %v4647_v47 = vpop.permute.xlu1 %4646 }
 0x774   : > { %v3876_v40 = vpop.permute.xlu0 %3875  ;;  %4724 = vst.msk [vmem:[#allocation5 + $0x98] sm:$0xff] %vm4704_vm5, %v4647_v47  ;;  %v4380_v47 = vld [vmem:[#allocation4 + $0x210] sm:$0xff] }
 0x775   : > { %3952 = vst.msk [vmem:[#allocation5 + $0xa0] sm:$0xff] %vm3931_vm1, %v3876_v40  ;;  %v2968_v40 = vpop.f32.mrf.mxu1 }
 0x779   : > { %4232 = vrot.lane.b32.xlu2 %v4163_v23, %s5624_s22  ;;  %4656 = vrot.lane.b32.xlu1 %v8313_v13, %s5626_s29  ;;  %v2971_v23 = vsub.f32 0.0, %v2968_v40 }
 0x77a   : > { %3885 = vrot.lane.b32.xlu0 %v4374_v30, %s5623_s21 }
 0x77b   : > { %v4611_v26 = vpop.permute.xlu2 %4610  ;;  %v4416_v42 = vpop.permute.xlu1 %4415  ;;  %v4756_v10 = vld [vmem:[#allocation5 + $0x98] sm:$0xff] }
 0x77c   : > { %v4263_v1 = vpop.permute.xlu0 %4262  ;;  %4512 = vst.msk [vmem:[#allocation5] sm:$0xff] %vm4511_vm4, %v4416_v42  ;;  %5525 = vmatmul.msk.f32.gmra.mxu2 %vm4782_vm6, %v4756_v10  ;;  %v9195_v42 = vld [vmem:[#allocation41_spill] sm:$0xff] }
 0x77d   : > { %4705 = vst.msk [vmem:[#allocation5] sm:$0xff] %vm4704_vm5, %v4609_v2  ;;  %v769_v10 = vsub.f32 0.0, %v9195_v42 }
 0x781   : > { %4618 = vrot.lane.b32.xlu2 %v4549_v8, %s5626_s29  ;;  %4425 = vrot.lane.b32.xlu1 %v4356_v5, %s5633_s14  ;;  %v2972_v8 = vmul.f32 1.442695, %v2971_v23  ;;  %v4381_v5 = vld [vmem:[#allocation4 + $0x228] sm:$0xff] }
 0x782   : > { %4272 = vrot.lane.b32.xlu0 %v4183_v51, %s5624_s22 }
 0x783   : > { %v4458_v60 = vpop.permute.xlu2 %4457  ;;  %v4069_v32 = vpop.permute.xlu1 %4068  ;;  %5598 = vpow2.f32 %v2972_v8 }
 0x784   : > { %v4031_v6 = vpop.permute.xlu0 %4030  ;;  %4145 = vst.msk [vmem:[#allocation5 + $0xa0] sm:$0xff] %vm4124_vm2, %v4069_v32  ;;  %v4737_v31 = vld [vmem:[#allocation5] sm:$0xff] }
 0x785   : > { %4126 = vst.msk [vmem:[#allocation5 + $0x8] sm:$0xff] %vm4124_vm2, %v4031_v6  ;;  %5506 = vmatmul.msk.f32.vlgmr.msra.gmra.mxu1 %vm4782_vm6, %v4737_v31  ;;  %v4573_v6 = vld [vmem:[#allocation4 + $0x211] sm:$0xff] }
 0x786   : > { %4339 = vst.msk [vmem:[#allocation5 + $0xa0] sm:$0xff] %vm4318_vm3, %v4263_v1 }
 0x787   : > { %4532 = vst.msk [vmem:[#allocation5 + $0xa0] sm:$0xff] %vm4511_vm4, %v4456_v46  ;;  %v4187_v46 = vld [vmem:[#allocation4 + $0x20f] sm:$0xff] }
 0x788   : > { %4320 = vst.msk [vmem:[#allocation5 + $0x8] sm:$0xff] %vm4318_vm3, %v4225_v9 }
 0x789   : > { %4465 = vrot.lane.b32.xlu2 %v4376_v41, %s5633_s14  ;;  %4078 = vrot.lane.b32.xlu1 %v8290_v3, %s5632_s30 }
 0x78a   : > { %4040 = vrot.lane.b32.xlu0 %v4548_v49, %s5632_s30 }
 0x78b   : > { %v4227_v39 = vpop.permute.xlu2 %4226  ;;  %v4649_v48 = vpop.permute.xlu1 %4648 }
 0x78c   : > { %v3878_v27 = vpop.permute.xlu0 %3877  ;;  %4725 = vst.msk [vmem:[#allocation5 + $0xa0] sm:$0xff] %vm4704_vm5, %v4649_v48  ;;  %v4188_v48 = vld [vmem:[#allocation4 + $0x227] sm:$0xff] }
 0x78d   : > { %3953 = vst.msk [vmem:[#allocation5 + $0xa8] sm:$0xff] %vm3931_vm1, %v3878_v27  ;;  %v5599_v27 = vpop.eup %5598 }
 0x791   : > { %4234 = vrot.lane.b32.xlu2 %v4164_v63, %s5624_s22  ;;  %4658 = vrot.lane.b32.xlu1 %v4569_v36, %s5626_s29  ;;  %v8401_v63 = vadd.f32 1.0, %v5599_v27 }
 0x792   : > { %3887 = vrot.lane.b32.xlu0 %v4375_v58, %s5623_s21 }
 0x793   : > { %v4613_v21 = vpop.permute.xlu2 %4612  ;;  %v4418_v11 = vpop.permute.xlu1 %4417  ;;  %v4757_v22 = vld [vmem:[#allocation5 + $0xa0] sm:$0xff]  ;;  %vm2980_vm8 = vweird.f32 %v8401_v63 }
 0x794   : > { %v4265_v0 = vpop.permute.xlu0 %4264  ;;  %4513 = vst.msk [vmem:[#allocation5 + $0x8] sm:$0xff] %vm4511_vm4, %v4418_v11  ;;  %5526 = vmatmul.msk.f32.gmra.mxu2 %vm4782_vm6, %v4757_v22 }
 0x795   : > { %4706 = vst.msk [vmem:[#allocation5 + $0x8] sm:$0xff] %vm4704_vm5, %v4611_v26 }
 0x799   : > { %4620 = vrot.lane.b32.xlu2 %v4550_v59, %s5626_s29  ;;  %4427 = vrot.lane.b32.xlu1 %v4357_v38, %s5633_s14  ;;  %v4575_v38 = vld [vmem:[#allocation4 + $0x231] sm:$0xff] }
 0x79a   : > { %4274 = vrot.lane.b32.xlu0 %v4184_v52, %s5624_s22  ;;  %v4189_v52 = vld [vmem:[#allocation4 + $0x22f] sm:$0xff] }
 0x79b   : > { %v4460_v61 = vpop.permute.xlu2 %4459  ;;  %v4071_v4 = vpop.permute.xlu1 %4070 }
 0x79c   : > { %v4033_v14 = vpop.permute.xlu0 %4032  ;;  %4146 = vst.msk [vmem:[#allocation5 + $0xa8] sm:$0xff] %vm4124_vm2, %v4071_v4  ;;  %v4738_v18 = vld [vmem:[#allocation5 + $0x8] sm:$0xff] }
 0x79d   : > { %4127 = vst.msk [vmem:[#allocation5 + $0x10] sm:$0xff] %vm4124_vm2, %v4033_v14  ;;  %5507 = vmatmul.msk.f32.gmra.mxu1 %vm4782_vm6, %v4738_v18 }
 0x79e   : > { %4340 = vst.msk [vmem:[#allocation5 + $0xa8] sm:$0xff] %vm4318_vm3, %v4265_v0 }
 0x79f   : > { %4533 = vst.msk [vmem:[#allocation5 + $0xa8] sm:$0xff] %vm4511_vm4, %v4458_v60  ;;  %v770_v60 = vmul.f32 1.442695, %v769_v10  ;;  %v9196_v10 = vld [vmem:[#allocation65_spill] sm:$0xff] }
 0x7a0   : > { %4321 = vst.msk [vmem:[#allocation5 + $0x10] sm:$0xff] %vm4318_vm3, %v4227_v39  ;;  %v4574_v39 = vld [vmem:[#allocation4 + $0x229] sm:$0xff] }
 0x7a1   : > { %4467 = vrot.lane.b32.xlu2 %v4377_v25, %s5633_s14  ;;  %4080 = vrot.lane.b32.xlu1 %v8313_v13, %s5632_s30  ;;  %5600 = vpow2.f32 %v770_v60 }
 0x7a2   : > { %3889 = vrot.lane.b32.xlu0 %v4376_v41, %s5623_s21  ;;  %5602 = vrcp.f32 %v8401_v63 }
 0x7a3   : > { %v4229_v19 = vpop.permute.xlu2 %4228  ;;  %v4651_v34 = vpop.permute.xlu1 %4650 }
 0x7a4   : > { %v3880_v55 = vpop.permute.xlu0 %3879  ;;  %4726 = vst.msk [vmem:[#allocation5 + $0xa8] sm:$0xff] %vm4704_vm5, %v4651_v34 }
 0x7a5   : > { %3954 = vst.msk [vmem:[#allocation5 + $0xb0] sm:$0xff] %vm3931_vm1, %v3880_v55  ;;  %v4382_v55 = vld [vmem:[#allocation4 + $0x230] sm:$0xff] }
 0x7a9   : > { %4082 = vrot.lane.b32.xlu2 %v4569_v36, %s5632_s30  ;;  %4660 = vrot.lane.b32.xlu1 %v4570_v28, %s5626_s29  ;;  %v5601_v36 = vpop.eup %5600 }
 0x7aa   : > { %4469 = vrot.lane.b32.xlu0 %v4378_v53, %s5633_s14  ;;  %v8406_v59 = vadd.f32 1.0, %v5601_v36  ;;  %v5603_v4 = vpop.eup %5602  ;;  %v9199_v36 = vld [vmem:[#allocation9_spill] sm:$0xff] }
 0x7ab   : > { %v4615_v12 = vpop.permute.xlu2 %4614  ;;  %v4420_v30 = vpop.permute.xlu1 %4419  ;;  %v4758_v44 = vld [vmem:[#allocation5 + $0xa8] sm:$0xff]  ;;  %vm2981_vm7 = vweird.f32 %v5603_v4 }
 0x7ac   : > { %v4267_v50 = vpop.permute.xlu0 %4266  ;;  %4514 = vst.msk [vmem:[#allocation5 + $0x10] sm:$0xff] %vm4511_vm4, %v4420_v30  ;;  %5527 = vmatmul.msk.f32.gmra.mxu2 %vm4782_vm6, %v4758_v44  ;;  %5604 = vrcp.f32 %v8406_v59  ;;  %vm2982_vm9 = vmor %vm2980_vm8, %vm2981_vm7  ;;  %vm778_vm12 = vweird.f32 %v8406_v59 }
 0x7ad   : > { %4707 = vst.msk [vmem:[#allocation5 + $0x10] sm:$0xff] %vm4704_vm5, %v4613_v21 }
 0x7b1   : > { %4662 = vrot.lane.b32.xlu2 %v4571_v29, %s5626_s29  ;;  %4276 = vrot.lane.b32.xlu1 %v4185_v62, %s5624_s22 }
 0x7b2   : > { %4084 = vrot.lane.b32.xlu0 %v4570_v28, %s5632_s30  ;;  %v5605_v34 = vpop.eup %5604 }
 0x7b3   : > { %v4462_v24 = vpop.permute.xlu2 %4461  ;;  %v4073_v3 = vpop.permute.xlu1 %4072  ;;  %vm779_vm10 = vweird.f32 %v5605_v34 }
 0x7b4   : > { %v4035_v7 = vpop.permute.xlu0 %4034  ;;  %4147 = vst.msk [vmem:[#allocation5 + $0xb0] sm:$0xff] %vm4124_vm2, %v4073_v3  ;;  %v4739_v2 = vld [vmem:[#allocation5 + $0x10] sm:$0xff]  ;;  %vm780_vm0 = vmor %vm778_vm12, %vm779_vm10 }
 0x7b5   : > { %4128 = vst.msk [vmem:[#allocation5 + $0x18] sm:$0xff] %vm4124_vm2, %v4035_v7  ;;  %5508 = vmatmul.msk.f32.gmra.mxu1 %vm4782_vm6, %v4739_v2  ;;  %v2986_v2 = vand.u32 2147483648, %v8401_v63 }
 0x7b6   : > { %4341 = vst.msk [vmem:[#allocation5 + $0xb0] sm:$0xff] %vm4318_vm3, %v4267_v50 }
 0x7b7   : > { %4534 = vst.msk [vmem:[#allocation5 + $0xb0] sm:$0xff] %vm4511_vm4, %v4460_v61 }
 0x7b8   : > { %4322 = vst.msk [vmem:[#allocation5 + $0x18] sm:$0xff] %vm4318_vm3, %v4229_v19  ;;  %v2976_v19 = vmul.f32 %v5603_v4, %v8401_v63 }
 0x7b9   : > { %4278 = vrot.lane.b32.xlu2 %v4186_v57, %s5624_s22  ;;  %3891 = vrot.lane.b32.xlu1 %v4377_v25, %s5623_s21 }
 0x7ba   : > { %4664 = vrot.lane.b32.xlu0 %v4572_v15, %s5626_s29  ;;  %v2977_v28 = vsub.f32 1.0, %v2976_v19 }
 0x7bb   : > { %v4231_v49 = vpop.permute.xlu2 %4230  ;;  %v4653_v33 = vpop.permute.xlu1 %4652 }
 0x7bc   : > { %v3882_v16 = vpop.permute.xlu0 %3881  ;;  %4727 = vst.msk [vmem:[#allocation5 + $0xb0] sm:$0xff] %vm4704_vm5, %v4653_v33 }
 0x7bd   : > { %3955 = vst.msk [vmem:[#allocation5 + $0xb8] sm:$0xff] %vm3931_vm1, %v3882_v16 }
 0x7c1   : > { %3893 = vrot.lane.b32.xlu2 %v4378_v53, %s5623_s21  ;;  %4471 = vrot.lane.b32.xlu1 %v4379_v54, %s5633_s14  ;;  %v774_v53 = vmul.f32 %v5605_v34, %v8406_v59 }
 0x7c2   : > { %4280 = vrot.lane.b32.xlu0 %v4187_v46, %s5624_s22  ;;  %v784_v46 = vand.u32 2147483648, %v8406_v59 }
 0x7c3   : > { %v4617_v37 = vpop.permute.xlu2 %4616  ;;  %v4422_v58 = vpop.permute.xlu1 %4421  ;;  %v4759_v9 = vld [vmem:[#allocation5 + $0xb0] sm:$0xff]  ;;  %v775_v44 = vsub.f32 1.0, %v774_v53 }
 0x7c4   : > { %v4269_v43 = vpop.permute.xlu0 %4268  ;;  %4515 = vst.msk [vmem:[#allocation5 + $0x18] sm:$0xff] %vm4511_vm4, %v4422_v58  ;;  %5528 = vmatmul.msk.f32.gmra.mxu2 %vm4782_vm6, %v4759_v9 }
 0x7c5   : > { %4708 = vst.msk [vmem:[#allocation5 + $0x18] sm:$0xff] %vm4704_vm5, %v4615_v12  ;;  %v776_v62 = vmul.f32 %v5605_v34, %v775_v44  ;;  %v8477_v44 = vpop.f32.mrf.mxu2 }
 0x7c7   : > { %v777_v16 = vadd.f32 %v5605_v34, %v776_v62 }
 0x7c9   : > { %4473 = vrot.lane.b32.xlu2 %v4380_v47, %s5633_s14  ;;  %4086 = vrot.lane.b32.xlu1 %v4571_v29, %s5632_s30  ;;  %v2978_v29 = vmul.f32 %v5603_v4, %v2977_v28  ;;  %v781_v58 = vsel %vm780_vm0, %v5605_v34, %v777_v16  ;;  %v9203_v34 = vld [vmem:[#allocation6_spill] sm:$0xff]  ;;  %v9204_v28 = vld [vmem:[#allocation12_spill] sm:$0xff] }
 0x7ca   : > { %3895 = vrot.lane.b32.xlu0 %v4379_v54, %s5623_s21  ;;  %v2987_v54 = vor.u32 1.1754944e-38, %v2986_v2  ;;  %v9207_v2 = vld [vmem:[#allocation14_spill] sm:$0xff] }
 0x7cb   : > { %v4464_v13 = vpop.permute.xlu2 %4463  ;;  %v4075_v1 = vpop.permute.xlu1 %4074 }
 0x7cc   : > { %v4037_v26 = vpop.permute.xlu0 %4036  ;;  %4148 = vst.msk [vmem:[#allocation5 + $0xb8] sm:$0xff] %vm4124_vm2, %v4075_v1  ;;  %v4740_v51 = vld [vmem:[#allocation5 + $0x18] sm:$0xff] }
 0x7cd   : > { %4129 = vst.msk [vmem:[#allocation5 + $0x20] sm:$0xff] %vm4124_vm2, %v4037_v26  ;;  %5509 = vmatmul.msk.f32.gmra.mxu1 %vm4782_vm6, %v4740_v51 }
 0x7ce   : > { %4342 = vst.msk [vmem:[#allocation5 + $0xb8] sm:$0xff] %vm4318_vm3, %v4269_v43 }
 0x7cf   : > { %4535 = vst.msk [vmem:[#allocation5 + $0xb8] sm:$0xff] %vm4511_vm4, %v4462_v24  ;;  %v2979_v24 = vadd.f32 %v5603_v4, %v2978_v29 }
 0x7d0   : > { %4323 = vst.msk [vmem:[#allocation5 + $0x20] sm:$0xff] %vm4318_vm3, %v4231_v49  ;;  %v2984_v49 = vand.u32 2147483647, %v8401_v63 }
 0x7d1   : > { %4088 = vrot.lane.b32.xlu2 %v4572_v15, %s5632_s30  ;;  %4666 = vrot.lane.b32.xlu1 %v4573_v6, %s5626_s29  ;;  %v2983_v33 = vsel %vm2982_vm9, %v5603_v4, %v2979_v24  ;;  %v9202_v4 = vld [vmem:[#allocation71_spill] sm:$0xff] }
 0x7d2   : > { %4475 = vrot.lane.b32.xlu0 %v4381_v5, %s5633_s14  ;;  %vm2985_vm13 = vcmp.eq.f32.partialorder %v2984_v49, 8.507059e+37 }
 0x7d3   : > { %v4233_v32 = vpop.permute.xlu2 %4232  ;;  %v4655_v41 = vpop.permute.xlu1 %4654  ;;  %v2988_v43 = vsel %vm2985_vm13, %v2987_v54, %v2983_v33 }
 0x7d4   : > { %v3884_v31 = vpop.permute.xlu0 %3883  ;;  %4728 = vst.msk [vmem:[#allocation5 + $0xb8] sm:$0xff] %vm4704_vm5, %v4655_v41 }
 0x7d5   : > { %3956 = vst.msk [vmem:[#allocation5 + $0xc0] sm:$0xff] %vm3931_vm1, %v3884_v31  ;;  %v9198_v31 = vld [vmem:[#allocation67_spill] sm:$0xff] }
 0x7d9   : > { %4668 = vrot.lane.b32.xlu2 %v4574_v39, %s5626_s29  ;;  %4282 = vrot.lane.b32.xlu1 %v4188_v48, %s5624_s22 }
 0x7da   : > { %4090 = vrot.lane.b32.xlu0 %v4573_v6, %s5632_s30  ;;  %v9197_v6 = vld [vmem:[#allocation7_spill] sm:$0xff] }
 0x7db   : > { %v4619_v21 = vpop.permute.xlu2 %4618  ;;  %v4424_v11 = vpop.permute.xlu1 %4423  ;;  %v4760_v22 = vld [vmem:[#allocation5 + $0xb8] sm:$0xff] }
 0x7dc   : > { %v4271_v0 = vpop.permute.xlu0 %4270  ;;  %4516 = vst.msk [vmem:[#allocation5 + $0x20] sm:$0xff] %vm4511_vm4, %v4424_v11  ;;  %5529 = vmatmul.msk.f32.gmra.mxu2 %vm4782_vm6, %v4760_v22 }
 0x7dd   : > { %4709 = vst.msk [vmem:[#allocation5 + $0x20] sm:$0xff] %vm4704_vm5, %v4617_v37  ;;  %v782_v37 = vand.u32 2147483647, %v8406_v59 }
 0x7df   : > { %vm783_vm7 = vcmp.eq.f32.partialorder %v782_v37, 8.507059e+37  ;;  %v8491_v37 = vpop.f32.mrf.mxu2 }
 0x7e1   : > { %4284 = vrot.lane.b32.xlu2 %v4189_v52, %s5624_s22  ;;  %3897 = vrot.lane.b32.xlu1 %v4380_v47, %s5623_s21  ;;  %v785_v47 = vor.u32 1.1754944e-38, %v784_v46  ;;  %v9209_v46 = vld [vmem:[#allocation11_spill] sm:$0xff] }
 0x7e2   : > { %4670 = vrot.lane.b32.xlu0 %v4575_v38, %s5626_s29 }
 0x7e3   : > { %v4466_v61 = vpop.permute.xlu2 %4465  ;;  %v4077_v18 = vpop.permute.xlu1 %4076  ;;  %v786_v1 = vsel %vm783_vm7, %v785_v47, %v781_v58  ;;  %v9210_v58 = vld [vmem:[#allocation17_spill] sm:$0xff] }
 0x7e4   : > { %v4039_v14 = vpop.permute.xlu0 %4038  ;;  %4149 = vst.msk [vmem:[#allocation5 + $0xc0] sm:$0xff] %vm4124_vm2, %v4077_v18  ;;  %v4741_v25 = vld [vmem:[#allocation5 + $0x20] sm:$0xff]  ;;  %v8442_v42 = vperm.slane %v786_v1, 0  ;;  %v9212_v1 = vld [vmem:[#allocation13_spill] sm:$0xff] }
 0x7e5   : > { %4130 = vst.msk [vmem:[#allocation5 + $0x28] sm:$0xff] %vm4124_vm2, %v4039_v14  ;;  %5510 = vmatmul.msk.f32.gmra.mxu1 %vm4782_vm6, %v4741_v25 }
 0x7e6   : > { %4343 = vst.msk [vmem:[#allocation5 + $0xc0] sm:$0xff] %vm4318_vm3, %v4271_v0  ;;  %v9200_v0 = vld [vmem:[#allocation69_spill] sm:$0xff]  ;;  %v805_v53 = vmul.f32 %v8442_v42, %v9203_v34  ;;  %v807_v54 = vmul.f32 %v8442_v42, %v9209_v46 }
 0x7e7   : > { %4536 = vst.msk [vmem:[#allocation5 + $0xc0] sm:$0xff] %vm4511_vm4, %v4464_v13  ;;  %v8435_v13 = vperm.slane %v2988_v43, 0 }
 0x7e8   : > { %4324 = vst.msk [vmem:[#allocation5 + $0x28] sm:$0xff] %vm4318_vm3, %v4233_v32  ;;  %v789_v32 = vmul.f32 %v8442_v42, %v9197_v6  ;;  %v9214_v6 = vld [vmem:[#allocation43_spill] sm:$0xff] }
 0x7e9   : > { %4477 = vrot.lane.b32.xlu1 %v4382_v55, %s5633_s14  ;;  %v2991_v8 = vmul.f32 %v8435_v13, %v9196_v10  ;;  %v2992_v41 = vmul.f32 %v8435_v13, %v9198_v31  ;;  %v2993_v11 = vmul.f32 %v8435_v13, %v9200_v0  ;;  %v2994_v18 = vmul.f32 %v8435_v13, %v9202_v4 }
 0x7ea   : > { %v808_v10 = vmul.f32 %v8442_v42, %v9212_v1 }
 0x7eb   : > { %v4235_v12 = vpop.permute.xlu2 %4234  ;;  %v4657_v30 = vpop.permute.xlu1 %4656 }
 0x7ec   : > { %v3886_v50 = vpop.permute.xlu0 %3885  ;;  %4729 = vst.msk [vmem:[#allocation5 + $0xc0] sm:$0xff] %vm4704_vm5, %v4657_v30 }
 0x7ed   : > { %3957 = vst.msk [vmem:[#allocation5 + $0xc8] sm:$0xff] %vm3931_vm1, %v3886_v50  ;;  %v9205_v50 = vld [vmem:[#allocation16_spill] sm:$0xff] }
 0x7ee   : > { %v2995_v30 = vmul.f32 %v8435_v13, %v9205_v50  ;;  %v9222_v50 = vld [vmem:[#allocation25_spill] sm:$0xff] }
 0x7f3   : > { %v4621_v7 = vpop.permute.xlu2 %4620  ;;  %v4426_v57 = vpop.permute.xlu1 %4425  ;;  %v4761_v15 = vld [vmem:[#allocation5 + $0xc0] sm:$0xff] }
 0x7f4   : > { %v4273_v3 = vpop.permute.xlu0 %4272  ;;  %4517 = vst.msk [vmem:[#allocation5 + $0x28] sm:$0xff] %vm4511_vm4, %v4426_v57  ;;  %5530 = vmatmul.msk.f32.gmra.mxu2 %vm4782_vm6, %v4761_v15  ;;  %v793_v57 = vmul.f32 %v8442_v42, %v9207_v2  ;;  %v9208_v15 = vld [vmem:[#allocation33_spill] sm:$0xff] }
 0x7f5   : > { %4710 = vst.msk [vmem:[#allocation5 + $0x28] sm:$0xff] %vm4704_vm5, %v4619_v21  ;;  %v790_v21 = vmul.f32 %v8442_v42, %v9199_v36  ;;  %v2996_v49 = vmul.f32 %v8435_v13, %v9208_v15 }
 0x7fb   : > { %v4468_v9 = vpop.permute.xlu2 %4467  ;;  %v4079_v23 = vpop.permute.xlu1 %4078 }
 0x7fc   : > { %v4041_v40 = vpop.permute.xlu0 %4040  ;;  %4150 = vst.msk [vmem:[#allocation5 + $0xc8] sm:$0xff] %vm4124_vm2, %v4079_v23  ;;  %v4742_v26 = vld [vmem:[#allocation5 + $0x28] sm:$0xff] }
 0x7fd   : > { %4131 = vst.msk [vmem:[#allocation5 + $0x30] sm:$0xff] %vm4124_vm2, %v4041_v40  ;;  %5511 = vmatmul.msk.f32.gmra.mxu1 %vm4782_vm6, %v4742_v26  ;;  %v9211_v40 = vld [vmem:[#allocation42_spill] sm:$0xff] }
 0x7fe   : > { %4344 = vst.msk [vmem:[#allocation5 + $0xc8] sm:$0xff] %vm4318_vm3, %v4273_v3  ;;  %v2997_v47 = vmul.f32 %v8435_v13, %v9211_v40  ;;  %v9227_v40 = vld [vmem:[#allocation24_spill] sm:$0xff] }
 0x7ff   : > { %4537 = vst.msk [vmem:[#allocation5 + $0xc8] sm:$0xff] %vm4511_vm4, %v4466_v61  ;;  %v9201_v61 = vld [vmem:[#allocation10_spill] sm:$0xff] }
 0x800   : > { %4325 = vst.msk [vmem:[#allocation5 + $0x30] sm:$0xff] %vm4318_vm3, %v4235_v12  ;;  %v791_v14 = vmul.f32 %v8442_v42, %v9201_v61  ;;  %v792_v12 = vmul.f32 %v8442_v42, %v9204_v28  ;;  %v9219_v61 = vld [vmem:[#allocation23_spill] sm:$0xff]  ;;  %v9221_v28 = vld [vmem:[#allocation20_spill] sm:$0xff] }
 0x803   : > { %v4083_v51 = vpop.permute.xlu2 %4082  ;;  %v4659_v5 = vpop.permute.xlu1 %4658 }
 0x804   : > { %5262 = vxpose.xlu0.b32.start [1/16] (narrow) %v2991_v8, 8  ;;  %v3888_v60 = vpop.permute.xlu0 %3887  ;;  %4730 = vst.msk [vmem:[#allocation5 + $0xc8] sm:$0xff] %vm4704_vm5, %v4659_v5 }
 0x805   : > { %3958 = vst.msk [vmem:[#allocation5 + $0xd0] sm:$0xff] %vm3931_vm1, %v3888_v60  ;;  %v8507_v60 = vpop.f32.mrf.mxu2 }
 0x807   : > { %5198 = vxpose.xlu2.b32.start [1/16] (narrow) %v789_v32, 16  ;;  %v2998_v32 = vmul.f32 %v8435_v13, %v9214_v6 }
 0x80b   : > { %v4663_v39 = vpop.permute.xlu2 %4662  ;;  %v4428_v27 = vpop.permute.xlu1 %4427  ;;  %v4762_v63 = vld [vmem:[#allocation5 + $0xc8] sm:$0xff] }
 0x80c   : > { %5263 = vxpose.xlu0.b32.cont [2/16] (narrow) %v2992_v41, 8  ;;  %v4275_v48 = vpop.permute.xlu0 %4274  ;;  %4518 = vst.msk [vmem:[#allocation5 + $0x30] sm:$0xff] %vm4511_vm4, %v4428_v27  ;;  %5531 = vmatmul.msk.f32.gmra.mxu2 %vm4782_vm6, %v4762_v63  ;;  %v9215_v41 = vld [vmem:[#allocation15_spill] sm:$0xff]  ;;  %v9216_v63 = vld [vmem:[#allocation21_spill] sm:$0xff] }
 0x80d   : > { %4711 = vst.msk [vmem:[#allocation5 + $0x30] sm:$0xff] %vm4704_vm5, %v4621_v7  ;;  %v9206_v7 = vld [vmem:[#allocation8_spill] sm:$0xff]  ;;  %v796_v36 = vmul.f32 %v8442_v42, %v9216_v63 }
 0x80e   : > { %v806_v3 = vmul.f32 %v8442_v42, %v9206_v7 }
 0x80f   : > { %5199 = vxpose.xlu2.b32.cont [2/16] (narrow) %v790_v21, 16  ;;  %v8518_v21 = vpop.f32.mrf.mxu2 }
 0x813   : > { %v4279_v22 = vpop.permute.xlu2 %4278  ;;  %v4081_v59 = vpop.permute.xlu1 %4080 }
 0x814   : > { %5264 = vxpose.xlu0.b32.cont [3/16] (narrow) %v2993_v11, 8  ;;  %v3890_v52 = vpop.permute.xlu0 %3889  ;;  %4151 = vst.msk [vmem:[#allocation5 + $0xd0] sm:$0xff] %vm4124_vm2, %v4081_v59  ;;  %v4743_v38 = vld [vmem:[#allocation5 + $0x30] sm:$0xff] }
 0x815   : > { %4345 = vst.msk [vmem:[#allocation5 + $0xd0] sm:$0xff] %vm4318_vm3, %v4275_v48  ;;  %5512 = vmatmul.msk.f32.gmra.mxu1 %vm4782_vm6, %v4743_v38  ;;  %v9217_v11 = vld [vmem:[#allocation44_spill] sm:$0xff] }
 0x816   : > { %4538 = vst.msk [vmem:[#allocation5 + $0xd0] sm:$0xff] %vm4511_vm4, %v4468_v9  ;;  %v794_v9 = vmul.f32 %v8442_v42, %v9210_v58 }
 0x817   : > { %5200 = vxpose.xlu2.b32.cont [3/16] (narrow) %v791_v14, 16  ;;  %3959 = vst.msk [vmem:[#allocation5 + $0xd8] sm:$0xff] %vm3931_vm1, %v3890_v52  ;;  %v9218_v52 = vld [vmem:[#allocation18_spill] sm:$0xff]  ;;  %v797_v14 = vmul.f32 %v8442_v42, %v9219_v61  ;;  %v8530_v4 = vpop.f32.mrf.mxu2 }
 0x818   : > { %4152 = vst.msk [vmem:[#allocation5 + $0xd8] sm:$0xff] %vm4124_vm2, %v4083_v51  ;;  %v9213_v51 = vld [vmem:[#allocation19_spill] sm:$0xff]  ;;  %v810_v38 = vmul.f32 %v8442_v42, %v9218_v52 }
 0x819   : > { %v795_v5 = vmul.f32 %v8442_v42, %v9213_v51 }
 0x81b   : > { %v3894_v25 = vpop.permute.xlu2 %3893  ;;  %v4661_v19 = vpop.permute.xlu1 %4660 }
 0x81c   : > { %5265 = vxpose.xlu0.b32.cont [4/16] (narrow) %v2994_v18, 8  ;;  %3961 = vst.msk [vmem:[#allocation5 + $0xe8] sm:$0xff] %vm3931_vm1, %v3894_v25  ;;  %v4470_v55 = vpop.permute.xlu0 %4469  ;;  %v9220_v25 = vld [vmem:[#allocation46_spill] sm:$0xff] }
 0x81d   : > { %4731 = vst.msk [vmem:[#allocation5 + $0xd0] sm:$0xff] %vm4704_vm5, %v4661_v19  ;;  %v3000_v19 = vmul.f32 %v8435_v13, %v9220_v25  ;;  %v9237_v25 = vld [vmem:[#allocation36_spill] sm:$0xff] }
 0x81e   : > { %5230 = vxpose.xlu1.b32.start [1/16] (narrow) %v805_v53, 16 }
 0x81f   : > { %5201 = vxpose.xlu2.b32.cont [4/16] (narrow) %v792_v12, 16  ;;  %v811_v12 = vmul.f32 %v8442_v42, %v9221_v28 }
 0x823   : > { %v4277_v29 = vpop.permute.xlu1 %4276  ;;  %v4474_v8 = vpop.permute.xlu2 %4473 }
 0x824   : > { %5266 = vxpose.xlu0.b32.cont [5/16] (narrow) %v2995_v30, 8  ;;  %v4085_v62 = vpop.permute.xlu0 %4084  ;;  %v4763_v24 = vld [vmem:[#allocation5 + $0xd0] sm:$0xff]  ;;  %4346 = vst.msk [vmem:[#allocation5 + $0xd8] sm:$0xff] %vm4318_vm3, %v4277_v29  ;;  %v798_v30 = vmul.f32 %v8442_v42, %v9222_v50  ;;  %v8541_v29 = vpop.f32.mrf.mxu2 }
 0x825   : > { %5532 = vmatmul.msk.f32.gmra.mxu2 %vm4782_vm6, %v4763_v24  ;;  %4539 = vst.msk [vmem:[#allocation5 + $0xd8] sm:$0xff] %vm4511_vm4, %v4470_v55 }
 0x826   : > { %4732 = vst.msk [vmem:[#allocation5 + $0xd8] sm:$0xff] %vm4704_vm5, %v4663_v39  ;;  %5231 = vxpose.xlu1.b32.cont [2/16] (narrow) %v806_v3, 16  ;;  %v809_v39 = vmul.f32 %v8442_v42, %v9215_v41 }
 0x827   : > { %5202 = vxpose.xlu2.b32.cont [5/16] (narrow) %v793_v57, 16  ;;  %v9224_v57 = vld [vmem:[#allocation22_spill] sm:$0xff] }
 0x828   : > { %v812_v15 = vmul.f32 %v8442_v42, %v9224_v57  ;;  %v9241_v57 = vld [vmem:[#allocation35_spill] sm:$0xff] }
 0x82b   : > { %v3892_v16 = vpop.permute.xlu1 %3891  ;;  %v4089_v0 = vpop.permute.xlu2 %4088 }
 0x82c   : > { %5267 = vxpose.xlu0.b32.cont [6/16] (narrow) %v2996_v49, 8  ;;  %v4665_v33 = vpop.permute.xlu0 %4664  ;;  %3960 = vst.msk [vmem:[#allocation5 + $0xe0] sm:$0xff] %vm3931_vm1, %v3892_v16  ;;  %v9225_v16 = vld [vmem:[#allocation27_spill] sm:$0xff]  ;;  %v8552_v46 = vpop.f32.mrf.mxu2 }
 0x82d   : > { %4153 = vst.msk [vmem:[#allocation5 + $0xe0] sm:$0xff] %vm4124_vm2, %v4085_v62  ;;  %v4764_v43 = vld [vmem:[#allocation5 + $0xd8] sm:$0xff]  ;;  %v9223_v62 = vld [vmem:[#allocation48_spill] sm:$0xff] }
 0x82e   : > { %4347 = vst.msk [vmem:[#allocation5 + $0xe0] sm:$0xff] %vm4318_vm3, %v4279_v22  ;;  %5232 = vxpose.xlu1.b32.cont [3/16] (narrow) %v807_v54, 16  ;;  %5533 = vmatmul.msk.f32.gmra.mxu2 %vm4782_vm6, %v4764_v43  ;;  %v2999_v22 = vmul.f32 %v8435_v13, %v9217_v11  ;;  %v3001_v24 = vmul.f32 %v8435_v13, %v9223_v62  ;;  %v9226_v54 = vld [vmem:[#allocation51_spill] sm:$0xff]  ;;  %v9234_v11 = vld [vmem:[#allocation34_spill] sm:$0xff] }
 0x82f   : > { %5203 = vxpose.xlu2.b32.cont [6/16] (narrow) %v794_v9, 16  ;;  %v3002_v43 = vmul.f32 %v8435_v13, %v9226_v54 }
 0x833   : > { %v4472_v23 = vpop.permute.xlu1 %4471  ;;  %v4669_v53 = vpop.permute.xlu2 %4668 }
 0x834   : > { %5268 = vxpose.xlu0.b32.cont [7/16] (narrow) %v2997_v47, 8  ;;  %v4281_v26 = vpop.permute.xlu0 %4280  ;;  %4540 = vst.msk [vmem:[#allocation5 + $0xe0] sm:$0xff] %vm4511_vm4, %v4472_v23  ;;  %v813_v47 = vmul.f32 %v8442_v42, %v9227_v40  ;;  %v9228_v23 = vld [vmem:[#allocation29_spill] sm:$0xff]  ;;  %v8564_v1 = vpop.f32.mrf.mxu2 }
 0x835   : > { %4733 = vst.msk [vmem:[#allocation5 + $0xe0] sm:$0xff] %vm4704_vm5, %v4665_v33  ;;  %v799_v33 = vmul.f32 %v8442_v42, %v9225_v16 }
 0x836   : > { %5233 = vxpose.xlu1.b32.cont [4/16] (narrow) %v808_v10, 16  ;;  %v4896_v10 = vpop.f32.mrf.mxu1 }
 0x837   : > { %5204 = vxpose.xlu2.b32.cont [7/16] (narrow) %v795_v5, 16  ;;  %v9230_v5 = vld [vmem:[#allocation26_spill] sm:$0xff] }
 0x838   : > { %v814_v6 = vmul.f32 %v8442_v42, %v9230_v5  ;;  %v9243_v5 = vld [vmem:[#allocation38_spill] sm:$0xff] }
 0x83b   : > { %v4087_v31 = vpop.permute.xlu1 %4086  ;;  %v4285_v2 = vpop.permute.xlu2 %4284 }
 0x83c   : > { %5269 = vxpose.xlu0.b32.cont [8/16] (narrow) %v2998_v32, 8  ;;  %4154 = vst.msk [vmem:[#allocation5 + $0xe8] sm:$0xff] %vm4124_vm2, %v4087_v31  ;;  %v3896_v27 = vpop.permute.xlu0 %3895  ;;  %v4765_v48 = vld [vmem:[#allocation5 + $0xe0] sm:$0xff]  ;;  %v9231_v31 = vld [vmem:[#allocation31_spill] sm:$0xff] }
 0x83d   : > { %4348 = vst.msk [vmem:[#allocation5 + $0xe8] sm:$0xff] %vm4318_vm3, %v4281_v26  ;;  %5534 = vmatmul.msk.f32.gmra.mxu2 %vm4782_vm6, %v4765_v48  ;;  %v800_v26 = vmul.f32 %v8442_v42, %v9228_v23  ;;  %v801_v41 = vmul.f32 %v8442_v42, %v9231_v31  ;;  %v9232_v48 = vld [vmem:[#allocation56_spill] sm:$0xff] }
 0x83e   : > { %4541 = vst.msk [vmem:[#allocation5 + $0xe8] sm:$0xff] %vm4511_vm4, %v4474_v8  ;;  %5234 = vxpose.xlu1.b32.cont [5/16] (narrow) %v809_v39, 16  ;;  %v9229_v8 = vld [vmem:[#allocation54_spill] sm:$0xff]  ;;  %v8573_v39 = vpop.f32.mrf.mxu2  ;;  %v3004_v63 = vmul.f32 %v8435_v13, %v9232_v48 }
 0x83f   : > { %3962 = vst.msk [vmem:[#allocation5 + $0xf0] sm:$0xff] %vm3931_vm1, %v3896_v27  ;;  %5205 = vxpose.xlu2.b32.cont [8/16] (narrow) %v796_v36, 16  ;;  %v3003_v51 = vmul.f32 %v8435_v13, %v9229_v8  ;;  %v4899_v27 = vpop.f32.mrf.mxu1  ;;  %v9233_v36 = vld [vmem:[#allocation28_spill] sm:$0xff] }
 0x840   : > { %4155 = vst.msk [vmem:[#allocation5 + $0xf0] sm:$0xff] %vm4124_vm2, %v4089_v0  ;;  %v815_v0 = vmul.f32 %v8442_v42, %v9233_v36 }
 0x843   : > { %v4667_v59 = vpop.permute.xlu1 %4666 }
 0x844   : > { %5270 = vxpose.xlu0.b32.cont [9/16] (narrow) %v2999_v22, 8  ;;  %4734 = vst.msk [vmem:[#allocation5 + $0xe8] sm:$0xff] %vm4704_vm5, %v4667_v59  ;;  %v4476_v18 = vpop.permute.xlu0 %4475  ;;  %v802_v22 = vmul.f32 %v8442_v42, %v9234_v11 }
 0x846   : > { %5235 = vxpose.xlu1.b32.cont [6/16] (narrow) %v810_v38, 16  ;;  %v8581_v59 = vpop.f32.mrf.mxu2  ;;  %v9235_v38 = vld [vmem:[#allocation59_spill] sm:$0xff] }
 0x847   : > { %5206 = vxpose.xlu2.b32.cont [9/16] (narrow) %v797_v14, 16  ;;  %v4902_v52 = vpop.f32.mrf.mxu1  ;;  %v3005_v61 = vmul.f32 %v8435_v13, %v9235_v38  ;;  %v9236_v14 = vld [vmem:[#allocation30_spill] sm:$0xff] }
 0x84b   : > { %v4283_v55 = vpop.permute.xlu1 %4282  ;;  %v4766_v34 = vld [vmem:[#allocation5 + $0xe8] sm:$0xff] }
 0x84c   : > { %5271 = vxpose.xlu0.b32.cont [10/16] (narrow) %v3000_v19, 8  ;;  %4349 = vst.msk [vmem:[#allocation5 + $0xf0] sm:$0xff] %vm4318_vm3, %v4283_v55  ;;  %5535 = vmatmul.msk.f32.gmra.mxu2 %vm4782_vm6, %v4766_v34  ;;  %v4091_v7 = vpop.permute.xlu0 %4090  ;;  %v803_v19 = vmul.f32 %v8442_v42, %v9237_v25  ;;  %v9244_v25 = vld [vmem:[#allocation39_spill] sm:$0xff] }
 0x84d   : > { %4542 = vst.msk [vmem:[#allocation5 + $0xf0] sm:$0xff] %vm4511_vm4, %v4476_v18  ;;  %v816_v18 = vmul.f32 %v8442_v42, %v9236_v14 }
 0x84e   : > { %4735 = vst.msk [vmem:[#allocation5 + $0xf0] sm:$0xff] %vm4704_vm5, %v4669_v53  ;;  %5236 = vxpose.xlu1.b32.cont [7/16] (narrow) %v811_v12, 16  ;;  %v8589_v55 = vpop.f32.mrf.mxu2  ;;  %v9238_v53 = vld [vmem:[#allocation62_spill] sm:$0xff]  ;;  %v9239_v12 = vld [vmem:[#allocation32_spill] sm:$0xff] }
 0x84f   : > { %5207 = vxpose.xlu2.b32.cont [10/16] (narrow) %v798_v30, 16  ;;  %v4905_v34 = vpop.f32.mrf.mxu1  ;;  %v3006_v28 = vmul.f32 %v8435_v13, %v9238_v53  ;;  %v817_v50 = vmul.f32 %v8442_v42, %v9239_v12  ;;  %v9240_v30 = vld [vmem:[#allocation37_spill] sm:$0xff] }
 0x850   : > { %v804_v62 = vmul.f32 %v8442_v42, %v9240_v30 }
 0x853   : > { %v3898_v3 = vpop.permute.xlu1 %3897 }
 0x854   : > { %5272 = vxpose.xlu0.b32.cont [11/16] (narrow) %v3001_v24, 8  ;;  %3963 = vst.msk [vmem:[#allocation5 + $0xf8] sm:$0xff] %vm3931_vm1, %v3898_v3  ;;  %v4671_v58 = vpop.permute.xlu0 %4670  ;;  %v8602_v3 = vld [vmem:[%s9018_s6] ss:$0 sm:$0xff] }
 0x855   : > { %4156 = vst.msk [vmem:[#allocation5 + $0xf8] sm:$0xff] %vm4124_vm2, %v4091_v7  ;;  %v4767_v49 = vld [vmem:[#allocation5 + $0xf0] sm:$0xff]  ;;  %v8613_v16 = vadd.f32 %v8602_v3, %v4902_v52  ;;  %v8674_v53 = vadd.f32 %v8602_v3, %v8507_v60 }
 0x856   : > { %5237 = vxpose.xlu1.b32.cont [8/16] (narrow) %v812_v15, 16  ;;  %5536 = vmatmul.msk.f32.gmra.mxu2 %vm4782_vm6, %v4767_v49  ;;  %4350 = vst.msk [vmem:[#allocation5 + $0xf8] sm:$0xff] %vm4318_vm3, %v4285_v2  ;;  %v8597_v24 = vpop.f32.mrf.mxu2  ;;  %v8605_v2 = vadd.f32 %v8602_v3, %v4899_v27  ;;  %v818_v15 = vmul.f32 %v8442_v42, %v9241_v57 }
 0x857   : > { %5208 = vxpose.xlu2.b32.cont [11/16] (narrow) %v799_v33, 16  ;;  %v8610_v49 = vadd.f32 %v8602_v3, %v4896_v10  ;;  %v9242_v33 = vld [vmem:[#allocation66_spill] sm:$0xff]  ;;  %v4994_v23 = vmax.f32 %v8613_v16, 0.0  ;;  %v3008_v27 = vmul.f32 %v8435_v13, %v7526_v45 }
 0x858   : > { %v3007_v54 = vmul.f32 %v8435_v13, %v9242_v33 }
 0x859   : > { %v5027_v31 = vsel %vm2846_vm11, %v4994_v23, 0.0 }
 0x85b   : > { %v4478_v9 = vpop.permute.xlu1 %4477 }
 0x85c   : > { %5273 = vxpose.xlu0.b32.cont [12/16] (narrow) %v3002_v43, 8  ;;  %4543 = vst.msk [vmem:[#allocation5 + $0xf8] sm:$0xff] %vm4511_vm4, %v4478_v9  ;;  %v8621_v9 = vadd.f32 %v8602_v3, %v4905_v34 }
 0x85d   : > { %4736 = vst.msk [vmem:[#allocation5 + $0xf8] sm:$0xff] %vm4704_vm5, %v4671_v58  ;;  %v4993_v58 = vmax.f32 %v8605_v2, 0.0 }
 0x85e   : > { %5238 = vxpose.xlu1.b32.cont [9/16] (narrow) %v813_v47, 16  ;;  %v8617_v43 = vpop.f32.mrf.mxu2  ;;  %v4992_v47 = vmax.f32 %v8610_v49, 0.0  ;;  %v4995_v8 = vmax.f32 %v8621_v9, 0.0 }
 0x85f   : > { %5209 = vxpose.xlu2.b32.cont [12/16] (narrow) %v800_v26, 16  ;;  %v5025_v10 = vsel %vm2846_vm11, %v4993_v58, 0.0 }
 0x860   : > { %v5029_v36 = vsel %vm2846_vm11, %v4995_v8, 0.0 }
 0x862   : > { %v4908_v7 = vpop.f32.mrf.mxu1 }
 0x863   : > { %v8626_v26 = vadd.f32 %v8602_v3, %v4908_v7  ;;  %v9105_v7 = vmax.f32 %v8674_v53, 0.0 }
 0x864   : > { %5274 = vxpose.xlu0.b32.cont [13/16] (narrow) %v3003_v51, 8  ;;  %v4768_v32 = vld [vmem:[#allocation5 + $0xf8] sm:$0xff] }
 0x865   : > { %5537 = vmatmul.msk.f32.gmra.mxu2 %vm4782_vm6, %v4768_v32  ;;  %v5024_v32 = vsel %vm2846_vm11, %v4992_v47, 0.0 }
 0x866   : > { %5239 = vxpose.xlu1.b32.cont [10/16] (narrow) %v814_v6, 16  ;;  %v819_v6 = vmul.f32 %v8442_v42, %v9243_v5  ;;  %v8646_v48 = vpop.f32.mrf.mxu2 }
 0x867   : > { %5210 = vxpose.xlu2.b32.cont [13/16] (narrow) %v801_v41, 16  ;;  %v4996_v41 = vmax.f32 %v8626_v26, 0.0 }
 0x869   : > { %v5031_v45 = vsel %vm2846_vm11, %v4996_v41, 0.0 }
 0x86c   : > { %5275 = vxpose.xlu0.b32.cont [14/16] (narrow) %v3004_v63, 8  ;;  %v5026_v63 = vadd.f32 %v5025_v10, %v5024_v32  ;;  %v8702_v10 = vadd.f32 %v8602_v3, %v8530_v4 }
 0x86e   : > { %5240 = vxpose.xlu1.b32.cont [11/16] (narrow) %v815_v0, 16  ;;  %v5028_v11 = vadd.f32 %v5027_v31, %v5026_v63  ;;  %v8679_v12 = vpop.f32.mrf.mxu2  ;;  %v9101_v31 = vmax.f32 %v8702_v10, 0.0 }
 0x86f   : > { %5211 = vxpose.xlu2.b32.cont [14/16] (narrow) %v802_v22, 16  ;;  %v8654_v22 = vadd.f32 %v8602_v3, %v8477_v44  ;;  %v820_v44 = vmul.f32 %v8442_v42, %v9244_v25 }
 0x870   : > { %v5030_v52 = vadd.f32 %v5029_v36, %v5028_v11  ;;  %v5045_v4 = vsel %vm2846_vm11, %v9101_v31, 0.0  ;;  %v8720_v36 = vadd.f32 %v8602_v3, %v8552_v46  ;;  %v3011_v11 = vmul.f32 %v8435_v13, %v7618_v56 }
 0x871   : > { %v9113_v34 = vmax.f32 %v8654_v22, 0.0  ;;  %v8733_v46 = vadd.f32 %v8602_v3, %v8564_v1 }
 0x873   : > { %v5037_v60 = vsel %vm2846_vm11, %v9113_v34, 0.0  ;;  %v9255_v34 = vld [vmem:[#allocation63_spill] sm:$0xff] }
 0x874   : > { %5276 = vxpose.xlu0.b32.cont [15/16] (narrow) %v3005_v61, 8  ;;  %v8661_v61 = vadd.f32 %v8602_v3, %v8491_v37 }
 0x876   : > { %5241 = vxpose.xlu1.b32.cont [12/16] (narrow) %v816_v18, 16  ;;  %v9109_v30 = vmax.f32 %v8661_v61, 0.0  ;;  %v4962_v5 = vpop.f32.mrf.mxu2 }
 0x877   : > { %5212 = vxpose.xlu2.b32.cont [15/16] (narrow) %v803_v19, 16  ;;  %v5032_v19 = vadd.f32 %v5031_v45, %v5030_v52 }
 0x87a   : > { %v4911_v40 = vpop.f32.mrf.mxu1 }
 0x87b   : > { %v8633_v51 = vadd.f32 %v8602_v3, %v4911_v40 }
 0x87c   : > { %5277 = vxpose.xlu0.b32.end [16/16] (narrow) %v3006_v28, 8  ;;  %v3009_v28 = vmul.f32 %v8435_v13, %v7550_v17  ;;  %v8691_v17 = vadd.f32 %v8602_v3, %v8518_v21  ;;  %v3010_v21 = vmul.f32 %v8435_v13, %v7584_v35 }
 0x87d   : > { %v4997_v0 = vmax.f32 %v8633_v51, 0.0  ;;  %v9256_v51 = vmax.f32 %v8654_v22, 0.0  ;;  %v9260_v22 = vmax.f32 %v8674_v53, 0.0  ;;  %v9264_v53 = vmax.f32 %v8702_v10, 0.0 }
 0x87e   : > { %5242 = vxpose.xlu1.b32.cont [13/16] (narrow) %v817_v50, 16  ;;  %v9102_v40 = vmax.f32 %v8691_v17, 0.0  ;;  %v4965_v45 = vpop.f32.mrf.mxu2 }
 0x87f   : > { %5213 = vxpose.xlu2.b32.end [16/16] (narrow) %v804_v62, 16  ;;  %v5033_v14 = vsel %vm2846_vm11, %v4997_v0, 0.0 }
 0x880   : > { %v5034_v50 = vadd.f32 %v5033_v14, %v5032_v19  ;;  %v5043_v32 = vsel %vm2846_vm11, %v9102_v40, 0.0  ;;  %v9099_v14 = vmax.f32 %v8720_v36, 0.0  ;;  %v8741_v19 = vadd.f32 %v8602_v3, %v8573_v39 }
 0x882   : > { %v5049_v56 = vsel %vm2846_vm11, %v9099_v14, 0.0 }
 0x886   : > { %5243 = vxpose.xlu1.b32.cont [14/16] (narrow) %v818_v15, 16  ;;  %v5039_v15 = vsel %vm2846_vm11, %v9109_v30, 0.0 }
 0x887   : > { %5294 = vxpose.xlu2.b32.start [1/16] (narrow) %v3007_v54, 8  ;;  %v5041_v54 = vsel %vm2846_vm11, %v9105_v7, 0.0 }
 0x88e   : > { %5244 = vxpose.xlu1.b32.cont [15/16] (narrow) %v819_v6, 16 }
 0x88f   : > { %5295 = vxpose.xlu2.b32.cont [2/16] (narrow) %v3008_v27, 8  ;;  %v8712_v27 = vadd.f32 %v8602_v3, %v8541_v29  ;;  %v5094_v29 = vld [vmem:[%s9023_s11] sm:$0xff] }
 0x890   : > { %5113 = vmatpush.msrb.mxu1 %v5094_v29  ;;  %v9246_v29 = vld [vmem:[#allocation73_spill] sm:$0xff] }
 0x891   : > { %v9100_v35 = vmax.f32 %v8712_v27, 0.0 }
 0x892   : > { %v4914_v38 = vpop.f32.mrf.mxu1 }
 0x893   : > { %v8667_v18 = vadd.f32 %v8602_v3, %v4914_v38  ;;  %v5047_v38 = vsel %vm2846_vm11, %v9100_v35, 0.0  ;;  %v9250_v35 = vld [vmem:[#allocation52_spill] sm:$0xff] }
 0x895   : > { %v4998_v37 = vmax.f32 %v8667_v18, 0.0  ;;  %v9258_v18 = vmax.f32 %v8661_v61, 0.0  ;;  %v9262_v61 = vmax.f32 %v8691_v17, 0.0 }
 0x896   : > { %5245 = vxpose.xlu1.b32.end [16/16] (narrow) %v820_v44, 16  ;;  %v9098_v44 = vmax.f32 %v8733_v46, 0.0 }
 0x897   : > { %v5035_v42 = vsel %vm2846_vm11, %v4998_v37, 0.0  ;;  %5296 = vxpose.xlu2.b32.cont [3/16] (narrow) %v3009_v28, 8  ;;  %v3012_v28 = vmul.f32 %v8435_v13, %v7650_v20 }
 0x898   : > { %v5036_v62 = vadd.f32 %v5035_v42, %v5034_v50  ;;  %v4968_v50 = vpop.f32.mrf.mxu2  ;;  %v5051_v1 = vsel %vm2846_vm11, %v9098_v44, 0.0 }
 0x89a   : > { %v5038_v57 = vadd.f32 %v5037_v60, %v5036_v62  ;;  %v9097_v62 = vmax.f32 %v8741_v19, 0.0  ;;  %v8751_v60 = vadd.f32 %v8602_v3, %v8581_v59 }
 0x89c   : > { %v5040_v33 = vadd.f32 %v5039_v15, %v5038_v57  ;;  %v5053_v39 = vsel %vm2846_vm11, %v9097_v62, 0.0  ;;  %v5008_v20 = vmax.f32 %v8751_v60, 0.0  ;;  %v8759_v15 = vadd.f32 %v8602_v3, %v8589_v55 }
 0x89e   : > { %v5042_v6 = vadd.f32 %v5041_v54, %v5040_v33  ;;  %v9245_v33 = vld [vmem:[#allocation72_spill] sm:$0xff]  ;;  %v5055_v59 = vsel %vm2846_vm11, %v5008_v20, 0.0 }
 0x89f   : > { %5297 = vxpose.xlu2.b32.cont [4/16] (narrow) %v3010_v21, 8  ;;  %v3013_v54 = vmul.f32 %v8435_v13, %v9245_v33  ;;  %v9247_v33 = vld [vmem:[#allocation45_spill] sm:$0xff] }
 0x8a0   : > { %v5044_v63 = vadd.f32 %v5043_v32, %v5042_v6  ;;  %v4971_v21 = vpop.f32.mrf.mxu2  ;;  %v5009_v32 = vmax.f32 %v8759_v15, 0.0  ;;  %v5214_v10 = vpop.trf.xlu2 }
 0x8a1   : > { %5390 = vst [vmem:[%s8975_s24] sm:$0xff] %v5214_v10 }
 0x8a2   : > { %v5046_v52 = vadd.f32 %v5045_v4, %v5044_v63  ;;  %v8769_v63 = vadd.f32 %v8602_v3, %v8597_v24  ;;  %v5057_v55 = vsel %vm2846_vm11, %v5009_v32, 0.0 }
 0x8a4   : > { %v5048_v25 = vadd.f32 %v5047_v38, %v5046_v52  ;;  %v8777_v52 = vadd.f32 %v8602_v3, %v8617_v43  ;;  %v3014_v38 = vmul.f32 %v8435_v13, %v9246_v29 }
 0x8a6   : > { %v5050_v42 = vadd.f32 %v5049_v56, %v5048_v25 }
 0x8a7   : > { %5298 = vxpose.xlu2.b32.cont [5/16] (narrow) %v3011_v11, 8  ;;  %v5010_v11 = vmax.f32 %v8769_v63, 0.0 }
 0x8a8   : > { %v5052_v57 = vadd.f32 %v5051_v1, %v5050_v42  ;;  %v4974_v25 = vpop.f32.mrf.mxu2  ;;  %v8787_v42 = vadd.f32 %v8602_v3, %v8646_v48 }
 0x8a9   : > { %v5059_v24 = vsel %vm2846_vm11, %v5010_v11, 0.0 }
 0x8aa   : > { %v5054_v6 = vadd.f32 %v5053_v39, %v5052_v57  ;;  %v5012_v57 = vmax.f32 %v8787_v42, 0.0  ;;  %v8795_v39 = vadd.f32 %v8602_v3, %v8679_v12 }
 0x8ac   : > { %v5056_v4 = vadd.f32 %v5055_v59, %v5054_v6  ;;  %v5063_v48 = vsel %vm2846_vm11, %v5012_v57, 0.0 }
 0x8ae   : > { %v5058_v56 = vadd.f32 %v5057_v55, %v5056_v4  ;;  %v5013_v4 = vmax.f32 %v8795_v39, 0.0  ;;  %v8804_v55 = vadd.f32 %v8602_v3, %v4962_v5 }
 0x8af   : > { %5299 = vxpose.xlu2.b32.cont [6/16] (narrow) %v3012_v28, 8  ;;  %v5011_v28 = vmax.f32 %v8777_v52, 0.0 }
 0x8b0   : > { %v5060_v1 = vadd.f32 %v5059_v24, %v5058_v56  ;;  %v5065_v12 = vsel %vm2846_vm11, %v5013_v4, 0.0  ;;  %v8811_v56 = vadd.f32 %v8602_v3, %v4965_v45  ;;  %v9248_v24 = vld [vmem:[#allocation47_spill] sm:$0xff] }
 0x8b1   : > { %v5061_v43 = vsel %vm2846_vm11, %v5011_v28, 0.0  ;;  %v4977_v59 = vpop.f32.mrf.mxu2 }
 0x8b2   : > { %v5062_v6 = vadd.f32 %v5061_v43, %v5060_v1  ;;  %v3016_v1 = vmul.f32 %v8435_v13, %v9248_v24  ;;  %v9257_v60 = vmax.f32 %v8811_v56, 0.0 }
 0x8b4   : > { %v5064_v29 = vadd.f32 %v5063_v48, %v5062_v6  ;;  %v8820_v6 = vadd.f32 %v8602_v3, %v4968_v50 }
 0x8b6   : > { %v5066_v43 = vadd.f32 %v5065_v12, %v5064_v29  ;;  %v9107_v62 = vmax.f32 %v8820_v6, 0.0  ;;  %v8827_v29 = vadd.f32 %v8602_v3, %v4971_v21  ;;  %v9249_v12 = vld [vmem:[#allocation49_spill] sm:$0xff]  ;;  %v3018_v21 = vmul.f32 %v8435_v13, %v9250_v35 }
 0x8b7   : > { %5300 = vxpose.xlu2.b32.cont [7/16] (narrow) %v3013_v54, 8  ;;  %v3015_v54 = vmul.f32 %v8435_v13, %v9247_v33  ;;  %v3017_v24 = vmul.f32 %v8435_v13, %v9249_v12  ;;  %v5119_v35 = vld [vmem:[%s9024_s12] sm:$0x3]  ;;  %v9259_v15 = vmax.f32 %v8820_v6, 0.0 }
 0x8b8   : > { %v5071_v50 = vsel %vm2846_vm11, %v9107_v62, 0.0  ;;  %5539 = vmatpush.msk.msra.mxu1 %vm2947_vm14, %v5119_v35 }
 0x8bf   : > { %5301 = vxpose.xlu2.b32.cont [8/16] (narrow) %v3014_v38, 8  ;;  %v5014_v38 = vmax.f32 %v8804_v55, 0.0 }
 0x8c0   : > { %v4980_v33 = vpop.f32.mrf.mxu2 }
 0x8c1   : > { %v5067_v5 = vsel %vm2846_vm11, %v5014_v38, 0.0 }
 0x8c2   : > { %v5068_v48 = vadd.f32 %v5067_v5, %v5066_v43  ;;  %v9104_v43 = vmax.f32 %v8827_v29, 0.0  ;;  %v8836_v5 = vadd.f32 %v8602_v3, %v4974_v25  ;;  %v5246_v17 = vpop.trf.xlu1 }
 0x8c3   : > { %5391 = vst [vmem:[%s8975_s24 + $0x8] sm:$0xff] %v5246_v17 }
 0x8c4   : > { %v5073_v12 = vsel %vm2846_vm11, %v9104_v43, 0.0  ;;  %v9263_v42 = vmax.f32 %v8836_v5, 0.0 }
 0x8c7   : > { %5302 = vxpose.xlu2.b32.cont [9/16] (narrow) %v3015_v54, 8  ;;  %v9110_v54 = vmax.f32 %v8811_v56, 0.0  ;;  %v9266_v56 = vmax.f32 %v8712_v27, 0.0 }
 0x8c9   : > { %v5069_v45 = vsel %vm2846_vm11, %v9110_v54, 0.0 }
 0x8cf   : > { %5303 = vxpose.xlu2.b32.cont [10/16] (narrow) %v3016_v1, 8  ;;  %v5070_v1 = vadd.f32 %v5069_v45, %v5068_v48  ;;  %v4983_v44 = vpop.f32.mrf.mxu2  ;;  %v9103_v48 = vmax.f32 %v8836_v5, 0.0  ;;  %v8845_v45 = vadd.f32 %v8602_v3, %v4977_v59 }
 0x8d0   : > { %v8851_v25 = vadd.f32 %v8602_v3, %v4983_v44 }
 0x8d1   : > { %v5072_v14 = vadd.f32 %v5071_v50, %v5070_v1  ;;  %v5075_v59 = vsel %vm2846_vm11, %v9103_v48, 0.0  ;;  %v9106_v1 = vmax.f32 %v8845_v45, 0.0  ;;  %v9251_v48 = vld [vmem:[#allocation55_spill] sm:$0xff] }
 0x8d2   : > { %v9111_v50 = vmax.f32 %v8851_v25, 0.0  ;;  %v3019_v43 = vmul.f32 %v8435_v13, %v9251_v48  ;;  %v9269_v27 = vmax.f32 %v8851_v25, 0.0 }
 0x8d3   : > { %v5074_v31 = vadd.f32 %v5073_v12, %v5072_v14 }
 0x8d5   : > { %v5076_v44 = vadd.f32 %v5075_v59, %v5074_v31 }
 0x8d7   : > { %5304 = vxpose.xlu2.b32.cont [11/16] (narrow) %v3017_v24, 8  ;;  %v8848_v24 = vadd.f32 %v8602_v3, %v4980_v33 }
 0x8d9   : > { %v4986_v40 = vpop.f32.mrf.mxu2  ;;  %v9108_v33 = vmax.f32 %v8848_v24, 0.0 }
 0x8da   : > { %v8863_v14 = vadd.f32 %v8602_v3, %v4986_v40  ;;  %v5081_v40 = vsel %vm2846_vm11, %v9111_v50, 0.0 }
 0x8db   : > { %v5079_v12 = vsel %vm2846_vm11, %v9108_v33, 0.0 }
 0x8dc   : > { %v9112_v35 = vmax.f32 %v8863_v14, 0.0 }
 0x8df   : > { %5305 = vxpose.xlu2.b32.cont [12/16] (narrow) %v3018_v21, 8  ;;  %v5077_v21 = vsel %vm2846_vm11, %v9106_v1, 0.0  ;;  %v5083_v1 = vsel %vm2846_vm11, %v9112_v35, 0.0  ;;  %v9253_v35 = vld [vmem:[#allocation60_spill] sm:$0xff] }
 0x8e0   : > { %v5078_v7 = vadd.f32 %v5077_v21, %v5076_v44  ;;  %v9252_v44 = vld [vmem:[#allocation57_spill] sm:$0xff] }
 0x8e2   : > { %v5080_v31 = vadd.f32 %v5079_v12, %v5078_v7 }
 0x8e4   : > { %v5082_v33 = vadd.f32 %v5081_v40, %v5080_v31 }
 0x8e6   : > { %v5084_v54 = vadd.f32 %v5083_v1, %v5082_v33  ;;  %v9254_v1 = vld [vmem:[#allocation40_spill] sm:$0xff] }
 0x8e7   : > { %5306 = vxpose.xlu2.b32.cont [13/16] (narrow) %v3019_v43, 8  ;;  %v3020_v43 = vmul.f32 %v8435_v13, %v9252_v44 }
 0x8e8   : > { %v4989_v59 = vpop.f32.mrf.mxu2 }
 0x8e9   : > { %v8882_v62 = vadd.f32 %v8602_v3, %v4989_v59  ;;  %v3021_v3 = vmul.f32 %v8435_v13, %v9253_v35 }
 0x8eb   : > { %v9114_v30 = vmax.f32 %v8882_v62, 0.0 }
 0x8ed   : > { %v5085_v48 = vsel %vm2846_vm11, %v9114_v30, 0.0  ;;  %v3022_v30 = vmul.f32 %v8435_v13, %v9255_v34 }
 0x8ee   : > { %v5086_v7 = vadd.f32 %v5085_v48, %v5084_v54 }
 0x8ef   : > { %5307 = vxpose.xlu2.b32.cont [14/16] (narrow) %v3020_v43, 8 }
 0x8f0   : > { %v5087_v21 = vrot.slane %v5086_v7, 4 }
 0x8f2   : > { %v5088_v12 = vadd.f32 %v5087_v21, %v5086_v7 }
 0x8f4   : > { %v5089_v50 = vrot.slane %v5088_v12, 2 }
 0x8f6   : > { %v5090_v59 = vadd.f32 %v5089_v50, %v5088_v12 }
 0x8f7   : > { %5308 = vxpose.xlu2.b32.cont [15/16] (narrow) %v3021_v3, 8 }
 0x8f8   : > { %v5091_v40 = vrot.slane %v5090_v59, 1 }
 0x8fa   : > { %v5092_v31 = vadd.f32 %v5091_v40, %v5090_v59 }
 0x8fc   : > { %v5093_v33 = vmul.f32 %v5092_v31, %v9254_v1 }
 0x8fe   : > { %5538 = vmatmul.msk.f32.vlgmr.msrb.gmra.mxu1 %vm2846_vm11, %v5093_v33 }
 0x8ff   : > { %5309 = vxpose.xlu2.b32.end [16/16] (narrow) %v3022_v30, 8 }
 0x97b   : > { %v5115_v54 = vpop.f32.mrf.mxu1 }
 0x97c   : > { %v5118_v48 = vmax.f32 %v5115_v54, 0.0 }
 0x97e   : > { %5540 = vmatmul.msk.f32.vlgmr.msra.gmra.mxu1 %vm2943_vm15, %v5118_v48 }
 0x9fb   : > { %v5143_v44 = vpop.f32.mrf.mxu1 }
 0x9fc   : > { %v5146_v43 = vsub.f32 0.0, %v5143_v44 }
 0x9fe   : > { %v5147_v7 = vmul.f32 1.442695, %v5146_v43 }
 0xa00   : > { %5606 = vpow2.f32 %v5147_v7  ;;  %v5215_v7 = vpop.trf.xlu2 }
 0xa01   : > { %5392 = vst [vmem:[%s8975_s24 + $0x10] sm:$0xff] %v5215_v7 }
 0xa06   : > { %v5607_v50 = vpop.eup %5606 }
 0xa07   : > { %v5149_v35 = vadd.f32 1.0, %v5607_v50  ;;  %v9268_v50 = vmax.f32 %v8720_v36, 0.0 }
 0xa09   : > { %5608 = vrcp.f32 %v5149_v35  ;;  %v5161_v59 = vand.u32 2147483648, %v5149_v35  ;;  %v5159_v13 = vand.u32 2147483647, %v5149_v35  ;;  %vm5155_vm11 = vweird.f32 %v5149_v35 }
 0xa0b   : > { %v5162_v30 = vor.u32 1.1754944e-38, %v5161_v59  ;;  %vm5160_vm15 = vcmp.eq.f32.partialorder %v5159_v13, 8.507059e+37  ;;  %v9271_v59 = vmax.f32 %v8863_v14, 0.0  ;;  %v9273_v13 = vmax.f32 %v8882_v62, 0.0 }
 0xa0f   : > { %v5609_v21 = vpop.eup %5608 }
 0xa10   : > { %v5151_v12 = vmul.f32 %v5609_v21, %v5149_v35  ;;  %vm5156_vm14 = vweird.f32 %v5609_v21 }
 0xa11   : > { %vm5157_vm1 = vmor %vm5155_vm11, %vm5156_vm14 }
 0xa12   : > { %v5152_v3 = vsub.f32 1.0, %v5151_v12  ;;  %v9270_v12 = vmax.f32 %v8733_v46, 0.0 }
 0xa14   : > { %v5153_v40 = vmul.f32 %v5609_v21, %v5152_v3 }
 0xa16   : > { %v5154_v34 = vadd.f32 %v5609_v21, %v5153_v40  ;;  %v9272_v40 = vmax.f32 %v8741_v19, 0.0 }
 0xa18   : > { %v5158_v31 = vsel %vm5157_vm1, %v5609_v21, %v5154_v34 }
 0xa19   : > { %v5163_v1 = vsel %vm5160_vm15, %v5162_v30, %v5158_v31 }
 0xa1a   : > { %v8897_v33 = vperm.slane %v5163_v1, 0 }
 0xa1c   : > { %v5166_v54 = vmul.f32 %v8897_v33, %v4992_v47  ;;  %v5182_v48 = vmul.f32 %v8897_v33, %v5008_v20  ;;  %v5167_v44 = vmul.f32 %v8897_v33, %v4993_v58  ;;  %v5183_v43 = vmul.f32 %v8897_v33, %v5009_v32 }
 0xa1d   : > { %v5168_v49 = vmul.f32 %v8897_v33, %v4994_v23  ;;  %v5184_v47 = vmul.f32 %v8897_v33, %v5010_v11  ;;  %v5169_v2 = vmul.f32 %v8897_v33, %v4995_v8  ;;  %v5185_v58 = vmul.f32 %v8897_v33, %v5011_v28 }
 0xa1e   : > { %5326 = vxpose.xlu0.b32.start [1/16] (narrow) %v5166_v54, 8  ;;  %5358 = vxpose.xlu1.b32.start [1/16] (narrow) %v5182_v48, 8  ;;  %v5170_v16 = vmul.f32 %v8897_v33, %v4996_v41  ;;  %v5186_v23 = vmul.f32 %v8897_v33, %v5012_v57  ;;  %v5171_v9 = vmul.f32 %v8897_v33, %v4997_v0  ;;  %v9261_v11 = vmax.f32 %v8827_v29, 0.0 }
 0xa1f   : > { %v5187_v8 = vmul.f32 %v8897_v33, %v5013_v4  ;;  %v5172_v26 = vmul.f32 %v8897_v33, %v4998_v37  ;;  %v5188_v41 = vmul.f32 %v8897_v33, %v5014_v38  ;;  %v5173_v0 = vmul.f32 %v8897_v33, %v9256_v51  ;;  %v5278_v38 = vpop.trf.xlu0 }
 0xa20   : > { %v5189_v20 = vmul.f32 %v8897_v33, %v9257_v60  ;;  %v5174_v37 = vmul.f32 %v8897_v33, %v9258_v18  ;;  %v5190_v32 = vmul.f32 %v8897_v33, %v9259_v15  ;;  %v5175_v63 = vmul.f32 %v8897_v33, %v9260_v22  ;;  %5394 = vst [vmem:[%s8975_s24 + $0x20] sm:$0xff] %v5278_v38 }
 0xa21   : > { %v5191_v52 = vmul.f32 %v8897_v33, %v9261_v11  ;;  %v5176_v28 = vmul.f32 %v8897_v33, %v9262_v61  ;;  %v5192_v57 = vmul.f32 %v8897_v33, %v9263_v42  ;;  %v5177_v39 = vmul.f32 %v8897_v33, %v9264_v53 }
 0xa22   : > { %v9265_v4 = vmax.f32 %v8845_v45, 0.0  ;;  %v5178_v6 = vmul.f32 %v8897_v33, %v9266_v56  ;;  %v9267_v29 = vmax.f32 %v8848_v24, 0.0  ;;  %v5247_v45 = vpop.trf.xlu1  ;;  %v5179_v35 = vmul.f32 %v8897_v33, %v9268_v50  ;;  %v5310_v24 = vpop.trf.xlu2 }
 0xa23   : > { %5393 = vst [vmem:[%s8975_s24 + $0x18] sm:$0xff] %v5247_v45  ;;  %v5195_v21 = vmul.f32 %v8897_v33, %v9269_v27  ;;  %v5180_v3 = vmul.f32 %v8897_v33, %v9270_v12  ;;  %v5196_v36 = vmul.f32 %v8897_v33, %v9271_v59  ;;  %v5181_v25 = vmul.f32 %v8897_v33, %v9272_v40 }
 0xa24   : > { %v5193_v55 = vmul.f32 %v8897_v33, %v9265_v4  ;;  %v5194_v5 = vmul.f32 %v8897_v33, %v9267_v29  ;;  %5395 = vst [vmem:[%s8975_s24 + $0x28] sm:$0xff] %v5310_v24  ;;  %v5197_v34 = vmul.f32 %v8897_v33, %v9273_v13 }
 0xa26   : > { %5327 = vxpose.xlu0.b32.cont [2/16] (narrow) %v5167_v44, 8  ;;  %5359 = vxpose.xlu1.b32.cont [2/16] (narrow) %v5183_v43, 8 }
 0xa2e   : > { %5328 = vxpose.xlu0.b32.cont [3/16] (narrow) %v5168_v49, 8  ;;  %5360 = vxpose.xlu1.b32.cont [3/16] (narrow) %v5184_v47, 8 }
 0xa36   : > { %5329 = vxpose.xlu0.b32.cont [4/16] (narrow) %v5169_v2, 8  ;;  %5361 = vxpose.xlu1.b32.cont [4/16] (narrow) %v5185_v58, 8 }
 0xa3e   : > { %5330 = vxpose.xlu0.b32.cont [5/16] (narrow) %v5170_v16, 8  ;;  %5362 = vxpose.xlu1.b32.cont [5/16] (narrow) %v5186_v23, 8 }
 0xa46   : > { %5331 = vxpose.xlu0.b32.cont [6/16] (narrow) %v5171_v9, 8  ;;  %5363 = vxpose.xlu1.b32.cont [6/16] (narrow) %v5187_v8, 8 }
 0xa4e   : > { %5332 = vxpose.xlu0.b32.cont [7/16] (narrow) %v5172_v26, 8  ;;  %5364 = vxpose.xlu1.b32.cont [7/16] (narrow) %v5188_v41, 8 }
 0xa56   : > { %5333 = vxpose.xlu0.b32.cont [8/16] (narrow) %v5173_v0, 8  ;;  %5365 = vxpose.xlu1.b32.cont [8/16] (narrow) %v5189_v20, 8 }
 0xa5e   : > { %5334 = vxpose.xlu0.b32.cont [9/16] (narrow) %v5174_v37, 8  ;;  %5366 = vxpose.xlu1.b32.cont [9/16] (narrow) %v5190_v32, 8 }
 0xa66   : > { %5335 = vxpose.xlu0.b32.cont [10/16] (narrow) %v5175_v63, 8  ;;  %5367 = vxpose.xlu1.b32.cont [10/16] (narrow) %v5191_v52, 8 }
 0xa6e   : > { %5336 = vxpose.xlu0.b32.cont [11/16] (narrow) %v5176_v28, 8  ;;  %5368 = vxpose.xlu1.b32.cont [11/16] (narrow) %v5192_v57, 8 }
 0xa76   : > { %5337 = vxpose.xlu0.b32.cont [12/16] (narrow) %v5177_v39, 8  ;;  %5369 = vxpose.xlu1.b32.cont [12/16] (narrow) %v5193_v55, 8 }
 0xa7e   : > { %5338 = vxpose.xlu0.b32.cont [13/16] (narrow) %v5178_v6, 8  ;;  %5370 = vxpose.xlu1.b32.cont [13/16] (narrow) %v5194_v5, 8 }
 0xa86   : > { %5339 = vxpose.xlu0.b32.cont [14/16] (narrow) %v5179_v35, 8  ;;  %5371 = vxpose.xlu1.b32.cont [14/16] (narrow) %v5195_v21, 8 }
 0xa8e   : > { %5340 = vxpose.xlu0.b32.cont [15/16] (narrow) %v5180_v3, 8  ;;  %5372 = vxpose.xlu1.b32.cont [15/16] (narrow) %v5196_v36, 8 }
 0xa96   : > { %5341 = vxpose.xlu0.b32.end [16/16] (narrow) %v5181_v25, 8  ;;  %5373 = vxpose.xlu1.b32.end [16/16] (narrow) %v5197_v34, 8 }
 0xac2   : > { %v5342_v30 = vpop.trf.xlu0  ;;  %v5374_v46 = vpop.trf.xlu1 }
 0xac3   : > { %5396 = vst [vmem:[%s8975_s24 + $0x30] sm:$0xff] %v5342_v30 }
 0xac4   : > { %5397 = vst [vmem:[%s8975_s24 + $0x38] sm:$0xff] %v5374_v46 }
 0xac5 PF: > { %s23_s25 = sadd.s32 1, %s5619_s25  }
 0xac6   : > { %p20_p4 = scmp.ge.s32.totalorder %s23_s25, 4  }
 0xac8   :  { %22 = sbr.rel (!%p20_p4) target bundleno = 1 (0x1), region = 106 }

</bundles_post_ra>
